<compile_context>
chip_gen: v6e
topology: v6e:2x2x1
jax: 0.10.0
libtpu: 0.0.40
codegen_flags: <defaults>
</compile_context>

<pallas_src>
import math

import jax
import jax.numpy as jnp
from jax.experimental import pallas as pl
from jax.experimental.pallas import tpu as pltpu

D_MODEL = 32
NHEAD = 4
HEAD_DIM = D_MODEL // NHEAD
DIM_FF = 512          # TransformerEncoderLayer default dim_feedforward in the spec
NUM_LAYERS = 4
LN_EPS = 1e-5


# ---------------------------------------------------------------------------
# small math helpers
# ---------------------------------------------------------------------------
def _layernorm(x, gamma, beta):
    mu = jnp.mean(x, axis=-1, keepdims=True)
    var = jnp.mean((x - mu) ** 2, axis=-1, keepdims=True)
    return (x - mu) * jax.lax.rsqrt(var + LN_EPS) * gamma + beta


def _erf_poly(x):
    # Abramowitz & Stegun 7.1.26 polynomial erf, |abs error| <= 1.5e-7.
    # Uses only exp/abs/select/arith -> guaranteed Mosaic lowering.
    p = 0.3275911
    a1, a2, a3, a4, a5 = (0.254829592, -0.284496736, 1.421413741,
                          -1.453152027, 1.061405429)
    sgn = jnp.where(x >= 0.0, 1.0, -1.0)
    z = jnp.abs(x)
    t = 1.0 / (1.0 + p * z)
    poly = ((((a5 * t + a4) * t + a3) * t + a2) * t + a1) * t
    return sgn * (1.0 - poly * jnp.exp(-z * z))


def _gelu_exact_kernel(x):
    # PyTorch F.gelu default = exact erf form.
    return 0.5 * x * (1.0 + _erf_poly(x * (1.0 / math.sqrt(2.0))))


def _gelu_exact_ref(x):
    return 0.5 * x * (1.0 + jax.lax.erf(x * (1.0 / math.sqrt(2.0))))


# ---------------------------------------------------------------------------
# fused Pallas kernel: whole MiniTransformer forward, batch folded into rows
# ---------------------------------------------------------------------------
def make_fused_kernel(batch, seq):
    def kernel(x_ref, pos_ref, ing_ref, inb_ref, aw_ref, ab_ref,
               n1g_ref, n1b_ref, wqkv_ref, bqkv_ref, wo_ref, bo_ref,
               n2g_ref, n2b_ref, w1_ref, b1_ref, w2_ref, b2_ref,
               o_ref):
        x = x_ref[...]                                   # (B*S, D) f32

        # torch.nan_to_num(nan=0.0): NaN -> 0, +/-inf -> +/- float32 max.
        # TODO(synk): PyTorch only applies this when a NaN is actually present;
        # unconditional application is identical for finite inputs.
        big = jnp.float32(jnp.finfo(jnp.float32).max)
        x = jnp.where(jnp.isnan(x), jnp.float32(0.0), x)
        x = jnp.clip(x, -big, big)

        # ---- input stage: input_norm -> input_adapter -> relu -> + pos_encoder ----
        xn = _layernorm(x, ing_ref[...], inb_ref[...])
        x = (jnp.dot(xn.astype(jnp.bfloat16), aw_ref[...],
                     preferred_element_type=jnp.float32) + ab_ref[...])
        x = jnp.maximum(x, 0.0) + pos_ref[...]           # dropout = identity (eval)

        for l in range(NUM_LAYERS):                      # static unroll, weights in VMEM
            # ---- self-attention block (pre-LN) ----
            xn = _layernorm(x, n1g_ref[l], n1b_ref[l])
            qkv = (jnp.dot(xn.astype(jnp.bfloat16), wqkv_ref[l],
                           preferred_element_type=jnp.float32)
                   + bqkv_ref[l])                        # (B*S, 3D); q pre-scaled
            rows = []
            for b in range(batch):
                r0 = b * seq
                qkv_b = qkv[r0:r0 + seq, :]              # (S, 3D) sublane-aligned slice
                # K transpose hoisted out of the head loop: one transpose per batch.
                kT = jnp.transpose(qkv_b[:, D_MODEL:2 * D_MODEL])       # (D, S)
                heads = []
                for h in range(NHEAD):
                    lo = h * HEAD_DIM
                    q = qkv_b[:, lo:lo + HEAD_DIM]                       # (S, hd)
                    v = qkv_b[:, 2 * D_MODEL + lo:2 * D_MODEL + lo + HEAD_DIM]
                    s = jnp.dot(q, kT[lo:lo + HEAD_DIM, :],              # sublane slice
                                preferred_element_type=jnp.float32)      # (S, S)
                    s = s - jnp.max(s, axis=-1, keepdims=True)
                    p = jnp.exp(s)
                    p = p * pl.reciprocal(jnp.sum(p, axis=-1, keepdims=True),
                                          approx=True)
                    heads.append(jnp.dot(p, v,
                                         preferred_element_type=jnp.float32))  # (S, hd)
                rows.append(jnp.concatenate(heads, axis=-1))             # (S, D)
            attn = jnp.concatenate(rows, axis=0)                         # (B*S, D)
            # single output-projection matmul for the whole batch
            x = x + (jnp.dot(attn.astype(jnp.bfloat16), wo_ref[l],
                             preferred_element_type=jnp.float32) + bo_ref[l])

            # ---- feed-forward block (pre-LN) ----
            xn2 = _layernorm(x, n2g_ref[l], n2b_ref[l])
            h1 = (jnp.dot(xn2.astype(jnp.bfloat16), w1_ref[l],
                          preferred_element_type=jnp.float32) + b1_ref[l])
            h1 = _gelu_exact_kernel(h1)
            y = (jnp.dot(h1.astype(jnp.bfloat16), w2_ref[l],
                         preferred_element_type=jnp.float32) + b2_ref[l])
            x = x + y                                     # residual (dropout2 = identity)

        o_ref[...] = x

    return kernel


# ---------------------------------------------------------------------------
# host-side parameter re-layout (done once): transpose to (in, out), fold the
# 1/sqrt(head_dim) query scale into the QKV weight/bias, cast matmul weights to
# bf16, stack per layer.
# ---------------------------------------------------------------------------
def prepare_kernel_params(params):
    scale = 1.0 / math.sqrt(HEAD_DIM)
    qkv_scale = jnp.concatenate([
        jnp.full((D_MODEL,), scale, jnp.float32),
        jnp.ones((2 * D_MODEL,), jnp.float32)])
    bf16 = jnp.bfloat16

    def stack(fn):
        return jnp.stack([fn(lp) for lp in params['layers']], axis=0)

    return {
        'pos': params['pos'],                                             # (1, 200, D)
        'in_g': params['in_g'].reshape(1, D_MODEL),
        'in_b': params['in_b'].reshape(1, D_MODEL),
        'adapter_wT': params['adapter_w'].T.astype(bf16),                 # (D, D)
        'adapter_b': params['adapter_b'].reshape(1, D_MODEL),
        'n1g': stack(lambda lp: lp['n1g'].reshape(1, D_MODEL)),           # (L, 1, D)
        'n1b': stack(lambda lp: lp['n1b'].reshape(1, D_MODEL)),
        'wqkvT': stack(lambda lp: (lp['wqkv'].T * qkv_scale[None, :]).astype(bf16)),
        'bqkv': stack(lambda lp: lp['bqkv'].reshape(1, 3 * D_MODEL) * qkv_scale[None, :]),
        'woT': stack(lambda lp: lp['wo'].T.astype(bf16)),                 # (L, D, D)
        'bo': stack(lambda lp: lp['bo'].reshape(1, D_MODEL)),
        'n2g': stack(lambda lp: lp['n2g'].reshape(1, D_MODEL)),
        'n2b': stack(lambda lp: lp['n2b'].reshape(1, D_MODEL)),
        'w1T': stack(lambda lp: lp['w1'].T.astype(bf16)),                 # (L, D, FF)
        'b1': stack(lambda lp: lp['b1'].reshape(1, DIM_FF)),
        'w2T': stack(lambda lp: lp['w2'].T.astype(bf16)),                 # (L, FF, D)
        'b2': stack(lambda lp: lp['b2'].reshape(1, D_MODEL)),
    }


# ---------------------------------------------------------------------------
# wrapper: ONE pallas_call for the full forward, batch folded into the row dim
# ---------------------------------------------------------------------------
def mini_transformer_forward(x, kp):
    B, S, D = x.shape
    BS = B * S
    x2 = x.reshape(BS, D).astype(jnp.float32)
    pos = jnp.tile(kp['pos'][0, :S, :], (B, 1))           # (B*S, D), tiled over batch

    args = (x2, pos, kp['in_g'], kp['in_b'], kp['adapter_wT'], kp['adapter_b'],
            kp['n1g'], kp['n1b'], kp['wqkvT'], kp['bqkv'], kp['woT'], kp['bo'],
            kp['n2g'], kp['n2b'], kp['w1T'], kp['b1'], kp['w2T'], kp['b2'])

    def whole(a):
        nd = a.ndim
        return pl.BlockSpec(a.shape, lambda i: (0,) * nd)   # whole array, VMEM-resident

    out2 = pl.pallas_call(
        make_fused_kernel(B, S),
        out_shape=jax.ShapeDtypeStruct((BS, D), jnp.float32),
        grid=(1,),                                         # single fat block
        in_specs=[whole(a) for a in args],
        out_specs=pl.BlockSpec((BS, D), lambda i: (0, 0)),
        compiler_params=pltpu.CompilerParams(
            dimension_semantics=("arbitrary",)),
    )(*args)
    return out2.reshape(B, S, D)


# ---------------------------------------------------------------------------
# pure-JAX reference (full f32, exact erf) for a correctness check
# ---------------------------------------------------------------------------
def reference_forward(x, params):
    x = jnp.nan_to_num(x)
    x = _layernorm(x, params['in_g'], params['in_b'])
    x = jnp.einsum('bsd,od->bso', x, params['adapter_w']) + params['adapter_b']
    x = jnp.maximum(x, 0.0)
    x = x + params['pos'][:, :x.shape[1], :]
    for lp in params['layers']:
        r = x
        xn = _layernorm(x, lp['n1g'], lp['n1b'])
        qkv = jnp.einsum('bsd,od->bso', xn, lp['wqkv']) + lp['bqkv']
        q, k, v = jnp.split(qkv, 3, axis=-1)
        B, S, _ = q.shape
        qh = q.reshape(B, S, NHEAD, HEAD_DIM)
        kh = k.reshape(B, S, NHEAD, HEAD_DIM)
        vh = v.reshape(B, S, NHEAD, HEAD_DIM)
        s = jnp.einsum('bqhd,bkhd->bhqk', qh, kh) / math.sqrt(HEAD_DIM)
        p = jax.nn.softmax(s, axis=-1)
        a = jnp.einsum('bhqk,bkhd->bqhd', p, vh).reshape(B, S, D_MODEL)
        a = jnp.einsum('bsd,od->bso', a, lp['wo']) + lp['bo']
        x = r + a
        r2 = x
        xn2 = _layernorm(x, lp['n2g'], lp['n2b'])
        h = _gelu_exact_ref(jnp.einsum('bsd,fd->bsf', xn2, lp['w1']) + lp['b1'])
        y = jnp.einsum('bsf,df->bsd', h, lp['w2']) + lp['b2']
        x = r2 + y
    return x


# ---------------------------------------------------------------------------
# deterministic parameter init (synthetic; mirrors the PyTorch __init__ shapes)
# ---------------------------------------------------------------------------
def init_params(key):
    ks = jax.random.split(key, 2 + 4 * NUM_LAYERS)

    def w(k, shape, std=0.02):
        return std * jax.random.normal(k, shape, dtype=jnp.float32)

    params = {
        'pos': w(ks[0], (1, 200, D_MODEL)),                     # self.pos_encoder
        'in_g': jnp.ones((1, D_MODEL), jnp.float32),            # input_norm.weight
        'in_b': jnp.zeros((1, D_MODEL), jnp.float32),           # input_norm.bias
        'adapter_w': w(ks[1], (D_MODEL, D_MODEL)),              # input_adapter.weight
        'adapter_b': jnp.zeros((1, D_MODEL), jnp.float32),      # input_adapter.bias
        'layers': [],
    }
    for i in range(NUM_LAYERS):
        kk = jax.random.split(ks[2 + i], 4)
        params['layers'].append({
            'n1g': jnp.ones((1, D_MODEL), jnp.float32),
            'n1b': jnp.zeros((1, D_MODEL), jnp.float32),
            'wqkv': w(kk[0], (3 * D_MODEL, D_MODEL)),           # in_proj_weight
            'bqkv': jnp.zeros((1, 3 * D_MODEL), jnp.float32),   # in_proj_bias
            'wo': w(kk[1], (D_MODEL, D_MODEL)),                 # out_proj.weight
            'bo': jnp.zeros((1, D_MODEL), jnp.float32),
            'n2g': jnp.ones((1, D_MODEL), jnp.float32),
            'n2b': jnp.zeros((1, D_MODEL), jnp.float32),
            'w1': w(kk[2], (DIM_FF, D_MODEL)),                  # linear1.weight
            'b1': jnp.zeros((1, DIM_FF), jnp.float32),
            'w2': w(kk[3], (D_MODEL, DIM_FF)),                  # linear2.weight
            'b2': jnp.zeros((1, D_MODEL), jnp.float32),
        })
    return params


if __name__ == "__main__":
    key = jax.random.PRNGKey(0)
    pkey, xkey = jax.random.split(key)
    params = init_params(pkey)
    kparams = prepare_kernel_params(params)          # host-side re-layout, once

    B, S = 2, 8
    x = jax.random.normal(xkey, (B, S, D_MODEL), dtype=jnp.float32)

    out = jax.block_until_ready(mini_transformer_forward(x, kparams))

    ref = reference_forward(x, params)
    assert out.shape == (B, S, D_MODEL)
    assert bool(jnp.all(jnp.isfinite(out)))
    max_err = float(jnp.max(jnp.abs(out - ref)))
    assert bool(jnp.allclose(out, ref, atol=1e-2, rtol=1e-2)), max_err

    print("KERNEL_OK")
</pallas_src>

<mosaic_0001>
module attributes {stable_mosaic.version = 11 : i64} {
  func.func @kernel(%arg0: i32, %arg1: memref<16x32xf32, #tpu.memory_space<vmem>>, %arg2: memref<16x32xf32, #tpu.memory_space<vmem>>, %arg3: memref<1x32xf32, #tpu.memory_space<vmem>>, %arg4: memref<1x32xf32, #tpu.memory_space<vmem>>, %arg5: memref<32x32xbf16, #tpu.memory_space<vmem>>, %arg6: memref<1x32xf32, #tpu.memory_space<vmem>>, %arg7: memref<4x1x32xf32, #tpu.memory_space<vmem>>, %arg8: memref<4x1x32xf32, #tpu.memory_space<vmem>>, %arg9: memref<4x32x96xbf16, #tpu.memory_space<vmem>>, %arg10: memref<4x1x96xf32, #tpu.memory_space<vmem>>, %arg11: memref<4x32x32xbf16, #tpu.memory_space<vmem>>, %arg12: memref<4x1x32xf32, #tpu.memory_space<vmem>>, %arg13: memref<4x1x32xf32, #tpu.memory_space<vmem>>, %arg14: memref<4x1x32xf32, #tpu.memory_space<vmem>>, %arg15: memref<4x32x512xbf16, #tpu.memory_space<vmem>>, %arg16: memref<4x1x512xf32, #tpu.memory_space<vmem>>, %arg17: memref<4x512x32xbf16, #tpu.memory_space<vmem>>, %arg18: memref<4x1x32xf32, #tpu.memory_space<vmem>>, %arg19: memref<16x32xf32, #tpu.memory_space<vmem>>) attributes {dimension_semantics = [#tpu.dimension_semantics<arbitrary>], iteration_bounds = array<i64: 1>, scalar_prefetch = 0 : i64, scratch_operands = 0 : i64, tpu.core_type = #tpu.core_type<tc>, window_params = [{pipeline_mode = #tpu.pipeline_mode<synchronous>, transform_indices = @transform_0, window_bounds = array<i64: 16, 32>}, {pipeline_mode = #tpu.pipeline_mode<synchronous>, transform_indices = @transform_1, window_bounds = array<i64: 16, 32>}, {pipeline_mode = #tpu.pipeline_mode<synchronous>, transform_indices = @transform_2, window_bounds = array<i64: 1, 32>}, {pipeline_mode = #tpu.pipeline_mode<synchronous>, transform_indices = @transform_3, window_bounds = array<i64: 1, 32>}, {pipeline_mode = #tpu.pipeline_mode<synchronous>, transform_indices = @transform_4, window_bounds = array<i64: 32, 32>}, {pipeline_mode = #tpu.pipeline_mode<synchronous>, transform_indices = @transform_5, window_bounds = array<i64: 1, 32>}, {pipeline_mode = #tpu.pipeline_mode<synchronous>, transform_indices = @transform_6, window_bounds = array<i64: 4, 1, 32>}, {pipeline_mode = #tpu.pipeline_mode<synchronous>, transform_indices = @transform_7, window_bounds = array<i64: 4, 1, 32>}, {pipeline_mode = #tpu.pipeline_mode<synchronous>, transform_indices = @transform_8, window_bounds = array<i64: 4, 32, 96>}, {pipeline_mode = #tpu.pipeline_mode<synchronous>, transform_indices = @transform_9, window_bounds = array<i64: 4, 1, 96>}, {pipeline_mode = #tpu.pipeline_mode<synchronous>, transform_indices = @transform_10, window_bounds = array<i64: 4, 32, 32>}, {pipeline_mode = #tpu.pipeline_mode<synchronous>, transform_indices = @transform_11, window_bounds = array<i64: 4, 1, 32>}, {pipeline_mode = #tpu.pipeline_mode<synchronous>, transform_indices = @transform_12, window_bounds = array<i64: 4, 1, 32>}, {pipeline_mode = #tpu.pipeline_mode<synchronous>, transform_indices = @transform_13, window_bounds = array<i64: 4, 1, 32>}, {pipeline_mode = #tpu.pipeline_mode<synchronous>, transform_indices = @transform_14, window_bounds = array<i64: 4, 32, 512>}, {pipeline_mode = #tpu.pipeline_mode<synchronous>, transform_indices = @transform_15, window_bounds = array<i64: 4, 1, 512>}, {pipeline_mode = #tpu.pipeline_mode<synchronous>, transform_indices = @transform_16, window_bounds = array<i64: 4, 512, 32>}, {pipeline_mode = #tpu.pipeline_mode<synchronous>, transform_indices = @transform_17, window_bounds = array<i64: 4, 1, 32>}, {pipeline_mode = #tpu.pipeline_mode<synchronous>, transform_indices = @transform_18, window_bounds = array<i64: 16, 32>}]} {
    %c0 = arith.constant 0 : index
    %c0_0 = arith.constant 0 : index
    %0 = vector.load %arg1[%c0, %c0_0] : memref<16x32xf32, #tpu.memory_space<vmem>>, vector<16x32xf32>
    %1 = arith.cmpf one, %0, %0 : vector<16x32xf32>
    %cst = arith.constant 0.000000e+00 : f32
    %2 = vector.broadcast %cst : f32 to vector<16x32xf32>
    %3 = arith.select %1, %2, %0 : vector<16x32xi1>, vector<16x32xf32>
    %cst_1 = arith.constant 0.000000e+00 : f32
    %cst_2 = arith.constant 3.40282347E+38 : f32
    %4 = arith.subf %cst_1, %cst_2 : f32
    %cst_3 = arith.constant 3.40282347E+38 : f32
    %5 = vector.broadcast %4 : f32 to vector<16x32xf32>
    %6 = arith.maximumf %5, %3 : vector<16x32xf32>
    %7 = vector.broadcast %cst_3 : f32 to vector<16x32xf32>
    %8 = arith.minimumf %7, %6 : vector<16x32xf32>
    %c0_4 = arith.constant 0 : index
    %c0_5 = arith.constant 0 : index
    %9 = vector.load %arg3[%c0_4, %c0_5] : memref<1x32xf32, #tpu.memory_space<vmem>>, vector<1x32xf32>
    %c0_6 = arith.constant 0 : index
    %c0_7 = arith.constant 0 : index
    %10 = vector.load %arg4[%c0_6, %c0_7] : memref<1x32xf32, #tpu.memory_space<vmem>>, vector<1x32xf32>
    %cst_8 = arith.constant dense<0.000000e+00> : vector<16xf32>
    %11 = vector.multi_reduction <add>, %8, %cst_8 [1] : vector<16x32xf32> to vector<16xf32>
    %12 = vector.shape_cast %11 : vector<16xf32> to vector<16x1xf32>
    %cst_9 = arith.constant 3.200000e+01 : f32
    %13 = vector.broadcast %cst_9 : f32 to vector<16x1xf32>
    %14 = arith.divf %12, %13 : vector<16x1xf32>
    %15 = vector.broadcast %14 : vector<16x1xf32> to vector<16x32xf32>
    %16 = arith.subf %8, %15 : vector<16x32xf32>
    %17 = arith.mulf %16, %16 : vector<16x32xf32>
    %cst_10 = arith.constant dense<0.000000e+00> : vector<16xf32>
    %18 = vector.multi_reduction <add>, %17, %cst_10 [1] : vector<16x32xf32> to vector<16xf32>
    %19 = vector.shape_cast %18 : vector<16xf32> to vector<16x1xf32>
    %cst_11 = arith.constant 3.200000e+01 : f32
    %20 = vector.broadcast %cst_11 : f32 to vector<16x1xf32>
    %21 = arith.divf %19, %20 : vector<16x1xf32>
    %22 = vector.broadcast %14 : vector<16x1xf32> to vector<16x32xf32>
    %23 = arith.subf %8, %22 : vector<16x32xf32>
    %cst_12 = arith.constant 9.99999974E-6 : f32
    %24 = vector.broadcast %cst_12 : f32 to vector<16x1xf32>
    %25 = arith.addf %21, %24 : vector<16x1xf32>
    %26 = math.rsqrt %25 : vector<16x1xf32>
    %27 = vector.broadcast %26 : vector<16x1xf32> to vector<16x32xf32>
    %28 = arith.mulf %23, %27 : vector<16x32xf32>
    %29 = vector.broadcast %9 : vector<1x32xf32> to vector<16x32xf32>
    %30 = arith.mulf %28, %29 : vector<16x32xf32>
    %31 = vector.broadcast %10 : vector<1x32xf32> to vector<16x32xf32>
    %32 = arith.addf %30, %31 : vector<16x32xf32>
    %33 = arith.truncf %32 : vector<16x32xf32> to vector<16x32xbf16>
    %c0_13 = arith.constant 0 : index
    %c0_14 = arith.constant 0 : index
    %34 = vector.load %arg5[%c0_13, %c0_14] : memref<32x32xbf16, #tpu.memory_space<vmem>>, vector<32x32xbf16>
    %cst_15 = arith.constant dense<0.000000e+00> : vector<16x32xf32>
    %35 = tpu.matmul %33, %34, %cst_15 {dimension_numbers = #tpu.dot_dimension_numbers<[1], [0], [0], [1], [0, 0, 1, 1], [], []>} : vector<16x32xbf16>, vector<32x32xbf16>, vector<16x32xf32> -> vector<16x32xf32>
    %c0_16 = arith.constant 0 : index
    %c0_17 = arith.constant 0 : index
    %36 = vector.load %arg6[%c0_16, %c0_17] : memref<1x32xf32, #tpu.memory_space<vmem>>, vector<1x32xf32>
    %37 = vector.broadcast %36 : vector<1x32xf32> to vector<16x32xf32>
    %38 = arith.addf %35, %37 : vector<16x32xf32>
    %cst_18 = arith.constant 0.000000e+00 : f32
    %39 = vector.broadcast %cst_18 : f32 to vector<16x32xf32>
    %40 = arith.maximumf %38, %39 : vector<16x32xf32>
    %c0_19 = arith.constant 0 : index
    %c0_20 = arith.constant 0 : index
    %41 = vector.load %arg2[%c0_19, %c0_20] : memref<16x32xf32, #tpu.memory_space<vmem>>, vector<16x32xf32>
    %42 = arith.addf %40, %41 : vector<16x32xf32>
    %c0_21 = arith.constant 0 : index
    %c0_22 = arith.constant 0 : index
    %c0_23 = arith.constant 0 : index
    %43 = vector.load %arg7[%c0_21, %c0_22, %c0_23] : memref<4x1x32xf32, #tpu.memory_space<vmem>>, vector<1x1x32xf32>
    %44 = vector.shape_cast %43 : vector<1x1x32xf32> to vector<1x32xf32>
    %c0_24 = arith.constant 0 : index
    %c0_25 = arith.constant 0 : index
    %c0_26 = arith.constant 0 : index
    %45 = vector.load %arg8[%c0_24, %c0_25, %c0_26] : memref<4x1x32xf32, #tpu.memory_space<vmem>>, vector<1x1x32xf32>
    %46 = vector.shape_cast %45 : vector<1x1x32xf32> to vector<1x32xf32>
    %cst_27 = arith.constant dense<0.000000e+00> : vector<16xf32>
    %47 = vector.multi_reduction <add>, %42, %cst_27 [1] : vector<16x32xf32> to vector<16xf32>
    %48 = vector.shape_cast %47 : vector<16xf32> to vector<16x1xf32>
    %cst_28 = arith.constant 3.200000e+01 : f32
    %49 = vector.broadcast %cst_28 : f32 to vector<16x1xf32>
    %50 = arith.divf %48, %49 : vector<16x1xf32>
    %51 = vector.broadcast %50 : vector<16x1xf32> to vector<16x32xf32>
    %52 = arith.subf %42, %51 : vector<16x32xf32>
    %53 = arith.mulf %52, %52 : vector<16x32xf32>
    %cst_29 = arith.constant dense<0.000000e+00> : vector<16xf32>
    %54 = vector.multi_reduction <add>, %53, %cst_29 [1] : vector<16x32xf32> to vector<16xf32>
    %55 = vector.shape_cast %54 : vector<16xf32> to vector<16x1xf32>
    %cst_30 = arith.constant 3.200000e+01 : f32
    %56 = vector.broadcast %cst_30 : f32 to vector<16x1xf32>
    %57 = arith.divf %55, %56 : vector<16x1xf32>
    %58 = vector.broadcast %50 : vector<16x1xf32> to vector<16x32xf32>
    %59 = arith.subf %42, %58 : vector<16x32xf32>
    %cst_31 = arith.constant 9.99999974E-6 : f32
    %60 = vector.broadcast %cst_31 : f32 to vector<16x1xf32>
    %61 = arith.addf %57, %60 : vector<16x1xf32>
    %62 = math.rsqrt %61 : vector<16x1xf32>
    %63 = vector.broadcast %62 : vector<16x1xf32> to vector<16x32xf32>
    %64 = arith.mulf %59, %63 : vector<16x32xf32>
    %65 = vector.broadcast %44 : vector<1x32xf32> to vector<16x32xf32>
    %66 = arith.mulf %64, %65 : vector<16x32xf32>
    %67 = vector.broadcast %46 : vector<1x32xf32> to vector<16x32xf32>
    %68 = arith.addf %66, %67 : vector<16x32xf32>
    %69 = arith.truncf %68 : vector<16x32xf32> to vector<16x32xbf16>
    %c0_32 = arith.constant 0 : index
    %c0_33 = arith.constant 0 : index
    %c0_34 = arith.constant 0 : index
    %70 = vector.load %arg9[%c0_32, %c0_33, %c0_34] : memref<4x32x96xbf16, #tpu.memory_space<vmem>>, vector<1x32x96xbf16>
    %71 = vector.shape_cast %70 : vector<1x32x96xbf16> to vector<32x96xbf16>
    %cst_35 = arith.constant dense<0.000000e+00> : vector<16x96xf32>
    %72 = tpu.matmul %69, %71, %cst_35 {dimension_numbers = #tpu.dot_dimension_numbers<[1], [0], [0], [1], [0, 0, 1, 1], [], []>} : vector<16x32xbf16>, vector<32x96xbf16>, vector<16x96xf32> -> vector<16x96xf32>
    %c0_36 = arith.constant 0 : index
    %c0_37 = arith.constant 0 : index
    %c0_38 = arith.constant 0 : index
    %73 = vector.load %arg10[%c0_36, %c0_37, %c0_38] : memref<4x1x96xf32, #tpu.memory_space<vmem>>, vector<1x1x96xf32>
    %74 = vector.shape_cast %73 : vector<1x1x96xf32> to vector<1x96xf32>
    %75 = vector.broadcast %74 : vector<1x96xf32> to vector<16x96xf32>
    %76 = arith.addf %72, %75 : vector<16x96xf32>
    %77 = vector.extract_strided_slice %76 {offsets = [0, 0], sizes = [8, 96], strides = [1, 1]} : vector<16x96xf32> to vector<8x96xf32>
    %78 = vector.extract_strided_slice %77 {offsets = [0, 32], sizes = [8, 32], strides = [1, 1]} : vector<8x96xf32> to vector<8x32xf32>
    %79 = tpu.transpose %78, [1, 0] : vector<8x32xf32> -> vector<32x8xf32>
    %80 = vector.extract_strided_slice %77 {offsets = [0, 0], sizes = [8, 8], strides = [1, 1]} : vector<8x96xf32> to vector<8x8xf32>
    %81 = vector.extract_strided_slice %77 {offsets = [0, 64], sizes = [8, 8], strides = [1, 1]} : vector<8x96xf32> to vector<8x8xf32>
    %82 = vector.extract_strided_slice %79 {offsets = [0, 0], sizes = [8, 8], strides = [1, 1]} : vector<32x8xf32> to vector<8x8xf32>
    %cst_39 = arith.constant dense<0.000000e+00> : vector<8x8xf32>
    %83 = tpu.matmul %80, %82, %cst_39 {dimension_numbers = #tpu.dot_dimension_numbers<[1], [0], [0], [1], [0, 0, 1, 1], [], []>} : vector<8x8xf32>, vector<8x8xf32>, vector<8x8xf32> -> vector<8x8xf32>
    %cst_40 = arith.constant dense<0xFF800000> : vector<8xf32>
    %84 = vector.multi_reduction <maximumf>, %83, %cst_40 [1] : vector<8x8xf32> to vector<8xf32>
    %85 = vector.shape_cast %84 : vector<8xf32> to vector<8x1xf32>
    %86 = vector.broadcast %85 : vector<8x1xf32> to vector<8x8xf32>
    %87 = arith.subf %83, %86 : vector<8x8xf32>
    %88 = math.exp %87 : vector<8x8xf32>
    %cst_41 = arith.constant dense<0.000000e+00> : vector<8xf32>
    %89 = vector.multi_reduction <add>, %88, %cst_41 [1] : vector<8x8xf32> to vector<8xf32>
    %90 = vector.shape_cast %89 : vector<8xf32> to vector<8x1xf32>
    %91 = tpu.reciprocal %90 {approx = true} : vector<8x1xf32> -> vector<8x1xf32>
    %92 = vector.broadcast %91 : vector<8x1xf32> to vector<8x8xf32>
    %93 = arith.mulf %88, %92 : vector<8x8xf32>
    %cst_42 = arith.constant dense<0.000000e+00> : vector<8x8xf32>
    %94 = tpu.matmul %93, %81, %cst_42 {dimension_numbers = #tpu.dot_dimension_numbers<[1], [0], [0], [1], [0, 0, 1, 1], [], []>} : vector<8x8xf32>, vector<8x8xf32>, vector<8x8xf32> -> vector<8x8xf32>
    %95 = vector.extract_strided_slice %77 {offsets = [0, 8], sizes = [8, 8], strides = [1, 1]} : vector<8x96xf32> to vector<8x8xf32>
    %96 = vector.extract_strided_slice %77 {offsets = [0, 72], sizes = [8, 8], strides = [1, 1]} : vector<8x96xf32> to vector<8x8xf32>
    %97 = vector.extract_strided_slice %79 {offsets = [8, 0], sizes = [8, 8], strides = [1, 1]} : vector<32x8xf32> to vector<8x8xf32>
    %cst_43 = arith.constant dense<0.000000e+00> : vector<8x8xf32>
    %98 = tpu.matmul %95, %97, %cst_43 {dimension_numbers = #tpu.dot_dimension_numbers<[1], [0], [0], [1], [0, 0, 1, 1], [], []>} : vector<8x8xf32>, vector<8x8xf32>, vector<8x8xf32> -> vector<8x8xf32>
    %cst_44 = arith.constant dense<0xFF800000> : vector<8xf32>
    %99 = vector.multi_reduction <maximumf>, %98, %cst_44 [1] : vector<8x8xf32> to vector<8xf32>
    %100 = vector.shape_cast %99 : vector<8xf32> to vector<8x1xf32>
    %101 = vector.broadcast %100 : vector<8x1xf32> to vector<8x8xf32>
    %102 = arith.subf %98, %101 : vector<8x8xf32>
    %103 = math.exp %102 : vector<8x8xf32>
    %cst_45 = arith.constant dense<0.000000e+00> : vector<8xf32>
    %104 = vector.multi_reduction <add>, %103, %cst_45 [1] : vector<8x8xf32> to vector<8xf32>
    %105 = vector.shape_cast %104 : vector<8xf32> to vector<8x1xf32>
    %106 = tpu.reciprocal %105 {approx = true} : vector<8x1xf32> -> vector<8x1xf32>
    %107 = vector.broadcast %106 : vector<8x1xf32> to vector<8x8xf32>
    %108 = arith.mulf %103, %107 : vector<8x8xf32>
    %cst_46 = arith.constant dense<0.000000e+00> : vector<8x8xf32>
    %109 = tpu.matmul %108, %96, %cst_46 {dimension_numbers = #tpu.dot_dimension_numbers<[1], [0], [0], [1], [0, 0, 1, 1], [], []>} : vector<8x8xf32>, vector<8x8xf32>, vector<8x8xf32> -> vector<8x8xf32>
    %110 = vector.extract_strided_slice %77 {offsets = [0, 16], sizes = [8, 8], strides = [1, 1]} : vector<8x96xf32> to vector<8x8xf32>
    %111 = vector.extract_strided_slice %77 {offsets = [0, 80], sizes = [8, 8], strides = [1, 1]} : vector<8x96xf32> to vector<8x8xf32>
    %112 = vector.extract_strided_slice %79 {offsets = [16, 0], sizes = [8, 8], strides = [1, 1]} : vector<32x8xf32> to vector<8x8xf32>
    %cst_47 = arith.constant dense<0.000000e+00> : vector<8x8xf32>
    %113 = tpu.matmul %110, %112, %cst_47 {dimension_numbers = #tpu.dot_dimension_numbers<[1], [0], [0], [1], [0, 0, 1, 1], [], []>} : vector<8x8xf32>, vector<8x8xf32>, vector<8x8xf32> -> vector<8x8xf32>
    %cst_48 = arith.constant dense<0xFF800000> : vector<8xf32>
    %114 = vector.multi_reduction <maximumf>, %113, %cst_48 [1] : vector<8x8xf32> to vector<8xf32>
    %115 = vector.shape_cast %114 : vector<8xf32> to vector<8x1xf32>
    %116 = vector.broadcast %115 : vector<8x1xf32> to vector<8x8xf32>
    %117 = arith.subf %113, %116 : vector<8x8xf32>
    %118 = math.exp %117 : vector<8x8xf32>
    %cst_49 = arith.constant dense<0.000000e+00> : vector<8xf32>
    %119 = vector.multi_reduction <add>, %118, %cst_49 [1] : vector<8x8xf32> to vector<8xf32>
    %120 = vector.shape_cast %119 : vector<8xf32> to vector<8x1xf32>
    %121 = tpu.reciprocal %120 {approx = true} : vector<8x1xf32> -> vector<8x1xf32>
    %122 = vector.broadcast %121 : vector<8x1xf32> to vector<8x8xf32>
    %123 = arith.mulf %118, %122 : vector<8x8xf32>
    %cst_50 = arith.constant dense<0.000000e+00> : vector<8x8xf32>
    %124 = tpu.matmul %123, %111, %cst_50 {dimension_numbers = #tpu.dot_dimension_numbers<[1], [0], [0], [1], [0, 0, 1, 1], [], []>} : vector<8x8xf32>, vector<8x8xf32>, vector<8x8xf32> -> vector<8x8xf32>
    %125 = vector.extract_strided_slice %77 {offsets = [0, 24], sizes = [8, 8], strides = [1, 1]} : vector<8x96xf32> to vector<8x8xf32>
    %126 = vector.extract_strided_slice %77 {offsets = [0, 88], sizes = [8, 8], strides = [1, 1]} : vector<8x96xf32> to vector<8x8xf32>
    %127 = vector.extract_strided_slice %79 {offsets = [24, 0], sizes = [8, 8], strides = [1, 1]} : vector<32x8xf32> to vector<8x8xf32>
    %cst_51 = arith.constant dense<0.000000e+00> : vector<8x8xf32>
    %128 = tpu.matmul %125, %127, %cst_51 {dimension_numbers = #tpu.dot_dimension_numbers<[1], [0], [0], [1], [0, 0, 1, 1], [], []>} : vector<8x8xf32>, vector<8x8xf32>, vector<8x8xf32> -> vector<8x8xf32>
    %cst_52 = arith.constant dense<0xFF800000> : vector<8xf32>
    %129 = vector.multi_reduction <maximumf>, %128, %cst_52 [1] : vector<8x8xf32> to vector<8xf32>
    %130 = vector.shape_cast %129 : vector<8xf32> to vector<8x1xf32>
    %131 = vector.broadcast %130 : vector<8x1xf32> to vector<8x8xf32>
    %132 = arith.subf %128, %131 : vector<8x8xf32>
    %133 = math.exp %132 : vector<8x8xf32>
    %cst_53 = arith.constant dense<0.000000e+00> : vector<8xf32>
    %134 = vector.multi_reduction <add>, %133, %cst_53 [1] : vector<8x8xf32> to vector<8xf32>
    %135 = vector.shape_cast %134 : vector<8xf32> to vector<8x1xf32>
    %136 = tpu.reciprocal %135 {approx = true} : vector<8x1xf32> -> vector<8x1xf32>
    %137 = vector.broadcast %136 : vector<8x1xf32> to vector<8x8xf32>
    %138 = arith.mulf %133, %137 : vector<8x8xf32>
    %cst_54 = arith.constant dense<0.000000e+00> : vector<8x8xf32>
    %139 = tpu.matmul %138, %126, %cst_54 {dimension_numbers = #tpu.dot_dimension_numbers<[1], [0], [0], [1], [0, 0, 1, 1], [], []>} : vector<8x8xf32>, vector<8x8xf32>, vector<8x8xf32> -> vector<8x8xf32>
    %140 = tpu.concatenate %94, %109, %124, %139 in 1 : vector<8x8xf32>, vector<8x8xf32>, vector<8x8xf32>, vector<8x8xf32> -> vector<8x32xf32>
    %141 = vector.extract_strided_slice %76 {offsets = [8, 0], sizes = [8, 96], strides = [1, 1]} : vector<16x96xf32> to vector<8x96xf32>
    %142 = vector.extract_strided_slice %141 {offsets = [0, 32], sizes = [8, 32], strides = [1, 1]} : vector<8x96xf32> to vector<8x32xf32>
    %143 = tpu.transpose %142, [1, 0] : vector<8x32xf32> -> vector<32x8xf32>
    %144 = vector.extract_strided_slice %141 {offsets = [0, 0], sizes = [8, 8], strides = [1, 1]} : vector<8x96xf32> to vector<8x8xf32>
    %145 = vector.extract_strided_slice %141 {offsets = [0, 64], sizes = [8, 8], strides = [1, 1]} : vector<8x96xf32> to vector<8x8xf32>
    %146 = vector.extract_strided_slice %143 {offsets = [0, 0], sizes = [8, 8], strides = [1, 1]} : vector<32x8xf32> to vector<8x8xf32>
    %cst_55 = arith.constant dense<0.000000e+00> : vector<8x8xf32>
    %147 = tpu.matmul %144, %146, %cst_55 {dimension_numbers = #tpu.dot_dimension_numbers<[1], [0], [0], [1], [0, 0, 1, 1], [], []>} : vector<8x8xf32>, vector<8x8xf32>, vector<8x8xf32> -> vector<8x8xf32>
    %cst_56 = arith.constant dense<0xFF800000> : vector<8xf32>
    %148 = vector.multi_reduction <maximumf>, %147, %cst_56 [1] : vector<8x8xf32> to vector<8xf32>
    %149 = vector.shape_cast %148 : vector<8xf32> to vector<8x1xf32>
    %150 = vector.broadcast %149 : vector<8x1xf32> to vector<8x8xf32>
    %151 = arith.subf %147, %150 : vector<8x8xf32>
    %152 = math.exp %151 : vector<8x8xf32>
    %cst_57 = arith.constant dense<0.000000e+00> : vector<8xf32>
    %153 = vector.multi_reduction <add>, %152, %cst_57 [1] : vector<8x8xf32> to vector<8xf32>
    %154 = vector.shape_cast %153 : vector<8xf32> to vector<8x1xf32>
    %155 = tpu.reciprocal %154 {approx = true} : vector<8x1xf32> -> vector<8x1xf32>
    %156 = vector.broadcast %155 : vector<8x1xf32> to vector<8x8xf32>
    %157 = arith.mulf %152, %156 : vector<8x8xf32>
    %cst_58 = arith.constant dense<0.000000e+00> : vector<8x8xf32>
    %158 = tpu.matmul %157, %145, %cst_58 {dimension_numbers = #tpu.dot_dimension_numbers<[1], [0], [0], [1], [0, 0, 1, 1], [], []>} : vector<8x8xf32>, vector<8x8xf32>, vector<8x8xf32> -> vector<8x8xf32>
    %159 = vector.extract_strided_slice %141 {offsets = [0, 8], sizes = [8, 8], strides = [1, 1]} : vector<8x96xf32> to vector<8x8xf32>
    %160 = vector.extract_strided_slice %141 {offsets = [0, 72], sizes = [8, 8], strides = [1, 1]} : vector<8x96xf32> to vector<8x8xf32>
    %161 = vector.extract_strided_slice %143 {offsets = [8, 0], sizes = [8, 8], strides = [1, 1]} : vector<32x8xf32> to vector<8x8xf32>
    %cst_59 = arith.constant dense<0.000000e+00> : vector<8x8xf32>
    %162 = tpu.matmul %159, %161, %cst_59 {dimension_numbers = #tpu.dot_dimension_numbers<[1], [0], [0], [1], [0, 0, 1, 1], [], []>} : vector<8x8xf32>, vector<8x8xf32>, vector<8x8xf32> -> vector<8x8xf32>
    %cst_60 = arith.constant dense<0xFF800000> : vector<8xf32>
    %163 = vector.multi_reduction <maximumf>, %162, %cst_60 [1] : vector<8x8xf32> to vector<8xf32>
    %164 = vector.shape_cast %163 : vector<8xf32> to vector<8x1xf32>
    %165 = vector.broadcast %164 : vector<8x1xf32> to vector<8x8xf32>
    %166 = arith.subf %162, %165 : vector<8x8xf32>
    %167 = math.exp %166 : vector<8x8xf32>
    %cst_61 = arith.constant dense<0.000000e+00> : vector<8xf32>
    %168 = vector.multi_reduction <add>, %167, %cst_61 [1] : vector<8x8xf32> to vector<8xf32>
    %169 = vector.shape_cast %168 : vector<8xf32> to vector<8x1xf32>
    %170 = tpu.reciprocal %169 {approx = true} : vector<8x1xf32> -> vector<8x1xf32>
    %171 = vector.broadcast %170 : vector<8x1xf32> to vector<8x8xf32>
    %172 = arith.mulf %167, %171 : vector<8x8xf32>
    %cst_62 = arith.constant dense<0.000000e+00> : vector<8x8xf32>
    %173 = tpu.matmul %172, %160, %cst_62 {dimension_numbers = #tpu.dot_dimension_numbers<[1], [0], [0], [1], [0, 0, 1, 1], [], []>} : vector<8x8xf32>, vector<8x8xf32>, vector<8x8xf32> -> vector<8x8xf32>
    %174 = vector.extract_strided_slice %141 {offsets = [0, 16], sizes = [8, 8], strides = [1, 1]} : vector<8x96xf32> to vector<8x8xf32>
    %175 = vector.extract_strided_slice %141 {offsets = [0, 80], sizes = [8, 8], strides = [1, 1]} : vector<8x96xf32> to vector<8x8xf32>
    %176 = vector.extract_strided_slice %143 {offsets = [16, 0], sizes = [8, 8], strides = [1, 1]} : vector<32x8xf32> to vector<8x8xf32>
    %cst_63 = arith.constant dense<0.000000e+00> : vector<8x8xf32>
    %177 = tpu.matmul %174, %176, %cst_63 {dimension_numbers = #tpu.dot_dimension_numbers<[1], [0], [0], [1], [0, 0, 1, 1], [], []>} : vector<8x8xf32>, vector<8x8xf32>, vector<8x8xf32> -> vector<8x8xf32>
    %cst_64 = arith.constant dense<0xFF800000> : vector<8xf32>
    %178 = vector.multi_reduction <maximumf>, %177, %cst_64 [1] : vector<8x8xf32> to vector<8xf32>
    %179 = vector.shape_cast %178 : vector<8xf32> to vector<8x1xf32>
    %180 = vector.broadcast %179 : vector<8x1xf32> to vector<8x8xf32>
    %181 = arith.subf %177, %180 : vector<8x8xf32>
    %182 = math.exp %181 : vector<8x8xf32>
    %cst_65 = arith.constant dense<0.000000e+00> : vector<8xf32>
    %183 = vector.multi_reduction <add>, %182, %cst_65 [1] : vector<8x8xf32> to vector<8xf32>
    %184 = vector.shape_cast %183 : vector<8xf32> to vector<8x1xf32>
    %185 = tpu.reciprocal %184 {approx = true} : vector<8x1xf32> -> vector<8x1xf32>
    %186 = vector.broadcast %185 : vector<8x1xf32> to vector<8x8xf32>
    %187 = arith.mulf %182, %186 : vector<8x8xf32>
    %cst_66 = arith.constant dense<0.000000e+00> : vector<8x8xf32>
    %188 = tpu.matmul %187, %175, %cst_66 {dimension_numbers = #tpu.dot_dimension_numbers<[1], [0], [0], [1], [0, 0, 1, 1], [], []>} : vector<8x8xf32>, vector<8x8xf32>, vector<8x8xf32> -> vector<8x8xf32>
    %189 = vector.extract_strided_slice %141 {offsets = [0, 24], sizes = [8, 8], strides = [1, 1]} : vector<8x96xf32> to vector<8x8xf32>
    %190 = vector.extract_strided_slice %141 {offsets = [0, 88], sizes = [8, 8], strides = [1, 1]} : vector<8x96xf32> to vector<8x8xf32>
    %191 = vector.extract_strided_slice %143 {offsets = [24, 0], sizes = [8, 8], strides = [1, 1]} : vector<32x8xf32> to vector<8x8xf32>
    %cst_67 = arith.constant dense<0.000000e+00> : vector<8x8xf32>
    %192 = tpu.matmul %189, %191, %cst_67 {dimension_numbers = #tpu.dot_dimension_numbers<[1], [0], [0], [1], [0, 0, 1, 1], [], []>} : vector<8x8xf32>, vector<8x8xf32>, vector<8x8xf32> -> vector<8x8xf32>
    %cst_68 = arith.constant dense<0xFF800000> : vector<8xf32>
    %193 = vector.multi_reduction <maximumf>, %192, %cst_68 [1] : vector<8x8xf32> to vector<8xf32>
    %194 = vector.shape_cast %193 : vector<8xf32> to vector<8x1xf32>
    %195 = vector.broadcast %194 : vector<8x1xf32> to vector<8x8xf32>
    %196 = arith.subf %192, %195 : vector<8x8xf32>
    %197 = math.exp %196 : vector<8x8xf32>
    %cst_69 = arith.constant dense<0.000000e+00> : vector<8xf32>
    %198 = vector.multi_reduction <add>, %197, %cst_69 [1] : vector<8x8xf32> to vector<8xf32>
    %199 = vector.shape_cast %198 : vector<8xf32> to vector<8x1xf32>
    %200 = tpu.reciprocal %199 {approx = true} : vector<8x1xf32> -> vector<8x1xf32>
    %201 = vector.broadcast %200 : vector<8x1xf32> to vector<8x8xf32>
    %202 = arith.mulf %197, %201 : vector<8x8xf32>
    %cst_70 = arith.constant dense<0.000000e+00> : vector<8x8xf32>
    %203 = tpu.matmul %202, %190, %cst_70 {dimension_numbers = #tpu.dot_dimension_numbers<[1], [0], [0], [1], [0, 0, 1, 1], [], []>} : vector<8x8xf32>, vector<8x8xf32>, vector<8x8xf32> -> vector<8x8xf32>
    %204 = tpu.concatenate %158, %173, %188, %203 in 1 : vector<8x8xf32>, vector<8x8xf32>, vector<8x8xf32>, vector<8x8xf32> -> vector<8x32xf32>
    %205 = tpu.concatenate %140, %204 in 0 : vector<8x32xf32>, vector<8x32xf32> -> vector<16x32xf32>
    %206 = arith.truncf %205 : vector<16x32xf32> to vector<16x32xbf16>
    %c0_71 = arith.constant 0 : index
    %c0_72 = arith.constant 0 : index
    %c0_73 = arith.constant 0 : index
    %207 = vector.load %arg11[%c0_71, %c0_72, %c0_73] : memref<4x32x32xbf16, #tpu.memory_space<vmem>>, vector<1x32x32xbf16>
    %208 = vector.shape_cast %207 : vector<1x32x32xbf16> to vector<32x32xbf16>
    %cst_74 = arith.constant dense<0.000000e+00> : vector<16x32xf32>
    %209 = tpu.matmul %206, %208, %cst_74 {dimension_numbers = #tpu.dot_dimension_numbers<[1], [0], [0], [1], [0, 0, 1, 1], [], []>} : vector<16x32xbf16>, vector<32x32xbf16>, vector<16x32xf32> -> vector<16x32xf32>
    %c0_75 = arith.constant 0 : index
    %c0_76 = arith.constant 0 : index
    %c0_77 = arith.constant 0 : index
    %210 = vector.load %arg12[%c0_75, %c0_76, %c0_77] : memref<4x1x32xf32, #tpu.memory_space<vmem>>, vector<1x1x32xf32>
    %211 = vector.shape_cast %210 : vector<1x1x32xf32> to vector<1x32xf32>
    %212 = vector.broadcast %211 : vector<1x32xf32> to vector<16x32xf32>
    %213 = arith.addf %209, %212 : vector<16x32xf32>
    %214 = arith.addf %42, %213 : vector<16x32xf32>
    %c0_78 = arith.constant 0 : index
    %c0_79 = arith.constant 0 : index
    %c0_80 = arith.constant 0 : index
    %215 = vector.load %arg13[%c0_78, %c0_79, %c0_80] : memref<4x1x32xf32, #tpu.memory_space<vmem>>, vector<1x1x32xf32>
    %216 = vector.shape_cast %215 : vector<1x1x32xf32> to vector<1x32xf32>
    %c0_81 = arith.constant 0 : index
    %c0_82 = arith.constant 0 : index
    %c0_83 = arith.constant 0 : index
    %217 = vector.load %arg14[%c0_81, %c0_82, %c0_83] : memref<4x1x32xf32, #tpu.memory_space<vmem>>, vector<1x1x32xf32>
    %218 = vector.shape_cast %217 : vector<1x1x32xf32> to vector<1x32xf32>
    %cst_84 = arith.constant dense<0.000000e+00> : vector<16xf32>
    %219 = vector.multi_reduction <add>, %214, %cst_84 [1] : vector<16x32xf32> to vector<16xf32>
    %220 = vector.shape_cast %219 : vector<16xf32> to vector<16x1xf32>
    %cst_85 = arith.constant 3.200000e+01 : f32
    %221 = vector.broadcast %cst_85 : f32 to vector<16x1xf32>
    %222 = arith.divf %220, %221 : vector<16x1xf32>
    %223 = vector.broadcast %222 : vector<16x1xf32> to vector<16x32xf32>
    %224 = arith.subf %214, %223 : vector<16x32xf32>
    %225 = arith.mulf %224, %224 : vector<16x32xf32>
    %cst_86 = arith.constant dense<0.000000e+00> : vector<16xf32>
    %226 = vector.multi_reduction <add>, %225, %cst_86 [1] : vector<16x32xf32> to vector<16xf32>
    %227 = vector.shape_cast %226 : vector<16xf32> to vector<16x1xf32>
    %cst_87 = arith.constant 3.200000e+01 : f32
    %228 = vector.broadcast %cst_87 : f32 to vector<16x1xf32>
    %229 = arith.divf %227, %228 : vector<16x1xf32>
    %230 = vector.broadcast %222 : vector<16x1xf32> to vector<16x32xf32>
    %231 = arith.subf %214, %230 : vector<16x32xf32>
    %cst_88 = arith.constant 9.99999974E-6 : f32
    %232 = vector.broadcast %cst_88 : f32 to vector<16x1xf32>
    %233 = arith.addf %229, %232 : vector<16x1xf32>
    %234 = math.rsqrt %233 : vector<16x1xf32>
    %235 = vector.broadcast %234 : vector<16x1xf32> to vector<16x32xf32>
    %236 = arith.mulf %231, %235 : vector<16x32xf32>
    %237 = vector.broadcast %216 : vector<1x32xf32> to vector<16x32xf32>
    %238 = arith.mulf %236, %237 : vector<16x32xf32>
    %239 = vector.broadcast %218 : vector<1x32xf32> to vector<16x32xf32>
    %240 = arith.addf %238, %239 : vector<16x32xf32>
    %241 = arith.truncf %240 : vector<16x32xf32> to vector<16x32xbf16>
    %c0_89 = arith.constant 0 : index
    %c0_90 = arith.constant 0 : index
    %c0_91 = arith.constant 0 : index
    %242 = vector.load %arg15[%c0_89, %c0_90, %c0_91] : memref<4x32x512xbf16, #tpu.memory_space<vmem>>, vector<1x32x512xbf16>
    %243 = vector.shape_cast %242 : vector<1x32x512xbf16> to vector<32x512xbf16>
    %cst_92 = arith.constant dense<0.000000e+00> : vector<16x512xf32>
    %244 = tpu.matmul %241, %243, %cst_92 {dimension_numbers = #tpu.dot_dimension_numbers<[1], [0], [0], [1], [0, 0, 1, 1], [], []>} : vector<16x32xbf16>, vector<32x512xbf16>, vector<16x512xf32> -> vector<16x512xf32>
    %c0_93 = arith.constant 0 : index
    %c0_94 = arith.constant 0 : index
    %c0_95 = arith.constant 0 : index
    %245 = vector.load %arg16[%c0_93, %c0_94, %c0_95] : memref<4x1x512xf32, #tpu.memory_space<vmem>>, vector<1x1x512xf32>
    %246 = vector.shape_cast %245 : vector<1x1x512xf32> to vector<1x512xf32>
    %247 = vector.broadcast %246 : vector<1x512xf32> to vector<16x512xf32>
    %248 = arith.addf %244, %247 : vector<16x512xf32>
    %cst_96 = arith.constant 5.000000e-01 : f32
    %249 = vector.broadcast %cst_96 : f32 to vector<16x512xf32>
    %250 = arith.mulf %249, %248 : vector<16x512xf32>
    %cst_97 = arith.constant 0.707106769 : f32
    %251 = vector.broadcast %cst_97 : f32 to vector<16x512xf32>
    %252 = arith.mulf %248, %251 : vector<16x512xf32>
    %cst_98 = arith.constant 0.000000e+00 : f32
    %253 = vector.broadcast %cst_98 : f32 to vector<16x512xf32>
    %254 = arith.cmpf oge, %252, %253 : vector<16x512xf32>
    %cst_99 = arith.constant 1.000000e+00 : f32
    %cst_100 = arith.constant -1.000000e+00 : f32
    %255 = vector.broadcast %cst_99 : f32 to vector<16x512xf32>
    %256 = vector.broadcast %cst_100 : f32 to vector<16x512xf32>
    %257 = arith.select %254, %255, %256 : vector<16x512xi1>, vector<16x512xf32>
    %258 = math.absf %252 : vector<16x512xf32>
    %cst_101 = arith.constant 0.327591091 : f32
    %259 = vector.broadcast %cst_101 : f32 to vector<16x512xf32>
    %260 = arith.mulf %259, %258 : vector<16x512xf32>
    %cst_102 = arith.constant 1.000000e+00 : f32
    %261 = vector.broadcast %cst_102 : f32 to vector<16x512xf32>
    %262 = arith.addf %261, %260 : vector<16x512xf32>
    %cst_103 = arith.constant 1.000000e+00 : f32
    %263 = vector.broadcast %cst_103 : f32 to vector<16x512xf32>
    %264 = arith.divf %263, %262 : vector<16x512xf32>
    %cst_104 = arith.constant 1.06140542 : f32
    %265 = vector.broadcast %cst_104 : f32 to vector<16x512xf32>
    %266 = arith.mulf %265, %264 : vector<16x512xf32>
    %cst_105 = arith.constant -1.45315206 : f32
    %267 = vector.broadcast %cst_105 : f32 to vector<16x512xf32>
    %268 = arith.addf %266, %267 : vector<16x512xf32>
    %269 = arith.mulf %268, %264 : vector<16x512xf32>
    %cst_106 = arith.constant 1.42141378 : f32
    %270 = vector.broadcast %cst_106 : f32 to vector<16x512xf32>
    %271 = arith.addf %269, %270 : vector<16x512xf32>
    %272 = arith.mulf %271, %264 : vector<16x512xf32>
    %cst_107 = arith.constant -0.284496725 : f32
    %273 = vector.broadcast %cst_107 : f32 to vector<16x512xf32>
    %274 = arith.addf %272, %273 : vector<16x512xf32>
    %275 = arith.mulf %274, %264 : vector<16x512xf32>
    %cst_108 = arith.constant 0.254829586 : f32
    %276 = vector.broadcast %cst_108 : f32 to vector<16x512xf32>
    %277 = arith.addf %275, %276 : vector<16x512xf32>
    %278 = arith.mulf %277, %264 : vector<16x512xf32>
    %cst_109 = arith.constant 0.000000e+00 : f32
    %279 = vector.broadcast %cst_109 : f32 to vector<16x512xf32>
    %280 = arith.subf %279, %258 : vector<16x512xf32>
    %281 = arith.mulf %280, %258 : vector<16x512xf32>
    %282 = math.exp %281 : vector<16x512xf32>
    %283 = arith.mulf %278, %282 : vector<16x512xf32>
    %cst_110 = arith.constant 1.000000e+00 : f32
    %284 = vector.broadcast %cst_110 : f32 to vector<16x512xf32>
    %285 = arith.subf %284, %283 : vector<16x512xf32>
    %286 = arith.mulf %257, %285 : vector<16x512xf32>
    %cst_111 = arith.constant 1.000000e+00 : f32
    %287 = vector.broadcast %cst_111 : f32 to vector<16x512xf32>
    %288 = arith.addf %287, %286 : vector<16x512xf32>
    %289 = arith.mulf %250, %288 : vector<16x512xf32>
    %290 = arith.truncf %289 : vector<16x512xf32> to vector<16x512xbf16>
    %c0_112 = arith.constant 0 : index
    %c0_113 = arith.constant 0 : index
    %c0_114 = arith.constant 0 : index
    %291 = vector.load %arg17[%c0_112, %c0_113, %c0_114] : memref<4x512x32xbf16, #tpu.memory_space<vmem>>, vector<1x512x32xbf16>
    %292 = vector.shape_cast %291 : vector<1x512x32xbf16> to vector<512x32xbf16>
    %cst_115 = arith.constant dense<0.000000e+00> : vector<16x32xf32>
    %293 = tpu.matmul %290, %292, %cst_115 {dimension_numbers = #tpu.dot_dimension_numbers<[1], [0], [0], [1], [0, 0, 1, 1], [], []>} : vector<16x512xbf16>, vector<512x32xbf16>, vector<16x32xf32> -> vector<16x32xf32>
    %c0_116 = arith.constant 0 : index
    %c0_117 = arith.constant 0 : index
    %c0_118 = arith.constant 0 : index
    %294 = vector.load %arg18[%c0_116, %c0_117, %c0_118] : memref<4x1x32xf32, #tpu.memory_space<vmem>>, vector<1x1x32xf32>
    %295 = vector.shape_cast %294 : vector<1x1x32xf32> to vector<1x32xf32>
    %296 = vector.broadcast %295 : vector<1x32xf32> to vector<16x32xf32>
    %297 = arith.addf %293, %296 : vector<16x32xf32>
    %298 = arith.addf %214, %297 : vector<16x32xf32>
    %c1 = arith.constant 1 : index
    %c0_119 = arith.constant 0 : index
    %c0_120 = arith.constant 0 : index
    %299 = vector.load %arg7[%c1, %c0_119, %c0_120] : memref<4x1x32xf32, #tpu.memory_space<vmem>>, vector<1x1x32xf32>
    %300 = vector.shape_cast %299 : vector<1x1x32xf32> to vector<1x32xf32>
    %c1_121 = arith.constant 1 : index
    %c0_122 = arith.constant 0 : index
    %c0_123 = arith.constant 0 : index
    %301 = vector.load %arg8[%c1_121, %c0_122, %c0_123] : memref<4x1x32xf32, #tpu.memory_space<vmem>>, vector<1x1x32xf32>
    %302 = vector.shape_cast %301 : vector<1x1x32xf32> to vector<1x32xf32>
    %cst_124 = arith.constant dense<0.000000e+00> : vector<16xf32>
    %303 = vector.multi_reduction <add>, %298, %cst_124 [1] : vector<16x32xf32> to vector<16xf32>
    %304 = vector.shape_cast %303 : vector<16xf32> to vector<16x1xf32>
    %cst_125 = arith.constant 3.200000e+01 : f32
    %305 = vector.broadcast %cst_125 : f32 to vector<16x1xf32>
    %306 = arith.divf %304, %305 : vector<16x1xf32>
    %307 = vector.broadcast %306 : vector<16x1xf32> to vector<16x32xf32>
    %308 = arith.subf %298, %307 : vector<16x32xf32>
    %309 = arith.mulf %308, %308 : vector<16x32xf32>
    %cst_126 = arith.constant dense<0.000000e+00> : vector<16xf32>
    %310 = vector.multi_reduction <add>, %309, %cst_126 [1] : vector<16x32xf32> to vector<16xf32>
    %311 = vector.shape_cast %310 : vector<16xf32> to vector<16x1xf32>
    %cst_127 = arith.constant 3.200000e+01 : f32
    %312 = vector.broadcast %cst_127 : f32 to vector<16x1xf32>
    %313 = arith.divf %311, %312 : vector<16x1xf32>
    %314 = vector.broadcast %306 : vector<16x1xf32> to vector<16x32xf32>
    %315 = arith.subf %298, %314 : vector<16x32xf32>
    %cst_128 = arith.constant 9.99999974E-6 : f32
    %316 = vector.broadcast %cst_128 : f32 to vector<16x1xf32>
    %317 = arith.addf %313, %316 : vector<16x1xf32>
    %318 = math.rsqrt %317 : vector<16x1xf32>
    %319 = vector.broadcast %318 : vector<16x1xf32> to vector<16x32xf32>
    %320 = arith.mulf %315, %319 : vector<16x32xf32>
    %321 = vector.broadcast %300 : vector<1x32xf32> to vector<16x32xf32>
    %322 = arith.mulf %320, %321 : vector<16x32xf32>
    %323 = vector.broadcast %302 : vector<1x32xf32> to vector<16x32xf32>
    %324 = arith.addf %322, %323 : vector<16x32xf32>
    %325 = arith.truncf %324 : vector<16x32xf32> to vector<16x32xbf16>
    %c1_129 = arith.constant 1 : index
    %c0_130 = arith.constant 0 : index
    %c0_131 = arith.constant 0 : index
    %326 = vector.load %arg9[%c1_129, %c0_130, %c0_131] : memref<4x32x96xbf16, #tpu.memory_space<vmem>>, vector<1x32x96xbf16>
    %327 = vector.shape_cast %326 : vector<1x32x96xbf16> to vector<32x96xbf16>
    %cst_132 = arith.constant dense<0.000000e+00> : vector<16x96xf32>
    %328 = tpu.matmul %325, %327, %cst_132 {dimension_numbers = #tpu.dot_dimension_numbers<[1], [0], [0], [1], [0, 0, 1, 1], [], []>} : vector<16x32xbf16>, vector<32x96xbf16>, vector<16x96xf32> -> vector<16x96xf32>
    %c1_133 = arith.constant 1 : index
    %c0_134 = arith.constant 0 : index
    %c0_135 = arith.constant 0 : index
    %329 = vector.load %arg10[%c1_133, %c0_134, %c0_135] : memref<4x1x96xf32, #tpu.memory_space<vmem>>, vector<1x1x96xf32>
    %330 = vector.shape_cast %329 : vector<1x1x96xf32> to vector<1x96xf32>
    %331 = vector.broadcast %330 : vector<1x96xf32> to vector<16x96xf32>
    %332 = arith.addf %328, %331 : vector<16x96xf32>
    %333 = vector.extract_strided_slice %332 {offsets = [0, 0], sizes = [8, 96], strides = [1, 1]} : vector<16x96xf32> to vector<8x96xf32>
    %334 = vector.extract_strided_slice %333 {offsets = [0, 32], sizes = [8, 32], strides = [1, 1]} : vector<8x96xf32> to vector<8x32xf32>
    %335 = tpu.transpose %334, [1, 0] : vector<8x32xf32> -> vector<32x8xf32>
    %336 = vector.extract_strided_slice %333 {offsets = [0, 0], sizes = [8, 8], strides = [1, 1]} : vector<8x96xf32> to vector<8x8xf32>
    %337 = vector.extract_strided_slice %333 {offsets = [0, 64], sizes = [8, 8], strides = [1, 1]} : vector<8x96xf32> to vector<8x8xf32>
    %338 = vector.extract_strided_slice %335 {offsets = [0, 0], sizes = [8, 8], strides = [1, 1]} : vector<32x8xf32> to vector<8x8xf32>
    %cst_136 = arith.constant dense<0.000000e+00> : vector<8x8xf32>
    %339 = tpu.matmul %336, %338, %cst_136 {dimension_numbers = #tpu.dot_dimension_numbers<[1], [0], [0], [1], [0, 0, 1, 1], [], []>} : vector<8x8xf32>, vector<8x8xf32>, vector<8x8xf32> -> vector<8x8xf32>
    %cst_137 = arith.constant dense<0xFF800000> : vector<8xf32>
    %340 = vector.multi_reduction <maximumf>, %339, %cst_137 [1] : vector<8x8xf32> to vector<8xf32>
    %341 = vector.shape_cast %340 : vector<8xf32> to vector<8x1xf32>
    %342 = vector.broadcast %341 : vector<8x1xf32> to vector<8x8xf32>
    %343 = arith.subf %339, %342 : vector<8x8xf32>
    %344 = math.exp %343 : vector<8x8xf32>
    %cst_138 = arith.constant dense<0.000000e+00> : vector<8xf32>
    %345 = vector.multi_reduction <add>, %344, %cst_138 [1] : vector<8x8xf32> to vector<8xf32>
    %346 = vector.shape_cast %345 : vector<8xf32> to vector<8x1xf32>
    %347 = tpu.reciprocal %346 {approx = true} : vector<8x1xf32> -> vector<8x1xf32>
    %348 = vector.broadcast %347 : vector<8x1xf32> to vector<8x8xf32>
    %349 = arith.mulf %344, %348 : vector<8x8xf32>
    %cst_139 = arith.constant dense<0.000000e+00> : vector<8x8xf32>
    %350 = tpu.matmul %349, %337, %cst_139 {dimension_numbers = #tpu.dot_dimension_numbers<[1], [0], [0], [1], [0, 0, 1, 1], [], []>} : vector<8x8xf32>, vector<8x8xf32>, vector<8x8xf32> -> vector<8x8xf32>
    %351 = vector.extract_strided_slice %333 {offsets = [0, 8], sizes = [8, 8], strides = [1, 1]} : vector<8x96xf32> to vector<8x8xf32>
    %352 = vector.extract_strided_slice %333 {offsets = [0, 72], sizes = [8, 8], strides = [1, 1]} : vector<8x96xf32> to vector<8x8xf32>
    %353 = vector.extract_strided_slice %335 {offsets = [8, 0], sizes = [8, 8], strides = [1, 1]} : vector<32x8xf32> to vector<8x8xf32>
    %cst_140 = arith.constant dense<0.000000e+00> : vector<8x8xf32>
    %354 = tpu.matmul %351, %353, %cst_140 {dimension_numbers = #tpu.dot_dimension_numbers<[1], [0], [0], [1], [0, 0, 1, 1], [], []>} : vector<8x8xf32>, vector<8x8xf32>, vector<8x8xf32> -> vector<8x8xf32>
    %cst_141 = arith.constant dense<0xFF800000> : vector<8xf32>
    %355 = vector.multi_reduction <maximumf>, %354, %cst_141 [1] : vector<8x8xf32> to vector<8xf32>
    %356 = vector.shape_cast %355 : vector<8xf32> to vector<8x1xf32>
    %357 = vector.broadcast %356 : vector<8x1xf32> to vector<8x8xf32>
    %358 = arith.subf %354, %357 : vector<8x8xf32>
    %359 = math.exp %358 : vector<8x8xf32>
    %cst_142 = arith.constant dense<0.000000e+00> : vector<8xf32>
    %360 = vector.multi_reduction <add>, %359, %cst_142 [1] : vector<8x8xf32> to vector<8xf32>
    %361 = vector.shape_cast %360 : vector<8xf32> to vector<8x1xf32>
    %362 = tpu.reciprocal %361 {approx = true} : vector<8x1xf32> -> vector<8x1xf32>
    %363 = vector.broadcast %362 : vector<8x1xf32> to vector<8x8xf32>
    %364 = arith.mulf %359, %363 : vector<8x8xf32>
    %cst_143 = arith.constant dense<0.000000e+00> : vector<8x8xf32>
    %365 = tpu.matmul %364, %352, %cst_143 {dimension_numbers = #tpu.dot_dimension_numbers<[1], [0], [0], [1], [0, 0, 1, 1], [], []>} : vector<8x8xf32>, vector<8x8xf32>, vector<8x8xf32> -> vector<8x8xf32>
    %366 = vector.extract_strided_slice %333 {offsets = [0, 16], sizes = [8, 8], strides = [1, 1]} : vector<8x96xf32> to vector<8x8xf32>
    %367 = vector.extract_strided_slice %333 {offsets = [0, 80], sizes = [8, 8], strides = [1, 1]} : vector<8x96xf32> to vector<8x8xf32>
    %368 = vector.extract_strided_slice %335 {offsets = [16, 0], sizes = [8, 8], strides = [1, 1]} : vector<32x8xf32> to vector<8x8xf32>
    %cst_144 = arith.constant dense<0.000000e+00> : vector<8x8xf32>
    %369 = tpu.matmul %366, %368, %cst_144 {dimension_numbers = #tpu.dot_dimension_numbers<[1], [0], [0], [1], [0, 0, 1, 1], [], []>} : vector<8x8xf32>, vector<8x8xf32>, vector<8x8xf32> -> vector<8x8xf32>
    %cst_145 = arith.constant dense<0xFF800000> : vector<8xf32>
    %370 = vector.multi_reduction <maximumf>, %369, %cst_145 [1] : vector<8x8xf32> to vector<8xf32>
    %371 = vector.shape_cast %370 : vector<8xf32> to vector<8x1xf32>
    %372 = vector.broadcast %371 : vector<8x1xf32> to vector<8x8xf32>
    %373 = arith.subf %369, %372 : vector<8x8xf32>
    %374 = math.exp %373 : vector<8x8xf32>
    %cst_146 = arith.constant dense<0.000000e+00> : vector<8xf32>
    %375 = vector.multi_reduction <add>, %374, %cst_146 [1] : vector<8x8xf32> to vector<8xf32>
    %376 = vector.shape_cast %375 : vector<8xf32> to vector<8x1xf32>
    %377 = tpu.reciprocal %376 {approx = true} : vector<8x1xf32> -> vector<8x1xf32>
    %378 = vector.broadcast %377 : vector<8x1xf32> to vector<8x8xf32>
    %379 = arith.mulf %374, %378 : vector<8x8xf32>
    %cst_147 = arith.constant dense<0.000000e+00> : vector<8x8xf32>
    %380 = tpu.matmul %379, %367, %cst_147 {dimension_numbers = #tpu.dot_dimension_numbers<[1], [0], [0], [1], [0, 0, 1, 1], [], []>} : vector<8x8xf32>, vector<8x8xf32>, vector<8x8xf32> -> vector<8x8xf32>
    %381 = vector.extract_strided_slice %333 {offsets = [0, 24], sizes = [8, 8], strides = [1, 1]} : vector<8x96xf32> to vector<8x8xf32>
    %382 = vector.extract_strided_slice %333 {offsets = [0, 88], sizes = [8, 8], strides = [1, 1]} : vector<8x96xf32> to vector<8x8xf32>
    %383 = vector.extract_strided_slice %335 {offsets = [24, 0], sizes = [8, 8], strides = [1, 1]} : vector<32x8xf32> to vector<8x8xf32>
    %cst_148 = arith.constant dense<0.000000e+00> : vector<8x8xf32>
    %384 = tpu.matmul %381, %383, %cst_148 {dimension_numbers = #tpu.dot_dimension_numbers<[1], [0], [0], [1], [0, 0, 1, 1], [], []>} : vector<8x8xf32>, vector<8x8xf32>, vector<8x8xf32> -> vector<8x8xf32>
    %cst_149 = arith.constant dense<0xFF800000> : vector<8xf32>
    %385 = vector.multi_reduction <maximumf>, %384, %cst_149 [1] : vector<8x8xf32> to vector<8xf32>
    %386 = vector.shape_cast %385 : vector<8xf32> to vector<8x1xf32>
    %387 = vector.broadcast %386 : vector<8x1xf32> to vector<8x8xf32>
    %388 = arith.subf %384, %387 : vector<8x8xf32>
    %389 = math.exp %388 : vector<8x8xf32>
    %cst_150 = arith.constant dense<0.000000e+00> : vector<8xf32>
    %390 = vector.multi_reduction <add>, %389, %cst_150 [1] : vector<8x8xf32> to vector<8xf32>
    %391 = vector.shape_cast %390 : vector<8xf32> to vector<8x1xf32>
    %392 = tpu.reciprocal %391 {approx = true} : vector<8x1xf32> -> vector<8x1xf32>
    %393 = vector.broadcast %392 : vector<8x1xf32> to vector<8x8xf32>
    %394 = arith.mulf %389, %393 : vector<8x8xf32>
    %cst_151 = arith.constant dense<0.000000e+00> : vector<8x8xf32>
    %395 = tpu.matmul %394, %382, %cst_151 {dimension_numbers = #tpu.dot_dimension_numbers<[1], [0], [0], [1], [0, 0, 1, 1], [], []>} : vector<8x8xf32>, vector<8x8xf32>, vector<8x8xf32> -> vector<8x8xf32>
    %396 = tpu.concatenate %350, %365, %380, %395 in 1 : vector<8x8xf32>, vector<8x8xf32>, vector<8x8xf32>, vector<8x8xf32> -> vector<8x32xf32>
    %397 = vector.extract_strided_slice %332 {offsets = [8, 0], sizes = [8, 96], strides = [1, 1]} : vector<16x96xf32> to vector<8x96xf32>
    %398 = vector.extract_strided_slice %397 {offsets = [0, 32], sizes = [8, 32], strides = [1, 1]} : vector<8x96xf32> to vector<8x32xf32>
    %399 = tpu.transpose %398, [1, 0] : vector<8x32xf32> -> vector<32x8xf32>
    %400 = vector.extract_strided_slice %397 {offsets = [0, 0], sizes = [8, 8], strides = [1, 1]} : vector<8x96xf32> to vector<8x8xf32>
    %401 = vector.extract_strided_slice %397 {offsets = [0, 64], sizes = [8, 8], strides = [1, 1]} : vector<8x96xf32> to vector<8x8xf32>
    %402 = vector.extract_strided_slice %399 {offsets = [0, 0], sizes = [8, 8], strides = [1, 1]} : vector<32x8xf32> to vector<8x8xf32>
    %cst_152 = arith.constant dense<0.000000e+00> : vector<8x8xf32>
    %403 = tpu.matmul %400, %402, %cst_152 {dimension_numbers = #tpu.dot_dimension_numbers<[1], [0], [0], [1], [0, 0, 1, 1], [], []>} : vector<8x8xf32>, vector<8x8xf32>, vector<8x8xf32> -> vector<8x8xf32>
    %cst_153 = arith.constant dense<0xFF800000> : vector<8xf32>
    %404 = vector.multi_reduction <maximumf>, %403, %cst_153 [1] : vector<8x8xf32> to vector<8xf32>
    %405 = vector.shape_cast %404 : vector<8xf32> to vector<8x1xf32>
    %406 = vector.broadcast %405 : vector<8x1xf32> to vector<8x8xf32>
    %407 = arith.subf %403, %406 : vector<8x8xf32>
    %408 = math.exp %407 : vector<8x8xf32>
    %cst_154 = arith.constant dense<0.000000e+00> : vector<8xf32>
    %409 = vector.multi_reduction <add>, %408, %cst_154 [1] : vector<8x8xf32> to vector<8xf32>
    %410 = vector.shape_cast %409 : vector<8xf32> to vector<8x1xf32>
    %411 = tpu.reciprocal %410 {approx = true} : vector<8x1xf32> -> vector<8x1xf32>
    %412 = vector.broadcast %411 : vector<8x1xf32> to vector<8x8xf32>
    %413 = arith.mulf %408, %412 : vector<8x8xf32>
    %cst_155 = arith.constant dense<0.000000e+00> : vector<8x8xf32>
    %414 = tpu.matmul %413, %401, %cst_155 {dimension_numbers = #tpu.dot_dimension_numbers<[1], [0], [0], [1], [0, 0, 1, 1], [], []>} : vector<8x8xf32>, vector<8x8xf32>, vector<8x8xf32> -> vector<8x8xf32>
    %415 = vector.extract_strided_slice %397 {offsets = [0, 8], sizes = [8, 8], strides = [1, 1]} : vector<8x96xf32> to vector<8x8xf32>
    %416 = vector.extract_strided_slice %397 {offsets = [0, 72], sizes = [8, 8], strides = [1, 1]} : vector<8x96xf32> to vector<8x8xf32>
    %417 = vector.extract_strided_slice %399 {offsets = [8, 0], sizes = [8, 8], strides = [1, 1]} : vector<32x8xf32> to vector<8x8xf32>
    %cst_156 = arith.constant dense<0.000000e+00> : vector<8x8xf32>
    %418 = tpu.matmul %415, %417, %cst_156 {dimension_numbers = #tpu.dot_dimension_numbers<[1], [0], [0], [1], [0, 0, 1, 1], [], []>} : vector<8x8xf32>, vector<8x8xf32>, vector<8x8xf32> -> vector<8x8xf32>
    %cst_157 = arith.constant dense<0xFF800000> : vector<8xf32>
    %419 = vector.multi_reduction <maximumf>, %418, %cst_157 [1] : vector<8x8xf32> to vector<8xf32>
    %420 = vector.shape_cast %419 : vector<8xf32> to vector<8x1xf32>
    %421 = vector.broadcast %420 : vector<8x1xf32> to vector<8x8xf32>
    %422 = arith.subf %418, %421 : vector<8x8xf32>
    %423 = math.exp %422 : vector<8x8xf32>
    %cst_158 = arith.constant dense<0.000000e+00> : vector<8xf32>
    %424 = vector.multi_reduction <add>, %423, %cst_158 [1] : vector<8x8xf32> to vector<8xf32>
    %425 = vector.shape_cast %424 : vector<8xf32> to vector<8x1xf32>
    %426 = tpu.reciprocal %425 {approx = true} : vector<8x1xf32> -> vector<8x1xf32>
    %427 = vector.broadcast %426 : vector<8x1xf32> to vector<8x8xf32>
    %428 = arith.mulf %423, %427 : vector<8x8xf32>
    %cst_159 = arith.constant dense<0.000000e+00> : vector<8x8xf32>
    %429 = tpu.matmul %428, %416, %cst_159 {dimension_numbers = #tpu.dot_dimension_numbers<[1], [0], [0], [1], [0, 0, 1, 1], [], []>} : vector<8x8xf32>, vector<8x8xf32>, vector<8x8xf32> -> vector<8x8xf32>
    %430 = vector.extract_strided_slice %397 {offsets = [0, 16], sizes = [8, 8], strides = [1, 1]} : vector<8x96xf32> to vector<8x8xf32>
    %431 = vector.extract_strided_slice %397 {offsets = [0, 80], sizes = [8, 8], strides = [1, 1]} : vector<8x96xf32> to vector<8x8xf32>
    %432 = vector.extract_strided_slice %399 {offsets = [16, 0], sizes = [8, 8], strides = [1, 1]} : vector<32x8xf32> to vector<8x8xf32>
    %cst_160 = arith.constant dense<0.000000e+00> : vector<8x8xf32>
    %433 = tpu.matmul %430, %432, %cst_160 {dimension_numbers = #tpu.dot_dimension_numbers<[1], [0], [0], [1], [0, 0, 1, 1], [], []>} : vector<8x8xf32>, vector<8x8xf32>, vector<8x8xf32> -> vector<8x8xf32>
    %cst_161 = arith.constant dense<0xFF800000> : vector<8xf32>
    %434 = vector.multi_reduction <maximumf>, %433, %cst_161 [1] : vector<8x8xf32> to vector<8xf32>
    %435 = vector.shape_cast %434 : vector<8xf32> to vector<8x1xf32>
    %436 = vector.broadcast %435 : vector<8x1xf32> to vector<8x8xf32>
    %437 = arith.subf %433, %436 : vector<8x8xf32>
    %438 = math.exp %437 : vector<8x8xf32>
    %cst_162 = arith.constant dense<0.000000e+00> : vector<8xf32>
    %439 = vector.multi_reduction <add>, %438, %cst_162 [1] : vector<8x8xf32> to vector<8xf32>
    %440 = vector.shape_cast %439 : vector<8xf32> to vector<8x1xf32>
    %441 = tpu.reciprocal %440 {approx = true} : vector<8x1xf32> -> vector<8x1xf32>
    %442 = vector.broadcast %441 : vector<8x1xf32> to vector<8x8xf32>
    %443 = arith.mulf %438, %442 : vector<8x8xf32>
    %cst_163 = arith.constant dense<0.000000e+00> : vector<8x8xf32>
    %444 = tpu.matmul %443, %431, %cst_163 {dimension_numbers = #tpu.dot_dimension_numbers<[1], [0], [0], [1], [0, 0, 1, 1], [], []>} : vector<8x8xf32>, vector<8x8xf32>, vector<8x8xf32> -> vector<8x8xf32>
    %445 = vector.extract_strided_slice %397 {offsets = [0, 24], sizes = [8, 8], strides = [1, 1]} : vector<8x96xf32> to vector<8x8xf32>
    %446 = vector.extract_strided_slice %397 {offsets = [0, 88], sizes = [8, 8], strides = [1, 1]} : vector<8x96xf32> to vector<8x8xf32>
    %447 = vector.extract_strided_slice %399 {offsets = [24, 0], sizes = [8, 8], strides = [1, 1]} : vector<32x8xf32> to vector<8x8xf32>
    %cst_164 = arith.constant dense<0.000000e+00> : vector<8x8xf32>
    %448 = tpu.matmul %445, %447, %cst_164 {dimension_numbers = #tpu.dot_dimension_numbers<[1], [0], [0], [1], [0, 0, 1, 1], [], []>} : vector<8x8xf32>, vector<8x8xf32>, vector<8x8xf32> -> vector<8x8xf32>
    %cst_165 = arith.constant dense<0xFF800000> : vector<8xf32>
    %449 = vector.multi_reduction <maximumf>, %448, %cst_165 [1] : vector<8x8xf32> to vector<8xf32>
    %450 = vector.shape_cast %449 : vector<8xf32> to vector<8x1xf32>
    %451 = vector.broadcast %450 : vector<8x1xf32> to vector<8x8xf32>
    %452 = arith.subf %448, %451 : vector<8x8xf32>
    %453 = math.exp %452 : vector<8x8xf32>
    %cst_166 = arith.constant dense<0.000000e+00> : vector<8xf32>
    %454 = vector.multi_reduction <add>, %453, %cst_166 [1] : vector<8x8xf32> to vector<8xf32>
    %455 = vector.shape_cast %454 : vector<8xf32> to vector<8x1xf32>
    %456 = tpu.reciprocal %455 {approx = true} : vector<8x1xf32> -> vector<8x1xf32>
    %457 = vector.broadcast %456 : vector<8x1xf32> to vector<8x8xf32>
    %458 = arith.mulf %453, %457 : vector<8x8xf32>
    %cst_167 = arith.constant dense<0.000000e+00> : vector<8x8xf32>
    %459 = tpu.matmul %458, %446, %cst_167 {dimension_numbers = #tpu.dot_dimension_numbers<[1], [0], [0], [1], [0, 0, 1, 1], [], []>} : vector<8x8xf32>, vector<8x8xf32>, vector<8x8xf32> -> vector<8x8xf32>
    %460 = tpu.concatenate %414, %429, %444, %459 in 1 : vector<8x8xf32>, vector<8x8xf32>, vector<8x8xf32>, vector<8x8xf32> -> vector<8x32xf32>
    %461 = tpu.concatenate %396, %460 in 0 : vector<8x32xf32>, vector<8x32xf32> -> vector<16x32xf32>
    %462 = arith.truncf %461 : vector<16x32xf32> to vector<16x32xbf16>
    %c1_168 = arith.constant 1 : index
    %c0_169 = arith.constant 0 : index
    %c0_170 = arith.constant 0 : index
    %463 = vector.load %arg11[%c1_168, %c0_169, %c0_170] : memref<4x32x32xbf16, #tpu.memory_space<vmem>>, vector<1x32x32xbf16>
    %464 = vector.shape_cast %463 : vector<1x32x32xbf16> to vector<32x32xbf16>
    %cst_171 = arith.constant dense<0.000000e+00> : vector<16x32xf32>
    %465 = tpu.matmul %462, %464, %cst_171 {dimension_numbers = #tpu.dot_dimension_numbers<[1], [0], [0], [1], [0, 0, 1, 1], [], []>} : vector<16x32xbf16>, vector<32x32xbf16>, vector<16x32xf32> -> vector<16x32xf32>
    %c1_172 = arith.constant 1 : index
    %c0_173 = arith.constant 0 : index
    %c0_174 = arith.constant 0 : index
    %466 = vector.load %arg12[%c1_172, %c0_173, %c0_174] : memref<4x1x32xf32, #tpu.memory_space<vmem>>, vector<1x1x32xf32>
    %467 = vector.shape_cast %466 : vector<1x1x32xf32> to vector<1x32xf32>
    %468 = vector.broadcast %467 : vector<1x32xf32> to vector<16x32xf32>
    %469 = arith.addf %465, %468 : vector<16x32xf32>
    %470 = arith.addf %298, %469 : vector<16x32xf32>
    %c1_175 = arith.constant 1 : index
    %c0_176 = arith.constant 0 : index
    %c0_177 = arith.constant 0 : index
    %471 = vector.load %arg13[%c1_175, %c0_176, %c0_177] : memref<4x1x32xf32, #tpu.memory_space<vmem>>, vector<1x1x32xf32>
    %472 = vector.shape_cast %471 : vector<1x1x32xf32> to vector<1x32xf32>
    %c1_178 = arith.constant 1 : index
    %c0_179 = arith.constant 0 : index
    %c0_180 = arith.constant 0 : index
    %473 = vector.load %arg14[%c1_178, %c0_179, %c0_180] : memref<4x1x32xf32, #tpu.memory_space<vmem>>, vector<1x1x32xf32>
    %474 = vector.shape_cast %473 : vector<1x1x32xf32> to vector<1x32xf32>
    %cst_181 = arith.constant dense<0.000000e+00> : vector<16xf32>
    %475 = vector.multi_reduction <add>, %470, %cst_181 [1] : vector<16x32xf32> to vector<16xf32>
    %476 = vector.shape_cast %475 : vector<16xf32> to vector<16x1xf32>
    %cst_182 = arith.constant 3.200000e+01 : f32
    %477 = vector.broadcast %cst_182 : f32 to vector<16x1xf32>
    %478 = arith.divf %476, %477 : vector<16x1xf32>
    %479 = vector.broadcast %478 : vector<16x1xf32> to vector<16x32xf32>
    %480 = arith.subf %470, %479 : vector<16x32xf32>
    %481 = arith.mulf %480, %480 : vector<16x32xf32>
    %cst_183 = arith.constant dense<0.000000e+00> : vector<16xf32>
    %482 = vector.multi_reduction <add>, %481, %cst_183 [1] : vector<16x32xf32> to vector<16xf32>
    %483 = vector.shape_cast %482 : vector<16xf32> to vector<16x1xf32>
    %cst_184 = arith.constant 3.200000e+01 : f32
    %484 = vector.broadcast %cst_184 : f32 to vector<16x1xf32>
    %485 = arith.divf %483, %484 : vector<16x1xf32>
    %486 = vector.broadcast %478 : vector<16x1xf32> to vector<16x32xf32>
    %487 = arith.subf %470, %486 : vector<16x32xf32>
    %cst_185 = arith.constant 9.99999974E-6 : f32
    %488 = vector.broadcast %cst_185 : f32 to vector<16x1xf32>
    %489 = arith.addf %485, %488 : vector<16x1xf32>
    %490 = math.rsqrt %489 : vector<16x1xf32>
    %491 = vector.broadcast %490 : vector<16x1xf32> to vector<16x32xf32>
    %492 = arith.mulf %487, %491 : vector<16x32xf32>
    %493 = vector.broadcast %472 : vector<1x32xf32> to vector<16x32xf32>
    %494 = arith.mulf %492, %493 : vector<16x32xf32>
    %495 = vector.broadcast %474 : vector<1x32xf32> to vector<16x32xf32>
    %496 = arith.addf %494, %495 : vector<16x32xf32>
    %497 = arith.truncf %496 : vector<16x32xf32> to vector<16x32xbf16>
    %c1_186 = arith.constant 1 : index
    %c0_187 = arith.constant 0 : index
    %c0_188 = arith.constant 0 : index
    %498 = vector.load %arg15[%c1_186, %c0_187, %c0_188] : memref<4x32x512xbf16, #tpu.memory_space<vmem>>, vector<1x32x512xbf16>
    %499 = vector.shape_cast %498 : vector<1x32x512xbf16> to vector<32x512xbf16>
    %cst_189 = arith.constant dense<0.000000e+00> : vector<16x512xf32>
    %500 = tpu.matmul %497, %499, %cst_189 {dimension_numbers = #tpu.dot_dimension_numbers<[1], [0], [0], [1], [0, 0, 1, 1], [], []>} : vector<16x32xbf16>, vector<32x512xbf16>, vector<16x512xf32> -> vector<16x512xf32>
    %c1_190 = arith.constant 1 : index
    %c0_191 = arith.constant 0 : index
    %c0_192 = arith.constant 0 : index
    %501 = vector.load %arg16[%c1_190, %c0_191, %c0_192] : memref<4x1x512xf32, #tpu.memory_space<vmem>>, vector<1x1x512xf32>
    %502 = vector.shape_cast %501 : vector<1x1x512xf32> to vector<1x512xf32>
    %503 = vector.broadcast %502 : vector<1x512xf32> to vector<16x512xf32>
    %504 = arith.addf %500, %503 : vector<16x512xf32>
    %cst_193 = arith.constant 5.000000e-01 : f32
    %505 = vector.broadcast %cst_193 : f32 to vector<16x512xf32>
    %506 = arith.mulf %505, %504 : vector<16x512xf32>
    %cst_194 = arith.constant 0.707106769 : f32
    %507 = vector.broadcast %cst_194 : f32 to vector<16x512xf32>
    %508 = arith.mulf %504, %507 : vector<16x512xf32>
    %cst_195 = arith.constant 0.000000e+00 : f32
    %509 = vector.broadcast %cst_195 : f32 to vector<16x512xf32>
    %510 = arith.cmpf oge, %508, %509 : vector<16x512xf32>
    %cst_196 = arith.constant 1.000000e+00 : f32
    %cst_197 = arith.constant -1.000000e+00 : f32
    %511 = vector.broadcast %cst_196 : f32 to vector<16x512xf32>
    %512 = vector.broadcast %cst_197 : f32 to vector<16x512xf32>
    %513 = arith.select %510, %511, %512 : vector<16x512xi1>, vector<16x512xf32>
    %514 = math.absf %508 : vector<16x512xf32>
    %cst_198 = arith.constant 0.327591091 : f32
    %515 = vector.broadcast %cst_198 : f32 to vector<16x512xf32>
    %516 = arith.mulf %515, %514 : vector<16x512xf32>
    %cst_199 = arith.constant 1.000000e+00 : f32
    %517 = vector.broadcast %cst_199 : f32 to vector<16x512xf32>
    %518 = arith.addf %517, %516 : vector<16x512xf32>
    %cst_200 = arith.constant 1.000000e+00 : f32
    %519 = vector.broadcast %cst_200 : f32 to vector<16x512xf32>
    %520 = arith.divf %519, %518 : vector<16x512xf32>
    %cst_201 = arith.constant 1.06140542 : f32
    %521 = vector.broadcast %cst_201 : f32 to vector<16x512xf32>
    %522 = arith.mulf %521, %520 : vector<16x512xf32>
    %cst_202 = arith.constant -1.45315206 : f32
    %523 = vector.broadcast %cst_202 : f32 to vector<16x512xf32>
    %524 = arith.addf %522, %523 : vector<16x512xf32>
    %525 = arith.mulf %524, %520 : vector<16x512xf32>
    %cst_203 = arith.constant 1.42141378 : f32
    %526 = vector.broadcast %cst_203 : f32 to vector<16x512xf32>
    %527 = arith.addf %525, %526 : vector<16x512xf32>
    %528 = arith.mulf %527, %520 : vector<16x512xf32>
    %cst_204 = arith.constant -0.284496725 : f32
    %529 = vector.broadcast %cst_204 : f32 to vector<16x512xf32>
    %530 = arith.addf %528, %529 : vector<16x512xf32>
    %531 = arith.mulf %530, %520 : vector<16x512xf32>
    %cst_205 = arith.constant 0.254829586 : f32
    %532 = vector.broadcast %cst_205 : f32 to vector<16x512xf32>
    %533 = arith.addf %531, %532 : vector<16x512xf32>
    %534 = arith.mulf %533, %520 : vector<16x512xf32>
    %cst_206 = arith.constant 0.000000e+00 : f32
    %535 = vector.broadcast %cst_206 : f32 to vector<16x512xf32>
    %536 = arith.subf %535, %514 : vector<16x512xf32>
    %537 = arith.mulf %536, %514 : vector<16x512xf32>
    %538 = math.exp %537 : vector<16x512xf32>
    %539 = arith.mulf %534, %538 : vector<16x512xf32>
    %cst_207 = arith.constant 1.000000e+00 : f32
    %540 = vector.broadcast %cst_207 : f32 to vector<16x512xf32>
    %541 = arith.subf %540, %539 : vector<16x512xf32>
    %542 = arith.mulf %513, %541 : vector<16x512xf32>
    %cst_208 = arith.constant 1.000000e+00 : f32
    %543 = vector.broadcast %cst_208 : f32 to vector<16x512xf32>
    %544 = arith.addf %543, %542 : vector<16x512xf32>
    %545 = arith.mulf %506, %544 : vector<16x512xf32>
    %546 = arith.truncf %545 : vector<16x512xf32> to vector<16x512xbf16>
    %c1_209 = arith.constant 1 : index
    %c0_210 = arith.constant 0 : index
    %c0_211 = arith.constant 0 : index
    %547 = vector.load %arg17[%c1_209, %c0_210, %c0_211] : memref<4x512x32xbf16, #tpu.memory_space<vmem>>, vector<1x512x32xbf16>
    %548 = vector.shape_cast %547 : vector<1x512x32xbf16> to vector<512x32xbf16>
    %cst_212 = arith.constant dense<0.000000e+00> : vector<16x32xf32>
    %549 = tpu.matmul %546, %548, %cst_212 {dimension_numbers = #tpu.dot_dimension_numbers<[1], [0], [0], [1], [0, 0, 1, 1], [], []>} : vector<16x512xbf16>, vector<512x32xbf16>, vector<16x32xf32> -> vector<16x32xf32>
    %c1_213 = arith.constant 1 : index
    %c0_214 = arith.constant 0 : index
    %c0_215 = arith.constant 0 : index
    %550 = vector.load %arg18[%c1_213, %c0_214, %c0_215] : memref<4x1x32xf32, #tpu.memory_space<vmem>>, vector<1x1x32xf32>
    %551 = vector.shape_cast %550 : vector<1x1x32xf32> to vector<1x32xf32>
    %552 = vector.broadcast %551 : vector<1x32xf32> to vector<16x32xf32>
    %553 = arith.addf %549, %552 : vector<16x32xf32>
    %554 = arith.addf %470, %553 : vector<16x32xf32>
    %c2 = arith.constant 2 : index
    %c0_216 = arith.constant 0 : index
    %c0_217 = arith.constant 0 : index
    %555 = vector.load %arg7[%c2, %c0_216, %c0_217] : memref<4x1x32xf32, #tpu.memory_space<vmem>>, vector<1x1x32xf32>
    %556 = vector.shape_cast %555 : vector<1x1x32xf32> to vector<1x32xf32>
    %c2_218 = arith.constant 2 : index
    %c0_219 = arith.constant 0 : index
    %c0_220 = arith.constant 0 : index
    %557 = vector.load %arg8[%c2_218, %c0_219, %c0_220] : memref<4x1x32xf32, #tpu.memory_space<vmem>>, vector<1x1x32xf32>
    %558 = vector.shape_cast %557 : vector<1x1x32xf32> to vector<1x32xf32>
    %cst_221 = arith.constant dense<0.000000e+00> : vector<16xf32>
    %559 = vector.multi_reduction <add>, %554, %cst_221 [1] : vector<16x32xf32> to vector<16xf32>
    %560 = vector.shape_cast %559 : vector<16xf32> to vector<16x1xf32>
    %cst_222 = arith.constant 3.200000e+01 : f32
    %561 = vector.broadcast %cst_222 : f32 to vector<16x1xf32>
    %562 = arith.divf %560, %561 : vector<16x1xf32>
    %563 = vector.broadcast %562 : vector<16x1xf32> to vector<16x32xf32>
    %564 = arith.subf %554, %563 : vector<16x32xf32>
    %565 = arith.mulf %564, %564 : vector<16x32xf32>
    %cst_223 = arith.constant dense<0.000000e+00> : vector<16xf32>
    %566 = vector.multi_reduction <add>, %565, %cst_223 [1] : vector<16x32xf32> to vector<16xf32>
    %567 = vector.shape_cast %566 : vector<16xf32> to vector<16x1xf32>
    %cst_224 = arith.constant 3.200000e+01 : f32
    %568 = vector.broadcast %cst_224 : f32 to vector<16x1xf32>
    %569 = arith.divf %567, %568 : vector<16x1xf32>
    %570 = vector.broadcast %562 : vector<16x1xf32> to vector<16x32xf32>
    %571 = arith.subf %554, %570 : vector<16x32xf32>
    %cst_225 = arith.constant 9.99999974E-6 : f32
    %572 = vector.broadcast %cst_225 : f32 to vector<16x1xf32>
    %573 = arith.addf %569, %572 : vector<16x1xf32>
    %574 = math.rsqrt %573 : vector<16x1xf32>
    %575 = vector.broadcast %574 : vector<16x1xf32> to vector<16x32xf32>
    %576 = arith.mulf %571, %575 : vector<16x32xf32>
    %577 = vector.broadcast %556 : vector<1x32xf32> to vector<16x32xf32>
    %578 = arith.mulf %576, %577 : vector<16x32xf32>
    %579 = vector.broadcast %558 : vector<1x32xf32> to vector<16x32xf32>
    %580 = arith.addf %578, %579 : vector<16x32xf32>
    %581 = arith.truncf %580 : vector<16x32xf32> to vector<16x32xbf16>
    %c2_226 = arith.constant 2 : index
    %c0_227 = arith.constant 0 : index
    %c0_228 = arith.constant 0 : index
    %582 = vector.load %arg9[%c2_226, %c0_227, %c0_228] : memref<4x32x96xbf16, #tpu.memory_space<vmem>>, vector<1x32x96xbf16>
    %583 = vector.shape_cast %582 : vector<1x32x96xbf16> to vector<32x96xbf16>
    %cst_229 = arith.constant dense<0.000000e+00> : vector<16x96xf32>
    %584 = tpu.matmul %581, %583, %cst_229 {dimension_numbers = #tpu.dot_dimension_numbers<[1], [0], [0], [1], [0, 0, 1, 1], [], []>} : vector<16x32xbf16>, vector<32x96xbf16>, vector<16x96xf32> -> vector<16x96xf32>
    %c2_230 = arith.constant 2 : index
    %c0_231 = arith.constant 0 : index
    %c0_232 = arith.constant 0 : index
    %585 = vector.load %arg10[%c2_230, %c0_231, %c0_232] : memref<4x1x96xf32, #tpu.memory_space<vmem>>, vector<1x1x96xf32>
    %586 = vector.shape_cast %585 : vector<1x1x96xf32> to vector<1x96xf32>
    %587 = vector.broadcast %586 : vector<1x96xf32> to vector<16x96xf32>
    %588 = arith.addf %584, %587 : vector<16x96xf32>
    %589 = vector.extract_strided_slice %588 {offsets = [0, 0], sizes = [8, 96], strides = [1, 1]} : vector<16x96xf32> to vector<8x96xf32>
    %590 = vector.extract_strided_slice %589 {offsets = [0, 32], sizes = [8, 32], strides = [1, 1]} : vector<8x96xf32> to vector<8x32xf32>
    %591 = tpu.transpose %590, [1, 0] : vector<8x32xf32> -> vector<32x8xf32>
    %592 = vector.extract_strided_slice %589 {offsets = [0, 0], sizes = [8, 8], strides = [1, 1]} : vector<8x96xf32> to vector<8x8xf32>
    %593 = vector.extract_strided_slice %589 {offsets = [0, 64], sizes = [8, 8], strides = [1, 1]} : vector<8x96xf32> to vector<8x8xf32>
    %594 = vector.extract_strided_slice %591 {offsets = [0, 0], sizes = [8, 8], strides = [1, 1]} : vector<32x8xf32> to vector<8x8xf32>
    %cst_233 = arith.constant dense<0.000000e+00> : vector<8x8xf32>
    %595 = tpu.matmul %592, %594, %cst_233 {dimension_numbers = #tpu.dot_dimension_numbers<[1], [0], [0], [1], [0, 0, 1, 1], [], []>} : vector<8x8xf32>, vector<8x8xf32>, vector<8x8xf32> -> vector<8x8xf32>
    %cst_234 = arith.constant dense<0xFF800000> : vector<8xf32>
    %596 = vector.multi_reduction <maximumf>, %595, %cst_234 [1] : vector<8x8xf32> to vector<8xf32>
    %597 = vector.shape_cast %596 : vector<8xf32> to vector<8x1xf32>
    %598 = vector.broadcast %597 : vector<8x1xf32> to vector<8x8xf32>
    %599 = arith.subf %595, %598 : vector<8x8xf32>
    %600 = math.exp %599 : vector<8x8xf32>
    %cst_235 = arith.constant dense<0.000000e+00> : vector<8xf32>
    %601 = vector.multi_reduction <add>, %600, %cst_235 [1] : vector<8x8xf32> to vector<8xf32>
    %602 = vector.shape_cast %601 : vector<8xf32> to vector<8x1xf32>
    %603 = tpu.reciprocal %602 {approx = true} : vector<8x1xf32> -> vector<8x1xf32>
    %604 = vector.broadcast %603 : vector<8x1xf32> to vector<8x8xf32>
    %605 = arith.mulf %600, %604 : vector<8x8xf32>
    %cst_236 = arith.constant dense<0.000000e+00> : vector<8x8xf32>
    %606 = tpu.matmul %605, %593, %cst_236 {dimension_numbers = #tpu.dot_dimension_numbers<[1], [0], [0], [1], [0, 0, 1, 1], [], []>} : vector<8x8xf32>, vector<8x8xf32>, vector<8x8xf32> -> vector<8x8xf32>
    %607 = vector.extract_strided_slice %589 {offsets = [0, 8], sizes = [8, 8], strides = [1, 1]} : vector<8x96xf32> to vector<8x8xf32>
    %608 = vector.extract_strided_slice %589 {offsets = [0, 72], sizes = [8, 8], strides = [1, 1]} : vector<8x96xf32> to vector<8x8xf32>
    %609 = vector.extract_strided_slice %591 {offsets = [8, 0], sizes = [8, 8], strides = [1, 1]} : vector<32x8xf32> to vector<8x8xf32>
    %cst_237 = arith.constant dense<0.000000e+00> : vector<8x8xf32>
    %610 = tpu.matmul %607, %609, %cst_237 {dimension_numbers = #tpu.dot_dimension_numbers<[1], [0], [0], [1], [0, 0, 1, 1], [], []>} : vector<8x8xf32>, vector<8x8xf32>, vector<8x8xf32> -> vector<8x8xf32>
    %cst_238 = arith.constant dense<0xFF800000> : vector<8xf32>
    %611 = vector.multi_reduction <maximumf>, %610, %cst_238 [1] : vector<8x8xf32> to vector<8xf32>
    %612 = vector.shape_cast %611 : vector<8xf32> to vector<8x1xf32>
    %613 = vector.broadcast %612 : vector<8x1xf32> to vector<8x8xf32>
    %614 = arith.subf %610, %613 : vector<8x8xf32>
    %615 = math.exp %614 : vector<8x8xf32>
    %cst_239 = arith.constant dense<0.000000e+00> : vector<8xf32>
    %616 = vector.multi_reduction <add>, %615, %cst_239 [1] : vector<8x8xf32> to vector<8xf32>
    %617 = vector.shape_cast %616 : vector<8xf32> to vector<8x1xf32>
    %618 = tpu.reciprocal %617 {approx = true} : vector<8x1xf32> -> vector<8x1xf32>
    %619 = vector.broadcast %618 : vector<8x1xf32> to vector<8x8xf32>
    %620 = arith.mulf %615, %619 : vector<8x8xf32>
    %cst_240 = arith.constant dense<0.000000e+00> : vector<8x8xf32>
    %621 = tpu.matmul %620, %608, %cst_240 {dimension_numbers = #tpu.dot_dimension_numbers<[1], [0], [0], [1], [0, 0, 1, 1], [], []>} : vector<8x8xf32>, vector<8x8xf32>, vector<8x8xf32> -> vector<8x8xf32>
    %622 = vector.extract_strided_slice %589 {offsets = [0, 16], sizes = [8, 8], strides = [1, 1]} : vector<8x96xf32> to vector<8x8xf32>
    %623 = vector.extract_strided_slice %589 {offsets = [0, 80], sizes = [8, 8], strides = [1, 1]} : vector<8x96xf32> to vector<8x8xf32>
    %624 = vector.extract_strided_slice %591 {offsets = [16, 0], sizes = [8, 8], strides = [1, 1]} : vector<32x8xf32> to vector<8x8xf32>
    %cst_241 = arith.constant dense<0.000000e+00> : vector<8x8xf32>
    %625 = tpu.matmul %622, %624, %cst_241 {dimension_numbers = #tpu.dot_dimension_numbers<[1], [0], [0], [1], [0, 0, 1, 1], [], []>} : vector<8x8xf32>, vector<8x8xf32>, vector<8x8xf32> -> vector<8x8xf32>
    %cst_242 = arith.constant dense<0xFF800000> : vector<8xf32>
    %626 = vector.multi_reduction <maximumf>, %625, %cst_242 [1] : vector<8x8xf32> to vector<8xf32>
    %627 = vector.shape_cast %626 : vector<8xf32> to vector<8x1xf32>
    %628 = vector.broadcast %627 : vector<8x1xf32> to vector<8x8xf32>
    %629 = arith.subf %625, %628 : vector<8x8xf32>
    %630 = math.exp %629 : vector<8x8xf32>
    %cst_243 = arith.constant dense<0.000000e+00> : vector<8xf32>
    %631 = vector.multi_reduction <add>, %630, %cst_243 [1] : vector<8x8xf32> to vector<8xf32>
    %632 = vector.shape_cast %631 : vector<8xf32> to vector<8x1xf32>
    %633 = tpu.reciprocal %632 {approx = true} : vector<8x1xf32> -> vector<8x1xf32>
    %634 = vector.broadcast %633 : vector<8x1xf32> to vector<8x8xf32>
    %635 = arith.mulf %630, %634 : vector<8x8xf32>
    %cst_244 = arith.constant dense<0.000000e+00> : vector<8x8xf32>
    %636 = tpu.matmul %635, %623, %cst_244 {dimension_numbers = #tpu.dot_dimension_numbers<[1], [0], [0], [1], [0, 0, 1, 1], [], []>} : vector<8x8xf32>, vector<8x8xf32>, vector<8x8xf32> -> vector<8x8xf32>
    %637 = vector.extract_strided_slice %589 {offsets = [0, 24], sizes = [8, 8], strides = [1, 1]} : vector<8x96xf32> to vector<8x8xf32>
    %638 = vector.extract_strided_slice %589 {offsets = [0, 88], sizes = [8, 8], strides = [1, 1]} : vector<8x96xf32> to vector<8x8xf32>
    %639 = vector.extract_strided_slice %591 {offsets = [24, 0], sizes = [8, 8], strides = [1, 1]} : vector<32x8xf32> to vector<8x8xf32>
    %cst_245 = arith.constant dense<0.000000e+00> : vector<8x8xf32>
    %640 = tpu.matmul %637, %639, %cst_245 {dimension_numbers = #tpu.dot_dimension_numbers<[1], [0], [0], [1], [0, 0, 1, 1], [], []>} : vector<8x8xf32>, vector<8x8xf32>, vector<8x8xf32> -> vector<8x8xf32>
    %cst_246 = arith.constant dense<0xFF800000> : vector<8xf32>
    %641 = vector.multi_reduction <maximumf>, %640, %cst_246 [1] : vector<8x8xf32> to vector<8xf32>
    %642 = vector.shape_cast %641 : vector<8xf32> to vector<8x1xf32>
    %643 = vector.broadcast %642 : vector<8x1xf32> to vector<8x8xf32>
    %644 = arith.subf %640, %643 : vector<8x8xf32>
    %645 = math.exp %644 : vector<8x8xf32>
    %cst_247 = arith.constant dense<0.000000e+00> : vector<8xf32>
    %646 = vector.multi_reduction <add>, %645, %cst_247 [1] : vector<8x8xf32> to vector<8xf32>
    %647 = vector.shape_cast %646 : vector<8xf32> to vector<8x1xf32>
    %648 = tpu.reciprocal %647 {approx = true} : vector<8x1xf32> -> vector<8x1xf32>
    %649 = vector.broadcast %648 : vector<8x1xf32> to vector<8x8xf32>
    %650 = arith.mulf %645, %649 : vector<8x8xf32>
    %cst_248 = arith.constant dense<0.000000e+00> : vector<8x8xf32>
    %651 = tpu.matmul %650, %638, %cst_248 {dimension_numbers = #tpu.dot_dimension_numbers<[1], [0], [0], [1], [0, 0, 1, 1], [], []>} : vector<8x8xf32>, vector<8x8xf32>, vector<8x8xf32> -> vector<8x8xf32>
    %652 = tpu.concatenate %606, %621, %636, %651 in 1 : vector<8x8xf32>, vector<8x8xf32>, vector<8x8xf32>, vector<8x8xf32> -> vector<8x32xf32>
    %653 = vector.extract_strided_slice %588 {offsets = [8, 0], sizes = [8, 96], strides = [1, 1]} : vector<16x96xf32> to vector<8x96xf32>
    %654 = vector.extract_strided_slice %653 {offsets = [0, 32], sizes = [8, 32], strides = [1, 1]} : vector<8x96xf32> to vector<8x32xf32>
    %655 = tpu.transpose %654, [1, 0] : vector<8x32xf32> -> vector<32x8xf32>
    %656 = vector.extract_strided_slice %653 {offsets = [0, 0], sizes = [8, 8], strides = [1, 1]} : vector<8x96xf32> to vector<8x8xf32>
    %657 = vector.extract_strided_slice %653 {offsets = [0, 64], sizes = [8, 8], strides = [1, 1]} : vector<8x96xf32> to vector<8x8xf32>
    %658 = vector.extract_strided_slice %655 {offsets = [0, 0], sizes = [8, 8], strides = [1, 1]} : vector<32x8xf32> to vector<8x8xf32>
    %cst_249 = arith.constant dense<0.000000e+00> : vector<8x8xf32>
    %659 = tpu.matmul %656, %658, %cst_249 {dimension_numbers = #tpu.dot_dimension_numbers<[1], [0], [0], [1], [0, 0, 1, 1], [], []>} : vector<8x8xf32>, vector<8x8xf32>, vector<8x8xf32> -> vector<8x8xf32>
    %cst_250 = arith.constant dense<0xFF800000> : vector<8xf32>
    %660 = vector.multi_reduction <maximumf>, %659, %cst_250 [1] : vector<8x8xf32> to vector<8xf32>
    %661 = vector.shape_cast %660 : vector<8xf32> to vector<8x1xf32>
    %662 = vector.broadcast %661 : vector<8x1xf32> to vector<8x8xf32>
    %663 = arith.subf %659, %662 : vector<8x8xf32>
    %664 = math.exp %663 : vector<8x8xf32>
    %cst_251 = arith.constant dense<0.000000e+00> : vector<8xf32>
    %665 = vector.multi_reduction <add>, %664, %cst_251 [1] : vector<8x8xf32> to vector<8xf32>
    %666 = vector.shape_cast %665 : vector<8xf32> to vector<8x1xf32>
    %667 = tpu.reciprocal %666 {approx = true} : vector<8x1xf32> -> vector<8x1xf32>
    %668 = vector.broadcast %667 : vector<8x1xf32> to vector<8x8xf32>
    %669 = arith.mulf %664, %668 : vector<8x8xf32>
    %cst_252 = arith.constant dense<0.000000e+00> : vector<8x8xf32>
    %670 = tpu.matmul %669, %657, %cst_252 {dimension_numbers = #tpu.dot_dimension_numbers<[1], [0], [0], [1], [0, 0, 1, 1], [], []>} : vector<8x8xf32>, vector<8x8xf32>, vector<8x8xf32> -> vector<8x8xf32>
    %671 = vector.extract_strided_slice %653 {offsets = [0, 8], sizes = [8, 8], strides = [1, 1]} : vector<8x96xf32> to vector<8x8xf32>
    %672 = vector.extract_strided_slice %653 {offsets = [0, 72], sizes = [8, 8], strides = [1, 1]} : vector<8x96xf32> to vector<8x8xf32>
    %673 = vector.extract_strided_slice %655 {offsets = [8, 0], sizes = [8, 8], strides = [1, 1]} : vector<32x8xf32> to vector<8x8xf32>
    %cst_253 = arith.constant dense<0.000000e+00> : vector<8x8xf32>
    %674 = tpu.matmul %671, %673, %cst_253 {dimension_numbers = #tpu.dot_dimension_numbers<[1], [0], [0], [1], [0, 0, 1, 1], [], []>} : vector<8x8xf32>, vector<8x8xf32>, vector<8x8xf32> -> vector<8x8xf32>
    %cst_254 = arith.constant dense<0xFF800000> : vector<8xf32>
    %675 = vector.multi_reduction <maximumf>, %674, %cst_254 [1] : vector<8x8xf32> to vector<8xf32>
    %676 = vector.shape_cast %675 : vector<8xf32> to vector<8x1xf32>
    %677 = vector.broadcast %676 : vector<8x1xf32> to vector<8x8xf32>
    %678 = arith.subf %674, %677 : vector<8x8xf32>
    %679 = math.exp %678 : vector<8x8xf32>
    %cst_255 = arith.constant dense<0.000000e+00> : vector<8xf32>
    %680 = vector.multi_reduction <add>, %679, %cst_255 [1] : vector<8x8xf32> to vector<8xf32>
    %681 = vector.shape_cast %680 : vector<8xf32> to vector<8x1xf32>
    %682 = tpu.reciprocal %681 {approx = true} : vector<8x1xf32> -> vector<8x1xf32>
    %683 = vector.broadcast %682 : vector<8x1xf32> to vector<8x8xf32>
    %684 = arith.mulf %679, %683 : vector<8x8xf32>
    %cst_256 = arith.constant dense<0.000000e+00> : vector<8x8xf32>
    %685 = tpu.matmul %684, %672, %cst_256 {dimension_numbers = #tpu.dot_dimension_numbers<[1], [0], [0], [1], [0, 0, 1, 1], [], []>} : vector<8x8xf32>, vector<8x8xf32>, vector<8x8xf32> -> vector<8x8xf32>
    %686 = vector.extract_strided_slice %653 {offsets = [0, 16], sizes = [8, 8], strides = [1, 1]} : vector<8x96xf32> to vector<8x8xf32>
    %687 = vector.extract_strided_slice %653 {offsets = [0, 80], sizes = [8, 8], strides = [1, 1]} : vector<8x96xf32> to vector<8x8xf32>
    %688 = vector.extract_strided_slice %655 {offsets = [16, 0], sizes = [8, 8], strides = [1, 1]} : vector<32x8xf32> to vector<8x8xf32>
    %cst_257 = arith.constant dense<0.000000e+00> : vector<8x8xf32>
    %689 = tpu.matmul %686, %688, %cst_257 {dimension_numbers = #tpu.dot_dimension_numbers<[1], [0], [0], [1], [0, 0, 1, 1], [], []>} : vector<8x8xf32>, vector<8x8xf32>, vector<8x8xf32> -> vector<8x8xf32>
    %cst_258 = arith.constant dense<0xFF800000> : vector<8xf32>
    %690 = vector.multi_reduction <maximumf>, %689, %cst_258 [1] : vector<8x8xf32> to vector<8xf32>
    %691 = vector.shape_cast %690 : vector<8xf32> to vector<8x1xf32>
    %692 = vector.broadcast %691 : vector<8x1xf32> to vector<8x8xf32>
    %693 = arith.subf %689, %692 : vector<8x8xf32>
    %694 = math.exp %693 : vector<8x8xf32>
    %cst_259 = arith.constant dense<0.000000e+00> : vector<8xf32>
    %695 = vector.multi_reduction <add>, %694, %cst_259 [1] : vector<8x8xf32> to vector<8xf32>
    %696 = vector.shape_cast %695 : vector<8xf32> to vector<8x1xf32>
    %697 = tpu.reciprocal %696 {approx = true} : vector<8x1xf32> -> vector<8x1xf32>
    %698 = vector.broadcast %697 : vector<8x1xf32> to vector<8x8xf32>
    %699 = arith.mulf %694, %698 : vector<8x8xf32>
    %cst_260 = arith.constant dense<0.000000e+00> : vector<8x8xf32>
    %700 = tpu.matmul %699, %687, %cst_260 {dimension_numbers = #tpu.dot_dimension_numbers<[1], [0], [0], [1], [0, 0, 1, 1], [], []>} : vector<8x8xf32>, vector<8x8xf32>, vector<8x8xf32> -> vector<8x8xf32>
    %701 = vector.extract_strided_slice %653 {offsets = [0, 24], sizes = [8, 8], strides = [1, 1]} : vector<8x96xf32> to vector<8x8xf32>
    %702 = vector.extract_strided_slice %653 {offsets = [0, 88], sizes = [8, 8], strides = [1, 1]} : vector<8x96xf32> to vector<8x8xf32>
    %703 = vector.extract_strided_slice %655 {offsets = [24, 0], sizes = [8, 8], strides = [1, 1]} : vector<32x8xf32> to vector<8x8xf32>
    %cst_261 = arith.constant dense<0.000000e+00> : vector<8x8xf32>
    %704 = tpu.matmul %701, %703, %cst_261 {dimension_numbers = #tpu.dot_dimension_numbers<[1], [0], [0], [1], [0, 0, 1, 1], [], []>} : vector<8x8xf32>, vector<8x8xf32>, vector<8x8xf32> -> vector<8x8xf32>
    %cst_262 = arith.constant dense<0xFF800000> : vector<8xf32>
    %705 = vector.multi_reduction <maximumf>, %704, %cst_262 [1] : vector<8x8xf32> to vector<8xf32>
    %706 = vector.shape_cast %705 : vector<8xf32> to vector<8x1xf32>
    %707 = vector.broadcast %706 : vector<8x1xf32> to vector<8x8xf32>
    %708 = arith.subf %704, %707 : vector<8x8xf32>
    %709 = math.exp %708 : vector<8x8xf32>
    %cst_263 = arith.constant dense<0.000000e+00> : vector<8xf32>
    %710 = vector.multi_reduction <add>, %709, %cst_263 [1] : vector<8x8xf32> to vector<8xf32>
    %711 = vector.shape_cast %710 : vector<8xf32> to vector<8x1xf32>
    %712 = tpu.reciprocal %711 {approx = true} : vector<8x1xf32> -> vector<8x1xf32>
    %713 = vector.broadcast %712 : vector<8x1xf32> to vector<8x8xf32>
    %714 = arith.mulf %709, %713 : vector<8x8xf32>
    %cst_264 = arith.constant dense<0.000000e+00> : vector<8x8xf32>
    %715 = tpu.matmul %714, %702, %cst_264 {dimension_numbers = #tpu.dot_dimension_numbers<[1], [0], [0], [1], [0, 0, 1, 1], [], []>} : vector<8x8xf32>, vector<8x8xf32>, vector<8x8xf32> -> vector<8x8xf32>
    %716 = tpu.concatenate %670, %685, %700, %715 in 1 : vector<8x8xf32>, vector<8x8xf32>, vector<8x8xf32>, vector<8x8xf32> -> vector<8x32xf32>
    %717 = tpu.concatenate %652, %716 in 0 : vector<8x32xf32>, vector<8x32xf32> -> vector<16x32xf32>
    %718 = arith.truncf %717 : vector<16x32xf32> to vector<16x32xbf16>
    %c2_265 = arith.constant 2 : index
    %c0_266 = arith.constant 0 : index
    %c0_267 = arith.constant 0 : index
    %719 = vector.load %arg11[%c2_265, %c0_266, %c0_267] : memref<4x32x32xbf16, #tpu.memory_space<vmem>>, vector<1x32x32xbf16>
    %720 = vector.shape_cast %719 : vector<1x32x32xbf16> to vector<32x32xbf16>
    %cst_268 = arith.constant dense<0.000000e+00> : vector<16x32xf32>
    %721 = tpu.matmul %718, %720, %cst_268 {dimension_numbers = #tpu.dot_dimension_numbers<[1], [0], [0], [1], [0, 0, 1, 1], [], []>} : vector<16x32xbf16>, vector<32x32xbf16>, vector<16x32xf32> -> vector<16x32xf32>
    %c2_269 = arith.constant 2 : index
    %c0_270 = arith.constant 0 : index
    %c0_271 = arith.constant 0 : index
    %722 = vector.load %arg12[%c2_269, %c0_270, %c0_271] : memref<4x1x32xf32, #tpu.memory_space<vmem>>, vector<1x1x32xf32>
    %723 = vector.shape_cast %722 : vector<1x1x32xf32> to vector<1x32xf32>
    %724 = vector.broadcast %723 : vector<1x32xf32> to vector<16x32xf32>
    %725 = arith.addf %721, %724 : vector<16x32xf32>
    %726 = arith.addf %554, %725 : vector<16x32xf32>
    %c2_272 = arith.constant 2 : index
    %c0_273 = arith.constant 0 : index
    %c0_274 = arith.constant 0 : index
    %727 = vector.load %arg13[%c2_272, %c0_273, %c0_274] : memref<4x1x32xf32, #tpu.memory_space<vmem>>, vector<1x1x32xf32>
    %728 = vector.shape_cast %727 : vector<1x1x32xf32> to vector<1x32xf32>
    %c2_275 = arith.constant 2 : index
    %c0_276 = arith.constant 0 : index
    %c0_277 = arith.constant 0 : index
    %729 = vector.load %arg14[%c2_275, %c0_276, %c0_277] : memref<4x1x32xf32, #tpu.memory_space<vmem>>, vector<1x1x32xf32>
    %730 = vector.shape_cast %729 : vector<1x1x32xf32> to vector<1x32xf32>
    %cst_278 = arith.constant dense<0.000000e+00> : vector<16xf32>
    %731 = vector.multi_reduction <add>, %726, %cst_278 [1] : vector<16x32xf32> to vector<16xf32>
    %732 = vector.shape_cast %731 : vector<16xf32> to vector<16x1xf32>
    %cst_279 = arith.constant 3.200000e+01 : f32
    %733 = vector.broadcast %cst_279 : f32 to vector<16x1xf32>
    %734 = arith.divf %732, %733 : vector<16x1xf32>
    %735 = vector.broadcast %734 : vector<16x1xf32> to vector<16x32xf32>
    %736 = arith.subf %726, %735 : vector<16x32xf32>
    %737 = arith.mulf %736, %736 : vector<16x32xf32>
    %cst_280 = arith.constant dense<0.000000e+00> : vector<16xf32>
    %738 = vector.multi_reduction <add>, %737, %cst_280 [1] : vector<16x32xf32> to vector<16xf32>
    %739 = vector.shape_cast %738 : vector<16xf32> to vector<16x1xf32>
    %cst_281 = arith.constant 3.200000e+01 : f32
    %740 = vector.broadcast %cst_281 : f32 to vector<16x1xf32>
    %741 = arith.divf %739, %740 : vector<16x1xf32>
    %742 = vector.broadcast %734 : vector<16x1xf32> to vector<16x32xf32>
    %743 = arith.subf %726, %742 : vector<16x32xf32>
    %cst_282 = arith.constant 9.99999974E-6 : f32
    %744 = vector.broadcast %cst_282 : f32 to vector<16x1xf32>
    %745 = arith.addf %741, %744 : vector<16x1xf32>
    %746 = math.rsqrt %745 : vector<16x1xf32>
    %747 = vector.broadcast %746 : vector<16x1xf32> to vector<16x32xf32>
    %748 = arith.mulf %743, %747 : vector<16x32xf32>
    %749 = vector.broadcast %728 : vector<1x32xf32> to vector<16x32xf32>
    %750 = arith.mulf %748, %749 : vector<16x32xf32>
    %751 = vector.broadcast %730 : vector<1x32xf32> to vector<16x32xf32>
    %752 = arith.addf %750, %751 : vector<16x32xf32>
    %753 = arith.truncf %752 : vector<16x32xf32> to vector<16x32xbf16>
    %c2_283 = arith.constant 2 : index
    %c0_284 = arith.constant 0 : index
    %c0_285 = arith.constant 0 : index
    %754 = vector.load %arg15[%c2_283, %c0_284, %c0_285] : memref<4x32x512xbf16, #tpu.memory_space<vmem>>, vector<1x32x512xbf16>
    %755 = vector.shape_cast %754 : vector<1x32x512xbf16> to vector<32x512xbf16>
    %cst_286 = arith.constant dense<0.000000e+00> : vector<16x512xf32>
    %756 = tpu.matmul %753, %755, %cst_286 {dimension_numbers = #tpu.dot_dimension_numbers<[1], [0], [0], [1], [0, 0, 1, 1], [], []>} : vector<16x32xbf16>, vector<32x512xbf16>, vector<16x512xf32> -> vector<16x512xf32>
    %c2_287 = arith.constant 2 : index
    %c0_288 = arith.constant 0 : index
    %c0_289 = arith.constant 0 : index
    %757 = vector.load %arg16[%c2_287, %c0_288, %c0_289] : memref<4x1x512xf32, #tpu.memory_space<vmem>>, vector<1x1x512xf32>
    %758 = vector.shape_cast %757 : vector<1x1x512xf32> to vector<1x512xf32>
    %759 = vector.broadcast %758 : vector<1x512xf32> to vector<16x512xf32>
    %760 = arith.addf %756, %759 : vector<16x512xf32>
    %cst_290 = arith.constant 5.000000e-01 : f32
    %761 = vector.broadcast %cst_290 : f32 to vector<16x512xf32>
    %762 = arith.mulf %761, %760 : vector<16x512xf32>
    %cst_291 = arith.constant 0.707106769 : f32
    %763 = vector.broadcast %cst_291 : f32 to vector<16x512xf32>
    %764 = arith.mulf %760, %763 : vector<16x512xf32>
    %cst_292 = arith.constant 0.000000e+00 : f32
    %765 = vector.broadcast %cst_292 : f32 to vector<16x512xf32>
    %766 = arith.cmpf oge, %764, %765 : vector<16x512xf32>
    %cst_293 = arith.constant 1.000000e+00 : f32
    %cst_294 = arith.constant -1.000000e+00 : f32
    %767 = vector.broadcast %cst_293 : f32 to vector<16x512xf32>
    %768 = vector.broadcast %cst_294 : f32 to vector<16x512xf32>
    %769 = arith.select %766, %767, %768 : vector<16x512xi1>, vector<16x512xf32>
    %770 = math.absf %764 : vector<16x512xf32>
    %cst_295 = arith.constant 0.327591091 : f32
    %771 = vector.broadcast %cst_295 : f32 to vector<16x512xf32>
    %772 = arith.mulf %771, %770 : vector<16x512xf32>
    %cst_296 = arith.constant 1.000000e+00 : f32
    %773 = vector.broadcast %cst_296 : f32 to vector<16x512xf32>
    %774 = arith.addf %773, %772 : vector<16x512xf32>
    %cst_297 = arith.constant 1.000000e+00 : f32
    %775 = vector.broadcast %cst_297 : f32 to vector<16x512xf32>
    %776 = arith.divf %775, %774 : vector<16x512xf32>
    %cst_298 = arith.constant 1.06140542 : f32
    %777 = vector.broadcast %cst_298 : f32 to vector<16x512xf32>
    %778 = arith.mulf %777, %776 : vector<16x512xf32>
    %cst_299 = arith.constant -1.45315206 : f32
    %779 = vector.broadcast %cst_299 : f32 to vector<16x512xf32>
    %780 = arith.addf %778, %779 : vector<16x512xf32>
    %781 = arith.mulf %780, %776 : vector<16x512xf32>
    %cst_300 = arith.constant 1.42141378 : f32
    %782 = vector.broadcast %cst_300 : f32 to vector<16x512xf32>
    %783 = arith.addf %781, %782 : vector<16x512xf32>
    %784 = arith.mulf %783, %776 : vector<16x512xf32>
    %cst_301 = arith.constant -0.284496725 : f32
    %785 = vector.broadcast %cst_301 : f32 to vector<16x512xf32>
    %786 = arith.addf %784, %785 : vector<16x512xf32>
    %787 = arith.mulf %786, %776 : vector<16x512xf32>
    %cst_302 = arith.constant 0.254829586 : f32
    %788 = vector.broadcast %cst_302 : f32 to vector<16x512xf32>
    %789 = arith.addf %787, %788 : vector<16x512xf32>
    %790 = arith.mulf %789, %776 : vector<16x512xf32>
    %cst_303 = arith.constant 0.000000e+00 : f32
    %791 = vector.broadcast %cst_303 : f32 to vector<16x512xf32>
    %792 = arith.subf %791, %770 : vector<16x512xf32>
    %793 = arith.mulf %792, %770 : vector<16x512xf32>
    %794 = math.exp %793 : vector<16x512xf32>
    %795 = arith.mulf %790, %794 : vector<16x512xf32>
    %cst_304 = arith.constant 1.000000e+00 : f32
    %796 = vector.broadcast %cst_304 : f32 to vector<16x512xf32>
    %797 = arith.subf %796, %795 : vector<16x512xf32>
    %798 = arith.mulf %769, %797 : vector<16x512xf32>
    %cst_305 = arith.constant 1.000000e+00 : f32
    %799 = vector.broadcast %cst_305 : f32 to vector<16x512xf32>
    %800 = arith.addf %799, %798 : vector<16x512xf32>
    %801 = arith.mulf %762, %800 : vector<16x512xf32>
    %802 = arith.truncf %801 : vector<16x512xf32> to vector<16x512xbf16>
    %c2_306 = arith.constant 2 : index
    %c0_307 = arith.constant 0 : index
    %c0_308 = arith.constant 0 : index
    %803 = vector.load %arg17[%c2_306, %c0_307, %c0_308] : memref<4x512x32xbf16, #tpu.memory_space<vmem>>, vector<1x512x32xbf16>
    %804 = vector.shape_cast %803 : vector<1x512x32xbf16> to vector<512x32xbf16>
    %cst_309 = arith.constant dense<0.000000e+00> : vector<16x32xf32>
    %805 = tpu.matmul %802, %804, %cst_309 {dimension_numbers = #tpu.dot_dimension_numbers<[1], [0], [0], [1], [0, 0, 1, 1], [], []>} : vector<16x512xbf16>, vector<512x32xbf16>, vector<16x32xf32> -> vector<16x32xf32>
    %c2_310 = arith.constant 2 : index
    %c0_311 = arith.constant 0 : index
    %c0_312 = arith.constant 0 : index
    %806 = vector.load %arg18[%c2_310, %c0_311, %c0_312] : memref<4x1x32xf32, #tpu.memory_space<vmem>>, vector<1x1x32xf32>
    %807 = vector.shape_cast %806 : vector<1x1x32xf32> to vector<1x32xf32>
    %808 = vector.broadcast %807 : vector<1x32xf32> to vector<16x32xf32>
    %809 = arith.addf %805, %808 : vector<16x32xf32>
    %810 = arith.addf %726, %809 : vector<16x32xf32>
    %c3 = arith.constant 3 : index
    %c0_313 = arith.constant 0 : index
    %c0_314 = arith.constant 0 : index
    %811 = vector.load %arg7[%c3, %c0_313, %c0_314] : memref<4x1x32xf32, #tpu.memory_space<vmem>>, vector<1x1x32xf32>
    %812 = vector.shape_cast %811 : vector<1x1x32xf32> to vector<1x32xf32>
    %c3_315 = arith.constant 3 : index
    %c0_316 = arith.constant 0 : index
    %c0_317 = arith.constant 0 : index
    %813 = vector.load %arg8[%c3_315, %c0_316, %c0_317] : memref<4x1x32xf32, #tpu.memory_space<vmem>>, vector<1x1x32xf32>
    %814 = vector.shape_cast %813 : vector<1x1x32xf32> to vector<1x32xf32>
    %cst_318 = arith.constant dense<0.000000e+00> : vector<16xf32>
    %815 = vector.multi_reduction <add>, %810, %cst_318 [1] : vector<16x32xf32> to vector<16xf32>
    %816 = vector.shape_cast %815 : vector<16xf32> to vector<16x1xf32>
    %cst_319 = arith.constant 3.200000e+01 : f32
    %817 = vector.broadcast %cst_319 : f32 to vector<16x1xf32>
    %818 = arith.divf %816, %817 : vector<16x1xf32>
    %819 = vector.broadcast %818 : vector<16x1xf32> to vector<16x32xf32>
    %820 = arith.subf %810, %819 : vector<16x32xf32>
    %821 = arith.mulf %820, %820 : vector<16x32xf32>
    %cst_320 = arith.constant dense<0.000000e+00> : vector<16xf32>
    %822 = vector.multi_reduction <add>, %821, %cst_320 [1] : vector<16x32xf32> to vector<16xf32>
    %823 = vector.shape_cast %822 : vector<16xf32> to vector<16x1xf32>
    %cst_321 = arith.constant 3.200000e+01 : f32
    %824 = vector.broadcast %cst_321 : f32 to vector<16x1xf32>
    %825 = arith.divf %823, %824 : vector<16x1xf32>
    %826 = vector.broadcast %818 : vector<16x1xf32> to vector<16x32xf32>
    %827 = arith.subf %810, %826 : vector<16x32xf32>
    %cst_322 = arith.constant 9.99999974E-6 : f32
    %828 = vector.broadcast %cst_322 : f32 to vector<16x1xf32>
    %829 = arith.addf %825, %828 : vector<16x1xf32>
    %830 = math.rsqrt %829 : vector<16x1xf32>
    %831 = vector.broadcast %830 : vector<16x1xf32> to vector<16x32xf32>
    %832 = arith.mulf %827, %831 : vector<16x32xf32>
    %833 = vector.broadcast %812 : vector<1x32xf32> to vector<16x32xf32>
    %834 = arith.mulf %832, %833 : vector<16x32xf32>
    %835 = vector.broadcast %814 : vector<1x32xf32> to vector<16x32xf32>
    %836 = arith.addf %834, %835 : vector<16x32xf32>
    %837 = arith.truncf %836 : vector<16x32xf32> to vector<16x32xbf16>
    %c3_323 = arith.constant 3 : index
    %c0_324 = arith.constant 0 : index
    %c0_325 = arith.constant 0 : index
    %838 = vector.load %arg9[%c3_323, %c0_324, %c0_325] : memref<4x32x96xbf16, #tpu.memory_space<vmem>>, vector<1x32x96xbf16>
    %839 = vector.shape_cast %838 : vector<1x32x96xbf16> to vector<32x96xbf16>
    %cst_326 = arith.constant dense<0.000000e+00> : vector<16x96xf32>
    %840 = tpu.matmul %837, %839, %cst_326 {dimension_numbers = #tpu.dot_dimension_numbers<[1], [0], [0], [1], [0, 0, 1, 1], [], []>} : vector<16x32xbf16>, vector<32x96xbf16>, vector<16x96xf32> -> vector<16x96xf32>
    %c3_327 = arith.constant 3 : index
    %c0_328 = arith.constant 0 : index
    %c0_329 = arith.constant 0 : index
    %841 = vector.load %arg10[%c3_327, %c0_328, %c0_329] : memref<4x1x96xf32, #tpu.memory_space<vmem>>, vector<1x1x96xf32>
    %842 = vector.shape_cast %841 : vector<1x1x96xf32> to vector<1x96xf32>
    %843 = vector.broadcast %842 : vector<1x96xf32> to vector<16x96xf32>
    %844 = arith.addf %840, %843 : vector<16x96xf32>
    %845 = vector.extract_strided_slice %844 {offsets = [0, 0], sizes = [8, 96], strides = [1, 1]} : vector<16x96xf32> to vector<8x96xf32>
    %846 = vector.extract_strided_slice %845 {offsets = [0, 32], sizes = [8, 32], strides = [1, 1]} : vector<8x96xf32> to vector<8x32xf32>
    %847 = tpu.transpose %846, [1, 0] : vector<8x32xf32> -> vector<32x8xf32>
    %848 = vector.extract_strided_slice %845 {offsets = [0, 0], sizes = [8, 8], strides = [1, 1]} : vector<8x96xf32> to vector<8x8xf32>
    %849 = vector.extract_strided_slice %845 {offsets = [0, 64], sizes = [8, 8], strides = [1, 1]} : vector<8x96xf32> to vector<8x8xf32>
    %850 = vector.extract_strided_slice %847 {offsets = [0, 0], sizes = [8, 8], strides = [1, 1]} : vector<32x8xf32> to vector<8x8xf32>
    %cst_330 = arith.constant dense<0.000000e+00> : vector<8x8xf32>
    %851 = tpu.matmul %848, %850, %cst_330 {dimension_numbers = #tpu.dot_dimension_numbers<[1], [0], [0], [1], [0, 0, 1, 1], [], []>} : vector<8x8xf32>, vector<8x8xf32>, vector<8x8xf32> -> vector<8x8xf32>
    %cst_331 = arith.constant dense<0xFF800000> : vector<8xf32>
    %852 = vector.multi_reduction <maximumf>, %851, %cst_331 [1] : vector<8x8xf32> to vector<8xf32>
    %853 = vector.shape_cast %852 : vector<8xf32> to vector<8x1xf32>
    %854 = vector.broadcast %853 : vector<8x1xf32> to vector<8x8xf32>
    %855 = arith.subf %851, %854 : vector<8x8xf32>
    %856 = math.exp %855 : vector<8x8xf32>
    %cst_332 = arith.constant dense<0.000000e+00> : vector<8xf32>
    %857 = vector.multi_reduction <add>, %856, %cst_332 [1] : vector<8x8xf32> to vector<8xf32>
    %858 = vector.shape_cast %857 : vector<8xf32> to vector<8x1xf32>
    %859 = tpu.reciprocal %858 {approx = true} : vector<8x1xf32> -> vector<8x1xf32>
    %860 = vector.broadcast %859 : vector<8x1xf32> to vector<8x8xf32>
    %861 = arith.mulf %856, %860 : vector<8x8xf32>
    %cst_333 = arith.constant dense<0.000000e+00> : vector<8x8xf32>
    %862 = tpu.matmul %861, %849, %cst_333 {dimension_numbers = #tpu.dot_dimension_numbers<[1], [0], [0], [1], [0, 0, 1, 1], [], []>} : vector<8x8xf32>, vector<8x8xf32>, vector<8x8xf32> -> vector<8x8xf32>
    %863 = vector.extract_strided_slice %845 {offsets = [0, 8], sizes = [8, 8], strides = [1, 1]} : vector<8x96xf32> to vector<8x8xf32>
    %864 = vector.extract_strided_slice %845 {offsets = [0, 72], sizes = [8, 8], strides = [1, 1]} : vector<8x96xf32> to vector<8x8xf32>
    %865 = vector.extract_strided_slice %847 {offsets = [8, 0], sizes = [8, 8], strides = [1, 1]} : vector<32x8xf32> to vector<8x8xf32>
    %cst_334 = arith.constant dense<0.000000e+00> : vector<8x8xf32>
    %866 = tpu.matmul %863, %865, %cst_334 {dimension_numbers = #tpu.dot_dimension_numbers<[1], [0], [0], [1], [0, 0, 1, 1], [], []>} : vector<8x8xf32>, vector<8x8xf32>, vector<8x8xf32> -> vector<8x8xf32>
    %cst_335 = arith.constant dense<0xFF800000> : vector<8xf32>
    %867 = vector.multi_reduction <maximumf>, %866, %cst_335 [1] : vector<8x8xf32> to vector<8xf32>
    %868 = vector.shape_cast %867 : vector<8xf32> to vector<8x1xf32>
    %869 = vector.broadcast %868 : vector<8x1xf32> to vector<8x8xf32>
    %870 = arith.subf %866, %869 : vector<8x8xf32>
    %871 = math.exp %870 : vector<8x8xf32>
    %cst_336 = arith.constant dense<0.000000e+00> : vector<8xf32>
    %872 = vector.multi_reduction <add>, %871, %cst_336 [1] : vector<8x8xf32> to vector<8xf32>
    %873 = vector.shape_cast %872 : vector<8xf32> to vector<8x1xf32>
    %874 = tpu.reciprocal %873 {approx = true} : vector<8x1xf32> -> vector<8x1xf32>
    %875 = vector.broadcast %874 : vector<8x1xf32> to vector<8x8xf32>
    %876 = arith.mulf %871, %875 : vector<8x8xf32>
    %cst_337 = arith.constant dense<0.000000e+00> : vector<8x8xf32>
    %877 = tpu.matmul %876, %864, %cst_337 {dimension_numbers = #tpu.dot_dimension_numbers<[1], [0], [0], [1], [0, 0, 1, 1], [], []>} : vector<8x8xf32>, vector<8x8xf32>, vector<8x8xf32> -> vector<8x8xf32>
    %878 = vector.extract_strided_slice %845 {offsets = [0, 16], sizes = [8, 8], strides = [1, 1]} : vector<8x96xf32> to vector<8x8xf32>
    %879 = vector.extract_strided_slice %845 {offsets = [0, 80], sizes = [8, 8], strides = [1, 1]} : vector<8x96xf32> to vector<8x8xf32>
    %880 = vector.extract_strided_slice %847 {offsets = [16, 0], sizes = [8, 8], strides = [1, 1]} : vector<32x8xf32> to vector<8x8xf32>
    %cst_338 = arith.constant dense<0.000000e+00> : vector<8x8xf32>
    %881 = tpu.matmul %878, %880, %cst_338 {dimension_numbers = #tpu.dot_dimension_numbers<[1], [0], [0], [1], [0, 0, 1, 1], [], []>} : vector<8x8xf32>, vector<8x8xf32>, vector<8x8xf32> -> vector<8x8xf32>
    %cst_339 = arith.constant dense<0xFF800000> : vector<8xf32>
    %882 = vector.multi_reduction <maximumf>, %881, %cst_339 [1] : vector<8x8xf32> to vector<8xf32>
    %883 = vector.shape_cast %882 : vector<8xf32> to vector<8x1xf32>
    %884 = vector.broadcast %883 : vector<8x1xf32> to vector<8x8xf32>
    %885 = arith.subf %881, %884 : vector<8x8xf32>
    %886 = math.exp %885 : vector<8x8xf32>
    %cst_340 = arith.constant dense<0.000000e+00> : vector<8xf32>
    %887 = vector.multi_reduction <add>, %886, %cst_340 [1] : vector<8x8xf32> to vector<8xf32>
    %888 = vector.shape_cast %887 : vector<8xf32> to vector<8x1xf32>
    %889 = tpu.reciprocal %888 {approx = true} : vector<8x1xf32> -> vector<8x1xf32>
    %890 = vector.broadcast %889 : vector<8x1xf32> to vector<8x8xf32>
    %891 = arith.mulf %886, %890 : vector<8x8xf32>
    %cst_341 = arith.constant dense<0.000000e+00> : vector<8x8xf32>
    %892 = tpu.matmul %891, %879, %cst_341 {dimension_numbers = #tpu.dot_dimension_numbers<[1], [0], [0], [1], [0, 0, 1, 1], [], []>} : vector<8x8xf32>, vector<8x8xf32>, vector<8x8xf32> -> vector<8x8xf32>
    %893 = vector.extract_strided_slice %845 {offsets = [0, 24], sizes = [8, 8], strides = [1, 1]} : vector<8x96xf32> to vector<8x8xf32>
    %894 = vector.extract_strided_slice %845 {offsets = [0, 88], sizes = [8, 8], strides = [1, 1]} : vector<8x96xf32> to vector<8x8xf32>
    %895 = vector.extract_strided_slice %847 {offsets = [24, 0], sizes = [8, 8], strides = [1, 1]} : vector<32x8xf32> to vector<8x8xf32>
    %cst_342 = arith.constant dense<0.000000e+00> : vector<8x8xf32>
    %896 = tpu.matmul %893, %895, %cst_342 {dimension_numbers = #tpu.dot_dimension_numbers<[1], [0], [0], [1], [0, 0, 1, 1], [], []>} : vector<8x8xf32>, vector<8x8xf32>, vector<8x8xf32> -> vector<8x8xf32>
    %cst_343 = arith.constant dense<0xFF800000> : vector<8xf32>
    %897 = vector.multi_reduction <maximumf>, %896, %cst_343 [1] : vector<8x8xf32> to vector<8xf32>
    %898 = vector.shape_cast %897 : vector<8xf32> to vector<8x1xf32>
    %899 = vector.broadcast %898 : vector<8x1xf32> to vector<8x8xf32>
    %900 = arith.subf %896, %899 : vector<8x8xf32>
    %901 = math.exp %900 : vector<8x8xf32>
    %cst_344 = arith.constant dense<0.000000e+00> : vector<8xf32>
    %902 = vector.multi_reduction <add>, %901, %cst_344 [1] : vector<8x8xf32> to vector<8xf32>
    %903 = vector.shape_cast %902 : vector<8xf32> to vector<8x1xf32>
    %904 = tpu.reciprocal %903 {approx = true} : vector<8x1xf32> -> vector<8x1xf32>
    %905 = vector.broadcast %904 : vector<8x1xf32> to vector<8x8xf32>
    %906 = arith.mulf %901, %905 : vector<8x8xf32>
    %cst_345 = arith.constant dense<0.000000e+00> : vector<8x8xf32>
    %907 = tpu.matmul %906, %894, %cst_345 {dimension_numbers = #tpu.dot_dimension_numbers<[1], [0], [0], [1], [0, 0, 1, 1], [], []>} : vector<8x8xf32>, vector<8x8xf32>, vector<8x8xf32> -> vector<8x8xf32>
    %908 = tpu.concatenate %862, %877, %892, %907 in 1 : vector<8x8xf32>, vector<8x8xf32>, vector<8x8xf32>, vector<8x8xf32> -> vector<8x32xf32>
    %909 = vector.extract_strided_slice %844 {offsets = [8, 0], sizes = [8, 96], strides = [1, 1]} : vector<16x96xf32> to vector<8x96xf32>
    %910 = vector.extract_strided_slice %909 {offsets = [0, 32], sizes = [8, 32], strides = [1, 1]} : vector<8x96xf32> to vector<8x32xf32>
    %911 = tpu.transpose %910, [1, 0] : vector<8x32xf32> -> vector<32x8xf32>
    %912 = vector.extract_strided_slice %909 {offsets = [0, 0], sizes = [8, 8], strides = [1, 1]} : vector<8x96xf32> to vector<8x8xf32>
    %913 = vector.extract_strided_slice %909 {offsets = [0, 64], sizes = [8, 8], strides = [1, 1]} : vector<8x96xf32> to vector<8x8xf32>
    %914 = vector.extract_strided_slice %911 {offsets = [0, 0], sizes = [8, 8], strides = [1, 1]} : vector<32x8xf32> to vector<8x8xf32>
    %cst_346 = arith.constant dense<0.000000e+00> : vector<8x8xf32>
    %915 = tpu.matmul %912, %914, %cst_346 {dimension_numbers = #tpu.dot_dimension_numbers<[1], [0], [0], [1], [0, 0, 1, 1], [], []>} : vector<8x8xf32>, vector<8x8xf32>, vector<8x8xf32> -> vector<8x8xf32>
    %cst_347 = arith.constant dense<0xFF800000> : vector<8xf32>
    %916 = vector.multi_reduction <maximumf>, %915, %cst_347 [1] : vector<8x8xf32> to vector<8xf32>
    %917 = vector.shape_cast %916 : vector<8xf32> to vector<8x1xf32>
    %918 = vector.broadcast %917 : vector<8x1xf32> to vector<8x8xf32>
    %919 = arith.subf %915, %918 : vector<8x8xf32>
    %920 = math.exp %919 : vector<8x8xf32>
    %cst_348 = arith.constant dense<0.000000e+00> : vector<8xf32>
    %921 = vector.multi_reduction <add>, %920, %cst_348 [1] : vector<8x8xf32> to vector<8xf32>
    %922 = vector.shape_cast %921 : vector<8xf32> to vector<8x1xf32>
    %923 = tpu.reciprocal %922 {approx = true} : vector<8x1xf32> -> vector<8x1xf32>
    %924 = vector.broadcast %923 : vector<8x1xf32> to vector<8x8xf32>
    %925 = arith.mulf %920, %924 : vector<8x8xf32>
    %cst_349 = arith.constant dense<0.000000e+00> : vector<8x8xf32>
    %926 = tpu.matmul %925, %913, %cst_349 {dimension_numbers = #tpu.dot_dimension_numbers<[1], [0], [0], [1], [0, 0, 1, 1], [], []>} : vector<8x8xf32>, vector<8x8xf32>, vector<8x8xf32> -> vector<8x8xf32>
    %927 = vector.extract_strided_slice %909 {offsets = [0, 8], sizes = [8, 8], strides = [1, 1]} : vector<8x96xf32> to vector<8x8xf32>
    %928 = vector.extract_strided_slice %909 {offsets = [0, 72], sizes = [8, 8], strides = [1, 1]} : vector<8x96xf32> to vector<8x8xf32>
    %929 = vector.extract_strided_slice %911 {offsets = [8, 0], sizes = [8, 8], strides = [1, 1]} : vector<32x8xf32> to vector<8x8xf32>
    %cst_350 = arith.constant dense<0.000000e+00> : vector<8x8xf32>
    %930 = tpu.matmul %927, %929, %cst_350 {dimension_numbers = #tpu.dot_dimension_numbers<[1], [0], [0], [1], [0, 0, 1, 1], [], []>} : vector<8x8xf32>, vector<8x8xf32>, vector<8x8xf32> -> vector<8x8xf32>
    %cst_351 = arith.constant dense<0xFF800000> : vector<8xf32>
    %931 = vector.multi_reduction <maximumf>, %930, %cst_351 [1] : vector<8x8xf32> to vector<8xf32>
    %932 = vector.shape_cast %931 : vector<8xf32> to vector<8x1xf32>
    %933 = vector.broadcast %932 : vector<8x1xf32> to vector<8x8xf32>
    %934 = arith.subf %930, %933 : vector<8x8xf32>
    %935 = math.exp %934 : vector<8x8xf32>
    %cst_352 = arith.constant dense<0.000000e+00> : vector<8xf32>
    %936 = vector.multi_reduction <add>, %935, %cst_352 [1] : vector<8x8xf32> to vector<8xf32>
    %937 = vector.shape_cast %936 : vector<8xf32> to vector<8x1xf32>
    %938 = tpu.reciprocal %937 {approx = true} : vector<8x1xf32> -> vector<8x1xf32>
    %939 = vector.broadcast %938 : vector<8x1xf32> to vector<8x8xf32>
    %940 = arith.mulf %935, %939 : vector<8x8xf32>
    %cst_353 = arith.constant dense<0.000000e+00> : vector<8x8xf32>
    %941 = tpu.matmul %940, %928, %cst_353 {dimension_numbers = #tpu.dot_dimension_numbers<[1], [0], [0], [1], [0, 0, 1, 1], [], []>} : vector<8x8xf32>, vector<8x8xf32>, vector<8x8xf32> -> vector<8x8xf32>
    %942 = vector.extract_strided_slice %909 {offsets = [0, 16], sizes = [8, 8], strides = [1, 1]} : vector<8x96xf32> to vector<8x8xf32>
    %943 = vector.extract_strided_slice %909 {offsets = [0, 80], sizes = [8, 8], strides = [1, 1]} : vector<8x96xf32> to vector<8x8xf32>
    %944 = vector.extract_strided_slice %911 {offsets = [16, 0], sizes = [8, 8], strides = [1, 1]} : vector<32x8xf32> to vector<8x8xf32>
    %cst_354 = arith.constant dense<0.000000e+00> : vector<8x8xf32>
    %945 = tpu.matmul %942, %944, %cst_354 {dimension_numbers = #tpu.dot_dimension_numbers<[1], [0], [0], [1], [0, 0, 1, 1], [], []>} : vector<8x8xf32>, vector<8x8xf32>, vector<8x8xf32> -> vector<8x8xf32>
    %cst_355 = arith.constant dense<0xFF800000> : vector<8xf32>
    %946 = vector.multi_reduction <maximumf>, %945, %cst_355 [1] : vector<8x8xf32> to vector<8xf32>
    %947 = vector.shape_cast %946 : vector<8xf32> to vector<8x1xf32>
    %948 = vector.broadcast %947 : vector<8x1xf32> to vector<8x8xf32>
    %949 = arith.subf %945, %948 : vector<8x8xf32>
    %950 = math.exp %949 : vector<8x8xf32>
    %cst_356 = arith.constant dense<0.000000e+00> : vector<8xf32>
    %951 = vector.multi_reduction <add>, %950, %cst_356 [1] : vector<8x8xf32> to vector<8xf32>
    %952 = vector.shape_cast %951 : vector<8xf32> to vector<8x1xf32>
    %953 = tpu.reciprocal %952 {approx = true} : vector<8x1xf32> -> vector<8x1xf32>
    %954 = vector.broadcast %953 : vector<8x1xf32> to vector<8x8xf32>
    %955 = arith.mulf %950, %954 : vector<8x8xf32>
    %cst_357 = arith.constant dense<0.000000e+00> : vector<8x8xf32>
    %956 = tpu.matmul %955, %943, %cst_357 {dimension_numbers = #tpu.dot_dimension_numbers<[1], [0], [0], [1], [0, 0, 1, 1], [], []>} : vector<8x8xf32>, vector<8x8xf32>, vector<8x8xf32> -> vector<8x8xf32>
    %957 = vector.extract_strided_slice %909 {offsets = [0, 24], sizes = [8, 8], strides = [1, 1]} : vector<8x96xf32> to vector<8x8xf32>
    %958 = vector.extract_strided_slice %909 {offsets = [0, 88], sizes = [8, 8], strides = [1, 1]} : vector<8x96xf32> to vector<8x8xf32>
    %959 = vector.extract_strided_slice %911 {offsets = [24, 0], sizes = [8, 8], strides = [1, 1]} : vector<32x8xf32> to vector<8x8xf32>
    %cst_358 = arith.constant dense<0.000000e+00> : vector<8x8xf32>
    %960 = tpu.matmul %957, %959, %cst_358 {dimension_numbers = #tpu.dot_dimension_numbers<[1], [0], [0], [1], [0, 0, 1, 1], [], []>} : vector<8x8xf32>, vector<8x8xf32>, vector<8x8xf32> -> vector<8x8xf32>
    %cst_359 = arith.constant dense<0xFF800000> : vector<8xf32>
    %961 = vector.multi_reduction <maximumf>, %960, %cst_359 [1] : vector<8x8xf32> to vector<8xf32>
    %962 = vector.shape_cast %961 : vector<8xf32> to vector<8x1xf32>
    %963 = vector.broadcast %962 : vector<8x1xf32> to vector<8x8xf32>
    %964 = arith.subf %960, %963 : vector<8x8xf32>
    %965 = math.exp %964 : vector<8x8xf32>
    %cst_360 = arith.constant dense<0.000000e+00> : vector<8xf32>
    %966 = vector.multi_reduction <add>, %965, %cst_360 [1] : vector<8x8xf32> to vector<8xf32>
    %967 = vector.shape_cast %966 : vector<8xf32> to vector<8x1xf32>
    %968 = tpu.reciprocal %967 {approx = true} : vector<8x1xf32> -> vector<8x1xf32>
    %969 = vector.broadcast %968 : vector<8x1xf32> to vector<8x8xf32>
    %970 = arith.mulf %965, %969 : vector<8x8xf32>
    %cst_361 = arith.constant dense<0.000000e+00> : vector<8x8xf32>
    %971 = tpu.matmul %970, %958, %cst_361 {dimension_numbers = #tpu.dot_dimension_numbers<[1], [0], [0], [1], [0, 0, 1, 1], [], []>} : vector<8x8xf32>, vector<8x8xf32>, vector<8x8xf32> -> vector<8x8xf32>
    %972 = tpu.concatenate %926, %941, %956, %971 in 1 : vector<8x8xf32>, vector<8x8xf32>, vector<8x8xf32>, vector<8x8xf32> -> vector<8x32xf32>
    %973 = tpu.concatenate %908, %972 in 0 : vector<8x32xf32>, vector<8x32xf32> -> vector<16x32xf32>
    %974 = arith.truncf %973 : vector<16x32xf32> to vector<16x32xbf16>
    %c3_362 = arith.constant 3 : index
    %c0_363 = arith.constant 0 : index
    %c0_364 = arith.constant 0 : index
    %975 = vector.load %arg11[%c3_362, %c0_363, %c0_364] : memref<4x32x32xbf16, #tpu.memory_space<vmem>>, vector<1x32x32xbf16>
    %976 = vector.shape_cast %975 : vector<1x32x32xbf16> to vector<32x32xbf16>
    %cst_365 = arith.constant dense<0.000000e+00> : vector<16x32xf32>
    %977 = tpu.matmul %974, %976, %cst_365 {dimension_numbers = #tpu.dot_dimension_numbers<[1], [0], [0], [1], [0, 0, 1, 1], [], []>} : vector<16x32xbf16>, vector<32x32xbf16>, vector<16x32xf32> -> vector<16x32xf32>
    %c3_366 = arith.constant 3 : index
    %c0_367 = arith.constant 0 : index
    %c0_368 = arith.constant 0 : index
    %978 = vector.load %arg12[%c3_366, %c0_367, %c0_368] : memref<4x1x32xf32, #tpu.memory_space<vmem>>, vector<1x1x32xf32>
    %979 = vector.shape_cast %978 : vector<1x1x32xf32> to vector<1x32xf32>
    %980 = vector.broadcast %979 : vector<1x32xf32> to vector<16x32xf32>
    %981 = arith.addf %977, %980 : vector<16x32xf32>
    %982 = arith.addf %810, %981 : vector<16x32xf32>
    %c3_369 = arith.constant 3 : index
    %c0_370 = arith.constant 0 : index
    %c0_371 = arith.constant 0 : index
    %983 = vector.load %arg13[%c3_369, %c0_370, %c0_371] : memref<4x1x32xf32, #tpu.memory_space<vmem>>, vector<1x1x32xf32>
    %984 = vector.shape_cast %983 : vector<1x1x32xf32> to vector<1x32xf32>
    %c3_372 = arith.constant 3 : index
    %c0_373 = arith.constant 0 : index
    %c0_374 = arith.constant 0 : index
    %985 = vector.load %arg14[%c3_372, %c0_373, %c0_374] : memref<4x1x32xf32, #tpu.memory_space<vmem>>, vector<1x1x32xf32>
    %986 = vector.shape_cast %985 : vector<1x1x32xf32> to vector<1x32xf32>
    %cst_375 = arith.constant dense<0.000000e+00> : vector<16xf32>
    %987 = vector.multi_reduction <add>, %982, %cst_375 [1] : vector<16x32xf32> to vector<16xf32>
    %988 = vector.shape_cast %987 : vector<16xf32> to vector<16x1xf32>
    %cst_376 = arith.constant 3.200000e+01 : f32
    %989 = vector.broadcast %cst_376 : f32 to vector<16x1xf32>
    %990 = arith.divf %988, %989 : vector<16x1xf32>
    %991 = vector.broadcast %990 : vector<16x1xf32> to vector<16x32xf32>
    %992 = arith.subf %982, %991 : vector<16x32xf32>
    %993 = arith.mulf %992, %992 : vector<16x32xf32>
    %cst_377 = arith.constant dense<0.000000e+00> : vector<16xf32>
    %994 = vector.multi_reduction <add>, %993, %cst_377 [1] : vector<16x32xf32> to vector<16xf32>
    %995 = vector.shape_cast %994 : vector<16xf32> to vector<16x1xf32>
    %cst_378 = arith.constant 3.200000e+01 : f32
    %996 = vector.broadcast %cst_378 : f32 to vector<16x1xf32>
    %997 = arith.divf %995, %996 : vector<16x1xf32>
    %998 = vector.broadcast %990 : vector<16x1xf32> to vector<16x32xf32>
    %999 = arith.subf %982, %998 : vector<16x32xf32>
    %cst_379 = arith.constant 9.99999974E-6 : f32
    %1000 = vector.broadcast %cst_379 : f32 to vector<16x1xf32>
    %1001 = arith.addf %997, %1000 : vector<16x1xf32>
    %1002 = math.rsqrt %1001 : vector<16x1xf32>
    %1003 = vector.broadcast %1002 : vector<16x1xf32> to vector<16x32xf32>
    %1004 = arith.mulf %999, %1003 : vector<16x32xf32>
    %1005 = vector.broadcast %984 : vector<1x32xf32> to vector<16x32xf32>
    %1006 = arith.mulf %1004, %1005 : vector<16x32xf32>
    %1007 = vector.broadcast %986 : vector<1x32xf32> to vector<16x32xf32>
    %1008 = arith.addf %1006, %1007 : vector<16x32xf32>
    %1009 = arith.truncf %1008 : vector<16x32xf32> to vector<16x32xbf16>
    %c3_380 = arith.constant 3 : index
    %c0_381 = arith.constant 0 : index
    %c0_382 = arith.constant 0 : index
    %1010 = vector.load %arg15[%c3_380, %c0_381, %c0_382] : memref<4x32x512xbf16, #tpu.memory_space<vmem>>, vector<1x32x512xbf16>
    %1011 = vector.shape_cast %1010 : vector<1x32x512xbf16> to vector<32x512xbf16>
    %cst_383 = arith.constant dense<0.000000e+00> : vector<16x512xf32>
    %1012 = tpu.matmul %1009, %1011, %cst_383 {dimension_numbers = #tpu.dot_dimension_numbers<[1], [0], [0], [1], [0, 0, 1, 1], [], []>} : vector<16x32xbf16>, vector<32x512xbf16>, vector<16x512xf32> -> vector<16x512xf32>
    %c3_384 = arith.constant 3 : index
    %c0_385 = arith.constant 0 : index
    %c0_386 = arith.constant 0 : index
    %1013 = vector.load %arg16[%c3_384, %c0_385, %c0_386] : memref<4x1x512xf32, #tpu.memory_space<vmem>>, vector<1x1x512xf32>
    %1014 = vector.shape_cast %1013 : vector<1x1x512xf32> to vector<1x512xf32>
    %1015 = vector.broadcast %1014 : vector<1x512xf32> to vector<16x512xf32>
    %1016 = arith.addf %1012, %1015 : vector<16x512xf32>
    %cst_387 = arith.constant 5.000000e-01 : f32
    %1017 = vector.broadcast %cst_387 : f32 to vector<16x512xf32>
    %1018 = arith.mulf %1017, %1016 : vector<16x512xf32>
    %cst_388 = arith.constant 0.707106769 : f32
    %1019 = vector.broadcast %cst_388 : f32 to vector<16x512xf32>
    %1020 = arith.mulf %1016, %1019 : vector<16x512xf32>
    %cst_389 = arith.constant 0.000000e+00 : f32
    %1021 = vector.broadcast %cst_389 : f32 to vector<16x512xf32>
    %1022 = arith.cmpf oge, %1020, %1021 : vector<16x512xf32>
    %cst_390 = arith.constant 1.000000e+00 : f32
    %cst_391 = arith.constant -1.000000e+00 : f32
    %1023 = vector.broadcast %cst_390 : f32 to vector<16x512xf32>
    %1024 = vector.broadcast %cst_391 : f32 to vector<16x512xf32>
    %1025 = arith.select %1022, %1023, %1024 : vector<16x512xi1>, vector<16x512xf32>
    %1026 = math.absf %1020 : vector<16x512xf32>
    %cst_392 = arith.constant 0.327591091 : f32
    %1027 = vector.broadcast %cst_392 : f32 to vector<16x512xf32>
    %1028 = arith.mulf %1027, %1026 : vector<16x512xf32>
    %cst_393 = arith.constant 1.000000e+00 : f32
    %1029 = vector.broadcast %cst_393 : f32 to vector<16x512xf32>
    %1030 = arith.addf %1029, %1028 : vector<16x512xf32>
    %cst_394 = arith.constant 1.000000e+00 : f32
    %1031 = vector.broadcast %cst_394 : f32 to vector<16x512xf32>
    %1032 = arith.divf %1031, %1030 : vector<16x512xf32>
    %cst_395 = arith.constant 1.06140542 : f32
    %1033 = vector.broadcast %cst_395 : f32 to vector<16x512xf32>
    %1034 = arith.mulf %1033, %1032 : vector<16x512xf32>
    %cst_396 = arith.constant -1.45315206 : f32
    %1035 = vector.broadcast %cst_396 : f32 to vector<16x512xf32>
    %1036 = arith.addf %1034, %1035 : vector<16x512xf32>
    %1037 = arith.mulf %1036, %1032 : vector<16x512xf32>
    %cst_397 = arith.constant 1.42141378 : f32
    %1038 = vector.broadcast %cst_397 : f32 to vector<16x512xf32>
    %1039 = arith.addf %1037, %1038 : vector<16x512xf32>
    %1040 = arith.mulf %1039, %1032 : vector<16x512xf32>
    %cst_398 = arith.constant -0.284496725 : f32
    %1041 = vector.broadcast %cst_398 : f32 to vector<16x512xf32>
    %1042 = arith.addf %1040, %1041 : vector<16x512xf32>
    %1043 = arith.mulf %1042, %1032 : vector<16x512xf32>
    %cst_399 = arith.constant 0.254829586 : f32
    %1044 = vector.broadcast %cst_399 : f32 to vector<16x512xf32>
    %1045 = arith.addf %1043, %1044 : vector<16x512xf32>
    %1046 = arith.mulf %1045, %1032 : vector<16x512xf32>
    %cst_400 = arith.constant 0.000000e+00 : f32
    %1047 = vector.broadcast %cst_400 : f32 to vector<16x512xf32>
    %1048 = arith.subf %1047, %1026 : vector<16x512xf32>
    %1049 = arith.mulf %1048, %1026 : vector<16x512xf32>
    %1050 = math.exp %1049 : vector<16x512xf32>
    %1051 = arith.mulf %1046, %1050 : vector<16x512xf32>
    %cst_401 = arith.constant 1.000000e+00 : f32
    %1052 = vector.broadcast %cst_401 : f32 to vector<16x512xf32>
    %1053 = arith.subf %1052, %1051 : vector<16x512xf32>
    %1054 = arith.mulf %1025, %1053 : vector<16x512xf32>
    %cst_402 = arith.constant 1.000000e+00 : f32
    %1055 = vector.broadcast %cst_402 : f32 to vector<16x512xf32>
    %1056 = arith.addf %1055, %1054 : vector<16x512xf32>
    %1057 = arith.mulf %1018, %1056 : vector<16x512xf32>
    %1058 = arith.truncf %1057 : vector<16x512xf32> to vector<16x512xbf16>
    %c3_403 = arith.constant 3 : index
    %c0_404 = arith.constant 0 : index
    %c0_405 = arith.constant 0 : index
    %1059 = vector.load %arg17[%c3_403, %c0_404, %c0_405] : memref<4x512x32xbf16, #tpu.memory_space<vmem>>, vector<1x512x32xbf16>
    %1060 = vector.shape_cast %1059 : vector<1x512x32xbf16> to vector<512x32xbf16>
    %cst_406 = arith.constant dense<0.000000e+00> : vector<16x32xf32>
    %1061 = tpu.matmul %1058, %1060, %cst_406 {dimension_numbers = #tpu.dot_dimension_numbers<[1], [0], [0], [1], [0, 0, 1, 1], [], []>} : vector<16x512xbf16>, vector<512x32xbf16>, vector<16x32xf32> -> vector<16x32xf32>
    %c3_407 = arith.constant 3 : index
    %c0_408 = arith.constant 0 : index
    %c0_409 = arith.constant 0 : index
    %1062 = vector.load %arg18[%c3_407, %c0_408, %c0_409] : memref<4x1x32xf32, #tpu.memory_space<vmem>>, vector<1x1x32xf32>
    %1063 = vector.shape_cast %1062 : vector<1x1x32xf32> to vector<1x32xf32>
    %1064 = vector.broadcast %1063 : vector<1x32xf32> to vector<16x32xf32>
    %1065 = arith.addf %1061, %1064 : vector<16x32xf32>
    %1066 = arith.addf %982, %1065 : vector<16x32xf32>
    %c0_410 = arith.constant 0 : index
    %c0_411 = arith.constant 0 : index
    %1067 = vector.load %arg19[%c0_410, %c0_411] : memref<16x32xf32, #tpu.memory_space<vmem>>, vector<16x32xf32>
    tpu.vector_store %arg19[%c0_410, %c0_411], %1066 {strides = array<i32>} : memref<16x32xf32, #tpu.memory_space<vmem>>, vector<16x32xf32>,
    return
  }
  func.func @transform_0(%arg0: i32) -> (i32, i32) {
    %c0_i32 = arith.constant 0 : i32
    %c0_i32_0 = arith.constant 0 : i32
    %c0_i32_1 = arith.constant 0 : i32
    return %c0_i32, %c0_i32_0 : i32, i32
  }
  func.func @transform_1(%arg0: i32) -> (i32, i32) {
    %c0_i32 = arith.constant 0 : i32
    %c0_i32_0 = arith.constant 0 : i32
    %c0_i32_1 = arith.constant 0 : i32
    return %c0_i32, %c0_i32_0 : i32, i32
  }
  func.func @transform_2(%arg0: i32) -> (i32, i32) {
    %c0_i32 = arith.constant 0 : i32
    %c0_i32_0 = arith.constant 0 : i32
    %c0_i32_1 = arith.constant 0 : i32
    return %c0_i32, %c0_i32_0 : i32, i32
  }
  func.func @transform_3(%arg0: i32) -> (i32, i32) {
    %c0_i32 = arith.constant 0 : i32
    %c0_i32_0 = arith.constant 0 : i32
    %c0_i32_1 = arith.constant 0 : i32
    return %c0_i32, %c0_i32_0 : i32, i32
  }
  func.func @transform_4(%arg0: i32) -> (i32, i32) {
    %c0_i32 = arith.constant 0 : i32
    %c0_i32_0 = arith.constant 0 : i32
    %c0_i32_1 = arith.constant 0 : i32
    return %c0_i32, %c0_i32_0 : i32, i32
  }
  func.func @transform_5(%arg0: i32) -> (i32, i32) {
    %c0_i32 = arith.constant 0 : i32
    %c0_i32_0 = arith.constant 0 : i32
    %c0_i32_1 = arith.constant 0 : i32
    return %c0_i32, %c0_i32_0 : i32, i32
  }
  func.func @transform_6(%arg0: i32) -> (i32, i32, i32) {
    %c0_i32 = arith.constant 0 : i32
    %c0_i32_0 = arith.constant 0 : i32
    %c0_i32_1 = arith.constant 0 : i32
    %c0_i32_2 = arith.constant 0 : i32
    return %c0_i32, %c0_i32_0, %c0_i32_1 : i32, i32, i32
  }
  func.func @transform_7(%arg0: i32) -> (i32, i32, i32) {
    %c0_i32 = arith.constant 0 : i32
    %c0_i32_0 = arith.constant 0 : i32
    %c0_i32_1 = arith.constant 0 : i32
    %c0_i32_2 = arith.constant 0 : i32
    return %c0_i32, %c0_i32_0, %c0_i32_1 : i32, i32, i32
  }
  func.func @transform_8(%arg0: i32) -> (i32, i32, i32) {
    %c0_i32 = arith.constant 0 : i32
    %c0_i32_0 = arith.constant 0 : i32
    %c0_i32_1 = arith.constant 0 : i32
    %c0_i32_2 = arith.constant 0 : i32
    return %c0_i32, %c0_i32_0, %c0_i32_1 : i32, i32, i32
  }
  func.func @transform_9(%arg0: i32) -> (i32, i32, i32) {
    %c0_i32 = arith.constant 0 : i32
    %c0_i32_0 = arith.constant 0 : i32
    %c0_i32_1 = arith.constant 0 : i32
    %c0_i32_2 = arith.constant 0 : i32
    return %c0_i32, %c0_i32_0, %c0_i32_1 : i32, i32, i32
  }
  func.func @transform_10(%arg0: i32) -> (i32, i32, i32) {
    %c0_i32 = arith.constant 0 : i32
    %c0_i32_0 = arith.constant 0 : i32
    %c0_i32_1 = arith.constant 0 : i32
    %c0_i32_2 = arith.constant 0 : i32
    return %c0_i32, %c0_i32_0, %c0_i32_1 : i32, i32, i32
  }
  func.func @transform_11(%arg0: i32) -> (i32, i32, i32) {
    %c0_i32 = arith.constant 0 : i32
    %c0_i32_0 = arith.constant 0 : i32
    %c0_i32_1 = arith.constant 0 : i32
    %c0_i32_2 = arith.constant 0 : i32
    return %c0_i32, %c0_i32_0, %c0_i32_1 : i32, i32, i32
  }
  func.func @transform_12(%arg0: i32) -> (i32, i32, i32) {
    %c0_i32 = arith.constant 0 : i32
    %c0_i32_0 = arith.constant 0 : i32
    %c0_i32_1 = arith.constant 0 : i32
    %c0_i32_2 = arith.constant 0 : i32
    return %c0_i32, %c0_i32_0, %c0_i32_1 : i32, i32, i32
  }
  func.func @transform_13(%arg0: i32) -> (i32, i32, i32) {
    %c0_i32 = arith.constant 0 : i32
    %c0_i32_0 = arith.constant 0 : i32
    %c0_i32_1 = arith.constant 0 : i32
    %c0_i32_2 = arith.constant 0 : i32
    return %c0_i32, %c0_i32_0, %c0_i32_1 : i32, i32, i32
  }
  func.func @transform_14(%arg0: i32) -> (i32, i32, i32) {
    %c0_i32 = arith.constant 0 : i32
    %c0_i32_0 = arith.constant 0 : i32
    %c0_i32_1 = arith.constant 0 : i32
    %c0_i32_2 = arith.constant 0 : i32
    return %c0_i32, %c0_i32_0, %c0_i32_1 : i32, i32, i32
  }
  func.func @transform_15(%arg0: i32) -> (i32, i32, i32) {
    %c0_i32 = arith.constant 0 : i32
    %c0_i32_0 = arith.constant 0 : i32
    %c0_i32_1 = arith.constant 0 : i32
    %c0_i32_2 = arith.constant 0 : i32
    return %c0_i32, %c0_i32_0, %c0_i32_1 : i32, i32, i32
  }
  func.func @transform_16(%arg0: i32) -> (i32, i32, i32) {
    %c0_i32 = arith.constant 0 : i32
    %c0_i32_0 = arith.constant 0 : i32
    %c0_i32_1 = arith.constant 0 : i32
    %c0_i32_2 = arith.constant 0 : i32
    return %c0_i32, %c0_i32_0, %c0_i32_1 : i32, i32, i32
  }
  func.func @transform_17(%arg0: i32) -> (i32, i32, i32) {
    %c0_i32 = arith.constant 0 : i32
    %c0_i32_0 = arith.constant 0 : i32
    %c0_i32_1 = arith.constant 0 : i32
    %c0_i32_2 = arith.constant 0 : i32
    return %c0_i32, %c0_i32_0, %c0_i32_1 : i32, i32, i32
  }
  func.func @transform_18(%arg0: i32) -> (i32, i32) {
    %c0_i32 = arith.constant 0 : i32
    %c0_i32_0 = arith.constant 0 : i32
    %c0_i32_1 = arith.constant 0 : i32
    return %c0_i32, %c0_i32_0 : i32, i32
  }
}

</mosaic_0001>

<bundles_post_ra>
// kernel: tpu_custom_call.1
= control target key start
LH: loop header
LB: loop body
LE: loop exit
PB: predicated region body
PF: predicated region fallthrough
CT: control target
= control target key end

     0   :  { %s13564_s0 = inlined_call_operand.vmem [shape: f32[16,32], index: 0, kind: input, shape index: {}]   ;;  %s13565_s1 = inlined_call_operand.vmem [shape: f32[16,32], index: 1, kind: input, shape index: {}]   ;;  %s13566_s2 = inlined_call_operand.vmem [shape: f32[1,32], index: 2, kind: input, shape index: {}]   ;;  %s13567_s3 = inlined_call_operand.vmem [shape: f32[1,32], index: 3, kind: input, shape index: {}]   ;;  %s13568_s4 = inlined_call_operand.vmem [shape: bf16[32,32], index: 4, kind: input, shape index: {}]   ;;  %s13569_s5 = inlined_call_operand.vmem [shape: f32[1,32], index: 5, kind: input, shape index: {}]   ;;  %s13570_s6 = inlined_call_operand.vmem [shape: f32[4,1,32], index: 6, kind: input, shape index: {}]   ;;  %s13571_s7 = inlined_call_operand.vmem [shape: f32[4,1,32], index: 7, kind: input, shape index: {}]   ;;  %s13572_s8 = inlined_call_operand.vmem [shape: bf16[4,32,96], index: 8, kind: input, shape index: {}]   ;;  %s13573_s9 = inlined_call_operand.vmem [shape: f32[4,1,96], index: 9, kind: input, shape index: {}]   ;;  %s13574_s10 = inlined_call_operand.vmem [shape: bf16[4,32,32], index: 10, kind: input, shape index: {}]   ;;  %s13575_s11 = inlined_call_operand.vmem [shape: f32[4,1,32], index: 11, kind: input, shape index: {}]   ;;  %s13576_s12 = inlined_call_operand.vmem [shape: f32[4,1,32], index: 12, kind: input, shape index: {}]   ;;  %s13577_s13 = inlined_call_operand.vmem [shape: f32[4,1,32], index: 13, kind: input, shape index: {}]   ;;  %s13578_s14 = inlined_call_operand.vmem [shape: bf16[4,32,512], index: 14, kind: input, shape index: {}]   ;;  %s13579_s15 = inlined_call_operand.vmem [shape: f32[4,1,512], index: 15, kind: input, shape index: {}]   ;;  %s13580_s16 = inlined_call_operand.vmem [shape: bf16[4,512,32], index: 16, kind: input, shape index: {}]   ;;  %s13581_s17 = inlined_call_operand.vmem [shape: f32[4,1,32], index: 17, kind: input, shape index: {}]   ;;  %s13582_s18 = inlined_call_operand.hbm [shape: f32[16,32], index: 18, kind: output, shape index: {}]  }
   0x1   :  { %13619 = sst [smem:[#allocation5_spill]] %s13564_s0 }
   0x2   :  { %13620 = sst [smem:[#allocation6_spill]] %s13565_s1 }
   0x3   :  { %13621 = sst [smem:[#allocation7_spill]] %s13566_s2 }
   0x4   :  { %13622 = sst [smem:[#allocation8_spill]] %s13574_s10 }
   0x5   :  { %13623 = sst [smem:[#allocation9_spill]] %s13575_s11 }
   0x6   :  { %13624 = sst [smem:[#allocation10_spill]] %s13582_s18 }
   0x7   :  { %s13625_s29 = sld [smem:[#allocation5_spill]]  ;;  %vm73_vm0 = vcmask 261120  }
   0xd   :  { %v61_v0 = vld [vmem:[%s13625_s29] sm:$0xff]  ;;  %v62_v1 = vld [vmem:[%s13625_s29 + $0x8] sm:$0xff] }
   0xe   :  { %vm63_vm1 = vcmp.ne.f32.partialorder %v61_v0, %v61_v0  ;;  %vm64_vm2 = vcmp.ne.f32.partialorder %v62_v1, %v62_v1 }
   0xf   :  { %v65_v2 = vsel %vm63_vm1, 0.0, %v61_v0  ;;  %v66_v3 = vsel %vm64_vm2, 0.0, %v62_v1 }
  0x10   :  { %v9452_v4 = vclamps-f32 %v65_v2, 3.4028235e+38  ;;  %v9453_v5 = vclamps-f32 %v66_v3, 3.4028235e+38 }
  0x12   :  { %v74_v6 = vsel %vm73_vm0, %v9452_v4, 0.0  ;;  %v77_v7 = vsel %vm73_vm0, %v9453_v5, 0.0 }
  0x13   :  { %75 = vadd.xlane.f32.xlu0 %v74_v6 }
  0x17   :  { %78 = vadd.xlane.f32.xlu0 %v77_v7 }
  0x18   :  { %23 = vsyncpa [#allocation3], 0  ;;  %v10843_v18 = vld [vmem:[%s13568_s4 + $0x8] sm:$0xff]   ;;  %v11351_v19 = vmov 0.0   ;;  %vm11352_vm3 = vmmov 0   ;;  %v10844_v20 = vld [vmem:[%s13568_s4] sm:$0xff]  }
  0x19   :  { %10371 = vmatprep.subr.bf16.mxu0 %v11351_v19  ;;  %10375 = vmatprep.mubr.msk.bf16.mxu0 %vm11352_vm3, %v11351_v19  ;;  %s13626_s2 = sld [smem:[#allocation7_spill]]  ;;  %v9455_v33 = vld [vmem:[%s13567_s3] ss:$0 sm:$0xff]  ;;  %v10845_v63 = vld [vmem:[%s13572_s8 + $0x8] sm:$0xff]   ;;  %s13611_s24 = smov 88   ;;  %vm306_vm4 = vcmask 64512  }
  0x1a   :  { %10372 = vmatpush3.bf16.msra.mxu0 %v10843_v18  ;;  %10379 = vmatprep.subr.bf16.mxu1 %v11351_v19  ;;  %v9456_v38 = vld [vmem:[%s13569_s5] ss:$0 sm:$0xff]  ;;  %s13627_s29 = sld [smem:[#allocation6_spill]]  ;;  %s13609_s25 = smov 96   ;;  %vm976_vm5 = vcmask 130048   ;;  %vm978_vm6 = vcmask 195584  }
  0x1b   :  { %10373 = vmatprep.subr.bf16.mxu0 %v11351_v19  ;;  %10383 = vmatprep.mubr.msk.bf16.mxu1 %vm11352_vm3, %v11351_v19  ;;  %v10846_v0 = vld [vmem:[%s13572_s8] sm:$0xff]   ;;  %s13607_s26 = smov 120   ;;  %s13605_s27 = smov 112  }
  0x1c   :  { %10380 = vmatpush3.bf16.msra.mxu1 %v10845_v63  ;;  %v9462_v18 = vld [vmem:[%s13573_s9] ss:$0 sm:$0xff]  ;;  %s13603_s28 = smov 80   ;;  %s13599_s3 = smov 72  }
  0x1d   :  { %10381 = vmatprep.subr.bf16.mxu1 %v11351_v19  ;;  %s13593_s30 = smov 64   ;;  %s13595_s5 = smov 48  }
  0x1e   :  { %10374 = vmatpush3.bf16.msra.mxu0 %v10844_v20  ;;  %s13591_s0 = smov 40   ;;  %s13597_s19 = smov 56  }
  0x1f   :  { %10397 = vmatprep.subr.mxu0 %v11351_v19  ;;  %v9454_v29 = vld [vmem:[%s13626_s2] ss:$0 sm:$0xff]  ;;  %s13589_s22 = smov 8   ;;  %s13587_s2 = smov 16  }
  0x20   :  { %v187_v41 = vld [vmem:[%s13627_s29] sm:$0xff]  ;;  %v188_v47 = vld [vmem:[%s13627_s29 + $0x8] sm:$0xff]  ;;  %10382 = vmatpush3.bf16.msra.mxu1 %v10846_v0  ;;  %s13601_s29 = smov 104   ;;  %s13585_s23 = smov 24  }
  0x21   :  { %10387 = vmatprep.subr.mxu1 %v11351_v19  ;;  %s13630_s21 = smov 40   ;;  %s13634_s1 = smov 96  }
  0x22   :  { %s13635_s20 = smov 120   ;;  %s13637_s4 = smov 80  }
  0x9c   :  { %v76_v8 = vpop.xlane.xlu0 %75 }
  0x9d   :  { %v81_v9 = vmul.f32 0.03125, %v76_v8 }
  0x9f   :  { %v83_v10 = vsub.f32 %v9452_v4, %v81_v9  ;;  %v9460_v9 = vld [vmem:[%s13570_s6] ss:$0 sm:$0xff] }
  0xa0   :  { %v79_v11 = vpop.xlane.xlu0 %78 }
  0xa1   :  { %v82_v12 = vmul.f32 0.03125, %v79_v11  ;;  %v85_v13 = vmul.f32 %v83_v10, %v83_v10 }
  0xa3   :  { %v84_v14 = vsub.f32 %v9453_v5, %v82_v12  ;;  %v87_v15 = vsel %vm73_vm0, %v85_v13, 0.0  ;;  %v9461_v13 = vld [vmem:[%s13571_s7] ss:$0 sm:$0xff] }
  0xa4   :  { %88 = vadd.xlane.f32.xlu1 %v87_v15 }
  0xa5   :  { %v86_v16 = vmul.f32 %v84_v14, %v84_v14 }
  0xa7   :  { %v90_v17 = vsel %vm73_vm0, %v86_v16, 0.0 }
  0xa8   :  { %91 = vadd.xlane.f32.xlu1 %v90_v17 }
 0x12d   :  { %v89_v21 = vpop.xlane.xlu1 %88 }
 0x12e   :  { %v93_v22 = vmul.f32 0.03125, %v89_v21 }
 0x130   :  { %v95_v23 = vadd.f32 1e-05, %v93_v22 }
 0x131   :  { %v92_v24 = vpop.xlane.xlu1 %91 }
 0x132   :  { %11037 = vrsqrt.f32 %v95_v23  ;;  %v94_v25 = vmul.f32 0.03125, %v92_v24 }
 0x134   :  { %v96_v26 = vadd.f32 1e-05, %v94_v25 }
 0x136   :  { %11039 = vrsqrt.f32 %v96_v26 }
 0x13f   :  { %v11038_v27 = vpop.eup %11037 }
 0x140   :  { %v99_v28 = vmul.f32 %v11038_v27, %v83_v10 }
 0x142   :  { %v107_v32 = vmul.f32 %v9454_v29, %v99_v28 }
 0x143   :  { %v11040_v30 = vpop.eup %11039 }
 0x144   :  { %v100_v31 = vmul.f32 %v11040_v30, %v84_v14  ;;  %v115_v35 = vadd.f32 %v9455_v33, %v107_v32 }
 0x146   :  { %v108_v34 = vmul.f32 %v9454_v29, %v100_v31 }
 0x148   :  { %v116_v36 = vadd.f32 %v9455_v33, %v108_v34 }
 0x14a   :  { %v117_v37 = vpack.c.bf16 %v116_v36, %v115_v35 }
 0x14c   :  { %10376 = vmatmul.mubr.msk.bf16.vlgmr.msra.gmra.mxu0 %vm73_vm0, %v117_v37 }
 0x14d   :  { %10399 = vmatprep.mubr.msk.f32.mxu0 %vm11352_vm3, %v11351_v19 }
 0x20c   :  { %v178_v39 = vpop.f32.mrf.mxu0 }
 0x20d   :  { %v179_v40 = vadd.f32 %v9456_v38, %v178_v39 }
 0x20e   :  { %v10377_v42 = vpop.f32.mrf.mxu0 }
 0x20f   :  { %v185_v43 = vmax.f32 %v179_v40, 0.0 }
 0x210   :  { %v181_v44 = vpop.f32.mrf.mxu0 }
 0x211   :  { %v11505_v45 = vadd.f32 %v187_v41, %v185_v43  ;;  %v182_v46 = vadd.f32 %v9456_v38, %v181_v44 }
 0x212   :  { %v10378_v48 = vpop.f32.mrf.mxu0 }
 0x213   :  { %v186_v49 = vmax.f32 %v182_v46, 0.0  ;;  %v193_v50 = vsel %vm73_vm0, %v11505_v45, 0.0 }
 0x214   :  { %194 = vadd.xlane.f32.xlu0 %v193_v50 }
 0x215   :  { %v11512_v51 = vadd.f32 %v188_v47, %v186_v49 }
 0x217   :  { %v196_v52 = vsel %vm73_vm0, %v11512_v51, 0.0 }
 0x218   :  { %197 = vadd.xlane.f32.xlu1 %v196_v52 }
 0x29d   :  { %v195_v53 = vpop.xlane.xlu0 %194 }
 0x29e   :  { %v199_v54 = vmul.f32 0.03125, %v195_v53 }
 0x2a0   :  { %v201_v55 = vsub.f32 %v11505_v45, %v199_v54 }
 0x2a1   :  { %v198_v56 = vpop.xlane.xlu1 %197 }
 0x2a2   :  { %v200_v57 = vmul.f32 0.03125, %v198_v56  ;;  %v203_v58 = vmul.f32 %v201_v55, %v201_v55 }
 0x2a4   :  { %v202_v59 = vsub.f32 %v11512_v51, %v200_v57  ;;  %v205_v60 = vsel %vm73_vm0, %v203_v58, 0.0 }
 0x2a5   :  { %206 = vadd.xlane.f32.xlu0 %v205_v60 }
 0x2a6   :  { %v204_v61 = vmul.f32 %v202_v59, %v202_v59 }
 0x2a8   :  { %v208_v62 = vsel %vm73_vm0, %v204_v61, 0.0 }
 0x2a9   :  { %209 = vadd.xlane.f32.xlu1 %v208_v62 }
 0x32e   :  { %v207_v1 = vpop.xlane.xlu0 %206 }
 0x32f   :  { %v211_v2 = vmul.f32 0.03125, %v207_v1 }
 0x331   :  { %v213_v3 = vadd.f32 1e-05, %v211_v2 }
 0x332   :  { %v210_v4 = vpop.xlane.xlu1 %209 }
 0x333   :  { %11041 = vrsqrt.f32 %v213_v3  ;;  %v212_v5 = vmul.f32 0.03125, %v210_v4 }
 0x335   :  { %v214_v6 = vadd.f32 1e-05, %v212_v5 }
 0x337   :  { %11043 = vrsqrt.f32 %v214_v6 }
 0x340   :  { %v11042_v7 = vpop.eup %11041 }
 0x341   :  { %v217_v8 = vmul.f32 %v11042_v7, %v201_v55 }
 0x343   :  { %v225_v12 = vmul.f32 %v9460_v9, %v217_v8 }
 0x344   :  { %v11044_v10 = vpop.eup %11043 }
 0x345   :  { %v218_v11 = vmul.f32 %v11044_v10, %v202_v59  ;;  %v233_v15 = vadd.f32 %v9461_v13, %v225_v12 }
 0x347   :  { %v226_v14 = vmul.f32 %v9460_v9, %v218_v11 }
 0x349   :  { %v234_v16 = vadd.f32 %v9461_v13, %v226_v14 }
 0x34b   :  { %v235_v17 = vpack.c.bf16 %v234_v16, %v233_v15 }
 0x34d   :  { %10384 = vmatmul.mubr.msk.bf16.vlgmr.msra.gmra.mxu1 %vm73_vm0, %v235_v17 }
 0x34e   :  { %10389 = vmatprep.mubr.msk.f32.mxu1 %vm11352_vm3, %v11351_v19 }
 0x40d   :  { %v296_v20 = vpop.f32.mrf.mxu1 }
 0x40e   :  { %v11540_v21 = vadd.f32 %v9462_v18, %v296_v20 }
 0x40f   :  { %v10385_v22 = vpop.f32.mrf.mxu1 }
 0x410   :  { %470 = vrot.lane.b32.xlu1 %v11540_v21, %s13611_s24  ;;  %304 = vrot.lane.b32.xlu0 %v11540_v21, %s13609_s25 }
 0x411   :  { %v299_v23 = vpop.f32.mrf.mxu1 }
 0x412   :  { %v11554_v25 = vadd.f32 %v9462_v18, %v299_v23 }
 0x413   :  { %v10386_v24 = vpop.f32.mrf.mxu1 }
 0x414   :  { %468 = vrot.lane.b32.xlu1 %v11540_v21, %s13607_s26  ;;  %633 = vrot.lane.b32.xlu0 %v11540_v21, %s13605_s27 }
 0x418   :  { %635 = vrot.lane.b32.xlu1 %v11540_v21, %s13603_s28  ;;  %798 = vrot.lane.b32.xlu0 %v11540_v21, %s13601_s29 }
 0x41c   :  { %800 = vrot.lane.b32.xlu1 %v11540_v21, %s13599_s3  ;;  %1146 = vrot.lane.b32.xlu0 %v11554_v25, %s13611_s24 }
 0x420   :  { %1311 = vrot.lane.b32.xlu0 %v11554_v25, %s13603_s28  ;;  %981 = vrot.lane.b32.xlu1 %v11554_v25, %s13609_s25 }
 0x424   :  { %1476 = vrot.lane.b32.xlu0 %v11554_v25, %s13599_s3  ;;  %1144 = vrot.lane.b32.xlu1 %v11554_v25, %s13607_s26 }
 0x428   :  { %1309 = vrot.lane.b32.xlu1 %v11554_v25, %s13605_s27 }
 0x42c   :  { %1474 = vrot.lane.b32.xlu1 %v11554_v25, %s13601_s29 }
 0x482   :  { %v471_v26 = vpop.permute.xlu1 %470  ;;  %v305_v27 = vpop.permute.xlu0 %304 }
 0x483   :  { %10388 = vmatpush3.xpose.msk.msra.mxu1 %vm306_vm4, %v305_v27  ;;  %10398 = vmatpush3.xpose.msk.msra.mxu0 %vm306_vm4, %v471_v26 }
 0x484   :  { %10407 = vmatprep.subr.mxu0 %v11351_v19  ;;  %10392 = vmatprep.subr.mxu1 %v11351_v19 }
 0x486   :  { %v469_v28 = vpop.permute.xlu1 %468  ;;  %10390 = vmatmul.mubr.msk.f32.vlgmr.msra.gmra.mxu1 %vm306_vm4, %v11540_v21  ;;  %v634_v29 = vpop.permute.xlu0 %633 }
 0x487   :  { %10400 = vmatmul.mubr.msk.f32.vlgmr.msra.gmra.mxu0 %vm306_vm4, %v469_v28  ;;  %10394 = vmatprep.mubr.msk.f32.mxu1 %vm11352_vm3, %v11351_v19 }
 0x488   :  { %10409 = vmatprep.mubr.msk.f32.mxu0 %vm11352_vm3, %v11351_v19 }
 0x48a   :  { %v636_v30 = vpop.permute.xlu1 %635  ;;  %v799_v31 = vpop.permute.xlu0 %798 }
 0x48b   :  { %10408 = vmatpush3.xpose.msk.msra.mxu0 %vm306_vm4, %v636_v30 }
 0x48c   :  { %10417 = vmatprep.subr.mxu0 %v11351_v19 }
 0x48e   :  { %v801_v32 = vpop.permute.xlu1 %800  ;;  %10410 = vmatmul.mubr.msk.f32.vlgmr.msra.gmra.mxu0 %vm306_vm4, %v634_v29  ;;  %v1147_v33 = vpop.permute.xlu0 %1146 }
 0x48f   :  { %10418 = vmatpush3.xpose.msk.msra.mxu0 %vm306_vm4, %v801_v32  ;;  %10419 = vmatprep.mubr.msk.f32.mxu0 %vm11352_vm3, %v11351_v19 }
 0x490   :  { %10427 = vmatprep.subr.mxu0 %v11351_v19 }
 0x492   :  { %10420 = vmatmul.mubr.msk.f32.vlgmr.msra.gmra.mxu0 %vm306_vm4, %v799_v31  ;;  %v982_v34 = vpop.permute.xlu1 %981  ;;  %v1312_v36 = vpop.permute.xlu0 %1311 }
 0x493   :  { %10428 = vmatpush3.xpose.msk.msra.mxu0 %vm306_vm4, %v982_v34  ;;  %10429 = vmatprep.mubr.msk.f32.mxu0 %vm11352_vm3, %v11351_v19 }
 0x494   :  { %10437 = vmatprep.subr.mxu0 %v11351_v19 }
 0x496   :  { %10430 = vmatmul.mubr.msk.f32.vlgmr.msra.gmra.mxu0 %vm306_vm4, %v11554_v25  ;;  %v1145_v35 = vpop.permute.xlu1 %1144  ;;  %v1477_v38 = vpop.permute.xlu0 %1476 }
 0x497   :  { %10438 = vmatpush3.xpose.msk.msra.mxu0 %vm306_vm4, %v1147_v33  ;;  %10439 = vmatprep.mubr.msk.f32.mxu0 %vm11352_vm3, %v11351_v19 }
 0x498   :  { %10447 = vmatprep.subr.mxu0 %v11351_v19 }
 0x49a   :  { %10440 = vmatmul.mubr.msk.f32.vlgmr.msra.gmra.mxu0 %vm306_vm4, %v1145_v35  ;;  %v1310_v37 = vpop.permute.xlu1 %1309 }
 0x49b   :  { %10448 = vmatpush3.xpose.msk.msra.mxu0 %vm306_vm4, %v1312_v36  ;;  %10449 = vmatprep.mubr.msk.f32.mxu0 %vm11352_vm3, %v11351_v19 }
 0x49c   :  { %10457 = vmatprep.subr.mxu0 %v11351_v19 }
 0x49e   :  { %10450 = vmatmul.mubr.msk.f32.vlgmr.msra.gmra.mxu0 %vm306_vm4, %v1310_v37  ;;  %v1475_v39 = vpop.permute.xlu1 %1474 }
 0x49f   :  { %10458 = vmatpush3.xpose.msk.msra.mxu0 %vm306_vm4, %v1477_v38  ;;  %10459 = vmatprep.mubr.msk.f32.mxu0 %vm11352_vm3, %v11351_v19 }
 0x4a0   :  { %10467 = vmatprep.subr.bf16.mxu0 %v11351_v19 }
 0x4a2   :  { %10460 = vmatmul.mubr.msk.f32.vlgmr.msra.gmra.mxu0 %vm306_vm4, %v1475_v39 }
 0x4a3   :  { %10471 = vmatprep.mubr.msk.bf16.mxu0 %vm11352_vm3, %v11351_v19 }
 0x546   :  { %v377_v40 = vpop.f32.mrf.mxu1 }
 0x547   :  { %v542_v41 = vpop.f32.mrf.mxu0  ;;  %v381_v42 = vsel %vm306_vm4, %v377_v40, -inf }
 0x548   :  { %382 = vmax.xlane.f32.xlu0 %v381_v42  ;;  %v10391_v43 = vpop.f32.mrf.mxu1  ;;  %v546_v44 = vsel %vm306_vm4, %v542_v41, -inf }
 0x549   :  { %547 = vmax.xlane.f32.xlu1 %v546_v44  ;;  %v10401_v46 = vpop.f32.mrf.mxu0 }
 0x54e   :  { %v707_v47 = vpop.f32.mrf.mxu0 }
 0x54f   :  { %v711_v48 = vsel %vm306_vm4, %v707_v47, -inf }
 0x550   :  { %712 = vmax.xlane.f32.xlu0 %v711_v48  ;;  %v10411_v49 = vpop.f32.mrf.mxu0 }
 0x552   :  { %v872_v50 = vpop.f32.mrf.mxu0 }
 0x553   :  { %v876_v52 = vsel %vm306_vm4, %v872_v50, -inf }
 0x554   :  { %877 = vmax.xlane.f32.xlu0 %v876_v52  ;;  %v10421_v53 = vpop.f32.mrf.mxu0 }
 0x556   :  { %v1053_v54 = vpop.f32.mrf.mxu0 }
 0x557   :  { %v1057_v55 = vsel %vm306_vm4, %v1053_v54, -inf }
 0x558   :  { %1058 = vmax.xlane.f32.xlu0 %v1057_v55  ;;  %v10431_v56 = vpop.f32.mrf.mxu0 }
 0x55a   :  { %v1218_v57 = vpop.f32.mrf.mxu0 }
 0x55b   :  { %v1222_v58 = vsel %vm306_vm4, %v1218_v57, -inf }
 0x55c   :  { %1223 = vmax.xlane.f32.xlu1 %v1222_v58  ;;  %v10441_v59 = vpop.f32.mrf.mxu0 }
 0x55e   :  { %v1383_v60 = vpop.f32.mrf.mxu0 }
 0x55f   :  { %v1387_v61 = vsel %vm306_vm4, %v1383_v60, -inf }
 0x560   :  { %1388 = vmax.xlane.f32.xlu0 %v1387_v61  ;;  %v10451_v62 = vpop.f32.mrf.mxu0 }
 0x562   :  { %v1548_v63 = vpop.f32.mrf.mxu0 }
 0x563   :  { %v1552_v1 = vsel %vm306_vm4, %v1548_v63, -inf }
 0x564   :  { %v10461_v0 = vpop.f32.mrf.mxu0 }
 0x56d   :  { %392 = vrot.lane.b32.xlu1 %v11540_v21, %s13593_s30 }
 0x591   :  { %1553 = vmax.xlane.f32.xlu1 %v1552_v1 }
 0x5a2   :  { %722 = vrot.lane.b32.xlu1 %v11540_v21, %s13595_s5 }
 0x5a6   :  { %887 = vrot.lane.b32.xlu1 %v11540_v21, %s13591_s0 }
 0x5aa   :  { %1068 = vrot.lane.b32.xlu1 %v11554_v25, %s13593_s30  ;;  %s13632_s30 = smov 16  }
 0x5d1   :  { %v383_v2 = vpop.xlane.xlu0 %382 }
 0x5d2   :  { %v384_v3 = vsub.f32 %v377_v40, %v383_v2  ;;  %v548_v4 = vpop.xlane.xlu1 %547 }
 0x5d3   :  { %v549_v5 = vsub.f32 %v542_v41, %v548_v4 }
 0x5d4   :  { %v385_v6 = vmul.f32 1.442695, %v384_v3 }
 0x5d5   :  { %v550_v7 = vmul.f32 1.442695, %v549_v5 }
 0x5d6   :  { %11045 = vpow2.f32 %v385_v6 }
 0x5d7   :  { %11047 = vpow2.f32 %v550_v7 }
 0x5d9   :  { %v713_v8 = vpop.xlane.xlu0 %712 }
 0x5da   :  { %v714_v22 = vsub.f32 %v707_v47, %v713_v8 }
 0x5dc   :  { %v715_v24 = vmul.f32 1.442695, %v714_v22 }
 0x5dd   :  { %v878_v9 = vpop.xlane.xlu0 %877 }
 0x5de   :  { %v879_v10 = vsub.f32 %v872_v50, %v878_v9 }
 0x5e0   :  { %v880_v11 = vmul.f32 1.442695, %v879_v10 }
 0x5e1   :  { %v1059_v23 = vpop.xlane.xlu0 %1058 }
 0x5e2   :  { %11049 = vpow2.f32 %v880_v11  ;;  %v1060_v26 = vsub.f32 %v1053_v54, %v1059_v23  ;;  %v10847_v23 = vld [vmem:[%s13574_s10 + $0x8] sm:$0xff]  }
 0x5e3   :  { %v11046_v12 = vpop.eup %11045  ;;  %11051 = vpow2.f32 %v715_v24  ;;  %10468 = vmatpush3.bf16.msra.mxu0 %v10847_v23 }
 0x5e4   :  { %v11630_v13 = vpop.eup %11047  ;;  %v387_v14 = vsel %vm306_vm4, %v11046_v12, 0.0  ;;  %v1061_v28 = vmul.f32 1.442695, %v1060_v26  ;;  %10469 = vmatprep.subr.bf16.mxu0 %v11351_v19 }
 0x5e5   :  { %v1224_v15 = vpop.xlane.xlu1 %1223  ;;  %388 = vadd.xlane.f32.xlu0 %v387_v14  ;;  %v552_v16 = vsel %vm306_vm4, %v11630_v13, 0.0 }
 0x5e6   :  { %553 = vadd.xlane.f32.xlu1 %v552_v16  ;;  %11053 = vpow2.f32 %v1061_v28  ;;  %v1225_v30 = vsub.f32 %v1218_v57, %v1224_v15 }
 0x5e8   :  { %v1226_v32 = vmul.f32 1.442695, %v1225_v30 }
 0x5e9   :  { %v393_v17 = vpop.permute.xlu1 %392  ;;  %v1389_v27 = vpop.xlane.xlu0 %1388 }
 0x5ea   :  { %10393 = vmatpush3.msra.mxu1 %v393_v17  ;;  %v1390_v29 = vsub.f32 %v1383_v60, %v1389_v27  ;;  %v10848_v27 = vld [vmem:[%s13574_s10] sm:$0xff]  }
 0x5eb   :  { %10402 = vmatprep.subr.mxu1 %v11351_v19  ;;  %10470 = vmatpush3.bf16.msra.mxu0 %v10848_v27 }
 0x5ec   :  { %v1391_v31 = vmul.f32 1.442695, %v1390_v29 }
 0x5ee   :  { %11055 = vpow2.f32 %v1391_v31 }
 0x5ef   :  { %v11636_v18 = vpop.eup %11049  ;;  %11057 = vpow2.f32 %v1226_v32 }
 0x5f0   :  { %v882_v20 = vsel %vm306_vm4, %v11636_v18, 0.0  ;;  %v11052_v33 = vpop.eup %11051 }
 0x5f1   :  { %883 = vadd.xlane.f32.xlu1 %v882_v20 }
 0x5f3   :  { %v11645_v34 = vpop.eup %11053 }
 0x5f4   :  { %v1063_v38 = vsel %vm306_vm4, %v11645_v34, 0.0 }
 0x5fb   :  { %557 = vrot.lane.b32.xlu0 %v11540_v21, %s13597_s19  ;;  %v717_v21 = vsel %vm306_vm4, %v11052_v33, 0.0  ;;  %v11649_v39 = vpop.eup %11055 }
 0x5fc   :  { %v1393_v40 = vsel %vm306_vm4, %v11649_v39, 0.0  ;;  %v11058_v41 = vpop.eup %11057 }
 0x5fd   :  { %v1228_v42 = vsel %vm306_vm4, %v11058_v41, 0.0 }
 0x602   :  { %1233 = vrot.lane.b32.xlu1 %v11554_v25, %s13597_s19 }
 0x61a   :  { %718 = vadd.xlane.f32.xlu0 %v717_v21  ;;  %v1554_v35 = vpop.xlane.xlu1 %1553 }
 0x61b   :  { %v1555_v36 = vsub.f32 %v1548_v63, %v1554_v35 }
 0x61d   :  { %v1556_v37 = vmul.f32 1.442695, %v1555_v36 }
 0x61e   :  { %1064 = vadd.xlane.f32.xlu0 %v1063_v38  ;;  %v723_v46 = vpop.permute.xlu1 %722 }
 0x61f   :  { %11059 = vpow2.f32 %v1556_v37 }
 0x622   :  { %1394 = vadd.xlane.f32.xlu0 %v1393_v40  ;;  %v888_v47 = vpop.permute.xlu1 %887 }
 0x626   :  { %1229 = vadd.xlane.f32.xlu1 %v1228_v42  ;;  %v1069_v48 = vpop.permute.xlu1 %1068 }
 0x62c   :  { %v11654_v43 = vpop.eup %11059 }
 0x62d   :  { %v1558_v44 = vsel %vm306_vm4, %v11654_v43, 0.0 }
 0x62e   :  { %1559 = vadd.xlane.f32.xlu0 %v1558_v44 }
 0x637   :  { %1563 = vrot.lane.b32.xlu1 %v11554_v25, %s13591_s0  ;;  %s13628_s0 = smov 48  }
 0x644   :  { %1398 = vrot.lane.b32.xlu0 %v11554_v25, %s13595_s5  ;;  %s13633_s5 = smov 24  }
 0x66e   :  { %v389_v49 = vpop.xlane.xlu0 %388 }
 0x66f   :  { %11061 = vrcp.f32 %v389_v49  ;;  %v554_v50 = vpop.xlane.xlu1 %553 }
 0x670   :  { %11063 = vrcp.f32 %v554_v50 }
 0x672   :  { %v558_v55 = vpop.permute.xlu0 %557 }
 0x67a   :  { %v884_v56 = vpop.xlane.xlu1 %883 }
 0x67c   :  { %v11062_v52 = vpop.eup %11061 }
 0x67d   :  { %v391_v53 = vmul.f32 %v11062_v52, %v11046_v12  ;;  %v11064_v54 = vpop.eup %11063 }
 0x67e   :  { %v556_v25 = vmul.f32 %v11064_v54, %v11630_v13  ;;  %v1234_v59 = vpop.permute.xlu1 %1233  ;;  %v9490_v54 = vld [vmem:[%s13575_s11] ss:$0 sm:$0xff] }
 0x67f   :  { %10395 = vmatmul.mubr.msk.f32.vlgmr.msra.gmra.mxu1 %vm306_vm4, %v391_v53 }
 0x680   :  { %10403 = vmatpush3.msra.mxu1 %v558_v55  ;;  %10404 = vmatprep.mubr.msk.f32.mxu1 %vm11352_vm3, %v11351_v19 }
 0x681   :  { %10412 = vmatprep.subr.mxu1 %v11351_v19 }
 0x683   :  { %10405 = vmatmul.mubr.msk.f32.vlgmr.msra.gmra.mxu1 %vm306_vm4, %v556_v25 }
 0x684   :  { %10413 = vmatpush3.msra.mxu1 %v723_v46  ;;  %10414 = vmatprep.mubr.msk.f32.mxu1 %vm11352_vm3, %v11351_v19 }
 0x685   :  { %10422 = vmatprep.subr.mxu1 %v11351_v19 }
 0x6a3   :  { %v719_v57 = vpop.xlane.xlu0 %718 }
 0x6a4   :  { %11065 = vrcp.f32 %v719_v57 }
 0x6a5   :  { %11067 = vrcp.f32 %v884_v56 }
 0x6a7   :  { %v1065_v58 = vpop.xlane.xlu0 %1064 }
 0x6a8   :  { %11069 = vrcp.f32 %v1065_v58 }
 0x6ab   :  { %v1395_v60 = vpop.xlane.xlu0 %1394 }
 0x6af   :  { %v1230_v61 = vpop.xlane.xlu1 %1229 }
 0x6b0   :  { %11071 = vrcp.f32 %v1230_v61 }
 0x6b1   :  { %v11066_v62 = vpop.eup %11065  ;;  %11073 = vrcp.f32 %v1395_v60 }
 0x6b2   :  { %v721_v63 = vmul.f32 %v11066_v62, %v11052_v33  ;;  %v11068_v0 = vpop.eup %11067 }
 0x6b3   :  { %v886_v1 = vmul.f32 %v11068_v0, %v11636_v18  ;;  %v1564_v10 = vpop.permute.xlu1 %1563 }
 0x6b4   :  { %10415 = vmatmul.mubr.msk.f32.vlgmr.msra.gmra.mxu1 %vm306_vm4, %v721_v63 }
 0x6b5   :  { %10423 = vmatpush3.msra.mxu1 %v888_v47  ;;  %10424 = vmatprep.mubr.msk.f32.mxu1 %vm11352_vm3, %v11351_v19  ;;  %v11070_v2 = vpop.eup %11069 }
 0x6b6   :  { %10432 = vmatprep.subr.mxu1 %v11351_v19  ;;  %v1067_v4 = vmul.f32 %v11070_v2, %v11645_v34 }
 0x6b7   :  { %v1560_v3 = vpop.xlane.xlu0 %1559 }
 0x6b8   :  { %11075 = vrcp.f32 %v1560_v3  ;;  %10425 = vmatmul.mubr.msk.f32.vlgmr.msra.gmra.mxu1 %vm306_vm4, %v886_v1 }
 0x6b9   :  { %10433 = vmatpush3.msra.mxu1 %v1069_v48  ;;  %10434 = vmatprep.mubr.msk.f32.mxu1 %vm11352_vm3, %v11351_v19 }
 0x6ba   :  { %10442 = vmatprep.subr.mxu1 %v11351_v19 }
 0x6bb   :  { %v1399_v8 = vpop.permute.xlu0 %1398 }
 0x6bc   :  { %10435 = vmatmul.mubr.msk.f32.vlgmr.msra.gmra.mxu1 %vm306_vm4, %v1067_v4 }
 0x6bd   :  { %v11072_v5 = vpop.eup %11071  ;;  %10443 = vmatpush3.msra.mxu1 %v1234_v59  ;;  %10444 = vmatprep.mubr.msk.f32.mxu1 %vm11352_vm3, %v11351_v19 }
 0x6be   :  { %10452 = vmatprep.subr.mxu1 %v11351_v19  ;;  %v1232_v6 = vmul.f32 %v11072_v5, %v11058_v41  ;;  %v11074_v7 = vpop.eup %11073 }
 0x6bf   :  { %v1397_v9 = vmul.f32 %v11074_v7, %v11649_v39 }
 0x6c0   :  { %10445 = vmatmul.mubr.msk.f32.vlgmr.msra.gmra.mxu1 %vm306_vm4, %v1232_v6 }
 0x6c1   :  { %10453 = vmatpush3.msra.mxu1 %v1399_v8  ;;  %10454 = vmatprep.mubr.msk.f32.mxu1 %vm11352_vm3, %v11351_v19  ;;  %v10851_v8 = vld [vmem:[%s13578_s14 + $0x24] ss:$16 sps:$4 sm:$0xff]  }
 0x6c2   :  { %10462 = vmatprep.subr.mxu1 %v11351_v19 }
 0x6c4   :  { %10455 = vmatmul.mubr.msk.f32.vlgmr.msra.gmra.mxu1 %vm306_vm4, %v1397_v9  ;;  %v10854_v9 = vld [vmem:[%s13578_s14 + $0x2c] ss:$16 sps:$4 sm:$0xff]  }
 0x6c5   :  { %v11076_v11 = vpop.eup %11075  ;;  %10463 = vmatpush3.msra.mxu1 %v1564_v10  ;;  %10464 = vmatprep.mubr.msk.f32.mxu1 %vm11352_vm3, %v11351_v19  ;;  %v10849_v10 = vld [vmem:[%s13578_s14 + $0x20] ss:$16 sps:$4 sm:$0xff]  }
 0x6c6   :  { %v1562_v12 = vmul.f32 %v11076_v11, %v11654_v43  ;;  %v10852_v11 = vld [vmem:[%s13578_s14 + $0x28] ss:$16 sps:$4 sm:$0xff]   ;;  %1854 = vmatprep.subr.bf16.mxu1 %v10851_v8  ;;  %1897 = vmatprep.subr.bf16.mxu0 %v10854_v9  ;;  %v1777_v9 = vld [vmem:[%s13579_s15] sm:$0xf] }
 0x6c8   :  { %10465 = vmatmul.mubr.msk.f32.vlgmr.msra.gmra.mxu1 %vm306_vm4, %v1562_v12  ;;  %v10857_v12 = vld [vmem:[%s13578_s14 + $0x4] ss:$16 sps:$4 sm:$0xff]  }
 0x6c9   :  { %1855 = vmatpush1.bf16.msra.mxu1 %v10849_v10 }
 0x6ca   :  { %1856 = vmatprep.subr.bf16.mxu1 %v10857_v12 }
 0x73f   :  { %v464_v13 = vpop.f32.mrf.mxu1 }
 0x741   :  { %v10396_v14 = vpop.f32.mrf.mxu1 }
 0x742   :  { %v10855_v14 = vld [vmem:[%s13578_s14] ss:$16 sps:$4 sm:$0xff]  }
 0x743   :  { %v629_v15 = vpop.f32.mrf.mxu1  ;;  %1857 = vmatpush1.bf16.msra.mxu1 %v10855_v14 }
 0x745   :  { %v10406_v16 = vpop.f32.mrf.mxu1 }
 0x746   :  { %v11367_v16 = vmov 0  }
 0x747   :  { %1874 = vmatprep.mubr.bf16.mxu1 %v11367_v16 }
 0x774   :  { %v794_v17 = vpop.f32.mrf.mxu1 }
 0x776   :  { %v10416_v18 = vpop.f32.mrf.mxu1 }
 0x778   :  { %v959_v20 = vpop.f32.mrf.mxu1 }
 0x77a   :  { %v10426_v22 = vpop.f32.mrf.mxu1 }
 0x77c   :  { %v1140_v24 = vpop.f32.mrf.mxu1 }
 0x77e   :  { %v10436_v26 = vpop.f32.mrf.mxu1 }
 0x780   :  { %v1305_v28 = vpop.f32.mrf.mxu1 }
 0x781   :  { %v10783_v29 = vpack.i.bf16 %v1305_v28, %v629_v15  ;;  %v10858_v15 = vld [vmem:[%s13578_s14 + $0x8] ss:$16 sps:$4 sm:$0xff]   ;;  %v9494_v28 = vld [vmem:[%s13576_s12] ss:$0 sm:$0xff] }
 0x782   :  { %v10446_v30 = vpop.f32.mrf.mxu1 }
 0x783   :  { %10784 = vrot.lane.b32.xlu0 %v10783_v29, %s13589_s22  ;;  %s13629_s22 = smov 64  }
 0x784   :  { %v1470_v31 = vpop.f32.mrf.mxu1 }
 0x785   :  { %v10788_v32 = vpack.i.bf16 %v1470_v31, %v794_v17 }
 0x786   :  { %v10456_v33 = vpop.f32.mrf.mxu1 }
 0x787   :  { %10789 = vrot.lane.b32.xlu1 %v10788_v32, %s13587_s2  ;;  %v9495_v32 = vld [vmem:[%s13577_s13] ss:$0 sm:$0xff]  ;;  %s13636_s2 = smov 112  }
 0x788   :  { %v1635_v21 = vpop.f32.mrf.mxu1 }
 0x789   :  { %v10793_v34 = vpack.i.bf16 %v1635_v21, %v959_v20 }
 0x78a   :  { %v10466_v35 = vpop.f32.mrf.mxu1 }
 0x78b   :  { %10794 = vrot.lane.b32.xlu0 %v10793_v34, %s13585_s23  ;;  %s13631_s23 = smov 8  }
 0x7f5   :  { %v10785_v36 = vpop.permute.xlu0 %10784 }
 0x7f6   :  { %v10787_v38 = vunpack.i.h.bf16 %v10785_v36  ;;  %v10786_v39 = vunpack.i.l.bf16 %v10785_v36  ;;  %v10861_v36 = vld [vmem:[%s13580_s16 + $0x78] sm:$0xff]  }
 0x7f7   :  { %10081 = vmatprep.subr.bf16.mxu1 %v10861_v36 }
 0x7f8   :  { %v1651_v43 = vsel %vm306_vm4, %v1140_v24, %v10787_v38  ;;  %v975_v44 = vsel %vm306_vm4, %v464_v13, %v10786_v39  ;;  %v10860_v13 = vld [vmem:[%s13578_s14 + $0xc] ss:$16 sps:$4 sm:$0xff]  }
 0x7f9   :  { %v10790_v37 = vpop.permute.xlu1 %10789  ;;  %v10863_v38 = vld [vmem:[%s13580_s16 + $0x38] sm:$0xff]  }
 0x7fa   :  { %v10792_v40 = vunpack.i.h.bf16 %v10790_v37  ;;  %v10791_v41 = vunpack.i.l.bf16 %v10790_v37  ;;  %v10862_v37 = vld [vmem:[%s13580_s16 + $0xf8] sm:$0xff]  }
 0x7fb   :  { %v10864_v39 = vld [vmem:[%s13580_s16 + $0xb8] sm:$0xff]  }
 0x7fc   :  { %v1652_v48 = vsel %vm976_vm5, %v1651_v43, %v10792_v40  ;;  %v977_v49 = vsel %vm976_vm5, %v975_v44, %v10791_v41  ;;  %v10865_v40 = vld [vmem:[%s13580_s16 + $0x70] sm:$0xff]   ;;  %v10869_v44 = vld [vmem:[%s13580_s16 + $0x68] sm:$0xff]  }
 0x7fd   :  { %v10795_v42 = vpop.permute.xlu0 %10794  ;;  %v10866_v41 = vld [vmem:[%s13580_s16 + $0xf0] sm:$0xff]  }
 0x7fe   :  { %v10797_v46 = vunpack.i.h.bf16 %v10795_v42  ;;  %v10796_v47 = vunpack.i.l.bf16 %v10795_v42  ;;  %v10867_v42 = vld [vmem:[%s13580_s16 + $0x30] sm:$0xff]  }
 0x7ff   :  { %v10868_v43 = vld [vmem:[%s13580_s16 + $0xb0] sm:$0xff]  }
 0x800   :  { %v979_v50 = vsel %vm978_vm6, %v977_v49, %v10796_v47  ;;  %v1653_v52 = vsel %vm978_vm6, %v1652_v48, %v10797_v46  ;;  %v10870_v46 = vld [vmem:[%s13580_s16 + $0xe8] sm:$0xff]   ;;  %v10873_v49 = vld [vmem:[%s13580_s16 + $0x60] sm:$0xff]  }
 0x801   :  { %v1654_v53 = vpack.c.bf16 %v1653_v52, %v979_v50  ;;  %v10871_v47 = vld [vmem:[%s13580_s16 + $0x28] sm:$0xff]   ;;  %v10874_v50 = vld [vmem:[%s13580_s16 + $0xe0] sm:$0xff]  }
 0x802   :  { %v10872_v48 = vld [vmem:[%s13580_s16 + $0xa8] sm:$0xff]   ;;  %v10875_v52 = vld [vmem:[%s13580_s16 + $0x20] sm:$0xff]  }
 0x803   :  { %10472 = vmatmul.mubr.msk.bf16.vlgmr.msra.gmra.mxu0 %vm73_vm0, %v1654_v53  ;;  %v10876_v53 = vld [vmem:[%s13580_s16 + $0xa0] sm:$0xff]  }
 0x804   :  { %1898 = vmatpush1.bf16.msra.mxu0 %v10852_v11  ;;  %1917 = vmatprep.mubr.bf16.mxu0 %v11367_v16 }
 0x805   :  { %1899 = vmatprep.subr.bf16.mxu0 %v10860_v13 }
 0x808   :  { %1900 = vmatpush1.bf16.msra.mxu0 %v10858_v15 }
 0x809   :  { %10103 = vmatprep.subr.bf16.mxu0 %v10862_v37 }
 0x8c3   :  { %v1715_v55 = vpop.f32.mrf.mxu0 }
 0x8c4   :  { %v1716_v25 = vadd.f32 %v9490_v54, %v1715_v55  ;;  %v10878_v55 = vld [vmem:[%s13580_s16 + $0xd8] sm:$0xff]  }
 0x8c5   :  { %v10473_v56 = vpop.f32.mrf.mxu0 }
 0x8c6   :  { %v11716_v57 = vadd.f32 %v1716_v25, %v11505_v45  ;;  %v10879_v25 = vld [vmem:[%s13580_s16 + $0x18] sm:$0xff]  }
 0x8c7   :  { %v1718_v58 = vpop.f32.mrf.mxu0  ;;  %v10880_v56 = vld [vmem:[%s13580_s16 + $0x98] sm:$0xff]  }
 0x8c8   :  { %v1719_v59 = vadd.f32 %v9490_v54, %v1718_v58  ;;  %v1726_v60 = vsel %vm73_vm0, %v11716_v57, 0.0  ;;  %v10877_v54 = vld [vmem:[%s13580_s16 + $0x58] sm:$0xff]   ;;  %v10881_v58 = vld [vmem:[%s13580_s16 + $0x50] sm:$0xff]  }
 0x8c9   :  { %1727 = vadd.xlane.f32.xlu1 %v1726_v60  ;;  %v10474_v61 = vpop.f32.mrf.mxu0  ;;  %v10883_v60 = vld [vmem:[%s13580_s16 + $0x10] sm:$0xff]  }
 0x8ca   :  { %v11721_v62 = vadd.f32 %v1719_v59, %v11512_v51  ;;  %v10882_v59 = vld [vmem:[%s13580_s16 + $0xd0] sm:$0xff]  }
 0x8cb   :  { %v10884_v61 = vld [vmem:[%s13580_s16 + $0x90] sm:$0xff]  }
 0x8cc   :  { %v1729_v63 = vsel %vm73_vm0, %v11721_v62, 0.0 }
 0x8cd   :  { %1730 = vadd.xlane.f32.xlu0 %v1729_v63  ;;  %v10885_v63 = vld [vmem:[%s13580_s16 + $0x48] sm:$0xff]  }
 0x952   :  { %v1728_v0 = vpop.xlane.xlu1 %1727 }
 0x953   :  { %v1732_v1 = vmul.f32 0.03125, %v1728_v0  ;;  %v10886_v0 = vld [vmem:[%s13580_s16 + $0xc8] sm:$0xff]  }
 0x955   :  { %v1734_v2 = vsub.f32 %v11716_v57, %v1732_v1  ;;  %v10887_v1 = vld [vmem:[%s13580_s16 + $0x8] sm:$0xff]  }
 0x956   :  { %v1731_v45 = vpop.xlane.xlu0 %1730 }
 0x957   :  { %v1733_v3 = vmul.f32 0.03125, %v1731_v45  ;;  %v1736_v4 = vmul.f32 %v1734_v2, %v1734_v2  ;;  %v10889_v45 = vld [vmem:[%s13580_s16 + $0x40] sm:$0xff]  }
 0x959   :  { %v1735_v5 = vsub.f32 %v11721_v62, %v1733_v3  ;;  %v1738_v6 = vsel %vm73_vm0, %v1736_v4, 0.0  ;;  %v10890_v3 = vld [vmem:[%s13580_s16 + $0xc0] sm:$0xff]  }
 0x95a   :  { %1739 = vadd.xlane.f32.xlu0 %v1738_v6  ;;  %v10891_v4 = vld [vmem:[%s13580_s16] sm:$0xff]   ;;  %v1779_v6 = vlaneseq }
 0x95b   :  { %v1737_v7 = vmul.f32 %v1735_v5, %v1735_v5 }
 0x95d   :  { %v1741_v51 = vsel %vm73_vm0, %v1737_v7, 0.0  ;;  %v1780_v7 = vshrl.u32 %v1779_v6, 7 }
 0x95e   :  { %1742 = vadd.xlane.f32.xlu0 %v1741_v51 }
 0x95f   :  { %v11861_v51 = vsub.s32 0, %v1780_v7  ;;  %v11863_v8 = vsub.s32 2, %v1780_v7  ;;  %v11868_v10 = vsub.s32 1, %v1780_v7  ;;  %v11870_v11 = vsub.s32 3, %v1780_v7 }
 0x961   :  { %v1782_v12 = vrot.slane %v1777_v9, %v11861_v51  ;;  %v1790_v13 = vrot.slane %v1777_v9, %v11863_v8 }
 0x9e3   :  { %v1740_v17 = vpop.xlane.xlu0 %1739 }
 0x9e4   :  { %v1744_v18 = vmul.f32 0.03125, %v1740_v17  ;;  %v1786_v17 = vrot.slane %v1777_v9, %v11868_v10 }
 0x9e6   :  { %v1746_v20 = vadd.f32 1e-05, %v1744_v18  ;;  %v1794_v18 = vrot.slane %v1777_v9, %v11870_v11 }
 0x9e7   :  { %v1743_v22 = vpop.xlane.xlu0 %1742 }
 0x9e8   :  { %11077 = vrsqrt.f32 %v1746_v20  ;;  %v1745_v23 = vmul.f32 0.03125, %v1743_v22 }
 0x9ea   :  { %v1747_v24 = vadd.f32 1e-05, %v1745_v23 }
 0x9ec   :  { %11079 = vrsqrt.f32 %v1747_v24 }
 0x9f5   :  { %v11078_v26 = vpop.eup %11077 }
 0x9f6   :  { %v1750_v27 = vmul.f32 %v11078_v26, %v1734_v2  ;;  %v10888_v2 = vld [vmem:[%s13580_s16 + $0x88] sm:$0xff]  }
 0x9f8   :  { %v1758_v31 = vmul.f32 %v9494_v28, %v1750_v27 }
 0x9f9   :  { %v11080_v29 = vpop.eup %11079 }
 0x9fa   :  { %v1751_v30 = vmul.f32 %v11080_v29, %v1735_v5  ;;  %v1766_v21 = vadd.f32 %v9495_v32, %v1758_v31  ;;  %v10892_v5 = vld [vmem:[%s13580_s16 + $0x80] sm:$0xff]  }
 0x9fc   :  { %v1759_v33 = vmul.f32 %v9494_v28, %v1751_v30 }
 0x9fe   :  { %v1767_v34 = vadd.f32 %v9495_v32, %v1759_v33 }
 0xa00   :  { %v1768_v35 = vpack.c.bf16 %v1767_v34, %v1766_v21 }
 0xa02   :  { %9504 = vmatmul.mubr.msk.bf16.vlgmr.msra.gmra.mxu1 %vm73_vm0, %v1768_v35  ;;  %9505 = vmatmul.mubr.msk.bf16.vlgmr.msra.gmra.mxu0 %vm73_vm0, %v1768_v35 }
 0xa03   :  { %10082 = vmatpush3.bf16.msra.mxu1 %v10863_v38  ;;  %10104 = vmatpush3.bf16.msra.mxu0 %v10864_v39 }
 0xa04   :  { %10083 = vmatprep.subr.bf16.mxu1 %v10865_v40  ;;  %10105 = vmatprep.subr.bf16.mxu0 %v10866_v41 }
 0xa07   :  { %10084 = vmatpush3.bf16.msra.mxu1 %v10867_v42  ;;  %10106 = vmatpush3.bf16.msra.mxu0 %v10868_v43 }
 0xa08   :  { %10085 = vmatprep.subr.bf16.mxu1 %v10869_v44  ;;  %10107 = vmatprep.subr.bf16.mxu0 %v10870_v46 }
 0xa0b   :  { %10086 = vmatpush3.bf16.msra.mxu1 %v10871_v47  ;;  %10108 = vmatpush3.bf16.msra.mxu0 %v10872_v48 }
 0xa0c   :  { %10087 = vmatprep.subr.bf16.mxu1 %v10873_v49  ;;  %10109 = vmatprep.subr.bf16.mxu0 %v10874_v50 }
 0xa0f   :  { %10088 = vmatpush3.bf16.msra.mxu1 %v10875_v52  ;;  %10110 = vmatpush3.bf16.msra.mxu0 %v10876_v53 }
 0xa10   :  { %10089 = vmatprep.subr.bf16.mxu1 %v10877_v54  ;;  %10111 = vmatprep.subr.bf16.mxu0 %v10878_v55 }
 0xa13   :  { %10090 = vmatpush3.bf16.msra.mxu1 %v10879_v25  ;;  %10112 = vmatpush3.bf16.msra.mxu0 %v10880_v56 }
 0xa14   :  { %10091 = vmatprep.subr.bf16.mxu1 %v10881_v58  ;;  %10113 = vmatprep.subr.bf16.mxu0 %v10882_v59 }
 0xa17   :  { %10092 = vmatpush3.bf16.msra.mxu1 %v10883_v60  ;;  %10114 = vmatpush3.bf16.msra.mxu0 %v10884_v61 }
 0xa18   :  { %10093 = vmatprep.subr.bf16.mxu1 %v10885_v63  ;;  %10115 = vmatprep.subr.bf16.mxu0 %v10886_v0 }
 0xa1b   :  { %10094 = vmatpush3.bf16.msra.mxu1 %v10887_v1  ;;  %10116 = vmatpush3.bf16.msra.mxu0 %v10888_v2 }
 0xa1c   :  { %10095 = vmatprep.subr.bf16.mxu1 %v10889_v45  ;;  %10117 = vmatprep.subr.bf16.mxu0 %v10890_v3 }
 0xa1f   :  { %10096 = vmatpush3.bf16.msra.mxu1 %v10891_v4  ;;  %10118 = vmatpush3.bf16.msra.mxu0 %v10892_v5 }
 0xa20   :  { %10475 = vmatprep.subr.bf16.mxu1 %v11351_v19  ;;  %10483 = vmatprep.subr.mxu0 %v11351_v19 }
 0xac2   :  { %v1876_v14 = vpop.f32.mrf.mxu1  ;;  %v1919_v15 = vpop.f32.mrf.mxu0 }
 0xac3   :  { %v11876_v20 = vadd.f32 %v1876_v14, %v1782_v12  ;;  %v11878_v22 = vadd.f32 %v1919_v15, %v1790_v13 }
 0xac4   :  { %v1878_v23 = vpop.f32.mrf.mxu1  ;;  %v1921_v24 = vpop.f32.mrf.mxu0 }
 0xac5   :  { %v11881_v26 = vmul.f32 0.70710677, %v11876_v20  ;;  %v11884_v27 = vmul.f32 0.70710677, %v11878_v22  ;;  %v11886_v28 = vadd.f32 %v1878_v23, %v1786_v17  ;;  %v11888_v29 = vadd.f32 %v1921_v24, %v1794_v18 }
 0xac6   :  { %v1880_v33 = vpop.f32.mrf.mxu1  ;;  %v1923_v40 = vpop.f32.mrf.mxu0 }
 0xac7   :  { %v1960_v30 = vand.u32 2147483647, %v11881_v26  ;;  %v11892_v31 = vand.u32 2147483647, %v11884_v27  ;;  %v11895_v32 = vmul.f32 0.70710677, %v11886_v28  ;;  %v11903_v44 = vadd.f32 %v1880_v33, %v1782_v12 }
 0xac8   :  { %v11900_v36 = vmul.f32 0.70710677, %v11888_v29  ;;  %v1882_v41 = vpop.f32.mrf.mxu1  ;;  %v11905_v46 = vadd.f32 %v1923_v40, %v1790_v13  ;;  %v1925_v55 = vpop.f32.mrf.mxu0  ;;  %vm1944_vm7 = vcmp.ge.f32.partialorder %v11881_v26, 0.0  ;;  %vm1946_vm9 = vcmp.ge.f32.partialorder %v11884_v27, 0.0 }
 0xac9   :  { %v1968_v21 = vmul.f32 0.3275911, %v1960_v30  ;;  %v1970_v34 = vmul.f32 0.3275911, %v11892_v31  ;;  %v1961_v35 = vand.u32 2147483647, %v11895_v32  ;;  %v11907_v47 = vadd.f32 %v1882_v41, %v1786_v17 }
 0xaca   :  { %v1963_v43 = vand.u32 2147483647, %v11900_v36  ;;  %v11910_v49 = vmul.f32 0.70710677, %v11903_v44  ;;  %v11913_v52 = vmul.f32 0.70710677, %v11905_v46  ;;  %v11921_v59 = vadd.f32 %v1925_v55, %v1794_v18 }
 0xacb   :  { %v1976_v37 = vadd.f32 1.0, %v1968_v21  ;;  %v1978_v38 = vadd.f32 1.0, %v1970_v34  ;;  %v1969_v39 = vmul.f32 0.3275911, %v1961_v35  ;;  %v11917_v54 = vmul.f32 0.70710677, %v11907_v47 }
 0xacc   :  { %v1971_v48 = vmul.f32 0.3275911, %v1963_v43  ;;  %v1964_v53 = vand.u32 2147483647, %v11910_v49  ;;  %v1966_v56 = vand.u32 2147483647, %v11913_v52 }
 0xacd   :  { %11081 = vrcp.f32 %v1976_v37  ;;  %v1977_v42 = vadd.f32 1.0, %v1969_v39  ;;  %v1965_v58 = vand.u32 2147483647, %v11917_v54  ;;  %v2072_v2 = vsub.f32 0.0, %v1960_v30 }
 0xace   :  { %11083 = vrcp.f32 %v1978_v38  ;;  %v1979_v50 = vadd.f32 1.0, %v1971_v48  ;;  %v1972_v25 = vmul.f32 0.3275911, %v1964_v53  ;;  %v1974_v61 = vmul.f32 0.3275911, %v1966_v56 }
 0xacf   :  { %11085 = vrcp.f32 %v1977_v42  ;;  %v1973_v63 = vmul.f32 0.3275911, %v1965_v58  ;;  %v11926_v3 = vmul.f32 0.70710677, %v11921_v59  ;;  %v2073_v7 = vsub.f32 0.0, %v1961_v35 }
 0xad0   :  { %11087 = vrcp.f32 %v1979_v50  ;;  %v1980_v60 = vadd.f32 1.0, %v1972_v25  ;;  %v1982_v0 = vadd.f32 1.0, %v1974_v61  ;;  %v2076_v12 = vsub.f32 0.0, %v1964_v53 }
 0xad1   :  { %v1981_v45 = vadd.f32 1.0, %v1973_v63  ;;  %v11933_v13 = vand.u32 2147483647, %v11926_v3  ;;  %v2080_v15 = vmul.f32 %v2072_v2, %v1960_v30  ;;  %v2074_v21 = vsub.f32 0.0, %v11892_v31 }
 0xad2   :  { %11089 = vrcp.f32 %v1980_v60  ;;  %v2081_v34 = vmul.f32 %v2073_v7, %v1961_v35  ;;  %v2075_v37 = vsub.f32 0.0, %v1963_v43  ;;  %v2084_v41 = vmul.f32 %v2076_v12, %v1964_v53 }
 0xad3   :  { %11091 = vrcp.f32 %v1982_v0  ;;  %v1975_v24 = vmul.f32 0.3275911, %v11933_v13  ;;  %v2088_v42 = vmul.f32 1.442695, %v2080_v15  ;;  %v2078_v50 = vsub.f32 0.0, %v1966_v56 }
 0xad4   :  { %11093 = vrcp.f32 %v1981_v45  ;;  %v2077_v55 = vsub.f32 0.0, %v1965_v58  ;;  %v2082_v35 = vmul.f32 %v2074_v21, %v11892_v31  ;;  %v2090_v63 = vmul.f32 1.442695, %v2081_v34 }
 0xad5   :  { %v1983_v30 = vadd.f32 1.0, %v1975_v24  ;;  %v2083_v2 = vmul.f32 %v2075_v37, %v1963_v43  ;;  %v2086_v7 = vmul.f32 %v2078_v50, %v1966_v56  ;;  %v2079_v34 = vsub.f32 0.0, %v11933_v13 }
 0xad6   :  { %v2092_v31 = vmul.f32 1.442695, %v2082_v35  ;;  %vm1945_vm8 = vcmp.ge.f32.partialorder %v11895_v32, 0.0  ;;  %vm1948_vm10 = vcmp.ge.f32.partialorder %v11910_v49, 0.0  ;;  %vm1947_vm11 = vcmp.ge.f32.partialorder %v11900_v36, 0.0 }
 0xad7   :  { %11095 = vrcp.f32 %v1983_v30  ;;  %v2094_v43 = vmul.f32 1.442695, %v2083_v2  ;;  %v2100_v37 = vmul.f32 1.442695, %v2086_v7  ;;  %vm1950_vm12 = vcmp.ge.f32.partialorder %v11913_v52, 0.0 }
 0xad8   :  { %11097 = vpow2.f32 %v2088_v42  ;;  %vm1949_vm13 = vcmp.ge.f32.partialorder %v11917_v54, 0.0  ;;  %vm1951_vm14 = vcmp.ge.f32.partialorder %v11926_v3, 0.0 }
 0xad9   :  { %11099 = vpow2.f32 %v2090_v63 }
 0xada   :  { %v11923_v1 = vpop.eup %11081 }
 0xadb   :  { %v11928_v4 = vpop.eup %11083  ;;  %v2000_v5 = vmul.f32 1.0614054, %v11923_v1 }
 0xadc   :  { %v2002_v6 = vmul.f32 1.0614054, %v11928_v4  ;;  %v11935_v14 = vpop.eup %11085 }
 0xadd   :  { %v2008_v9 = vadd.f32 -1.4531521, %v2000_v5  ;;  %v2001_v23 = vmul.f32 1.0614054, %v11935_v14  ;;  %v11942_v38 = vpop.eup %11087  ;;  %v2096_v5 = vmul.f32 1.442695, %v2084_v41 }
 0xade   :  { %v2010_v17 = vadd.f32 -1.4531521, %v2002_v6  ;;  %v2003_v48 = vmul.f32 1.0614054, %v11942_v38 }
 0xadf   :  { %v2016_v18 = vmul.f32 %v11923_v1, %v2008_v9  ;;  %v2009_v40 = vadd.f32 -1.4531521, %v2001_v23  ;;  %v11948_v53 = vpop.eup %11089  ;;  %v2085_v9 = vmul.f32 %v2077_v55, %v1965_v58  ;;  %11101 = vpow2.f32 %v2096_v5 }
 0xae0   :  { %v2018_v33 = vmul.f32 %v11928_v4, %v2010_v17  ;;  %v2011_v0 = vadd.f32 -1.4531521, %v2003_v48  ;;  %v11954_v24 = vpop.eup %11091  ;;  %11103 = vpow2.f32 %v2092_v31 }
 0xae1   :  { %v2024_v39 = vadd.f32 1.4214138, %v2016_v18  ;;  %v2017_v61 = vmul.f32 %v11935_v14, %v2009_v40  ;;  %v2004_v18 = vmul.f32 1.0614054, %v11948_v53  ;;  %v2006_v58 = vmul.f32 1.0614054, %v11954_v24  ;;  %v11959_v40 = vpop.eup %11093 }
 0xae2   :  { %v2026_v60 = vadd.f32 1.4214138, %v2018_v33  ;;  %v2019_v6 = vmul.f32 %v11942_v38, %v2011_v0  ;;  %11105 = vpow2.f32 %v2094_v43 }
 0xae3   :  { %v2032_v25 = vmul.f32 %v11923_v1, %v2024_v39  ;;  %v2025_v45 = vadd.f32 1.4214138, %v2017_v61  ;;  %v2012_v21 = vadd.f32 -1.4531521, %v2004_v18  ;;  %v2098_v39 = vmul.f32 1.442695, %v2085_v9 }
 0xae4   :  { %v2034_v15 = vmul.f32 %v11928_v4, %v2026_v60  ;;  %v2027_v23 = vadd.f32 1.4214138, %v2019_v6  ;;  %v2014_v55 = vadd.f32 -1.4531521, %v2006_v58  ;;  %v2087_v61 = vmul.f32 %v2079_v34, %v11933_v13  ;;  %v11969_v6 = vpop.eup %11095 }
 0xae5   :  { %v2040_v12 = vadd.f32 -0.28449672, %v2032_v25  ;;  %v2033_v17 = vmul.f32 %v11935_v14, %v2025_v45  ;;  %v2020_v48 = vmul.f32 %v11948_v53, %v2012_v21  ;;  %v2005_v25 = vmul.f32 1.0614054, %v11959_v40  ;;  %v11098_v43 = vpop.eup %11097 }
 0xae6   :  { %v2035_v56 = vmul.f32 %v11942_v38, %v2027_v23  ;;  %v2042_v30 = vadd.f32 -0.28449672, %v2034_v15  ;;  %v2022_v63 = vmul.f32 %v11954_v24, %v2014_v55  ;;  %11107 = vpow2.f32 %v2100_v37 }
 0xae7   :  { %v2041_v33 = vadd.f32 -0.28449672, %v2033_v17  ;;  %v2048_v41 = vmul.f32 %v11923_v1, %v2040_v12  ;;  %v2028_v60 = vadd.f32 1.4214138, %v2020_v48  ;;  %v2013_v0 = vadd.f32 -1.4531521, %v2005_v25 }
 0xae8   :  { %v2043_v50 = vadd.f32 -0.28449672, %v2035_v56  ;;  %v2050_v7 = vmul.f32 %v11928_v4, %v2042_v30  ;;  %v2030_v9 = vadd.f32 1.4214138, %v2022_v63  ;;  %11109 = vpow2.f32 %v2098_v39 }
 0xae9   :  { %v2049_v42 = vmul.f32 %v11935_v14, %v2041_v33  ;;  %v2056_v2 = vadd.f32 0.2548296, %v2048_v41  ;;  %v2036_v5 = vmul.f32 %v11948_v53, %v2028_v60  ;;  %v2021_v12 = vmul.f32 %v11959_v40, %v2013_v0  ;;  %v11100_v41 = vpop.eup %11099 }
 0xaea   :  { %v2051_v45 = vmul.f32 %v11942_v38, %v2043_v50  ;;  %v2007_v13 = vmul.f32 1.0614054, %v11969_v6  ;;  %v2102_v17 = vmul.f32 1.442695, %v2087_v61  ;;  %v2038_v31 = vmul.f32 %v11954_v24, %v2030_v9 }
 0xaeb   :  { %v2057_v35 = vadd.f32 0.2548296, %v2049_v42  ;;  %v2044_v15 = vadd.f32 -0.28449672, %v2036_v5  ;;  %v2029_v23 = vadd.f32 1.4214138, %v2021_v12  ;;  %v2064_v33 = vmul.f32 %v11923_v1, %v2056_v2 }
 0xaec   :  { %v2059_v21 = vadd.f32 0.2548296, %v2051_v45  ;;  %v2015_v56 = vadd.f32 -1.4531521, %v2007_v13  ;;  %v2058_v58 = vadd.f32 0.2548296, %v2050_v7  ;;  %11111 = vpow2.f32 %v2102_v17  ;;  %v11102_v42 = vpop.eup %11101 }
 0xaed   :  { %v2065_v18 = vmul.f32 %v11935_v14, %v2057_v35  ;;  %v2052_v34 = vmul.f32 %v11948_v53, %v2044_v15  ;;  %v2046_v37 = vadd.f32 -0.28449672, %v2038_v31  ;;  %v2037_v39 = vmul.f32 %v11959_v40, %v2029_v23  ;;  %v11104_v2 = vpop.eup %11103 }
 0xaee   :  { %v2023_v14 = vmul.f32 %v11969_v6, %v2015_v56  ;;  %v2104_v55 = vmul.f32 %v11098_v43, %v2064_v33  ;;  %v2067_v25 = vmul.f32 %v11942_v38, %v2059_v21  ;;  %v2066_v35 = vmul.f32 %v11928_v4, %v2058_v58 }
 0xaef   :  { %v2060_v30 = vadd.f32 0.2548296, %v2052_v34  ;;  %v2105_v48 = vmul.f32 %v11100_v41, %v2065_v18  ;;  %v2054_v1 = vmul.f32 %v11954_v24, %v2046_v37  ;;  %v2045_v50 = vadd.f32 -0.28449672, %v2037_v39 }
 0xaf0   :  { %v2031_v61 = vadd.f32 1.4214138, %v2023_v14  ;;  %v11368_v45 = vmov -1.0   ;;  %v2112_v17 = vsub.f32 1.0, %v2104_v55  ;;  %v2106_v23 = vmul.f32 %v11104_v2, %v2066_v35 }
 0xaf1   :  { %v2068_v60 = vmul.f32 %v11948_v53, %v2060_v30  ;;  %v2062_v63 = vadd.f32 0.2548296, %v2054_v1  ;;  %v2053_v0 = vmul.f32 %v11959_v40, %v2045_v50  ;;  %v1952_v5 = vsel %vm1944_vm7, 1.0, %v11368_v45  ;;  %v11106_v53 = vpop.eup %11105 }
 0xaf2   :  { %v2039_v38 = vmul.f32 %v11969_v6, %v2031_v61  ;;  %v1953_v9 = vsel %vm1945_vm8, 1.0, %v11368_v45  ;;  %v2113_v4 = vsub.f32 1.0, %v2105_v48  ;;  %v2107_v18 = vmul.f32 %v11106_v53, %v2067_v25 }
 0xaf3   :  { %v2108_v7 = vmul.f32 %v11102_v42, %v2068_v60  ;;  %v2070_v12 = vmul.f32 %v11954_v24, %v2062_v63  ;;  %v2061_v15 = vadd.f32 0.2548296, %v2053_v0  ;;  %v11108_v13 = vpop.eup %11107  ;;  %v1956_v49 = vsel %vm1948_vm10, 1.0, %v11368_v45 }
 0xaf4   :  { %v2047_v26 = vadd.f32 -0.28449672, %v2039_v38  ;;  %v2121_v34 = vmul.f32 %v2113_v4, %v1953_v9  ;;  %v2120_v37 = vmul.f32 %v2112_v17, %v1952_v5  ;;  %v2115_v39 = vsub.f32 1.0, %v2107_v18 }
 0xaf5   :  { %v2116_v31 = vsub.f32 1.0, %v2108_v7  ;;  %v2110_v43 = vmul.f32 %v11108_v13, %v2070_v12  ;;  %v2069_v33 = vmul.f32 %v11959_v40, %v2061_v15  ;;  %v11110_v21 = vpop.eup %11109  ;;  %v1954_v40 = vsel %vm1946_vm9, 1.0, %v11368_v45 }
 0xaf6   :  { %v2055_v24 = vmul.f32 %v11969_v6, %v2047_v26  ;;  %v2114_v30 = vsub.f32 1.0, %v2106_v23  ;;  %v1955_v36 = vsel %vm1947_vm11, 1.0, %v11368_v45  ;;  %v1958_v52 = vsel %vm1950_vm12, 1.0, %v11368_v45 }
 0xaf7   :  { %v2124_v32 = vmul.f32 %v2116_v31, %v1956_v49  ;;  %v2118_v56 = vsub.f32 1.0, %v2110_v43  ;;  %v2109_v58 = vmul.f32 %v11110_v21, %v2069_v33  ;;  %v1957_v48 = vsel %vm1949_vm13, 1.0, %v11368_v45 }
 0xaf8   :  { %v2063_v41 = vadd.f32 0.2548296, %v2055_v24  ;;  %v2129_v50 = vadd.f32 1.0, %v2121_v34  ;;  %v1932_v55 = vmul.f32 0.5, %v11903_v44  ;;  %v2128_v61 = vadd.f32 1.0, %v2120_v37 }
 0xaf9   :  { %v2117_v14 = vsub.f32 1.0, %v2109_v58  ;;  %v2132_v42 = vadd.f32 1.0, %v2124_v32  ;;  %v11112_v54 = vpop.eup %11111  ;;  %v2126_v25 = vmul.f32 %v2118_v56, %v1958_v52  ;;  %v2123_v27 = vmul.f32 %v2115_v39, %v1955_v36 }
 0xafa   :  { %v2071_v1 = vmul.f32 %v11969_v6, %v2063_v41  ;;  %v2122_v63 = vmul.f32 %v2114_v30, %v1954_v40  ;;  %v1929_v0 = vmul.f32 0.5, %v11886_v28  ;;  %v1933_v2 = vmul.f32 0.5, %v11907_v47 }
 0xafb   :  { %v2125_v60 = vmul.f32 %v2117_v14, %v1957_v48  ;;  %v1928_v7 = vmul.f32 0.5, %v11876_v20  ;;  %v2140_v6 = vmul.f32 %v2132_v42, %v1932_v55  ;;  %v2134_v9 = vadd.f32 1.0, %v2126_v25 }
 0xafc   :  { %v2111_v35 = vmul.f32 %v11112_v54, %v2071_v1  ;;  %v2137_v53 = vmul.f32 %v2129_v50, %v1929_v0  ;;  %v1959_v4 = vsel %vm1951_vm14, 1.0, %v11368_v45  ;;  %v2131_v15 = vadd.f32 1.0, %v2123_v27 }
 0xafd   :  { %v2133_v5 = vadd.f32 1.0, %v2125_v60  ;;  %v2136_v12 = vmul.f32 %v2128_v61, %v1928_v7  ;;  %v2130_v3 = vadd.f32 1.0, %v2122_v63  ;;  %v1934_v17 = vmul.f32 0.5, %v11905_v46 }
 0xafe   :  { %v2119_v38 = vsub.f32 1.0, %v2111_v35  ;;  %v1931_v28 = vmul.f32 0.5, %v11888_v29  ;;  %v1935_v31 = vmul.f32 0.5, %v11921_v59  ;;  %v1930_v26 = vmul.f32 0.5, %v11878_v22  ;;  %v9506_v22 = vld [vmem:[%s13581_s17] ss:$0 sm:$0xff] }
 0xaff   :  { %v2141_v44 = vmul.f32 %v2133_v5, %v1933_v2  ;;  %v2144_v47 = vpack.c.bf16 %v2140_v6, %v2136_v12  ;;  %v2142_v23 = vmul.f32 %v2134_v9, %v1934_v17  ;;  %v10893_v2 = vld [vmem:[%s13572_s8 + $0x18] sm:$0xff]   ;;  %v10894_v5 = vld [vmem:[%s13572_s8 + $0x10] sm:$0xff]  }
 0xb00   :  { %v2127_v13 = vmul.f32 %v2119_v38, %v1959_v4  ;;  %v2139_v49 = vmul.f32 %v2131_v15, %v1931_v28  ;;  %v2138_v33 = vmul.f32 %v2130_v3, %v1930_v26  ;;  %v9541_v15 = vld [vmem:[%s13570_s6 + $0x1] ss:$0 sm:$0xff] }
 0xb01   :  { %v2145_v18 = vpack.c.bf16 %v2141_v44, %v2137_v53  ;;  %v9548_v26 = vld [vmem:[%s13573_s9 + $0x1] ss:$0 sm:$0xff] }
 0xb02   :  { %v2135_v20 = vadd.f32 1.0, %v2127_v13  ;;  %v2146_v46 = vpack.c.bf16 %v2142_v23, %v2138_v33 }
 0xb03   :  { %2443 = vmatprep.mubr.bf16.mxu1 %v2145_v18  ;;  %v9542_v18 = vld [vmem:[%s13571_s7 + $0x1] ss:$0 sm:$0xff] }
 0xb04   :  { %v2143_v43 = vmul.f32 %v2135_v20, %v1935_v31  ;;  %2444 = vmatmul.mubr.bf16.vlgmr.msra.gmra.mxu1 %v2144_v47 }
 0xb05   :  { %10479 = vmatprep.mubr.msk.bf16.mxu1 %vm11352_vm3, %v11351_v19  ;;  %10476 = vmatpush3.bf16.msra.mxu1 %v10893_v2 }
 0xb06   :  { %v2147_v21 = vpack.c.bf16 %v2143_v43, %v2139_v49  ;;  %10477 = vmatprep.subr.bf16.mxu1 %v11351_v19 }
 0xb08   :  { %2484 = vmatprep.mubr.bf16.mxu0 %v2147_v21 }
 0xb09   :  { %2485 = vmatmul.mubr.bf16.vlgmr.msra.gmra.mxu0 %v2146_v46  ;;  %10478 = vmatpush3.bf16.msra.mxu1 %v10894_v5 }
 0xb0a   :  { %10485 = vmatprep.mubr.msk.f32.mxu0 %vm11352_vm3, %v11351_v19  ;;  %10488 = vmatprep.subr.mxu1 %v11351_v19 }
 0xbc4   :  { %v10097_v29 = vpop.f32.mrf.mxu1 }
 0xbc6   :  { %v10098_v59 = vpop.f32.mrf.mxu1 }
 0xbc7   :  { %v10099_v32 = vadd.f32 %v10098_v59, %v10097_v29 }
 0xbc8   :  { %v10100_v24 = vpop.f32.mrf.mxu1 }
 0xbc9   :  { %v10119_v34 = vpop.f32.mrf.mxu0  ;;  %v2446_v56 = vadd.f32 %v10099_v32, %v9506_v22 }
 0xbca   :  { %v10101_v58 = vpop.f32.mrf.mxu1 }
 0xbcb   :  { %v10120_v37 = vpop.f32.mrf.mxu0  ;;  %v10102_v39 = vadd.f32 %v10101_v58, %v10100_v24 }
 0xbcc   :  { %v10121_v41 = vadd.f32 %v10120_v37, %v10119_v34 }
 0xbcd   :  { %v10122_v40 = vpop.f32.mrf.mxu0  ;;  %v2449_v36 = vadd.f32 %v10102_v39, %v9506_v22 }
 0xbce   :  { %v2487_v30 = vadd.f32 %v10121_v41, %v2446_v56 }
 0xbcf   :  { %v10123_v14 = vpop.f32.mrf.mxu0 }
 0xbd0   :  { %v12028_v42 = vadd.f32 %v2487_v30, %v11716_v57  ;;  %v10124_v52 = vadd.f32 %v10123_v14, %v10122_v40 }
 0xbd2   :  { %v2490_v48 = vadd.f32 %v10124_v52, %v2449_v36  ;;  %v2499_v1 = vsel %vm73_vm0, %v12028_v42, 0.0 }
 0xbd3   :  { %2500 = vadd.xlane.f32.xlu1 %v2499_v1 }
 0xbd4   :  { %v12033_v54 = vadd.f32 %v2490_v48, %v11721_v62 }
 0xbd6   :  { %v2502_v50 = vsel %vm73_vm0, %v12033_v54, 0.0 }
 0xbd7   :  { %2503 = vadd.xlane.f32.xlu0 %v2502_v50 }
 0xc5c   :  { %v2501_v55 = vpop.xlane.xlu1 %2500 }
 0xc5d   :  { %v2505_v25 = vmul.f32 0.03125, %v2501_v55 }
 0xc5f   :  { %v2507_v60 = vsub.f32 %v12028_v42, %v2505_v25 }
 0xc60   :  { %v2504_v61 = vpop.xlane.xlu0 %2503 }
 0xc61   :  { %v2506_v57 = vmul.f32 0.03125, %v2504_v61  ;;  %v2509_v27 = vmul.f32 %v2507_v60, %v2507_v60 }
 0xc63   :  { %v2508_v35 = vsub.f32 %v12033_v54, %v2506_v57  ;;  %v2511_v63 = vsel %vm73_vm0, %v2509_v27, 0.0 }
 0xc64   :  { %2512 = vadd.xlane.f32.xlu1 %v2511_v63 }
 0xc65   :  { %v2510_v0 = vmul.f32 %v2508_v35, %v2508_v35 }
 0xc67   :  { %v2514_v62 = vsel %vm73_vm0, %v2510_v0, 0.0 }
 0xc68   :  { %2515 = vadd.xlane.f32.xlu0 %v2514_v62 }
 0xced   :  { %v2513_v7 = vpop.xlane.xlu1 %2512 }
 0xcee   :  { %v2517_v6 = vmul.f32 0.03125, %v2513_v7 }
 0xcf0   :  { %v2519_v38 = vadd.f32 1e-05, %v2517_v6 }
 0xcf1   :  { %v2516_v53 = vpop.xlane.xlu0 %2515 }
 0xcf2   :  { %11113 = vrsqrt.f32 %v2519_v38  ;;  %v2518_v9 = vmul.f32 0.03125, %v2516_v53 }
 0xcf4   :  { %v2520_v44 = vadd.f32 1e-05, %v2518_v9 }
 0xcf6   :  { %11115 = vrsqrt.f32 %v2520_v44 }
 0xcff   :  { %v11114_v4 = vpop.eup %11113 }
 0xd00   :  { %v2523_v12 = vmul.f32 %v11114_v4, %v2507_v60 }
 0xd02   :  { %v2531_v17 = vmul.f32 %v9541_v15, %v2523_v12 }
 0xd03   :  { %v11116_v13 = vpop.eup %11115 }
 0xd04   :  { %v2524_v3 = vmul.f32 %v11116_v13, %v2508_v35  ;;  %v2539_v47 = vadd.f32 %v9542_v18, %v2531_v17 }
 0xd06   :  { %v2532_v28 = vmul.f32 %v9541_v15, %v2524_v3 }
 0xd08   :  { %v2540_v31 = vadd.f32 %v9542_v18, %v2532_v28 }
 0xd0a   :  { %v2541_v20 = vpack.c.bf16 %v2540_v31, %v2539_v47 }
 0xd0c   :  { %10480 = vmatmul.mubr.msk.bf16.vlgmr.msra.gmra.mxu1 %vm73_vm0, %v2541_v20 }
 0xd0d   :  { %10490 = vmatprep.mubr.msk.f32.mxu1 %vm11352_vm3, %v11351_v19 }
 0xdcc   :  { %v2604_v23 = vpop.f32.mrf.mxu1 }
 0xdcd   :  { %v12061_v49 = vadd.f32 %v9548_v26, %v2604_v23 }
 0xdce   :  { %v10481_v43 = vpop.f32.mrf.mxu1 }
 0xdcf   :  { %2777 = vrot.lane.b32.xlu0 %v12061_v49, %s13611_s24  ;;  %2612 = vrot.lane.b32.xlu1 %v12061_v49, %s13609_s25 }
 0xdd0   :  { %v2607_v33 = vpop.f32.mrf.mxu1 }
 0xdd1   :  { %v12071_v46 = vadd.f32 %v9548_v26, %v2607_v33 }
 0xdd2   :  { %v10482_v21 = vpop.f32.mrf.mxu1 }
 0xdd3   :  { %3107 = vrot.lane.b32.xlu0 %v12061_v49, %s13599_s3  ;;  %2775 = vrot.lane.b32.xlu1 %v12061_v49, %s13607_s26 }
 0xdd7   :  { %2942 = vrot.lane.b32.xlu1 %v12061_v49, %s13603_s28  ;;  %3286 = vrot.lane.b32.xlu0 %v12071_v46, %s13609_s25  ;;  %s13640_s25 = smov 56  }
 0xddb   :  { %2940 = vrot.lane.b32.xlu1 %v12061_v49, %s13605_s27  ;;  %3449 = vrot.lane.b32.xlu0 %v12071_v46, %s13607_s26  ;;  %s11369_s26 = smov [#allocation2]  }
 0xddc   :  { %s9441_s18 = sshll.u32 %s11369_s26, 4  ;;  %s9442_s18 = int_to_ptr.vmem [resolvable:$true] %s9441_s18 }
 0xddd   :  { %p11334_p1 = scmp.lt.s32.totalorder %s9442_s18, %s9442_s18 }
 0xddf   :  { %3105 = vrot.lane.b32.xlu1 %v12061_v49, %s13601_s29  ;;  %3614 = vrot.lane.b32.xlu0 %v12071_v46, %s13605_s27 }
 0xde3   :  { %3451 = vrot.lane.b32.xlu1 %v12071_v46, %s13611_s24  ;;  %3779 = vrot.lane.b32.xlu0 %v12071_v46, %s13601_s29 }
 0xde7   :  { %3616 = vrot.lane.b32.xlu1 %v12071_v46, %s13603_s28  ;;  %s13639_s28 = smov 72  }
 0xdeb   :  { %3781 = vrot.lane.b32.xlu1 %v12071_v46, %s13599_s3  ;;  %s13638_s3 = smov 104  }
 0xe41   :  { %v2613_v29 = vpop.permute.xlu1 %2612  ;;  %v2778_v59 = vpop.permute.xlu0 %2777 }
 0xe42   :  { %10484 = vmatpush3.xpose.msk.msra.mxu0 %vm306_vm4, %v2613_v29 }
 0xe43   :  { %10493 = vmatprep.subr.mxu0 %v11351_v19 }
 0xe45   :  { %10486 = vmatmul.mubr.msk.f32.vlgmr.msra.gmra.mxu0 %vm306_vm4, %v12061_v49  ;;  %v2776_v22 = vpop.permute.xlu1 %2775  ;;  %v3108_v32 = vpop.permute.xlu0 %3107 }
 0xe46   :  { %10494 = vmatpush3.xpose.msk.msra.mxu0 %vm306_vm4, %v2778_v59  ;;  %10495 = vmatprep.mubr.msk.f32.mxu0 %vm11352_vm3, %v11351_v19 }
 0xe47   :  { %10503 = vmatprep.subr.mxu0 %v11351_v19 }
 0xe49   :  { %10496 = vmatmul.mubr.msk.f32.vlgmr.msra.gmra.mxu0 %vm306_vm4, %v2776_v22  ;;  %v2943_v24 = vpop.permute.xlu1 %2942  ;;  %v3287_v56 = vpop.permute.xlu0 %3286 }
 0xe4a   :  { %10504 = vmatpush3.xpose.msk.msra.mxu0 %vm306_vm4, %v2943_v24  ;;  %10505 = vmatprep.mubr.msk.f32.mxu0 %vm11352_vm3, %v11351_v19 }
 0xe4b   :  { %10513 = vmatprep.subr.mxu0 %v11351_v19 }
 0xe4d   :  { %v2941_v34 = vpop.permute.xlu1 %2940  ;;  %v3450_v37 = vpop.permute.xlu0 %3449 }
 0xe4e   :  { %10506 = vmatmul.mubr.msk.f32.vlgmr.msra.gmra.mxu0 %vm306_vm4, %v2941_v34 }
 0xe4f   :  { %10514 = vmatpush3.xpose.msk.msra.mxu0 %vm306_vm4, %v3108_v32  ;;  %10515 = vmatprep.mubr.msk.f32.mxu0 %vm11352_vm3, %v11351_v19 }
 0xe50   :  { %10523 = vmatprep.subr.mxu0 %v11351_v19 }
 0xe51   :  { %v3106_v58 = vpop.permute.xlu1 %3105  ;;  %v3615_v40 = vpop.permute.xlu0 %3614 }
 0xe52   :  { %10516 = vmatmul.mubr.msk.f32.vlgmr.msra.gmra.mxu0 %vm306_vm4, %v3106_v58 }
 0xe53   :  { %10524 = vmatpush3.xpose.msk.msra.mxu0 %vm306_vm4, %v3287_v56  ;;  %10525 = vmatprep.mubr.msk.f32.mxu0 %vm11352_vm3, %v11351_v19 }
 0xe54   :  { %10533 = vmatprep.subr.mxu0 %v11351_v19 }
 0xe55   :  { %v3452_v39 = vpop.permute.xlu1 %3451  ;;  %v3780_v36 = vpop.permute.xlu0 %3779 }
 0xe56   :  { %10526 = vmatmul.mubr.msk.f32.vlgmr.msra.gmra.mxu0 %vm306_vm4, %v12071_v46 }
 0xe57   :  { %10534 = vmatpush3.xpose.msk.msra.mxu0 %vm306_vm4, %v3452_v39  ;;  %10535 = vmatprep.mubr.msk.f32.mxu0 %vm11352_vm3, %v11351_v19 }
 0xe58   :  { %10543 = vmatprep.subr.mxu0 %v11351_v19 }
 0xe59   :  { %v3617_v41 = vpop.permute.xlu1 %3616 }
 0xe5a   :  { %10536 = vmatmul.mubr.msk.f32.vlgmr.msra.gmra.mxu0 %vm306_vm4, %v3450_v37 }
 0xe5b   :  { %10544 = vmatpush3.xpose.msk.msra.mxu0 %vm306_vm4, %v3617_v41  ;;  %10545 = vmatprep.mubr.msk.f32.mxu0 %vm11352_vm3, %v11351_v19 }
 0xe5c   :  { %10553 = vmatprep.subr.mxu0 %v11351_v19 }
 0xe5d   :  { %v3782_v30 = vpop.permute.xlu1 %3781 }
 0xe5e   :  { %10546 = vmatmul.mubr.msk.f32.vlgmr.msra.gmra.mxu0 %vm306_vm4, %v3615_v40 }
 0xe5f   :  { %10554 = vmatpush3.xpose.msk.msra.mxu0 %vm306_vm4, %v3782_v30  ;;  %10555 = vmatprep.mubr.msk.f32.mxu0 %vm11352_vm3, %v11351_v19 }
 0xe60   :  { %10563 = vmatprep.subr.bf16.mxu0 %v11351_v19 }
 0xe62   :  { %10556 = vmatmul.mubr.msk.f32.vlgmr.msra.gmra.mxu0 %vm306_vm4, %v3780_v36 }
 0xe63   :  { %10567 = vmatprep.mubr.msk.bf16.mxu0 %vm11352_vm3, %v11351_v19 }
 0xf05   :  { %v2684_v14 = vpop.f32.mrf.mxu0 }
 0xf06   :  { %v2688_v52 = vsel %vm306_vm4, %v2684_v14, -inf }
 0xf07   :  { %v10487_v48 = vpop.f32.mrf.mxu0  ;;  %2689 = vmax.xlane.f32.xlu1 %v2688_v52 }
 0xf09   :  { %v2849_v1 = vpop.f32.mrf.mxu0 }
 0xf0a   :  { %v2853_v50 = vsel %vm306_vm4, %v2849_v1, -inf }
 0xf0b   :  { %v10497_v55 = vpop.f32.mrf.mxu0  ;;  %2854 = vmax.xlane.f32.xlu0 %v2853_v50 }
 0xf0e   :  { %v3014_v25 = vpop.f32.mrf.mxu0 }
 0xf0f   :  { %v3018_v60 = vsel %vm306_vm4, %v3014_v25, -inf }
 0xf10   :  { %v10507_v61 = vpop.f32.mrf.mxu0  ;;  %3019 = vmax.xlane.f32.xlu0 %v3018_v60 }
 0xf12   :  { %v3179_v57 = vpop.f32.mrf.mxu0 }
 0xf13   :  { %v3183_v27 = vsel %vm306_vm4, %v3179_v57, -inf }
 0xf14   :  { %v10517_v35 = vpop.f32.mrf.mxu0  ;;  %3184 = vmax.xlane.f32.xlu0 %v3183_v27 }
 0xf16   :  { %v3358_v63 = vpop.f32.mrf.mxu0 }
 0xf17   :  { %v3362_v0 = vsel %vm306_vm4, %v3358_v63, -inf }
 0xf18   :  { %3363 = vmax.xlane.f32.xlu1 %v3362_v0  ;;  %v10527_v62 = vpop.f32.mrf.mxu0 }
 0xf1a   :  { %v3523_v2 = vpop.f32.mrf.mxu0 }
 0xf1b   :  { %v3527_v5 = vsel %vm306_vm4, %v3523_v2, -inf }
 0xf1c   :  { %3528 = vmax.xlane.f32.xlu0 %v3527_v5  ;;  %v10537_v7 = vpop.f32.mrf.mxu0 }
 0xf1e   :  { %v3688_v6 = vpop.f32.mrf.mxu0 }
 0xf1f   :  { %v3692_v38 = vsel %vm306_vm4, %v3688_v6, -inf }
 0xf20   :  { %3693 = vmax.xlane.f32.xlu1 %v3692_v38  ;;  %v10547_v53 = vpop.f32.mrf.mxu0 }
 0xf22   :  { %v3853_v9 = vpop.f32.mrf.mxu0 }
 0xf23   :  { %v3857_v44 = vsel %vm306_vm4, %v3853_v9, -inf }
 0xf24   :  { %3858 = vmax.xlane.f32.xlu0 %v3857_v44  ;;  %v10557_v4 = vpop.f32.mrf.mxu0 }
 0xf31   :  { %2864 = vrot.lane.b32.xlu1 %v12061_v49, %s13597_s19 }
 0xf35   :  { %3029 = vrot.lane.b32.xlu1 %v12061_v49, %s13628_s0 }
 0xf3a   :  { %2699 = vrot.lane.b32.xlu0 %v12061_v49, %s13629_s22 }
 0xf90   :  { %v2690_v12 = vpop.xlane.xlu1 %2689 }
 0xf91   :  { %v2691_v15 = vsub.f32 %v2684_v14, %v2690_v12 }
 0xf93   :  { %v2692_v13 = vmul.f32 1.442695, %v2691_v15 }
 0xf94   :  { %v2855_v3 = vpop.xlane.xlu0 %2854 }
 0xf95   :  { %11117 = vpow2.f32 %v2692_v13  ;;  %v2856_v17 = vsub.f32 %v2849_v1, %v2855_v3 }
 0xf97   :  { %v2857_v18 = vmul.f32 1.442695, %v2856_v17 }
 0xf99   :  { %11119 = vpow2.f32 %v2857_v18  ;;  %v3020_v28 = vpop.xlane.xlu0 %3019 }
 0xf9a   :  { %v3021_v29 = vsub.f32 %v3014_v25, %v3020_v28 }
 0xf9c   :  { %v3022_v32 = vmul.f32 1.442695, %v3021_v29 }
 0xf9d   :  { %v3185_v20 = vpop.xlane.xlu0 %3184 }
 0xf9e   :  { %v3186_v22 = vsub.f32 %v3179_v57, %v3185_v20  ;;  %11121 = vpow2.f32 %v3022_v32 }
 0xfa0   :  { %v3187_v56 = vmul.f32 1.442695, %v3186_v22 }
 0xfa1   :  { %v3364_v59 = vpop.xlane.xlu1 %3363 }
 0xfa2   :  { %v11118_v47 = vpop.eup %11117  ;;  %v3365_v24 = vsub.f32 %v3358_v63, %v3364_v59  ;;  %11123 = vpow2.f32 %v3187_v56 }
 0xfa3   :  { %v2694_v31 = vsel %vm306_vm4, %v11118_v47, 0.0 }
 0xfa4   :  { %2695 = vadd.xlane.f32.xlu1 %v2694_v31  ;;  %v3366_v37 = vmul.f32 1.442695, %v3365_v24 }
 0xfa5   :  { %v3529_v43 = vpop.xlane.xlu0 %3528 }
 0xfa6   :  { %v12150_v26 = vpop.eup %11119  ;;  %v3530_v58 = vsub.f32 %v3523_v2, %v3529_v43  ;;  %11125 = vpow2.f32 %v3366_v37 }
 0xfa7   :  { %v2859_v23 = vsel %vm306_vm4, %v12150_v26, 0.0 }
 0xfa8   :  { %2860 = vadd.xlane.f32.xlu0 %v2859_v23  ;;  %v3531_v41 = vmul.f32 1.442695, %v3530_v58 }
 0xfa9   :  { %v3694_v34 = vpop.xlane.xlu1 %3693 }
 0xfaa   :  { %v3695_v39 = vsub.f32 %v3688_v6, %v3694_v34  ;;  %11127 = vpow2.f32 %v3531_v41 }
 0xfac   :  { %v3696_v40 = vmul.f32 1.442695, %v3695_v39 }
 0xfad   :  { %v3859_v33 = vpop.xlane.xlu0 %3858  ;;  %v2865_v35 = vpop.permute.xlu1 %2864 }
 0xfae   :  { %v3860_v30 = vsub.f32 %v3853_v9, %v3859_v33  ;;  %11129 = vpow2.f32 %v3696_v40  ;;  %v10895_v40 = vld [vmem:[%s13574_s10 + $0x18] sm:$0xff]  }
 0xfaf   :  { %10564 = vmatpush3.bf16.msra.mxu0 %v10895_v40 }
 0xfb0   :  { %v3861_v36 = vmul.f32 1.442695, %v3860_v30  ;;  %10565 = vmatprep.subr.bf16.mxu0 %v11351_v19 }
 0xfb1   :  { %v2700_v21 = vpop.permute.xlu0 %2699  ;;  %v3030_v63 = vpop.permute.xlu1 %3029 }
 0xfb2   :  { %10489 = vmatpush3.msra.mxu1 %v2700_v21  ;;  %11131 = vpow2.f32 %v3861_v36 }
 0xfb3   :  { %10498 = vmatprep.subr.mxu1 %v11351_v19 }
 0xfb5   :  { %3373 = vrot.lane.b32.xlu1 %v12071_v46, %s13629_s22 }
 0xfbe   :  { %3194 = vrot.lane.b32.xlu0 %v12061_v49, %s13630_s21  ;;  %v11122_v49 = vpop.eup %11121 }
 0xfbf   :  { %v11124_v14 = vpop.eup %11123  ;;  %v3024_v52 = vsel %vm306_vm4, %v11122_v49, 0.0 }
 0xfc0   :  { %v12160_v48 = vpop.eup %11125  ;;  %v3189_v55 = vsel %vm306_vm4, %v11124_v14, 0.0 }
 0xfc1   :  { %v12162_v1 = vpop.eup %11127  ;;  %v3368_v50 = vsel %vm306_vm4, %v12160_v48, 0.0 }
 0xfc2   :  { %v12167_v25 = vpop.eup %11129  ;;  %v3533_v61 = vsel %vm306_vm4, %v12162_v1, 0.0 }
 0xfc3   :  { %v3698_v60 = vsel %vm306_vm4, %v12167_v25, 0.0  ;;  %v12173_v57 = vpop.eup %11131 }
 0xfc4   :  { %v3863_v27 = vsel %vm306_vm4, %v12173_v57, 0.0 }
 0xfd9   :  { %3025 = vadd.xlane.f32.xlu1 %v3024_v52 }
 0xfdd   :  { %3369 = vadd.xlane.f32.xlu1 %v3368_v50  ;;  %3190 = vadd.xlane.f32.xlu0 %v3189_v55 }
 0xfe1   :  { %3699 = vadd.xlane.f32.xlu1 %v3698_v60  ;;  %3534 = vadd.xlane.f32.xlu0 %v3533_v61 }
 0xfe5   :  { %3864 = vadd.xlane.f32.xlu1 %v3863_v27 }
 0xff6   :  { %3703 = vrot.lane.b32.xlu1 %v12071_v46, %s13628_s0 }
 0xff7   :  { %3538 = vrot.lane.b32.xlu0 %v12071_v46, %s13597_s19 }
 0xffb   :  { %3868 = vrot.lane.b32.xlu0 %v12071_v46, %s13630_s21 }
0x102d   :  { %v2696_v0 = vpop.xlane.xlu1 %2695 }
0x102e   :  { %11133 = vrcp.f32 %v2696_v0 }
0x1031   :  { %v2861_v62 = vpop.xlane.xlu0 %2860  ;;  %v3374_v46 = vpop.permute.xlu1 %3373 }
0x1032   :  { %11135 = vrcp.f32 %v2861_v62 }
0x1035   :  { %v3195_v38 = vpop.permute.xlu0 %3194 }
0x103b   :  { %v11134_v2 = vpop.eup %11133 }
0x103c   :  { %v2698_v5 = vmul.f32 %v11134_v2, %v11118_v47 }
0x103e   :  { %10491 = vmatmul.mubr.msk.f32.vlgmr.msra.gmra.mxu1 %vm306_vm4, %v2698_v5 }
0x103f   :  { %v11136_v7 = vpop.eup %11135  ;;  %10499 = vmatpush3.msra.mxu1 %v2865_v35  ;;  %10500 = vmatprep.mubr.msk.f32.mxu1 %vm11352_vm3, %v11351_v19 }
0x1040   :  { %10508 = vmatprep.subr.mxu1 %v11351_v19  ;;  %v2863_v6 = vmul.f32 %v11136_v7, %v12150_v26 }
0x1042   :  { %10501 = vmatmul.mubr.msk.f32.vlgmr.msra.gmra.mxu1 %vm306_vm4, %v2863_v6 }
0x1043   :  { %10509 = vmatpush3.msra.mxu1 %v3030_v63  ;;  %10510 = vmatprep.mubr.msk.f32.mxu1 %vm11352_vm3, %v11351_v19 }
0x1044   :  { %10518 = vmatprep.subr.mxu1 %v11351_v19 }
0x1062   :  { %v3026_v53 = vpop.xlane.xlu1 %3025 }
0x1063   :  { %11137 = vrcp.f32 %v3026_v53 }
0x1066   :  { %v3191_v9 = vpop.xlane.xlu0 %3190  ;;  %v3370_v44 = vpop.xlane.xlu1 %3369 }
0x1067   :  { %11139 = vrcp.f32 %v3191_v9 }
0x1068   :  { %11141 = vrcp.f32 %v3370_v44 }
0x106a   :  { %v3535_v4 = vpop.xlane.xlu0 %3534  ;;  %v3700_v12 = vpop.xlane.xlu1 %3699 }
0x106b   :  { %11143 = vrcp.f32 %v3535_v4  ;;  %v9581_v4 = vld [vmem:[%s13575_s11 + $0x1] ss:$0 sm:$0xff] }
0x106c   :  { %11145 = vrcp.f32 %v3700_v12 }
0x106e   :  { %v3865_v3 = vpop.xlane.xlu1 %3864  ;;  %v3539_v20 = vpop.permute.xlu0 %3538 }
0x106f   :  { %11147 = vrcp.f32 %v3865_v3 }
0x1070   :  { %v11138_v15 = vpop.eup %11137 }
0x1071   :  { %v3028_v13 = vmul.f32 %v11138_v15, %v11122_v49  ;;  %v10896_v49 = vld [vmem:[%s13574_s10 + $0x10] sm:$0xff]  }
0x1072   :  { %v3704_v43 = vpop.permute.xlu1 %3703  ;;  %v3869_v29 = vpop.permute.xlu0 %3868  ;;  %10566 = vmatpush3.bf16.msra.mxu0 %v10896_v49 }
0x1073   :  { %10511 = vmatmul.mubr.msk.f32.vlgmr.msra.gmra.mxu1 %vm306_vm4, %v3028_v13 }
0x1074   :  { %10519 = vmatpush3.msra.mxu1 %v3195_v38  ;;  %10520 = vmatprep.mubr.msk.f32.mxu1 %vm11352_vm3, %v11351_v19  ;;  %v11140_v17 = vpop.eup %11139 }
0x1075   :  { %10528 = vmatprep.subr.mxu1 %v11351_v19  ;;  %v3193_v18 = vmul.f32 %v11140_v17, %v11124_v14  ;;  %v11142_v28 = vpop.eup %11141 }
0x1076   :  { %v3372_v47 = vmul.f32 %v11142_v28, %v12160_v48 }
0x1077   :  { %10521 = vmatmul.mubr.msk.f32.vlgmr.msra.gmra.mxu1 %vm306_vm4, %v3193_v18 }
0x1078   :  { %10529 = vmatpush3.msra.mxu1 %v3374_v46  ;;  %10530 = vmatprep.mubr.msk.f32.mxu1 %vm11352_vm3, %v11351_v19  ;;  %v11144_v31 = vpop.eup %11143 }
0x1079   :  { %10538 = vmatprep.subr.mxu1 %v11351_v19  ;;  %v3537_v26 = vmul.f32 %v11144_v31, %v12162_v1  ;;  %v11146_v23 = vpop.eup %11145 }
0x107a   :  { %v3702_v33 = vmul.f32 %v11146_v23, %v12167_v25 }
0x107b   :  { %10531 = vmatmul.mubr.msk.f32.vlgmr.msra.gmra.mxu1 %vm306_vm4, %v3372_v47 }
0x107c   :  { %10539 = vmatpush3.msra.mxu1 %v3539_v20  ;;  %10540 = vmatprep.mubr.msk.f32.mxu1 %vm11352_vm3, %v11351_v19  ;;  %v11148_v21 = vpop.eup %11147 }
0x107d   :  { %10548 = vmatprep.subr.mxu1 %v11351_v19  ;;  %v3867_v59 = vmul.f32 %v11148_v21, %v12173_v57 }
0x107f   :  { %10541 = vmatmul.mubr.msk.f32.vlgmr.msra.gmra.mxu1 %vm306_vm4, %v3537_v26 }
0x1080   :  { %10549 = vmatpush3.msra.mxu1 %v3704_v43  ;;  %10550 = vmatprep.mubr.msk.f32.mxu1 %vm11352_vm3, %v11351_v19 }
0x1081   :  { %10558 = vmatprep.subr.mxu1 %v11351_v19 }
0x1083   :  { %10551 = vmatmul.mubr.msk.f32.vlgmr.msra.gmra.mxu1 %vm306_vm4, %v3702_v33 }
0x1084   :  { %10559 = vmatpush3.msra.mxu1 %v3869_v29  ;;  %10560 = vmatprep.mubr.msk.f32.mxu1 %vm11352_vm3, %v11351_v19 }
0x1087   :  { %10561 = vmatmul.mubr.msk.f32.vlgmr.msra.gmra.mxu1 %vm306_vm4, %v3867_v59 }
0x1088   :  { %4185 = vmatprep.mubr.bf16.mxu1 %v11367_v16 }
0x10fe   :  { %v2771_v22 = vpop.f32.mrf.mxu1 }
0x1100   :  { %v10492_v32 = vpop.f32.mrf.mxu1 }
0x1101   :  { %v10897_v32 = vld [vmem:[%s13578_s14 + $0x60] ss:$16 sps:$4 sm:$0xff]  }
0x1102   :  { %v2936_v24 = vpop.f32.mrf.mxu1 }
0x1104   :  { %v10502_v34 = vpop.f32.mrf.mxu1 }
0x1105   :  { %v10900_v34 = vld [vmem:[%s13578_s14 + $0x68] ss:$16 sps:$4 sm:$0xff]  }
0x1133   :  { %v3101_v56 = vpop.f32.mrf.mxu1 }
0x1135   :  { %v10512_v58 = vpop.f32.mrf.mxu1 }
0x1136   :  { %v10905_v58 = vld [vmem:[%s13578_s14 + $0x44] ss:$16 sps:$4 sm:$0xff]  }
0x1137   :  { %v3266_v37 = vpop.f32.mrf.mxu1 }
0x1139   :  { %v10522_v39 = vpop.f32.mrf.mxu1 }
0x113a   :  { %v10903_v39 = vld [vmem:[%s13578_s14 + $0x40] ss:$16 sps:$4 sm:$0xff]  }
0x113b   :  { %v3445_v41 = vpop.f32.mrf.mxu1 }
0x113d   :  { %v10532_v30 = vpop.f32.mrf.mxu1 }
0x113f   :  { %v3610_v36 = vpop.f32.mrf.mxu1 }
0x1140   :  { %v10798_v14 = vpack.i.bf16 %v3610_v36, %v2936_v24  ;;  %v10899_v24 = vld [vmem:[%s13578_s14 + $0x64] ss:$16 sps:$4 sm:$0xff]  }
0x1141   :  { %v10542_v52 = vpop.f32.mrf.mxu1  ;;  %4165 = vmatprep.subr.bf16.mxu1 %v10899_v24  ;;  %v10940_v24 = vld [vmem:[%s13580_s16 + $0x180] sm:$0xff]  }
0x1142   :  { %10799 = vrot.lane.b32.xlu1 %v10798_v14, %s13631_s23  ;;  %4166 = vmatpush1.bf16.msra.mxu1 %v10897_v32  ;;  %v10939_v32 = vld [vmem:[%s13580_s16 + $0x100] sm:$0xff]  }
0x1143   :  { %v3775_v48 = vpop.f32.mrf.mxu1  ;;  %4167 = vmatprep.subr.bf16.mxu1 %v10905_v58 }
0x1144   :  { %v10803_v1 = vpack.i.bf16 %v3775_v48, %v3101_v56  ;;  %v10902_v56 = vld [vmem:[%s13578_s14 + $0x6c] ss:$16 sps:$4 sm:$0xff]  }
0x1145   :  { %v10552_v50 = vpop.f32.mrf.mxu1  ;;  %4208 = vmatprep.subr.bf16.mxu0 %v10902_v56 }
0x1146   :  { %10804 = vrot.lane.b32.xlu0 %v10803_v1, %s13632_s30  ;;  %4168 = vmatpush1.bf16.msra.mxu1 %v10903_v39  ;;  %v9587_v50 = vld [vmem:[%s13576_s12 + $0x1] ss:$0 sm:$0xff] }
0x1147   :  { %v3940_v55 = vpop.f32.mrf.mxu1 }
0x1148   :  { %v10808_v25 = vpack.i.bf16 %v3940_v55, %v3266_v37  ;;  %v10908_v37 = vld [vmem:[%s13578_s14 + $0x4c] ss:$16 sps:$4 sm:$0xff]  }
0x1149   :  { %v10562_v60 = vpop.f32.mrf.mxu1 }
0x114a   :  { %10809 = vrot.lane.b32.xlu1 %v10808_v25, %s13633_s5 }
0x11b4   :  { %v10800_v61 = vpop.permute.xlu1 %10799 }
0x11b5   :  { %v10802_v27 = vunpack.i.h.bf16 %v10800_v61  ;;  %v10801_v35 = vunpack.i.l.bf16 %v10800_v61  ;;  %v9588_v61 = vld [vmem:[%s13577_s13 + $0x1] ss:$0 sm:$0xff] }
0x11b7   :  { %v3956_v2 = vsel %vm306_vm4, %v3445_v41, %v10802_v27  ;;  %v3282_v5 = vsel %vm306_vm4, %v2771_v22, %v10801_v35  ;;  %v10906_v41 = vld [vmem:[%s13578_s14 + $0x48] ss:$16 sps:$4 sm:$0xff]  }
0x11b8   :  { %v10805_v57 = vpop.permute.xlu0 %10804 }
0x11b9   :  { %v10807_v63 = vunpack.i.h.bf16 %v10805_v57  ;;  %v10806_v0 = vunpack.i.l.bf16 %v10805_v57 }
0x11bb   :  { %v3957_v46 = vsel %vm976_vm5, %v3956_v2, %v10807_v63  ;;  %v3283_v38 = vsel %vm976_vm5, %v3282_v5, %v10806_v0  ;;  %v10909_v0 = vld [vmem:[%s13580_s16 + $0x178] sm:$0xff]  }
0x11bc   :  { %v10810_v62 = vpop.permute.xlu1 %10809  ;;  %v10911_v2 = vld [vmem:[%s13580_s16 + $0x138] sm:$0xff]   ;;  %10163 = vmatprep.subr.bf16.mxu1 %v10909_v0 }
0x11bd   :  { %v10812_v7 = vunpack.i.h.bf16 %v10810_v62  ;;  %v10811_v6 = vunpack.i.l.bf16 %v10810_v62  ;;  %v10910_v62 = vld [vmem:[%s13580_s16 + $0x1f8] sm:$0xff]  }
0x11be   :  { %v10912_v5 = vld [vmem:[%s13580_s16 + $0x1b8] sm:$0xff]  }
0x11bf   :  { %v3958_v53 = vsel %vm978_vm6, %v3957_v46, %v10812_v7  ;;  %v3284_v9 = vsel %vm978_vm6, %v3283_v38, %v10811_v6  ;;  %v10913_v7 = vld [vmem:[%s13580_s16 + $0x170] sm:$0xff]  }
0x11c0   :  { %v3959_v44 = vpack.c.bf16 %v3958_v53, %v3284_v9  ;;  %v10914_v6 = vld [vmem:[%s13580_s16 + $0x1f0] sm:$0xff]   ;;  %v10917_v53 = vld [vmem:[%s13580_s16 + $0x168] sm:$0xff]  }
0x11c1   :  { %v10915_v46 = vld [vmem:[%s13580_s16 + $0x130] sm:$0xff]   ;;  %v10918_v9 = vld [vmem:[%s13580_s16 + $0x1e8] sm:$0xff]  }
0x11c2   :  { %10568 = vmatmul.mubr.msk.bf16.vlgmr.msra.gmra.mxu0 %vm73_vm0, %v3959_v44  ;;  %v10916_v38 = vld [vmem:[%s13580_s16 + $0x1b0] sm:$0xff]   ;;  %v10919_v44 = vld [vmem:[%s13580_s16 + $0x128] sm:$0xff]  }
0x11c3   :  { %4228 = vmatprep.mubr.bf16.mxu0 %v11367_v16  ;;  %4209 = vmatpush1.bf16.msra.mxu0 %v10900_v34  ;;  %v9597_v34 = vld [vmem:[%s13579_s15 + $0x4] sm:$0xf] }
0x11c4   :  { %4210 = vmatprep.subr.bf16.mxu0 %v10908_v37  ;;  %v4093_v56 = vrot.slane %v9597_v34, %v11861_v51  ;;  %v4101_v58 = vrot.slane %v9597_v34, %v11863_v8 }
0x11c7   :  { %4211 = vmatpush1.bf16.msra.mxu0 %v10906_v41  ;;  %v4097_v41 = vrot.slane %v9597_v34, %v11868_v10 }
0x11c8   :  { %10185 = vmatprep.subr.bf16.mxu0 %v10910_v62 }
0x1282   :  { %v4022_v12 = vpop.f32.mrf.mxu0 }
0x1283   :  { %v4023_v15 = vadd.f32 %v9581_v4, %v4022_v12  ;;  %v10921_v12 = vld [vmem:[%s13580_s16 + $0x160] sm:$0xff]  }
0x1284   :  { %v10569_v13 = vpop.f32.mrf.mxu0 }
0x1285   :  { %v12239_v3 = vadd.f32 %v4023_v15, %v12028_v42  ;;  %v10922_v15 = vld [vmem:[%s13580_s16 + $0x1e0] sm:$0xff]  }
0x1286   :  { %v4025_v17 = vpop.f32.mrf.mxu0  ;;  %v10923_v13 = vld [vmem:[%s13580_s16 + $0x120] sm:$0xff]  }
0x1287   :  { %v4026_v18 = vadd.f32 %v9581_v4, %v4025_v17  ;;  %v4035_v28 = vsel %vm73_vm0, %v12239_v3, 0.0  ;;  %v10920_v4 = vld [vmem:[%s13580_s16 + $0x1a8] sm:$0xff]   ;;  %v10924_v17 = vld [vmem:[%s13580_s16 + $0x1a0] sm:$0xff]  }
0x1288   :  { %4036 = vadd.xlane.f32.xlu0 %v4035_v28  ;;  %v10570_v47 = vpop.f32.mrf.mxu0  ;;  %v10926_v28 = vld [vmem:[%s13580_s16 + $0x1d8] sm:$0xff]  }
0x1289   :  { %v12244_v31 = vadd.f32 %v4026_v18, %v12033_v54  ;;  %v10925_v18 = vld [vmem:[%s13580_s16 + $0x158] sm:$0xff]  }
0x128a   :  { %v10927_v47 = vld [vmem:[%s13580_s16 + $0x118] sm:$0xff]  }
0x128b   :  { %v4038_v20 = vsel %vm73_vm0, %v12244_v31, 0.0 }
0x128c   :  { %4039 = vadd.xlane.f32.xlu1 %v4038_v20  ;;  %v10928_v20 = vld [vmem:[%s13580_s16 + $0x198] sm:$0xff]  }
0x1311   :  { %v4037_v26 = vpop.xlane.xlu0 %4036 }
0x1312   :  { %v4041_v23 = vmul.f32 0.03125, %v4037_v26  ;;  %v10929_v26 = vld [vmem:[%s13580_s16 + $0x150] sm:$0xff]  }
0x1314   :  { %v4043_v43 = vsub.f32 %v12239_v3, %v4041_v23  ;;  %v10930_v23 = vld [vmem:[%s13580_s16 + $0x1d0] sm:$0xff]  }
0x1315   :  { %v4040_v42 = vpop.xlane.xlu1 %4039 }
0x1316   :  { %v4042_v33 = vmul.f32 0.03125, %v4040_v42  ;;  %v4045_v21 = vmul.f32 %v4043_v43, %v4043_v43  ;;  %v10932_v42 = vld [vmem:[%s13580_s16 + $0x190] sm:$0xff]  }
0x1318   :  { %v4044_v29 = vsub.f32 %v12244_v31, %v4042_v33  ;;  %v4047_v59 = vsel %vm73_vm0, %v4045_v21, 0.0  ;;  %v10933_v33 = vld [vmem:[%s13580_s16 + $0x148] sm:$0xff]  }
0x1319   :  { %4048 = vadd.xlane.f32.xlu0 %v4047_v59  ;;  %v10934_v21 = vld [vmem:[%s13580_s16 + $0x1c8] sm:$0xff]  }
0x131a   :  { %v4046_v22 = vmul.f32 %v4044_v29, %v4044_v29  ;;  %v10936_v59 = vld [vmem:[%s13580_s16 + $0x188] sm:$0xff]  }
0x131c   :  { %v4050_v54 = vsel %vm73_vm0, %v4046_v22, 0.0  ;;  %v10937_v22 = vld [vmem:[%s13580_s16 + $0x140] sm:$0xff]  }
0x131d   :  { %4051 = vadd.xlane.f32.xlu0 %v4050_v54  ;;  %v10938_v54 = vld [vmem:[%s13580_s16 + $0x1c0] sm:$0xff]  }
0x13a2   :  { %v4049_v40 = vpop.xlane.xlu0 %4048 }
0x13a3   :  { %v4053_v30 = vmul.f32 0.03125, %v4049_v40  ;;  %v4105_v40 = vrot.slane %v9597_v34, %v11870_v11 }
0x13a5   :  { %v4055_v36 = vadd.f32 1e-05, %v4053_v30 }
0x13a6   :  { %v4052_v49 = vpop.xlane.xlu0 %4051 }
0x13a7   :  { %11149 = vrsqrt.f32 %v4055_v36  ;;  %v4054_v14 = vmul.f32 0.03125, %v4052_v49 }
0x13a9   :  { %v4056_v52 = vadd.f32 1e-05, %v4054_v14 }
0x13ab   :  { %11151 = vrsqrt.f32 %v4056_v52 }
0x13b4   :  { %v11150_v48 = vpop.eup %11149 }
0x13b5   :  { %v4059_v1 = vmul.f32 %v11150_v48, %v4043_v43  ;;  %v10931_v43 = vld [vmem:[%s13580_s16 + $0x110] sm:$0xff]  }
0x13b7   :  { %v4067_v60 = vmul.f32 %v9587_v50, %v4059_v1 }
0x13b8   :  { %v11152_v55 = vpop.eup %11151 }
0x13b9   :  { %v4060_v25 = vmul.f32 %v11152_v55, %v4044_v29  ;;  %v4075_v27 = vadd.f32 %v9588_v61, %v4067_v60  ;;  %v10935_v29 = vld [vmem:[%s13580_s16 + $0x108] sm:$0xff]  }
0x13bb   :  { %v4068_v57 = vmul.f32 %v9587_v50, %v4060_v25 }
0x13bd   :  { %v4076_v35 = vadd.f32 %v9588_v61, %v4068_v57 }
0x13bf   :  { %v4077_v63 = vpack.c.bf16 %v4076_v35, %v4075_v27 }
0x13c1   :  { %9606 = vmatmul.mubr.msk.bf16.vlgmr.msra.gmra.mxu1 %vm73_vm0, %v4077_v63  ;;  %9607 = vmatmul.mubr.msk.bf16.vlgmr.msra.gmra.mxu0 %vm73_vm0, %v4077_v63 }
0x13c2   :  { %10164 = vmatpush3.bf16.msra.mxu1 %v10911_v2  ;;  %10186 = vmatpush3.bf16.msra.mxu0 %v10912_v5 }
0x13c3   :  { %10165 = vmatprep.subr.bf16.mxu1 %v10913_v7  ;;  %10187 = vmatprep.subr.bf16.mxu0 %v10914_v6 }
0x13c6   :  { %10166 = vmatpush3.bf16.msra.mxu1 %v10915_v46  ;;  %10188 = vmatpush3.bf16.msra.mxu0 %v10916_v38 }
0x13c7   :  { %10167 = vmatprep.subr.bf16.mxu1 %v10917_v53  ;;  %10189 = vmatprep.subr.bf16.mxu0 %v10918_v9 }
0x13ca   :  { %10168 = vmatpush3.bf16.msra.mxu1 %v10919_v44  ;;  %10190 = vmatpush3.bf16.msra.mxu0 %v10920_v4 }
0x13cb   :  { %10169 = vmatprep.subr.bf16.mxu1 %v10921_v12  ;;  %10191 = vmatprep.subr.bf16.mxu0 %v10922_v15 }
0x13ce   :  { %10170 = vmatpush3.bf16.msra.mxu1 %v10923_v13  ;;  %10192 = vmatpush3.bf16.msra.mxu0 %v10924_v17 }
0x13cf   :  { %10171 = vmatprep.subr.bf16.mxu1 %v10925_v18  ;;  %10193 = vmatprep.subr.bf16.mxu0 %v10926_v28 }
0x13d2   :  { %10172 = vmatpush3.bf16.msra.mxu1 %v10927_v47  ;;  %10194 = vmatpush3.bf16.msra.mxu0 %v10928_v20 }
0x13d3   :  { %10173 = vmatprep.subr.bf16.mxu1 %v10929_v26  ;;  %10195 = vmatprep.subr.bf16.mxu0 %v10930_v23 }
0x13d6   :  { %10174 = vmatpush3.bf16.msra.mxu1 %v10931_v43  ;;  %10196 = vmatpush3.bf16.msra.mxu0 %v10932_v42 }
0x13d7   :  { %10175 = vmatprep.subr.bf16.mxu1 %v10933_v33  ;;  %10197 = vmatprep.subr.bf16.mxu0 %v10934_v21 }
0x13da   :  { %10176 = vmatpush3.bf16.msra.mxu1 %v10935_v29  ;;  %10198 = vmatpush3.bf16.msra.mxu0 %v10936_v59 }
0x13db   :  { %10177 = vmatprep.subr.bf16.mxu1 %v10937_v22  ;;  %10199 = vmatprep.subr.bf16.mxu0 %v10938_v54 }
0x13de   :  { %10178 = vmatpush3.bf16.msra.mxu1 %v10939_v32  ;;  %10200 = vmatpush3.bf16.msra.mxu0 %v10940_v24 }
0x13df   :  { %10571 = vmatprep.subr.bf16.mxu1 %v11351_v19  ;;  %10579 = vmatprep.subr.mxu0 %v11351_v19 }
0x1481   :  { %v4187_v37 = vpop.f32.mrf.mxu1  ;;  %v4230_v39 = vpop.f32.mrf.mxu0 }
0x1482   :  { %v12389_v30 = vadd.f32 %v4187_v37, %v4093_v56  ;;  %v12391_v36 = vadd.f32 %v4230_v39, %v4101_v58 }
0x1483   :  { %v4189_v49 = vpop.f32.mrf.mxu1  ;;  %v4232_v14 = vpop.f32.mrf.mxu0 }
0x1484   :  { %v12394_v52 = vmul.f32 0.70710677, %v12389_v30  ;;  %v12397_v48 = vmul.f32 0.70710677, %v12391_v36  ;;  %v12399_v1 = vadd.f32 %v4189_v49, %v4097_v41  ;;  %v12401_v50 = vadd.f32 %v4232_v14, %v4105_v40 }
0x1485   :  { %v4191_v61 = vpop.f32.mrf.mxu1  ;;  %v4234_v5 = vpop.f32.mrf.mxu0 }
0x1486   :  { %v4271_v55 = vand.u32 2147483647, %v12394_v52  ;;  %v12405_v25 = vand.u32 2147483647, %v12397_v48  ;;  %v12408_v60 = vmul.f32 0.70710677, %v12399_v1  ;;  %v12416_v38 = vadd.f32 %v4191_v61, %v4093_v56 }
0x1487   :  { %v12413_v63 = vmul.f32 0.70710677, %v12401_v50  ;;  %v4193_v7 = vpop.f32.mrf.mxu1  ;;  %v12418_v53 = vadd.f32 %v4234_v5, %v4101_v58  ;;  %v4236_v18 = vpop.f32.mrf.mxu0  ;;  %vm4255_vm15 = vcmp.ge.f32.partialorder %v12394_v52, 0.0  ;;  %vm4257_vm2 = vcmp.ge.f32.partialorder %v12397_v48, 0.0 }
0x1488   :  { %v4279_v57 = vmul.f32 0.3275911, %v4271_v55  ;;  %v4281_v27 = vmul.f32 0.3275911, %v12405_v25  ;;  %v4272_v35 = vand.u32 2147483647, %v12408_v60  ;;  %v12420_v9 = vadd.f32 %v4193_v7, %v4097_v41 }
0x1489   :  { %v4274_v46 = vand.u32 2147483647, %v12413_v63  ;;  %v12423_v4 = vmul.f32 0.70710677, %v12416_v38  ;;  %v12426_v15 = vmul.f32 0.70710677, %v12418_v53  ;;  %v12434_v26 = vadd.f32 %v4236_v18, %v4105_v40 }
0x148a   :  { %v4287_v0 = vadd.f32 1.0, %v4279_v57  ;;  %v4289_v62 = vadd.f32 1.0, %v4281_v27  ;;  %v4280_v2 = vmul.f32 0.3275911, %v4272_v35  ;;  %v12430_v17 = vmul.f32 0.70710677, %v12420_v9 }
0x148b   :  { %v4282_v44 = vmul.f32 0.3275911, %v4274_v46  ;;  %v4275_v13 = vand.u32 2147483647, %v12423_v4  ;;  %v4277_v47 = vand.u32 2147483647, %v12426_v15 }
0x148c   :  { %11153 = vrcp.f32 %v4287_v0  ;;  %v4288_v6 = vadd.f32 1.0, %v4280_v2  ;;  %v4276_v20 = vand.u32 2147483647, %v12430_v17  ;;  %v4383_v29 = vsub.f32 0.0, %v4271_v55 }
0x148d   :  { %11155 = vrcp.f32 %v4289_v62  ;;  %v4290_v12 = vadd.f32 1.0, %v4282_v44  ;;  %v4283_v28 = vmul.f32 0.3275911, %v4275_v13  ;;  %v4285_v43 = vmul.f32 0.3275911, %v4277_v47 }
0x148e   :  { %11157 = vrcp.f32 %v4288_v6  ;;  %v4284_v42 = vmul.f32 0.3275911, %v4276_v20  ;;  %v12439_v22 = vmul.f32 0.70710677, %v12434_v26  ;;  %v4384_v34 = vsub.f32 0.0, %v4272_v35 }
0x148f   :  { %11159 = vrcp.f32 %v4290_v12  ;;  %v4291_v23 = vadd.f32 1.0, %v4283_v28  ;;  %v4293_v33 = vadd.f32 1.0, %v4285_v43  ;;  %v4387_v58 = vsub.f32 0.0, %v4275_v13 }
0x1490   :  { %v4292_v59 = vadd.f32 1.0, %v4284_v42  ;;  %v12446_v37 = vand.u32 2147483647, %v12439_v22  ;;  %v4391_v41 = vmul.f32 %v4383_v29, %v4271_v55  ;;  %v4385_v27 = vsub.f32 0.0, %v12405_v25 }
0x1491   :  { %11161 = vrcp.f32 %v4291_v23  ;;  %v4392_v0 = vmul.f32 %v4384_v34, %v4272_v35  ;;  %v4386_v62 = vsub.f32 0.0, %v4274_v46  ;;  %v4395_v6 = vmul.f32 %v4387_v58, %v4275_v13 }
0x1492   :  { %11163 = vrcp.f32 %v4293_v33  ;;  %v4286_v61 = vmul.f32 0.3275911, %v12446_v37  ;;  %v4399_v44 = vmul.f32 1.442695, %v4391_v41  ;;  %v4389_v18 = vsub.f32 0.0, %v4277_v47 }
0x1493   :  { %11165 = vrcp.f32 %v4292_v59  ;;  %v4388_v28 = vsub.f32 0.0, %v4276_v20  ;;  %v4393_v35 = vmul.f32 %v4385_v27, %v12405_v25  ;;  %v4401_v33 = vmul.f32 1.442695, %v4392_v0 }
0x1494   :  { %v4294_v55 = vadd.f32 1.0, %v4286_v61  ;;  %v4394_v59 = vmul.f32 %v4386_v62, %v4274_v46  ;;  %v4390_v62 = vsub.f32 0.0, %v12446_v37  ;;  %vm4256_vm1 = vcmp.ge.f32.partialorder %v12408_v60, 0.0 }
0x1495   :  { %v4396_v58 = vmul.f32 %v4388_v28, %v4276_v20  ;;  %v4403_v25 = vmul.f32 1.442695, %v4393_v35  ;;  %vm4259_vm7 = vcmp.ge.f32.partialorder %v12423_v4, 0.0  ;;  %vm4258_vm8 = vcmp.ge.f32.partialorder %v12413_v63, 0.0 }
0x1496   :  { %11167 = vrcp.f32 %v4294_v55  ;;  %v4405_v46 = vmul.f32 1.442695, %v4394_v59  ;;  %v4398_v35 = vmul.f32 %v4390_v62, %v12446_v37  ;;  %v4267_v4 = vsel %vm4259_vm7, 1.0, %v11368_v45 }
0x1497   :  { %11169 = vpow2.f32 %v4399_v44  ;;  %vm4261_vm9 = vcmp.ge.f32.partialorder %v12426_v15, 0.0  ;;  %vm4260_vm10 = vcmp.ge.f32.partialorder %v12430_v17, 0.0  ;;  %v4266_v63 = vsel %vm4258_vm8, 1.0, %v11368_v45 }
0x1498   :  { %11171 = vpow2.f32 %v4401_v33  ;;  %v4269_v15 = vsel %vm4261_vm9, 1.0, %v11368_v45  ;;  %vm4262_vm11 = vcmp.ge.f32.partialorder %v12439_v22, 0.0 }
0x1499   :  { %v12436_v21 = vpop.eup %11153 }
0x149a   :  { %v12441_v54 = vpop.eup %11155  ;;  %v4311_v32 = vmul.f32 1.0614054, %v12436_v21 }
0x149b   :  { %v4313_v24 = vmul.f32 1.0614054, %v12441_v54  ;;  %v12448_v39 = vpop.eup %11157 }
0x149c   :  { %v4319_v56 = vadd.f32 -1.4531521, %v4311_v32  ;;  %v4312_v14 = vmul.f32 1.0614054, %v12448_v39  ;;  %v12455_v2 = vpop.eup %11159 }
0x149d   :  { %v4321_v40 = vadd.f32 -1.4531521, %v4313_v24  ;;  %v4314_v12 = vmul.f32 1.0614054, %v12455_v2  ;;  %v4407_v24 = vmul.f32 1.442695, %v4395_v6 }
0x149e   :  { %v4327_v49 = vmul.f32 %v12436_v21, %v4319_v56  ;;  %v4320_v7 = vadd.f32 -1.4531521, %v4312_v14  ;;  %v12461_v13 = vpop.eup %11161  ;;  %v4397_v56 = vmul.f32 %v4389_v18, %v4277_v47 }
0x149f   :  { %v4329_v57 = vmul.f32 %v12441_v54, %v4321_v40  ;;  %v4322_v29 = vadd.f32 -1.4531521, %v4314_v12  ;;  %v4315_v14 = vmul.f32 1.0614054, %v12461_v13  ;;  %11173 = vpow2.f32 %v4407_v24 }
0x14a0   :  { %v4335_v5 = vadd.f32 1.4214138, %v4327_v49  ;;  %v4328_v42 = vmul.f32 %v12448_v39, %v4320_v7  ;;  %v4409_v7 = vmul.f32 1.442695, %v4396_v58  ;;  %11175 = vpow2.f32 %v4403_v25 }
0x14a1   :  { %v4337_v43 = vadd.f32 1.4214138, %v4329_v57  ;;  %v4330_v34 = vmul.f32 %v12455_v2, %v4322_v29  ;;  %v12467_v57 = vpop.eup %11163  ;;  %v4323_v0 = vadd.f32 -1.4531521, %v4315_v14  ;;  %11177 = vpow2.f32 %v4405_v46 }
0x14a2   :  { %v4343_v23 = vmul.f32 %v12436_v21, %v4335_v5  ;;  %v4336_v32 = vadd.f32 1.4214138, %v4328_v42  ;;  %v4317_v20 = vmul.f32 1.0614054, %v12467_v57  ;;  %v4411_v5 = vmul.f32 1.442695, %v4397_v56  ;;  %v12472_v6 = vpop.eup %11165 }
0x14a3   :  { %v4345_v40 = vmul.f32 %v12441_v54, %v4337_v43  ;;  %v4338_v61 = vadd.f32 1.4214138, %v4330_v34  ;;  %v4331_v18 = vmul.f32 %v12461_v13, %v4323_v0  ;;  %v4316_v43 = vmul.f32 1.0614054, %v12472_v6  ;;  %v12482_v56 = vpop.eup %11167 }
0x14a4   :  { %v4351_v41 = vadd.f32 -0.28449672, %v4343_v23  ;;  %v4344_v49 = vmul.f32 %v12448_v39, %v4336_v32  ;;  %v4325_v23 = vadd.f32 -1.4531521, %v4317_v20  ;;  %11179 = vpow2.f32 %v4411_v5 }
0x14a5   :  { %v4346_v47 = vmul.f32 %v12455_v2, %v4338_v61  ;;  %v4353_v44 = vadd.f32 -0.28449672, %v4345_v40  ;;  %v4339_v42 = vadd.f32 1.4214138, %v4331_v18  ;;  %v4324_v59 = vadd.f32 -1.4531521, %v4316_v43 }
0x14a6   :  { %v4352_v27 = vadd.f32 -0.28449672, %v4344_v49  ;;  %v4359_v55 = vmul.f32 %v12436_v21, %v4351_v41  ;;  %v4333_v29 = vmul.f32 %v12467_v57, %v4325_v23  ;;  %11181 = vpow2.f32 %v4409_v7 }
0x14a7   :  { %v4354_v28 = vadd.f32 -0.28449672, %v4346_v47  ;;  %v4347_v34 = vmul.f32 %v12461_v13, %v4339_v42  ;;  %v4361_v58 = vmul.f32 %v12441_v54, %v4353_v44  ;;  %v4332_v40 = vmul.f32 %v12472_v6, %v4324_v59 }
0x14a8   :  { %v4360_v12 = vmul.f32 %v12448_v39, %v4352_v27  ;;  %v4367_v32 = vadd.f32 0.2548296, %v4359_v55  ;;  %v4341_v41 = vadd.f32 1.4214138, %v4333_v29  ;;  %v4318_v37 = vmul.f32 1.0614054, %v12482_v56  ;;  %v11170_v27 = vpop.eup %11169 }
0x14a9   :  { %v4362_v24 = vmul.f32 %v12455_v2, %v4354_v28  ;;  %v4355_v49 = vadd.f32 -0.28449672, %v4347_v34  ;;  %v4413_v14 = vmul.f32 1.442695, %v4398_v35  ;;  %v4340_v46 = vadd.f32 1.4214138, %v4332_v40  ;;  %v11172_v44 = vpop.eup %11171 }
0x14aa   :  { %v4368_v33 = vadd.f32 0.2548296, %v4360_v12  ;;  %v4349_v61 = vmul.f32 %v12467_v57, %v4341_v41  ;;  %v4375_v0 = vmul.f32 %v12436_v21, %v4367_v32  ;;  %v4326_v20 = vadd.f32 -1.4531521, %v4318_v37 }
0x14ab   :  { %v4370_v62 = vadd.f32 0.2548296, %v4362_v24  ;;  %v4363_v47 = vmul.f32 %v12461_v13, %v4355_v49  ;;  %v4369_v5 = vadd.f32 0.2548296, %v4361_v58  ;;  %v4348_v7 = vmul.f32 %v12472_v6, %v4340_v46 }
0x14ac   :  { %v4376_v25 = vmul.f32 %v12448_v39, %v4368_v33  ;;  %v4357_v55 = vadd.f32 -0.28449672, %v4349_v61  ;;  %v4334_v39 = vmul.f32 %v12482_v56, %v4326_v20  ;;  %11183 = vpow2.f32 %v4413_v14  ;;  %v11174_v18 = vpop.eup %11173 }
0x14ad   :  { %v4371_v12 = vadd.f32 0.2548296, %v4363_v47  ;;  %v4356_v23 = vadd.f32 -0.28449672, %v4348_v7  ;;  %v4415_v43 = vmul.f32 %v11170_v27, %v4375_v0  ;;  %v4378_v42 = vmul.f32 %v12455_v2, %v4370_v62  ;;  %v11176_v24 = vpop.eup %11175 }
0x14ae   :  { %v4416_v28 = vmul.f32 %v11172_v44, %v4376_v25  ;;  %v4365_v21 = vmul.f32 %v12467_v57, %v4357_v55  ;;  %v4342_v33 = vadd.f32 1.4214138, %v4334_v39  ;;  %v4377_v29 = vmul.f32 %v12441_v54, %v4369_v5  ;;  %v11178_v41 = vpop.eup %11177 }
0x14af   :  { %v4379_v35 = vmul.f32 %v12461_v13, %v4371_v12  ;;  %v4364_v32 = vmul.f32 %v12472_v6, %v4356_v23  ;;  %v4263_v34 = vsel %vm4255_vm15, 1.0, %v11368_v45  ;;  %v4264_v13 = vsel %vm4256_vm1, 1.0, %v11368_v45 }
0x14b0   :  { %v4373_v59 = vadd.f32 0.2548296, %v4365_v21  ;;  %v4350_v2 = vmul.f32 %v12482_v56, %v4342_v33  ;;  %v4424_v40 = vsub.f32 1.0, %v4416_v28  ;;  %v4423_v14 = vsub.f32 1.0, %v4415_v43 }
0x14b1   :  { %v4419_v58 = vmul.f32 %v11174_v18, %v4379_v35  ;;  %v4372_v49 = vadd.f32 0.2548296, %v4364_v32  ;;  %v11180_v37 = vpop.eup %11179  ;;  %v4418_v25 = vmul.f32 %v11178_v41, %v4378_v42  ;;  %v4417_v46 = vmul.f32 %v11176_v24, %v4377_v29 }
0x14b2   :  { %v4381_v54 = vmul.f32 %v12467_v57, %v4373_v59  ;;  %v4358_v52 = vadd.f32 -0.28449672, %v4350_v2  ;;  %v4432_v47 = vmul.f32 %v4424_v40, %v4264_v13  ;;  %v4431_v55 = vmul.f32 %v4423_v14, %v4263_v34 }
0x14b3   :  { %v4427_v61 = vsub.f32 1.0, %v4419_v58  ;;  %v4380_v0 = vmul.f32 %v12472_v6, %v4372_v49  ;;  %v11182_v62 = vpop.eup %11181  ;;  %v4426_v7 = vsub.f32 1.0, %v4418_v25  ;;  %v4265_v6 = vsel %vm4257_vm2, 1.0, %v11368_v45 }
0x14b4   :  { %v4421_v27 = vmul.f32 %v11180_v37, %v4381_v54  ;;  %v4366_v57 = vmul.f32 %v12482_v56, %v4358_v52  ;;  %v4425_v12 = vsub.f32 1.0, %v4417_v46  ;;  %v4268_v28 = vsel %vm4260_vm10, 1.0, %v11368_v45 }
0x14b5   :  { %v4435_v60 = vmul.f32 %v4427_v61, %v4267_v4  ;;  %v4420_v5 = vmul.f32 %v11182_v62, %v4380_v0  ;;  %v4440_v23 = vadd.f32 1.0, %v4432_v47  ;;  %v4243_v43 = vmul.f32 0.5, %v12416_v38 }
0x14b6   :  { %v4429_v20 = vsub.f32 1.0, %v4421_v27  ;;  %v4374_v44 = vadd.f32 0.2548296, %v4366_v57  ;;  %v4439_v33 = vadd.f32 1.0, %v4431_v55  ;;  %v4434_v48 = vmul.f32 %v4426_v7, %v4266_v63 }
0x14b7   :  { %v4428_v39 = vsub.f32 1.0, %v4420_v5  ;;  %v4443_v18 = vadd.f32 1.0, %v4435_v60  ;;  %v4433_v59 = vmul.f32 %v4425_v12, %v4265_v6  ;;  %v4240_v32 = vmul.f32 0.5, %v12399_v1 }
0x14b8   :  { %v4382_v21 = vmul.f32 %v12482_v56, %v4374_v44  ;;  %v4437_v42 = vmul.f32 %v4429_v20, %v4269_v15  ;;  %v4244_v24 = vmul.f32 0.5, %v12420_v9  ;;  %v4239_v58 = vmul.f32 0.5, %v12389_v30 }
0x14b9   :  { %v11184_v17 = vpop.eup %11183  ;;  %v4436_v35 = vmul.f32 %v4428_v39, %v4268_v28  ;;  %v4451_v56 = vmul.f32 %v4443_v18, %v4243_v43  ;;  %v4448_v41 = vmul.f32 %v4440_v23, %v4240_v32  ;;  %v4270_v40 = vsel %vm4262_vm11, 1.0, %v11368_v45 }
0x14ba   :  { %v4422_v29 = vmul.f32 %v11184_v17, %v4382_v21  ;;  %v4445_v13 = vadd.f32 1.0, %v4437_v42  ;;  %v4447_v54 = vmul.f32 %v4439_v33, %v4239_v58  ;;  %v4442_v49 = vadd.f32 1.0, %v4434_v48 }
0x14bb   :  { %v4444_v34 = vadd.f32 1.0, %v4436_v35  ;;  %v4441_v22 = vadd.f32 1.0, %v4433_v59  ;;  %v4245_v14 = vmul.f32 0.5, %v12418_v53  ;;  %v4242_v1 = vmul.f32 0.5, %v12401_v50 }
0x14bc   :  { %v4430_v2 = vsub.f32 1.0, %v4422_v29  ;;  %v4455_v9 = vpack.c.bf16 %v4451_v56, %v4447_v54  ;;  %v4246_v61 = vmul.f32 0.5, %v12434_v26  ;;  %v4241_v52 = vmul.f32 0.5, %v12391_v36  ;;  %v9673_v36 = vld [vmem:[%s13581_s17 + $0x1] ss:$0 sm:$0xff] }
0x14bd   :  { %v4452_v38 = vmul.f32 %v4444_v34, %v4244_v24  ;;  %v4453_v46 = vmul.f32 %v4445_v13, %v4245_v14  ;;  %v4450_v4 = vmul.f32 %v4442_v49, %v4242_v1  ;;  %v10941_v24 = vld [vmem:[%s13572_s8 + $0x28] sm:$0xff]   ;;  %v10942_v34 = vld [vmem:[%s13572_s8 + $0x20] sm:$0xff]  }
0x14be   :  { %v4438_v37 = vmul.f32 %v4430_v2, %v4270_v40  ;;  %v4449_v0 = vmul.f32 %v4441_v22, %v4241_v52  ;;  %v9708_v49 = vld [vmem:[%s13570_s6 + $0x2] ss:$0 sm:$0xff] }
0x14bf   :  { %v4456_v25 = vpack.c.bf16 %v4452_v38, %v4448_v41  ;;  %v9715_v52 = vld [vmem:[%s13573_s9 + $0x2] ss:$0 sm:$0xff] }
0x14c0   :  { %v4446_v30 = vadd.f32 1.0, %v4438_v37  ;;  %v4457_v53 = vpack.c.bf16 %v4453_v46, %v4449_v0 }
0x14c1   :  { %4756 = vmatprep.mubr.bf16.mxu1 %v4456_v25  ;;  %v9709_v25 = vld [vmem:[%s13571_s7 + $0x2] ss:$0 sm:$0xff] }
0x14c2   :  { %v4454_v27 = vmul.f32 %v4446_v30, %v4246_v61  ;;  %4757 = vmatmul.mubr.bf16.vlgmr.msra.gmra.mxu1 %v4455_v9 }
0x14c3   :  { %10575 = vmatprep.mubr.msk.bf16.mxu1 %vm11352_vm3, %v11351_v19  ;;  %10572 = vmatpush3.bf16.msra.mxu1 %v10941_v24 }
0x14c4   :  { %v4458_v62 = vpack.c.bf16 %v4454_v27, %v4450_v4  ;;  %10573 = vmatprep.subr.bf16.mxu1 %v11351_v19 }
0x14c6   :  { %4797 = vmatprep.mubr.bf16.mxu0 %v4458_v62 }
0x14c7   :  { %4798 = vmatmul.mubr.bf16.vlgmr.msra.gmra.mxu0 %v4457_v53  ;;  %10574 = vmatpush3.bf16.msra.mxu1 %v10942_v34 }
0x14c8   :  { %10581 = vmatprep.mubr.msk.f32.mxu0 %vm11352_vm3, %v11351_v19  ;;  %10584 = vmatprep.subr.mxu1 %v11351_v19 }
0x1582   :  { %v10179_v50 = vpop.f32.mrf.mxu1 }
0x1584   :  { %v10180_v26 = vpop.f32.mrf.mxu1 }
0x1585   :  { %v10181_v60 = vadd.f32 %v10180_v26, %v10179_v50 }
0x1586   :  { %v10182_v57 = vpop.f32.mrf.mxu1 }
0x1587   :  { %v10201_v47 = vpop.f32.mrf.mxu0  ;;  %v4759_v20 = vadd.f32 %v10181_v60, %v9673_v36 }
0x1588   :  { %v10183_v5 = vpop.f32.mrf.mxu1 }
0x1589   :  { %v10202_v55 = vpop.f32.mrf.mxu0  ;;  %v10184_v7 = vadd.f32 %v10183_v5, %v10182_v57 }
0x158a   :  { %v10203_v44 = vadd.f32 %v10202_v55, %v10201_v47 }
0x158b   :  { %v10204_v6 = vpop.f32.mrf.mxu0  ;;  %v4762_v63 = vadd.f32 %v10184_v7, %v9673_v36 }
0x158c   :  { %v4800_v12 = vadd.f32 %v10203_v44, %v4759_v20 }
0x158d   :  { %v10205_v39 = vpop.f32.mrf.mxu0 }
0x158e   :  { %v12541_v18 = vadd.f32 %v4800_v12, %v12239_v3  ;;  %v10206_v15 = vadd.f32 %v10205_v39, %v10204_v6 }
0x1590   :  { %v4803_v28 = vadd.f32 %v10206_v15, %v4762_v63  ;;  %v4812_v21 = vsel %vm73_vm0, %v12541_v18, 0.0 }
0x1591   :  { %4813 = vadd.xlane.f32.xlu0 %v4812_v21 }
0x1592   :  { %v12546_v17 = vadd.f32 %v4803_v28, %v12244_v31 }
0x1594   :  { %v4815_v23 = vsel %vm73_vm0, %v12546_v17, 0.0 }
0x1595   :  { %4816 = vadd.xlane.f32.xlu1 %v4815_v23 }
0x161a   :  { %v4814_v43 = vpop.xlane.xlu0 %4813 }
0x161b   :  { %v4818_v42 = vmul.f32 0.03125, %v4814_v43 }
0x161d   :  { %v4820_v35 = vsub.f32 %v12541_v18, %v4818_v42 }
0x161e   :  { %v4817_v33 = vpop.xlane.xlu1 %4816 }
0x161f   :  { %v4819_v3 = vmul.f32 0.03125, %v4817_v33  ;;  %v4822_v48 = vmul.f32 %v4820_v35, %v4820_v35 }
0x1621   :  { %v4821_v29 = vsub.f32 %v12546_v17, %v4819_v3  ;;  %v4824_v59 = vsel %vm73_vm0, %v4822_v48, 0.0 }
0x1622   :  { %4825 = vadd.xlane.f32.xlu0 %v4824_v59 }
0x1623   :  { %v4823_v32 = vmul.f32 %v4821_v29, %v4821_v29 }
0x1625   :  { %v4827_v31 = vsel %vm73_vm0, %v4823_v32, 0.0 }
0x1626   :  { %4828 = vadd.xlane.f32.xlu1 %v4827_v31 }
0x16ab   :  { %v4826_v58 = vpop.xlane.xlu0 %4825 }
0x16ac   :  { %v4830_v56 = vmul.f32 0.03125, %v4826_v58 }
0x16ae   :  { %v4832_v2 = vadd.f32 1e-05, %v4830_v56 }
0x16af   :  { %v4829_v41 = vpop.xlane.xlu1 %4828 }
0x16b0   :  { %11185 = vrsqrt.f32 %v4832_v2  ;;  %v4831_v13 = vmul.f32 0.03125, %v4829_v41 }
0x16b2   :  { %v4833_v38 = vadd.f32 1e-05, %v4831_v13 }
0x16b4   :  { %11187 = vrsqrt.f32 %v4833_v38 }
0x16bd   :  { %v11186_v40 = vpop.eup %11185 }
0x16be   :  { %v4836_v54 = vmul.f32 %v11186_v40, %v4820_v35 }
0x16c0   :  { %v4844_v14 = vmul.f32 %v9708_v49, %v4836_v54 }
0x16c1   :  { %v11188_v37 = vpop.eup %11187 }
0x16c2   :  { %v4837_v22 = vmul.f32 %v11188_v37, %v4821_v29  ;;  %v4852_v9 = vadd.f32 %v9709_v25, %v4844_v14 }
0x16c4   :  { %v4845_v1 = vmul.f32 %v9708_v49, %v4837_v22 }
0x16c6   :  { %v4853_v61 = vadd.f32 %v9709_v25, %v4845_v1 }
0x16c8   :  { %v4854_v30 = vpack.c.bf16 %v4853_v61, %v4852_v9 }
0x16ca   :  { %10576 = vmatmul.mubr.msk.bf16.vlgmr.msra.gmra.mxu1 %vm73_vm0, %v4854_v30 }
0x16cb   :  { %10586 = vmatprep.mubr.msk.f32.mxu1 %vm11352_vm3, %v11351_v19 }
0x178a   :  { %v4917_v46 = vpop.f32.mrf.mxu1 }
0x178b   :  { %v12574_v4 = vadd.f32 %v9715_v52, %v4917_v46 }
0x178c   :  { %v10577_v27 = vpop.f32.mrf.mxu1 }
0x178d   :  { %5090 = vrot.lane.b32.xlu1 %v12574_v4, %s13611_s24  ;;  %4925 = vrot.lane.b32.xlu0 %v12574_v4, %s13634_s1 }
0x178e   :  { %v4920_v0 = vpop.f32.mrf.mxu1 }
0x178f   :  { %v12588_v53 = vadd.f32 %v9715_v52, %v4920_v0 }
0x1790   :  { %v10578_v62 = vpop.f32.mrf.mxu1 }
0x1791   :  { %5088 = vrot.lane.b32.xlu1 %v12574_v4, %s13635_s20  ;;  %5253 = vrot.lane.b32.xlu0 %v12574_v4, %s13636_s2 }
0x1795   :  { %5255 = vrot.lane.b32.xlu1 %v12574_v4, %s13637_s4  ;;  %5418 = vrot.lane.b32.xlu0 %v12574_v4, %s13638_s3 }
0x1799   :  { %5420 = vrot.lane.b32.xlu1 %v12574_v4, %s13639_s28  ;;  %5764 = vrot.lane.b32.xlu0 %v12588_v53, %s13611_s24 }
0x179d   :  { %5929 = vrot.lane.b32.xlu0 %v12588_v53, %s13637_s4  ;;  %5599 = vrot.lane.b32.xlu1 %v12588_v53, %s13634_s1 }
0x17a1   :  { %6094 = vrot.lane.b32.xlu0 %v12588_v53, %s13639_s28  ;;  %5762 = vrot.lane.b32.xlu1 %v12588_v53, %s13635_s20 }
0x17a5   :  { %5927 = vrot.lane.b32.xlu1 %v12588_v53, %s13636_s2 }
0x17a9   :  { %6092 = vrot.lane.b32.xlu1 %v12588_v53, %s13638_s3 }
0x17ff   :  { %v5091_v50 = vpop.permute.xlu1 %5090  ;;  %v4926_v26 = vpop.permute.xlu0 %4925 }
0x1800   :  { %10580 = vmatpush3.xpose.msk.msra.mxu0 %vm306_vm4, %v4926_v26 }
0x1801   :  { %10589 = vmatprep.subr.mxu0 %v11351_v19 }
0x1803   :  { %v5089_v36 = vpop.permute.xlu1 %5088  ;;  %10582 = vmatmul.mubr.msk.f32.vlgmr.msra.gmra.mxu0 %vm306_vm4, %v12574_v4  ;;  %v5254_v60 = vpop.permute.xlu0 %5253 }
0x1804   :  { %10590 = vmatpush3.xpose.msk.msra.mxu0 %vm306_vm4, %v5091_v50  ;;  %10591 = vmatprep.mubr.msk.f32.mxu0 %vm11352_vm3, %v11351_v19 }
0x1805   :  { %10599 = vmatprep.subr.mxu0 %v11351_v19 }
0x1807   :  { %v5256_v57 = vpop.permute.xlu1 %5255  ;;  %10592 = vmatmul.mubr.msk.f32.vlgmr.msra.gmra.mxu0 %vm306_vm4, %v5089_v36  ;;  %v5419_v47 = vpop.permute.xlu0 %5418 }
0x1808   :  { %10600 = vmatpush3.xpose.msk.msra.mxu0 %vm306_vm4, %v5256_v57  ;;  %10601 = vmatprep.mubr.msk.f32.mxu0 %vm11352_vm3, %v11351_v19 }
0x1809   :  { %10609 = vmatprep.subr.mxu0 %v11351_v19 }
0x180b   :  { %v5421_v20 = vpop.permute.xlu1 %5420  ;;  %10602 = vmatmul.mubr.msk.f32.vlgmr.msra.gmra.mxu0 %vm306_vm4, %v5254_v60  ;;  %v5765_v5 = vpop.permute.xlu0 %5764 }
0x180c   :  { %10610 = vmatpush3.xpose.msk.msra.mxu0 %vm306_vm4, %v5421_v20  ;;  %10611 = vmatprep.mubr.msk.f32.mxu0 %vm11352_vm3, %v11351_v19 }
0x180d   :  { %10619 = vmatprep.subr.mxu0 %v11351_v19 }
0x180f   :  { %10612 = vmatmul.mubr.msk.f32.vlgmr.msra.gmra.mxu0 %vm306_vm4, %v5419_v47  ;;  %v5600_v55 = vpop.permute.xlu1 %5599  ;;  %v5930_v44 = vpop.permute.xlu0 %5929 }
0x1810   :  { %10620 = vmatpush3.xpose.msk.msra.mxu0 %vm306_vm4, %v5600_v55  ;;  %10621 = vmatprep.mubr.msk.f32.mxu0 %vm11352_vm3, %v11351_v19 }
0x1811   :  { %10629 = vmatprep.subr.mxu0 %v11351_v19 }
0x1813   :  { %10622 = vmatmul.mubr.msk.f32.vlgmr.msra.gmra.mxu0 %vm306_vm4, %v12588_v53  ;;  %v5763_v7 = vpop.permute.xlu1 %5762  ;;  %v6095_v12 = vpop.permute.xlu0 %6094 }
0x1814   :  { %10630 = vmatpush3.xpose.msk.msra.mxu0 %vm306_vm4, %v5765_v5  ;;  %10631 = vmatprep.mubr.msk.f32.mxu0 %vm11352_vm3, %v11351_v19 }
0x1815   :  { %10639 = vmatprep.subr.mxu0 %v11351_v19 }
0x1817   :  { %10632 = vmatmul.mubr.msk.f32.vlgmr.msra.gmra.mxu0 %vm306_vm4, %v5763_v7  ;;  %v5928_v6 = vpop.permute.xlu1 %5927 }
0x1818   :  { %10640 = vmatpush3.xpose.msk.msra.mxu0 %vm306_vm4, %v5930_v44  ;;  %10641 = vmatprep.mubr.msk.f32.mxu0 %vm11352_vm3, %v11351_v19 }
0x1819   :  { %10649 = vmatprep.subr.mxu0 %v11351_v19 }
0x181b   :  { %10642 = vmatmul.mubr.msk.f32.vlgmr.msra.gmra.mxu0 %vm306_vm4, %v5928_v6  ;;  %v6093_v63 = vpop.permute.xlu1 %6092 }
0x181c   :  { %10650 = vmatpush3.xpose.msk.msra.mxu0 %vm306_vm4, %v6095_v12  ;;  %10651 = vmatprep.mubr.msk.f32.mxu0 %vm11352_vm3, %v11351_v19 }
0x181d   :  { %10659 = vmatprep.subr.bf16.mxu0 %v11351_v19 }
0x181f   :  { %10652 = vmatmul.mubr.msk.f32.vlgmr.msra.gmra.mxu0 %vm306_vm4, %v6093_v63 }
0x1820   :  { %10663 = vmatprep.mubr.msk.bf16.mxu0 %vm11352_vm3, %v11351_v19 }
0x18c3   :  { %v4997_v39 = vpop.f32.mrf.mxu0 }
0x18c4   :  { %v5001_v15 = vsel %vm306_vm4, %v4997_v39, -inf }
0x18c5   :  { %v10583_v28 = vpop.f32.mrf.mxu0  ;;  %5002 = vmax.xlane.f32.xlu0 %v5001_v15 }
0x18c7   :  { %v5162_v21 = vpop.f32.mrf.mxu0 }
0x18c8   :  { %v5166_v23 = vsel %vm306_vm4, %v5162_v21, -inf }
0x18c9   :  { %v10593_v43 = vpop.f32.mrf.mxu0  ;;  %5167 = vmax.xlane.f32.xlu1 %v5166_v23 }
0x18cb   :  { %v5327_v42 = vpop.f32.mrf.mxu0 }
0x18cc   :  { %v5331_v35 = vsel %vm306_vm4, %v5327_v42, -inf }
0x18cd   :  { %v10603_v33 = vpop.f32.mrf.mxu0  ;;  %5332 = vmax.xlane.f32.xlu0 %v5331_v35 }
0x18cf   :  { %v5492_v3 = vpop.f32.mrf.mxu0 }
0x18d0   :  { %v5496_v48 = vsel %vm306_vm4, %v5492_v3, -inf }
0x18d1   :  { %v10613_v29 = vpop.f32.mrf.mxu0  ;;  %5497 = vmax.xlane.f32.xlu0 %v5496_v48 }
0x18d3   :  { %v5671_v59 = vpop.f32.mrf.mxu0 }
0x18d4   :  { %v5675_v32 = vsel %vm306_vm4, %v5671_v59, -inf }
0x18d5   :  { %5676 = vmax.xlane.f32.xlu0 %v5675_v32  ;;  %v10623_v31 = vpop.f32.mrf.mxu0 }
0x18d7   :  { %v5836_v24 = vpop.f32.mrf.mxu0 }
0x18d8   :  { %v5840_v34 = vsel %vm306_vm4, %v5836_v24, -inf }
0x18d9   :  { %5841 = vmax.xlane.f32.xlu1 %v5840_v34  ;;  %v10633_v58 = vpop.f32.mrf.mxu0 }
0x18db   :  { %v6001_v56 = vpop.f32.mrf.mxu0 }
0x18dc   :  { %v6005_v2 = vsel %vm306_vm4, %v6001_v56, -inf }
0x18dd   :  { %6006 = vmax.xlane.f32.xlu0 %v6005_v2  ;;  %v10643_v41 = vpop.f32.mrf.mxu0 }
0x18df   :  { %v6166_v13 = vpop.f32.mrf.mxu0 }
0x18e0   :  { %v6170_v40 = vsel %vm306_vm4, %v6166_v13, -inf }
0x18e1   :  { %v10653_v38 = vpop.f32.mrf.mxu0 }
0x18ea   :  { %5012 = vrot.lane.b32.xlu1 %v12574_v4, %s13629_s22 }
0x190e   :  { %6171 = vmax.xlane.f32.xlu1 %v6170_v40 }
0x191f   :  { %5342 = vrot.lane.b32.xlu1 %v12574_v4, %s13628_s0 }
0x1923   :  { %5507 = vrot.lane.b32.xlu1 %v12574_v4, %s13630_s21 }
0x1927   :  { %5686 = vrot.lane.b32.xlu1 %v12588_v53, %s13629_s22 }
0x194e   :  { %v5003_v54 = vpop.xlane.xlu0 %5002 }
0x194f   :  { %v5004_v49 = vsub.f32 %v4997_v39, %v5003_v54 }
0x1951   :  { %v5005_v37 = vmul.f32 1.442695, %v5004_v49 }
0x1952   :  { %v5168_v22 = vpop.xlane.xlu1 %5167 }
0x1953   :  { %11189 = vpow2.f32 %v5005_v37  ;;  %v5169_v14 = vsub.f32 %v5162_v21, %v5168_v22 }
0x1955   :  { %v5170_v25 = vmul.f32 1.442695, %v5169_v14 }
0x1956   :  { %v5333_v1 = vpop.xlane.xlu0 %5332 }
0x1957   :  { %11191 = vpow2.f32 %v5170_v25  ;;  %v5334_v60 = vsub.f32 %v5327_v42, %v5333_v1 }
0x1959   :  { %v5335_v47 = vmul.f32 1.442695, %v5334_v60 }
0x195a   :  { %v5498_v9 = vpop.xlane.xlu0 %5497 }
0x195b   :  { %v5499_v61 = vsub.f32 %v5492_v3, %v5498_v9 }
0x195d   :  { %v5500_v30 = vmul.f32 1.442695, %v5499_v61 }
0x195e   :  { %v5677_v57 = vpop.xlane.xlu0 %5676 }
0x195f   :  { %11193 = vpow2.f32 %v5500_v30  ;;  %v5678_v20 = vsub.f32 %v5671_v59, %v5677_v57 }
0x1960   :  { %v11190_v52 = vpop.eup %11189  ;;  %11195 = vpow2.f32 %v5335_v47 }
0x1961   :  { %v5007_v46 = vsel %vm306_vm4, %v11190_v52, 0.0  ;;  %v5679_v55 = vmul.f32 1.442695, %v5678_v20 }
0x1962   :  { %5008 = vadd.xlane.f32.xlu0 %v5007_v46  ;;  %v5842_v27 = vpop.xlane.xlu1 %5841 }
0x1963   :  { %11197 = vpow2.f32 %v5679_v55  ;;  %v5843_v44 = vsub.f32 %v5836_v24, %v5842_v27 }
0x1964   :  { %v11192_v0 = vpop.eup %11191 }
0x1965   :  { %v5172_v62 = vsel %vm306_vm4, %v11192_v0, 0.0  ;;  %v5844_v12 = vmul.f32 1.442695, %v5843_v44 }
0x1966   :  { %5173 = vadd.xlane.f32.xlu1 %v5172_v62  ;;  %v5013_v50 = vpop.permute.xlu1 %5012  ;;  %v6007_v5 = vpop.xlane.xlu0 %6006 }
0x1967   :  { %10585 = vmatpush3.msra.mxu1 %v5013_v50  ;;  %v6008_v7 = vsub.f32 %v6001_v56, %v6007_v5 }
0x1968   :  { %10594 = vmatprep.subr.mxu1 %v11351_v19 }
0x1969   :  { %v6009_v6 = vmul.f32 1.442695, %v6008_v7 }
0x196b   :  { %11199 = vpow2.f32 %v6009_v6  ;;  %v10943_v6 = vld [vmem:[%s13574_s10 + $0x28] sm:$0xff]  }
0x196c   :  { %v12667_v26 = vpop.eup %11193  ;;  %11201 = vpow2.f32 %v5844_v12  ;;  %10660 = vmatpush3.bf16.msra.mxu0 %v10943_v6 }
0x196d   :  { %v5502_v36 = vsel %vm306_vm4, %v12667_v26, 0.0  ;;  %v11196_v63 = vpop.eup %11195  ;;  %10661 = vmatprep.subr.bf16.mxu0 %v11351_v19 }
0x196e   :  { %5503 = vadd.xlane.f32.xlu1 %v5502_v36 }
0x1970   :  { %v12676_v39 = vpop.eup %11197 }
0x1971   :  { %v5681_v23 = vsel %vm306_vm4, %v12676_v39, 0.0 }
0x1978   :  { %5177 = vrot.lane.b32.xlu0 %v12574_v4, %s13640_s25  ;;  %v5337_v4 = vsel %vm306_vm4, %v11196_v63, 0.0  ;;  %v12680_v43 = vpop.eup %11199 }
0x1979   :  { %v6011_v42 = vsel %vm306_vm4, %v12680_v43, 0.0  ;;  %v11202_v35 = vpop.eup %11201 }
0x197a   :  { %v5846_v33 = vsel %vm306_vm4, %v11202_v35, 0.0 }
0x197f   :  { %5851 = vrot.lane.b32.xlu1 %v12588_v53, %s13640_s25 }
0x1997   :  { %5338 = vadd.xlane.f32.xlu0 %v5337_v4  ;;  %v6172_v15 = vpop.xlane.xlu1 %6171 }
0x1998   :  { %v6173_v28 = vsub.f32 %v6166_v13, %v6172_v15 }
0x199a   :  { %v6174_v21 = vmul.f32 1.442695, %v6173_v28 }
0x199b   :  { %5682 = vadd.xlane.f32.xlu0 %v5681_v23  ;;  %v5343_v29 = vpop.permute.xlu1 %5342 }
0x199c   :  { %11203 = vpow2.f32 %v6174_v21 }
0x199f   :  { %6012 = vadd.xlane.f32.xlu0 %v6011_v42  ;;  %v5508_v59 = vpop.permute.xlu1 %5507 }
0x19a3   :  { %5847 = vadd.xlane.f32.xlu1 %v5846_v33  ;;  %v5687_v32 = vpop.permute.xlu1 %5686 }
0x19a9   :  { %v12685_v3 = vpop.eup %11203 }
0x19aa   :  { %v6176_v48 = vsel %vm306_vm4, %v12685_v3, 0.0 }
0x19ab   :  { %6177 = vadd.xlane.f32.xlu0 %v6176_v48 }
0x19b4   :  { %6181 = vrot.lane.b32.xlu1 %v12588_v53, %s13630_s21 }
0x19c1   :  { %6016 = vrot.lane.b32.xlu0 %v12588_v53, %s13628_s0 }
0x19eb   :  { %v5009_v31 = vpop.xlane.xlu0 %5008 }
0x19ec   :  { %11205 = vrcp.f32 %v5009_v31 }
0x19ef   :  { %v5174_v24 = vpop.xlane.xlu1 %5173  ;;  %v5178_v56 = vpop.permute.xlu0 %5177 }
0x19f0   :  { %11207 = vrcp.f32 %v5174_v24 }
0x19f7   :  { %v5504_v41 = vpop.xlane.xlu1 %5503 }
0x19f9   :  { %v11206_v34 = vpop.eup %11205 }
0x19fa   :  { %v5011_v58 = vmul.f32 %v11206_v34, %v11190_v52 }
0x19fb   :  { %v5852_v40 = vpop.permute.xlu1 %5851 }
0x19fc   :  { %10587 = vmatmul.mubr.msk.f32.vlgmr.msra.gmra.mxu1 %vm306_vm4, %v5011_v58 }
0x19fd   :  { %v11208_v2 = vpop.eup %11207  ;;  %10595 = vmatpush3.msra.mxu1 %v5178_v56  ;;  %10596 = vmatprep.mubr.msk.f32.mxu1 %vm11352_vm3, %v11351_v19 }
0x19fe   :  { %10604 = vmatprep.subr.mxu1 %v11351_v19  ;;  %v5176_v53 = vmul.f32 %v11208_v2, %v11192_v0 }
0x1a00   :  { %10597 = vmatmul.mubr.msk.f32.vlgmr.msra.gmra.mxu1 %vm306_vm4, %v5176_v53 }
0x1a01   :  { %10605 = vmatpush3.msra.mxu1 %v5343_v29  ;;  %10606 = vmatprep.mubr.msk.f32.mxu1 %vm11352_vm3, %v11351_v19 }
0x1a02   :  { %10614 = vmatprep.subr.mxu1 %v11351_v19 }
0x1a20   :  { %v5339_v13 = vpop.xlane.xlu0 %5338 }
0x1a21   :  { %11209 = vrcp.f32 %v5339_v13 }
0x1a22   :  { %11211 = vrcp.f32 %v5504_v41 }
0x1a24   :  { %v5683_v38 = vpop.xlane.xlu0 %5682 }
0x1a25   :  { %11213 = vrcp.f32 %v5683_v38 }
0x1a28   :  { %v6013_v54 = vpop.xlane.xlu0 %6012 }
0x1a2c   :  { %v5848_v49 = vpop.xlane.xlu1 %5847 }
0x1a2d   :  { %11215 = vrcp.f32 %v5848_v49 }
0x1a2e   :  { %v11210_v37 = vpop.eup %11209  ;;  %11217 = vrcp.f32 %v6013_v54 }
0x1a2f   :  { %v5341_v22 = vmul.f32 %v11210_v37, %v11196_v63  ;;  %v11212_v14 = vpop.eup %11211 }
0x1a30   :  { %v5506_v25 = vmul.f32 %v11212_v14, %v12667_v26  ;;  %v6182_v62 = vpop.permute.xlu1 %6181 }
0x1a31   :  { %10607 = vmatmul.mubr.msk.f32.vlgmr.msra.gmra.mxu1 %vm306_vm4, %v5341_v22 }
0x1a32   :  { %10615 = vmatpush3.msra.mxu1 %v5508_v59  ;;  %10616 = vmatprep.mubr.msk.f32.mxu1 %vm11352_vm3, %v11351_v19  ;;  %v11214_v1 = vpop.eup %11213 }
0x1a33   :  { %10624 = vmatprep.subr.mxu1 %v11351_v19  ;;  %v5685_v61 = vmul.f32 %v11214_v1, %v12676_v39  ;;  %v10944_v39 = vld [vmem:[%s13574_s10 + $0x20] sm:$0xff]  }
0x1a34   :  { %v6178_v9 = vpop.xlane.xlu0 %6177  ;;  %10662 = vmatpush3.bf16.msra.mxu0 %v10944_v39 }
0x1a35   :  { %11219 = vrcp.f32 %v6178_v9  ;;  %10617 = vmatmul.mubr.msk.f32.vlgmr.msra.gmra.mxu1 %vm306_vm4, %v5506_v25 }
0x1a36   :  { %10625 = vmatpush3.msra.mxu1 %v5687_v32  ;;  %10626 = vmatprep.mubr.msk.f32.mxu1 %vm11352_vm3, %v11351_v19 }
0x1a37   :  { %10634 = vmatprep.subr.mxu1 %v11351_v19 }
0x1a38   :  { %v6017_v27 = vpop.permute.xlu0 %6016 }
0x1a39   :  { %10627 = vmatmul.mubr.msk.f32.vlgmr.msra.gmra.mxu1 %vm306_vm4, %v5685_v61 }
0x1a3a   :  { %v11216_v30 = vpop.eup %11215  ;;  %10635 = vmatpush3.msra.mxu1 %v5852_v40  ;;  %10636 = vmatprep.mubr.msk.f32.mxu1 %vm11352_vm3, %v11351_v19  ;;  %v9748_v40 = vld [vmem:[%s13575_s11 + $0x2] ss:$0 sm:$0xff] }
0x1a3b   :  { %10644 = vmatprep.subr.mxu1 %v11351_v19  ;;  %v5850_v52 = vmul.f32 %v11216_v30, %v11202_v35  ;;  %v11218_v46 = vpop.eup %11217 }
0x1a3c   :  { %v6015_v0 = vmul.f32 %v11218_v46, %v12680_v43 }
0x1a3d   :  { %10637 = vmatmul.mubr.msk.f32.vlgmr.msra.gmra.mxu1 %vm306_vm4, %v5850_v52 }
0x1a3e   :  { %10645 = vmatpush3.msra.mxu1 %v6017_v27  ;;  %10646 = vmatprep.mubr.msk.f32.mxu1 %vm11352_vm3, %v11351_v19 }
0x1a3f   :  { %10654 = vmatprep.subr.mxu1 %v11351_v19 }
0x1a41   :  { %10647 = vmatmul.mubr.msk.f32.vlgmr.msra.gmra.mxu1 %vm306_vm4, %v6015_v0 }
0x1a42   :  { %v11220_v50 = vpop.eup %11219  ;;  %10655 = vmatpush3.msra.mxu1 %v6182_v62  ;;  %10656 = vmatprep.mubr.msk.f32.mxu1 %vm11352_vm3, %v11351_v19 }
0x1a43   :  { %v6180_v26 = vmul.f32 %v11220_v50, %v12685_v3 }
0x1a45   :  { %10657 = vmatmul.mubr.msk.f32.vlgmr.msra.gmra.mxu1 %vm306_vm4, %v6180_v26 }
0x1a46   :  { %6498 = vmatprep.mubr.bf16.mxu1 %v11367_v16 }
0x1abc   :  { %v5084_v36 = vpop.f32.mrf.mxu1 }
0x1abe   :  { %v10588_v60 = vpop.f32.mrf.mxu1 }
0x1abf   :  { %v10945_v60 = vld [vmem:[%s13578_s14 + $0xa0] ss:$16 sps:$4 sm:$0xff]  }
0x1ac0   :  { %v5249_v57 = vpop.f32.mrf.mxu1 }
0x1ac2   :  { %v10598_v47 = vpop.f32.mrf.mxu1 }
0x1ac3   :  { %v10948_v47 = vld [vmem:[%s13578_s14 + $0xa8] ss:$16 sps:$4 sm:$0xff]  }
0x1af1   :  { %v5414_v20 = vpop.f32.mrf.mxu1 }
0x1af3   :  { %v10608_v5 = vpop.f32.mrf.mxu1 }
0x1af4   :  { %v10953_v5 = vld [vmem:[%s13578_s14 + $0x84] ss:$16 sps:$4 sm:$0xff]  }
0x1af5   :  { %v5579_v55 = vpop.f32.mrf.mxu1 }
0x1af7   :  { %v10618_v7 = vpop.f32.mrf.mxu1 }
0x1af8   :  { %v10951_v7 = vld [vmem:[%s13578_s14 + $0x80] ss:$16 sps:$4 sm:$0xff]  }
0x1af9   :  { %v5758_v44 = vpop.f32.mrf.mxu1 }
0x1afb   :  { %v10628_v12 = vpop.f32.mrf.mxu1 }
0x1afd   :  { %v5923_v63 = vpop.f32.mrf.mxu1 }
0x1afe   :  { %v10813_v4 = vpack.i.bf16 %v5923_v63, %v5249_v57  ;;  %v10947_v57 = vld [vmem:[%s13578_s14 + $0xa4] ss:$16 sps:$4 sm:$0xff]  }
0x1aff   :  { %v10638_v15 = vpop.f32.mrf.mxu1  ;;  %6478 = vmatprep.subr.bf16.mxu1 %v10947_v57  ;;  %v10988_v57 = vld [vmem:[%s13580_s16 + $0x280] sm:$0xff]  }
0x1b00   :  { %10814 = vrot.lane.b32.xlu0 %v10813_v4, %s13631_s23  ;;  %6479 = vmatpush1.bf16.msra.mxu1 %v10945_v60  ;;  %v10987_v60 = vld [vmem:[%s13580_s16 + $0x200] sm:$0xff]  }
0x1b01   :  { %v6088_v28 = vpop.f32.mrf.mxu1  ;;  %6480 = vmatprep.subr.bf16.mxu1 %v10953_v5 }
0x1b02   :  { %v10818_v21 = vpack.i.bf16 %v6088_v28, %v5414_v20  ;;  %v10950_v20 = vld [vmem:[%s13578_s14 + $0xac] ss:$16 sps:$4 sm:$0xff]  }
0x1b03   :  { %v10648_v23 = vpop.f32.mrf.mxu1  ;;  %6521 = vmatprep.subr.bf16.mxu0 %v10950_v20 }
0x1b04   :  { %10819 = vrot.lane.b32.xlu1 %v10818_v21, %s13632_s30  ;;  %6481 = vmatpush1.bf16.msra.mxu1 %v10951_v7  ;;  %v9754_v23 = vld [vmem:[%s13576_s12 + $0x2] ss:$0 sm:$0xff] }
0x1b05   :  { %v6253_v43 = vpop.f32.mrf.mxu1 }
0x1b06   :  { %v10823_v42 = vpack.i.bf16 %v6253_v43, %v5579_v55  ;;  %v10956_v55 = vld [vmem:[%s13578_s14 + $0x8c] ss:$16 sps:$4 sm:$0xff]  }
0x1b07   :  { %v10658_v35 = vpop.f32.mrf.mxu1 }
0x1b08   :  { %10824 = vrot.lane.b32.xlu0 %v10823_v42, %s13633_s5 }
0x1b72   :  { %v10815_v33 = vpop.permute.xlu0 %10814 }
0x1b73   :  { %v10817_v48 = vunpack.i.h.bf16 %v10815_v33  ;;  %v10816_v29 = vunpack.i.l.bf16 %v10815_v33  ;;  %v9755_v33 = vld [vmem:[%s13577_s13 + $0x2] ss:$0 sm:$0xff] }
0x1b75   :  { %v6269_v24 = vsel %vm306_vm4, %v5758_v44, %v10817_v48  ;;  %v5595_v34 = vsel %vm306_vm4, %v5084_v36, %v10816_v29  ;;  %v10954_v44 = vld [vmem:[%s13578_s14 + $0x88] ss:$16 sps:$4 sm:$0xff]  }
0x1b76   :  { %v10820_v3 = vpop.permute.xlu1 %10819 }
0x1b77   :  { %v10822_v59 = vunpack.i.h.bf16 %v10820_v3  ;;  %v10821_v32 = vunpack.i.l.bf16 %v10820_v3 }
0x1b79   :  { %v6270_v2 = vsel %vm976_vm5, %v6269_v24, %v10822_v59  ;;  %v5596_v53 = vsel %vm976_vm5, %v5595_v34, %v10821_v32  ;;  %v10957_v32 = vld [vmem:[%s13580_s16 + $0x278] sm:$0xff]  }
0x1b7a   :  { %v10825_v31 = vpop.permute.xlu0 %10824  ;;  %v10959_v24 = vld [vmem:[%s13580_s16 + $0x238] sm:$0xff]   ;;  %10245 = vmatprep.subr.bf16.mxu1 %v10957_v32 }
0x1b7b   :  { %v10827_v58 = vunpack.i.h.bf16 %v10825_v31  ;;  %v10826_v56 = vunpack.i.l.bf16 %v10825_v31  ;;  %v10958_v31 = vld [vmem:[%s13580_s16 + $0x2f8] sm:$0xff]  }
0x1b7c   :  { %v10960_v34 = vld [vmem:[%s13580_s16 + $0x2b8] sm:$0xff]  }
0x1b7d   :  { %v6271_v41 = vsel %vm978_vm6, %v6270_v2, %v10827_v58  ;;  %v5597_v13 = vsel %vm978_vm6, %v5596_v53, %v10826_v56  ;;  %v10961_v58 = vld [vmem:[%s13580_s16 + $0x270] sm:$0xff]  }
0x1b7e   :  { %v6272_v38 = vpack.c.bf16 %v6271_v41, %v5597_v13  ;;  %v10962_v56 = vld [vmem:[%s13580_s16 + $0x2f0] sm:$0xff]   ;;  %v10965_v41 = vld [vmem:[%s13580_s16 + $0x268] sm:$0xff]  }
0x1b7f   :  { %v10963_v2 = vld [vmem:[%s13580_s16 + $0x230] sm:$0xff]   ;;  %v10966_v13 = vld [vmem:[%s13580_s16 + $0x2e8] sm:$0xff]  }
0x1b80   :  { %10664 = vmatmul.mubr.msk.bf16.vlgmr.msra.gmra.mxu0 %vm73_vm0, %v6272_v38  ;;  %v10964_v53 = vld [vmem:[%s13580_s16 + $0x2b0] sm:$0xff]   ;;  %v10967_v38 = vld [vmem:[%s13580_s16 + $0x228] sm:$0xff]  }
0x1b81   :  { %6541 = vmatprep.mubr.bf16.mxu0 %v11367_v16  ;;  %6522 = vmatpush1.bf16.msra.mxu0 %v10948_v47  ;;  %v9764_v47 = vld [vmem:[%s13579_s15 + $0x8] sm:$0xf] }
0x1b82   :  { %6523 = vmatprep.subr.bf16.mxu0 %v10956_v55  ;;  %v6406_v20 = vrot.slane %v9764_v47, %v11861_v51  ;;  %v6414_v5 = vrot.slane %v9764_v47, %v11863_v8 }
0x1b85   :  { %6524 = vmatpush1.bf16.msra.mxu0 %v10954_v44  ;;  %v6410_v44 = vrot.slane %v9764_v47, %v11868_v10 }
0x1b86   :  { %10267 = vmatprep.subr.bf16.mxu0 %v10958_v31 }
0x1c40   :  { %v6335_v54 = vpop.f32.mrf.mxu0 }
0x1c41   :  { %v6336_v49 = vadd.f32 %v9748_v40, %v6335_v54  ;;  %v10969_v54 = vld [vmem:[%s13580_s16 + $0x260] sm:$0xff]  }
0x1c42   :  { %v10665_v37 = vpop.f32.mrf.mxu0 }
0x1c43   :  { %v12748_v22 = vadd.f32 %v6336_v49, %v12541_v18  ;;  %v10970_v49 = vld [vmem:[%s13580_s16 + $0x2e0] sm:$0xff]  }
0x1c44   :  { %v6338_v14 = vpop.f32.mrf.mxu0  ;;  %v10971_v37 = vld [vmem:[%s13580_s16 + $0x220] sm:$0xff]  }
0x1c45   :  { %v6339_v25 = vadd.f32 %v9748_v40, %v6338_v14  ;;  %v6348_v1 = vsel %vm73_vm0, %v12748_v22, 0.0  ;;  %v10968_v40 = vld [vmem:[%s13580_s16 + $0x2a8] sm:$0xff]   ;;  %v10972_v14 = vld [vmem:[%s13580_s16 + $0x2a0] sm:$0xff]  }
0x1c46   :  { %6349 = vadd.xlane.f32.xlu1 %v6348_v1  ;;  %v10666_v9 = vpop.f32.mrf.mxu0  ;;  %v10974_v1 = vld [vmem:[%s13580_s16 + $0x2d8] sm:$0xff]  }
0x1c47   :  { %v12753_v61 = vadd.f32 %v6339_v25, %v12546_v17  ;;  %v10973_v25 = vld [vmem:[%s13580_s16 + $0x258] sm:$0xff]  }
0x1c48   :  { %v10975_v9 = vld [vmem:[%s13580_s16 + $0x218] sm:$0xff]  }
0x1c49   :  { %v6351_v30 = vsel %vm73_vm0, %v12753_v61, 0.0 }
0x1c4a   :  { %6352 = vadd.xlane.f32.xlu0 %v6351_v30  ;;  %v10976_v30 = vld [vmem:[%s13580_s16 + $0x298] sm:$0xff]  }
0x1ccf   :  { %v6350_v52 = vpop.xlane.xlu1 %6349 }
0x1cd0   :  { %v6354_v46 = vmul.f32 0.03125, %v6350_v52  ;;  %v10977_v52 = vld [vmem:[%s13580_s16 + $0x250] sm:$0xff]  }
0x1cd2   :  { %v6356_v27 = vsub.f32 %v12748_v22, %v6354_v46  ;;  %v10978_v46 = vld [vmem:[%s13580_s16 + $0x2d0] sm:$0xff]  }
0x1cd3   :  { %v6353_v18 = vpop.xlane.xlu0 %6352 }
0x1cd4   :  { %v6355_v0 = vmul.f32 0.03125, %v6353_v18  ;;  %v6358_v62 = vmul.f32 %v6356_v27, %v6356_v27  ;;  %v10980_v18 = vld [vmem:[%s13580_s16 + $0x290] sm:$0xff]  }
0x1cd6   :  { %v6357_v50 = vsub.f32 %v12753_v61, %v6355_v0  ;;  %v6360_v26 = vsel %vm73_vm0, %v6358_v62, 0.0  ;;  %v10981_v0 = vld [vmem:[%s13580_s16 + $0x248] sm:$0xff]  }
0x1cd7   :  { %6361 = vadd.xlane.f32.xlu0 %v6360_v26  ;;  %v10982_v62 = vld [vmem:[%s13580_s16 + $0x2c8] sm:$0xff]  }
0x1cd8   :  { %v6359_v36 = vmul.f32 %v6357_v50, %v6357_v50  ;;  %v10984_v26 = vld [vmem:[%s13580_s16 + $0x288] sm:$0xff]  }
0x1cda   :  { %v6363_v17 = vsel %vm73_vm0, %v6359_v36, 0.0  ;;  %v10985_v36 = vld [vmem:[%s13580_s16 + $0x240] sm:$0xff]  }
0x1cdb   :  { %6364 = vadd.xlane.f32.xlu0 %v6363_v17  ;;  %v10986_v17 = vld [vmem:[%s13580_s16 + $0x2c0] sm:$0xff]  }
0x1d60   :  { %v6362_v6 = vpop.xlane.xlu0 %6361 }
0x1d61   :  { %v6366_v12 = vmul.f32 0.03125, %v6362_v6  ;;  %v6418_v6 = vrot.slane %v9764_v47, %v11870_v11 }
0x1d63   :  { %v6368_v63 = vadd.f32 1e-05, %v6366_v12 }
0x1d64   :  { %v6365_v4 = vpop.xlane.xlu0 %6364 }
0x1d65   :  { %11221 = vrsqrt.f32 %v6368_v63  ;;  %v6367_v39 = vmul.f32 0.03125, %v6365_v4 }
0x1d67   :  { %v6369_v15 = vadd.f32 1e-05, %v6367_v39 }
0x1d69   :  { %11223 = vrsqrt.f32 %v6369_v15 }
0x1d72   :  { %v11222_v28 = vpop.eup %11221 }
0x1d73   :  { %v6372_v21 = vmul.f32 %v11222_v28, %v6356_v27  ;;  %v10979_v27 = vld [vmem:[%s13580_s16 + $0x210] sm:$0xff]  }
0x1d75   :  { %v6380_v35 = vmul.f32 %v9754_v23, %v6372_v21 }
0x1d76   :  { %v11224_v43 = vpop.eup %11223 }
0x1d77   :  { %v6373_v42 = vmul.f32 %v11224_v43, %v6357_v50  ;;  %v6388_v48 = vadd.f32 %v9755_v33, %v6380_v35  ;;  %v10983_v50 = vld [vmem:[%s13580_s16 + $0x208] sm:$0xff]  }
0x1d79   :  { %v6381_v3 = vmul.f32 %v9754_v23, %v6373_v42 }
0x1d7b   :  { %v6389_v29 = vadd.f32 %v9755_v33, %v6381_v3 }
0x1d7d   :  { %v6390_v59 = vpack.c.bf16 %v6389_v29, %v6388_v48 }
0x1d7f   :  { %9773 = vmatmul.mubr.msk.bf16.vlgmr.msra.gmra.mxu1 %vm73_vm0, %v6390_v59  ;;  %9774 = vmatmul.mubr.msk.bf16.vlgmr.msra.gmra.mxu0 %vm73_vm0, %v6390_v59 }
0x1d80   :  { %10246 = vmatpush3.bf16.msra.mxu1 %v10959_v24  ;;  %10268 = vmatpush3.bf16.msra.mxu0 %v10960_v34 }
0x1d81   :  { %10247 = vmatprep.subr.bf16.mxu1 %v10961_v58  ;;  %10269 = vmatprep.subr.bf16.mxu0 %v10962_v56 }
0x1d84   :  { %10248 = vmatpush3.bf16.msra.mxu1 %v10963_v2  ;;  %10270 = vmatpush3.bf16.msra.mxu0 %v10964_v53 }
0x1d85   :  { %10249 = vmatprep.subr.bf16.mxu1 %v10965_v41  ;;  %10271 = vmatprep.subr.bf16.mxu0 %v10966_v13 }
0x1d88   :  { %10250 = vmatpush3.bf16.msra.mxu1 %v10967_v38  ;;  %10272 = vmatpush3.bf16.msra.mxu0 %v10968_v40 }
0x1d89   :  { %10251 = vmatprep.subr.bf16.mxu1 %v10969_v54  ;;  %10273 = vmatprep.subr.bf16.mxu0 %v10970_v49 }
0x1d8c   :  { %10252 = vmatpush3.bf16.msra.mxu1 %v10971_v37  ;;  %10274 = vmatpush3.bf16.msra.mxu0 %v10972_v14 }
0x1d8d   :  { %10253 = vmatprep.subr.bf16.mxu1 %v10973_v25  ;;  %10275 = vmatprep.subr.bf16.mxu0 %v10974_v1 }
0x1d90   :  { %10254 = vmatpush3.bf16.msra.mxu1 %v10975_v9  ;;  %10276 = vmatpush3.bf16.msra.mxu0 %v10976_v30 }
0x1d91   :  { %10255 = vmatprep.subr.bf16.mxu1 %v10977_v52  ;;  %10277 = vmatprep.subr.bf16.mxu0 %v10978_v46 }
0x1d94   :  { %10256 = vmatpush3.bf16.msra.mxu1 %v10979_v27  ;;  %10278 = vmatpush3.bf16.msra.mxu0 %v10980_v18 }
0x1d95   :  { %10257 = vmatprep.subr.bf16.mxu1 %v10981_v0  ;;  %10279 = vmatprep.subr.bf16.mxu0 %v10982_v62 }
0x1d98   :  { %10258 = vmatpush3.bf16.msra.mxu1 %v10983_v50  ;;  %10280 = vmatpush3.bf16.msra.mxu0 %v10984_v26 }
0x1d99   :  { %10259 = vmatprep.subr.bf16.mxu1 %v10985_v36  ;;  %10281 = vmatprep.subr.bf16.mxu0 %v10986_v17 }
0x1d9c   :  { %10260 = vmatpush3.bf16.msra.mxu1 %v10987_v60  ;;  %10282 = vmatpush3.bf16.msra.mxu0 %v10988_v57 }
0x1d9d   :  { %10667 = vmatprep.subr.bf16.mxu1 %v11351_v19  ;;  %10675 = vmatprep.subr.mxu0 %v11351_v19 }
0x1e3f   :  { %v6500_v55 = vpop.f32.mrf.mxu1  ;;  %v6543_v7 = vpop.f32.mrf.mxu0 }
0x1e40   :  { %v12898_v12 = vadd.f32 %v6500_v55, %v6406_v20  ;;  %v12900_v63 = vadd.f32 %v6543_v7, %v6414_v5 }
0x1e41   :  { %v6502_v4 = vpop.f32.mrf.mxu1  ;;  %v6545_v39 = vpop.f32.mrf.mxu0 }
0x1e42   :  { %v12903_v15 = vmul.f32 0.70710677, %v12898_v12  ;;  %v12906_v28 = vmul.f32 0.70710677, %v12900_v63  ;;  %v12908_v21 = vadd.f32 %v6502_v4, %v6410_v44  ;;  %v12910_v23 = vadd.f32 %v6545_v39, %v6418_v6 }
0x1e43   :  { %v6504_v33 = vpop.f32.mrf.mxu1  ;;  %v6547_v34 = vpop.f32.mrf.mxu0 }
0x1e44   :  { %v6584_v43 = vand.u32 2147483647, %v12903_v15  ;;  %v12914_v42 = vand.u32 2147483647, %v12906_v28  ;;  %v12917_v35 = vmul.f32 0.70710677, %v12908_v21  ;;  %v12925_v53 = vadd.f32 %v6504_v33, %v6406_v20 }
0x1e45   :  { %v12922_v59 = vmul.f32 0.70710677, %v12910_v23  ;;  %v6506_v58 = vpop.f32.mrf.mxu1  ;;  %v12927_v41 = vadd.f32 %v6547_v34, %v6414_v5  ;;  %v6549_v25 = vpop.f32.mrf.mxu0  ;;  %vm6568_vm12 = vcmp.ge.f32.partialorder %v12903_v15, 0.0  ;;  %vm6570_vm14 = vcmp.ge.f32.partialorder %v12906_v28, 0.0 }
0x1e46   :  { %v6592_v3 = vmul.f32 0.3275911, %v6584_v43  ;;  %v6594_v48 = vmul.f32 0.3275911, %v12914_v42  ;;  %v6585_v29 = vand.u32 2147483647, %v12917_v35  ;;  %v12929_v13 = vadd.f32 %v6506_v58, %v6410_v44 }
0x1e47   :  { %v6587_v2 = vand.u32 2147483647, %v12922_v59  ;;  %v12932_v40 = vmul.f32 0.70710677, %v12925_v53  ;;  %v12935_v49 = vmul.f32 0.70710677, %v12927_v41  ;;  %v12943_v52 = vadd.f32 %v6549_v25, %v6418_v6 }
0x1e48   :  { %v6600_v32 = vadd.f32 1.0, %v6592_v3  ;;  %v6602_v31 = vadd.f32 1.0, %v6594_v48  ;;  %v6593_v24 = vmul.f32 0.3275911, %v6585_v29  ;;  %v12939_v14 = vmul.f32 0.70710677, %v12929_v13 }
0x1e49   :  { %v6595_v38 = vmul.f32 0.3275911, %v6587_v2  ;;  %v6588_v37 = vand.u32 2147483647, %v12932_v40  ;;  %v6590_v9 = vand.u32 2147483647, %v12935_v49 }
0x1e4a   :  { %11225 = vrcp.f32 %v6600_v32  ;;  %v6601_v56 = vadd.f32 1.0, %v6593_v24  ;;  %v6589_v30 = vand.u32 2147483647, %v12939_v14  ;;  %v6696_v50 = vsub.f32 0.0, %v6584_v43 }
0x1e4b   :  { %11227 = vrcp.f32 %v6602_v31  ;;  %v6603_v54 = vadd.f32 1.0, %v6595_v38  ;;  %v6596_v1 = vmul.f32 0.3275911, %v6588_v37  ;;  %v6598_v27 = vmul.f32 0.3275911, %v6590_v9 }
0x1e4c   :  { %11229 = vrcp.f32 %v6601_v56  ;;  %v6597_v18 = vmul.f32 0.3275911, %v6589_v30  ;;  %v12948_v36 = vmul.f32 0.70710677, %v12943_v52  ;;  %v6697_v47 = vsub.f32 0.0, %v6585_v29 }
0x1e4d   :  { %11231 = vrcp.f32 %v6603_v54  ;;  %v6604_v46 = vadd.f32 1.0, %v6596_v1  ;;  %v6606_v0 = vadd.f32 1.0, %v6598_v27  ;;  %v6700_v5 = vsub.f32 0.0, %v6588_v37 }
0x1e4e   :  { %v6605_v26 = vadd.f32 1.0, %v6597_v18  ;;  %v12955_v55 = vand.u32 2147483647, %v12948_v36  ;;  %v6704_v44 = vmul.f32 %v6696_v50, %v6584_v43  ;;  %v6698_v48 = vsub.f32 0.0, %v12914_v42 }
0x1e4f   :  { %11233 = vrcp.f32 %v6604_v46  ;;  %v6705_v32 = vmul.f32 %v6697_v47, %v6585_v29  ;;  %v6699_v31 = vsub.f32 0.0, %v6587_v2  ;;  %v6708_v56 = vmul.f32 %v6700_v5, %v6588_v37 }
0x1e50   :  { %11235 = vrcp.f32 %v6606_v0  ;;  %v6599_v33 = vmul.f32 0.3275911, %v12955_v55  ;;  %v6712_v38 = vmul.f32 1.442695, %v6704_v44  ;;  %v6702_v25 = vsub.f32 0.0, %v6590_v9 }
0x1e51   :  { %11237 = vrcp.f32 %v6605_v26  ;;  %v6701_v1 = vsub.f32 0.0, %v6589_v30  ;;  %v6706_v29 = vmul.f32 %v6698_v48, %v12914_v42  ;;  %v6714_v0 = vmul.f32 1.442695, %v6705_v32 }
0x1e52   :  { %v6607_v43 = vadd.f32 1.0, %v6599_v33  ;;  %v6707_v26 = vmul.f32 %v6699_v31, %v6587_v2  ;;  %v6703_v31 = vsub.f32 0.0, %v12955_v55  ;;  %vm6569_vm13 = vcmp.ge.f32.partialorder %v12917_v35, 0.0 }
0x1e53   :  { %v6709_v5 = vmul.f32 %v6701_v1, %v6589_v30  ;;  %v6716_v42 = vmul.f32 1.442695, %v6706_v29  ;;  %vm6572_vm15 = vcmp.ge.f32.partialorder %v12932_v40, 0.0  ;;  %vm6571_vm1 = vcmp.ge.f32.partialorder %v12922_v59, 0.0 }
0x1e54   :  { %11239 = vrcp.f32 %v6607_v43  ;;  %v6718_v2 = vmul.f32 1.442695, %v6707_v26  ;;  %v6711_v29 = vmul.f32 %v6703_v31, %v12955_v55  ;;  %v6580_v40 = vsel %vm6572_vm15, 1.0, %v11368_v45 }
0x1e55   :  { %11241 = vpow2.f32 %v6712_v38  ;;  %vm6574_vm2 = vcmp.ge.f32.partialorder %v12935_v49, 0.0  ;;  %vm6573_vm7 = vcmp.ge.f32.partialorder %v12939_v14, 0.0  ;;  %v6579_v59 = vsel %vm6571_vm1, 1.0, %v11368_v45 }
0x1e56   :  { %11243 = vpow2.f32 %v6714_v0  ;;  %v6582_v49 = vsel %vm6574_vm2, 1.0, %v11368_v45  ;;  %vm6575_vm8 = vcmp.ge.f32.partialorder %v12948_v36, 0.0 }
0x1e57   :  { %v12945_v62 = vpop.eup %11225 }
0x1e58   :  { %v12950_v17 = vpop.eup %11227  ;;  %v6624_v60 = vmul.f32 1.0614054, %v12945_v62 }
0x1e59   :  { %v6626_v57 = vmul.f32 1.0614054, %v12950_v17  ;;  %v12957_v7 = vpop.eup %11229 }
0x1e5a   :  { %v6632_v20 = vadd.f32 -1.4531521, %v6624_v60  ;;  %v6625_v39 = vmul.f32 1.0614054, %v12957_v7  ;;  %v12964_v24 = vpop.eup %11231 }
0x1e5b   :  { %v6634_v6 = vadd.f32 -1.4531521, %v6626_v57  ;;  %v6627_v54 = vmul.f32 1.0614054, %v12964_v24  ;;  %v6720_v57 = vmul.f32 1.442695, %v6708_v56 }
0x1e5c   :  { %v6640_v4 = vmul.f32 %v12945_v62, %v6632_v20  ;;  %v6633_v58 = vadd.f32 -1.4531521, %v6625_v39  ;;  %v12970_v37 = vpop.eup %11233  ;;  %v6710_v20 = vmul.f32 %v6702_v25, %v6590_v9 }
0x1e5d   :  { %v6642_v3 = vmul.f32 %v12950_v17, %v6634_v6  ;;  %v6635_v50 = vadd.f32 -1.4531521, %v6627_v54  ;;  %v6628_v39 = vmul.f32 1.0614054, %v12970_v37  ;;  %11245 = vpow2.f32 %v6720_v57 }
0x1e5e   :  { %v6648_v34 = vadd.f32 1.4214138, %v6640_v4  ;;  %v6641_v18 = vmul.f32 %v12957_v7, %v6633_v58  ;;  %v6722_v58 = vmul.f32 1.442695, %v6709_v5  ;;  %11247 = vpow2.f32 %v6716_v42 }
0x1e5f   :  { %v6650_v27 = vadd.f32 1.4214138, %v6642_v3  ;;  %v6643_v47 = vmul.f32 %v12964_v24, %v6635_v50  ;;  %v12976_v3 = vpop.eup %11235  ;;  %v6636_v32 = vadd.f32 -1.4531521, %v6628_v39  ;;  %11249 = vpow2.f32 %v6718_v2 }
0x1e60   :  { %v6656_v46 = vmul.f32 %v12945_v62, %v6648_v34  ;;  %v6649_v60 = vadd.f32 1.4214138, %v6641_v18  ;;  %v6630_v30 = vmul.f32 1.0614054, %v12976_v3  ;;  %v6724_v34 = vmul.f32 1.442695, %v6710_v20  ;;  %v12981_v56 = vpop.eup %11237 }
0x1e61   :  { %v6658_v6 = vmul.f32 %v12950_v17, %v6650_v27  ;;  %v6651_v33 = vadd.f32 1.4214138, %v6643_v47  ;;  %v6644_v25 = vmul.f32 %v12970_v37, %v6636_v32  ;;  %v6629_v27 = vmul.f32 1.0614054, %v12981_v56  ;;  %v12991_v20 = vpop.eup %11239 }
0x1e62   :  { %v6664_v44 = vadd.f32 -0.28449672, %v6656_v46  ;;  %v6657_v4 = vmul.f32 %v12957_v7, %v6649_v60  ;;  %v6638_v46 = vadd.f32 -1.4531521, %v6630_v30  ;;  %11251 = vpow2.f32 %v6724_v34 }
0x1e63   :  { %v6659_v9 = vmul.f32 %v12964_v24, %v6651_v33  ;;  %v6666_v38 = vadd.f32 -0.28449672, %v6658_v6  ;;  %v6652_v18 = vadd.f32 1.4214138, %v6644_v25  ;;  %v6637_v26 = vadd.f32 -1.4531521, %v6629_v27 }
0x1e64   :  { %v6665_v48 = vadd.f32 -0.28449672, %v6657_v4  ;;  %v6672_v43 = vmul.f32 %v12945_v62, %v6664_v44  ;;  %v6646_v50 = vmul.f32 %v12976_v3, %v6638_v46  ;;  %11253 = vpow2.f32 %v6722_v58 }
0x1e65   :  { %v6667_v1 = vadd.f32 -0.28449672, %v6659_v9  ;;  %v6660_v47 = vmul.f32 %v12970_v37, %v6652_v18  ;;  %v6674_v5 = vmul.f32 %v12950_v17, %v6666_v38  ;;  %v6645_v6 = vmul.f32 %v12981_v56, %v6637_v26 }
0x1e66   :  { %v6673_v54 = vmul.f32 %v12957_v7, %v6665_v48  ;;  %v6680_v60 = vadd.f32 0.2548296, %v6672_v43  ;;  %v6654_v44 = vadd.f32 1.4214138, %v6646_v50  ;;  %v6631_v55 = vmul.f32 1.0614054, %v12991_v20  ;;  %v11242_v48 = vpop.eup %11241 }
0x1e67   :  { %v6675_v57 = vmul.f32 %v12964_v24, %v6667_v1  ;;  %v6668_v4 = vadd.f32 -0.28449672, %v6660_v47  ;;  %v6726_v39 = vmul.f32 1.442695, %v6711_v29  ;;  %v6653_v2 = vadd.f32 1.4214138, %v6645_v6  ;;  %v11244_v38 = vpop.eup %11243 }
0x1e68   :  { %v6681_v0 = vadd.f32 0.2548296, %v6673_v54  ;;  %v6662_v33 = vmul.f32 %v12976_v3, %v6654_v44  ;;  %v6688_v32 = vmul.f32 %v12945_v62, %v6680_v60  ;;  %v6639_v30 = vadd.f32 -1.4531521, %v6631_v55 }
0x1e69   :  { %v6683_v31 = vadd.f32 0.2548296, %v6675_v57  ;;  %v6676_v9 = vmul.f32 %v12970_v37, %v6668_v4  ;;  %v6682_v34 = vadd.f32 0.2548296, %v6674_v5  ;;  %v6661_v58 = vmul.f32 %v12981_v56, %v6653_v2 }
0x1e6a   :  { %v6689_v42 = vmul.f32 %v12957_v7, %v6681_v0  ;;  %v6670_v43 = vadd.f32 -0.28449672, %v6662_v33  ;;  %v6647_v7 = vmul.f32 %v12991_v20, %v6639_v30  ;;  %11255 = vpow2.f32 %v6726_v39  ;;  %v11246_v25 = vpop.eup %11245 }
0x1e6b   :  { %v6684_v54 = vadd.f32 0.2548296, %v6676_v9  ;;  %v6669_v46 = vadd.f32 -0.28449672, %v6661_v58  ;;  %v6728_v27 = vmul.f32 %v11242_v48, %v6688_v32  ;;  %v6691_v18 = vmul.f32 %v12964_v24, %v6683_v31  ;;  %v11248_v57 = vpop.eup %11247 }
0x1e6c   :  { %v6729_v1 = vmul.f32 %v11244_v38, %v6689_v42  ;;  %v6678_v62 = vmul.f32 %v12976_v3, %v6670_v43  ;;  %v6655_v0 = vadd.f32 1.4214138, %v6647_v7  ;;  %v6690_v50 = vmul.f32 %v12950_v17, %v6682_v34  ;;  %v11250_v44 = vpop.eup %11249 }
0x1e6d   :  { %v6692_v29 = vmul.f32 %v12970_v37, %v6684_v54  ;;  %v6677_v60 = vmul.f32 %v12981_v56, %v6669_v46  ;;  %v6576_v47 = vsel %vm6568_vm12, 1.0, %v11368_v45  ;;  %v6577_v37 = vsel %vm6569_vm13, 1.0, %v11368_v45 }
0x1e6e   :  { %v6686_v26 = vadd.f32 0.2548296, %v6678_v62  ;;  %v6663_v24 = vmul.f32 %v12991_v20, %v6655_v0  ;;  %v6737_v6 = vsub.f32 1.0, %v6729_v1  ;;  %v6736_v39 = vsub.f32 1.0, %v6728_v27 }
0x1e6f   :  { %v6732_v5 = vmul.f32 %v11246_v25, %v6692_v29  ;;  %v6685_v4 = vadd.f32 0.2548296, %v6677_v60  ;;  %v11252_v55 = vpop.eup %11251  ;;  %v6731_v42 = vmul.f32 %v11250_v44, %v6691_v18  ;;  %v6730_v2 = vmul.f32 %v11248_v57, %v6690_v50 }
0x1e70   :  { %v6694_v17 = vmul.f32 %v12976_v3, %v6686_v26  ;;  %v6671_v15 = vadd.f32 -0.28449672, %v6663_v24  ;;  %v6745_v9 = vmul.f32 %v6737_v6, %v6577_v37  ;;  %v6744_v43 = vmul.f32 %v6736_v39, %v6576_v47 }
0x1e71   :  { %v6740_v33 = vsub.f32 1.0, %v6732_v5  ;;  %v6693_v32 = vmul.f32 %v12981_v56, %v6685_v4  ;;  %v11254_v31 = vpop.eup %11253  ;;  %v6739_v58 = vsub.f32 1.0, %v6731_v42  ;;  %v6578_v56 = vsel %vm6570_vm14, 1.0, %v11368_v45 }
0x1e72   :  { %v6734_v48 = vmul.f32 %v11252_v55, %v6694_v17  ;;  %v6679_v3 = vmul.f32 %v12991_v20, %v6671_v15  ;;  %v6738_v54 = vsub.f32 1.0, %v6730_v2  ;;  %v6581_v1 = vsel %vm6573_vm7, 1.0, %v11368_v45 }
0x1e73   :  { %v6748_v35 = vmul.f32 %v6740_v33, %v6580_v40  ;;  %v6733_v34 = vmul.f32 %v11254_v31, %v6693_v32  ;;  %v6753_v46 = vadd.f32 1.0, %v6745_v9  ;;  %v6556_v27 = vmul.f32 0.5, %v12925_v53 }
0x1e74   :  { %v6742_v30 = vsub.f32 1.0, %v6734_v48  ;;  %v6687_v38 = vadd.f32 0.2548296, %v6679_v3  ;;  %v6752_v0 = vadd.f32 1.0, %v6744_v43  ;;  %v6747_v28 = vmul.f32 %v6739_v58, %v6579_v59 }
0x1e75   :  { %v6741_v7 = vsub.f32 1.0, %v6733_v34  ;;  %v6756_v25 = vadd.f32 1.0, %v6748_v35  ;;  %v6746_v26 = vmul.f32 %v6738_v54, %v6578_v56  ;;  %v6553_v60 = vmul.f32 0.5, %v12908_v21 }
0x1e76   :  { %v6695_v62 = vmul.f32 %v12991_v20, %v6687_v38  ;;  %v6750_v18 = vmul.f32 %v6742_v30, %v6582_v49  ;;  %v6557_v57 = vmul.f32 0.5, %v12929_v13  ;;  %v6552_v5 = vmul.f32 0.5, %v12898_v12 }
0x1e77   :  { %v11256_v14 = vpop.eup %11255  ;;  %v6749_v29 = vmul.f32 %v6741_v7, %v6581_v1  ;;  %v6764_v20 = vmul.f32 %v6756_v25, %v6556_v27  ;;  %v6761_v44 = vmul.f32 %v6753_v46, %v6553_v60  ;;  %v6583_v6 = vsel %vm6575_vm8, 1.0, %v11368_v45 }
0x1e78   :  { %v6735_v50 = vmul.f32 %v11256_v14, %v6695_v62  ;;  %v6758_v37 = vadd.f32 1.0, %v6750_v18  ;;  %v6760_v17 = vmul.f32 %v6752_v0, %v6552_v5  ;;  %v6755_v4 = vadd.f32 1.0, %v6747_v28 }
0x1e79   :  { %v6757_v47 = vadd.f32 1.0, %v6749_v29  ;;  %v6754_v36 = vadd.f32 1.0, %v6746_v26  ;;  %v6558_v39 = vmul.f32 0.5, %v12927_v41  ;;  %v6555_v21 = vmul.f32 0.5, %v12910_v23 }
0x1e7a   :  { %v6743_v24 = vsub.f32 1.0, %v6735_v50  ;;  %v6768_v13 = vpack.c.bf16 %v6764_v20, %v6760_v17  ;;  %v6559_v33 = vmul.f32 0.5, %v12943_v52  ;;  %v6554_v15 = vmul.f32 0.5, %v12900_v63  ;;  %v9840_v63 = vld [vmem:[%s13581_s17 + $0x2] ss:$0 sm:$0xff] }
0x1e7b   :  { %v6765_v53 = vmul.f32 %v6757_v47, %v6557_v57  ;;  %v6766_v2 = vmul.f32 %v6758_v37, %v6558_v39  ;;  %v6763_v40 = vmul.f32 %v6755_v4, %v6555_v21  ;;  %v10989_v57 = vld [vmem:[%s13572_s8 + $0x38] sm:$0xff]   ;;  %v10990_v47 = vld [vmem:[%s13572_s8 + $0x30] sm:$0xff]   ;;  %v9875_v4 = vld [vmem:[%s13570_s6 + $0x3] ss:$0 sm:$0xff]  ;;  %s13641_s6 = smov 88  }
0x1e7c   :  { %v6751_v55 = vmul.f32 %v6743_v24, %v6583_v6  ;;  %v6762_v32 = vmul.f32 %v6754_v36, %v6554_v15  ;;  %v9882_v15 = vld [vmem:[%s13573_s9 + $0x3] ss:$0 sm:$0xff] }
0x1e7d   :  { %v6769_v42 = vpack.c.bf16 %v6765_v53, %v6761_v44 }
0x1e7e   :  { %v6759_v12 = vadd.f32 1.0, %v6751_v55  ;;  %v6770_v41 = vpack.c.bf16 %v6766_v2, %v6762_v32 }
0x1e7f   :  { %7069 = vmatprep.mubr.bf16.mxu1 %v6769_v42  ;;  %v9876_v42 = vld [vmem:[%s13571_s7 + $0x3] ss:$0 sm:$0xff] }
0x1e80   :  { %v6767_v48 = vmul.f32 %v6759_v12, %v6559_v33  ;;  %7070 = vmatmul.mubr.bf16.vlgmr.msra.gmra.mxu1 %v6768_v13 }
0x1e81   :  { %10671 = vmatprep.mubr.msk.bf16.mxu1 %vm11352_vm3, %v11351_v19  ;;  %10668 = vmatpush3.bf16.msra.mxu1 %v10989_v57 }
0x1e82   :  { %v6771_v31 = vpack.c.bf16 %v6767_v48, %v6763_v40  ;;  %10669 = vmatprep.subr.bf16.mxu1 %v11351_v19 }
0x1e84   :  { %7110 = vmatprep.mubr.bf16.mxu0 %v6771_v31 }
0x1e85   :  { %7111 = vmatmul.mubr.bf16.vlgmr.msra.gmra.mxu0 %v6770_v41  ;;  %10670 = vmatpush3.bf16.msra.mxu1 %v10990_v47 }
0x1e86   :  { %10677 = vmatprep.mubr.msk.f32.mxu0 %vm11352_vm3, %v11351_v19  ;;  %10680 = vmatprep.subr.mxu1 %v11351_v19 }
0x1f40   :  { %v10261_v23 = vpop.f32.mrf.mxu1 }
0x1f42   :  { %v10262_v52 = vpop.f32.mrf.mxu1 }
0x1f43   :  { %v10263_v35 = vadd.f32 %v10262_v52, %v10261_v23 }
0x1f44   :  { %v10264_v3 = vpop.f32.mrf.mxu1 }
0x1f45   :  { %v10283_v9 = vpop.f32.mrf.mxu0  ;;  %v7072_v30 = vadd.f32 %v10263_v35, %v9840_v63 }
0x1f46   :  { %v10265_v34 = vpop.f32.mrf.mxu1 }
0x1f47   :  { %v10284_v43 = vpop.f32.mrf.mxu0  ;;  %v10266_v58 = vadd.f32 %v10265_v34, %v10264_v3 }
0x1f48   :  { %v10285_v38 = vadd.f32 %v10284_v43, %v10283_v9 }
0x1f49   :  { %v10286_v56 = vpop.f32.mrf.mxu0  ;;  %v7075_v59 = vadd.f32 %v10266_v58, %v9840_v63 }
0x1f4a   :  { %v7113_v54 = vadd.f32 %v10285_v38, %v7072_v30 }
0x1f4b   :  { %v10287_v7 = vpop.f32.mrf.mxu0 }
0x1f4c   :  { %v13050_v25 = vadd.f32 %v7113_v54, %v12748_v22  ;;  %v10288_v49 = vadd.f32 %v10287_v7, %v10286_v56 }
0x1f4e   :  { %v7116_v1 = vadd.f32 %v10288_v49, %v7075_v59  ;;  %v7125_v62 = vsel %vm73_vm0, %v13050_v25, 0.0 }
0x1f4f   :  { %7126 = vadd.xlane.f32.xlu1 %v7125_v62 }
0x1f50   :  { %v13055_v14 = vadd.f32 %v7116_v1, %v12753_v61 }
0x1f52   :  { %v7128_v46 = vsel %vm73_vm0, %v13055_v14, 0.0 }
0x1f53   :  { %7129 = vadd.xlane.f32.xlu0 %v7128_v46 }
0x1fd8   :  { %v7127_v27 = vpop.xlane.xlu1 %7126 }
0x1fd9   :  { %v7131_v18 = vmul.f32 0.03125, %v7127_v27 }
0x1fdb   :  { %v7133_v29 = vsub.f32 %v13050_v25, %v7131_v18 }
0x1fdc   :  { %v7130_v0 = vpop.xlane.xlu0 %7129 }
0x1fdd   :  { %v7132_v22 = vmul.f32 0.03125, %v7130_v0  ;;  %v7135_v28 = vmul.f32 %v7133_v29, %v7133_v29 }
0x1fdf   :  { %v7134_v50 = vsub.f32 %v13055_v14, %v7132_v22  ;;  %v7137_v26 = vsel %vm73_vm0, %v7135_v28, 0.0 }
0x1fe0   :  { %7138 = vadd.xlane.f32.xlu1 %v7137_v26 }
0x1fe1   :  { %v7136_v60 = vmul.f32 %v7134_v50, %v7134_v50 }
0x1fe3   :  { %v7140_v61 = vsel %vm73_vm0, %v7136_v60, 0.0 }
0x1fe4   :  { %7141 = vadd.xlane.f32.xlu0 %v7140_v61 }
0x2069   :  { %v7139_v5 = vpop.xlane.xlu1 %7138 }
0x206a   :  { %v7143_v20 = vmul.f32 0.03125, %v7139_v5 }
0x206c   :  { %v7145_v24 = vadd.f32 1e-05, %v7143_v20 }
0x206d   :  { %v7142_v44 = vpop.xlane.xlu0 %7141 }
0x206e   :  { %11257 = vrsqrt.f32 %v7145_v24  ;;  %v7144_v37 = vmul.f32 0.03125, %v7142_v44 }
0x2070   :  { %v7146_v53 = vadd.f32 1e-05, %v7144_v37 }
0x2072   :  { %11259 = vrsqrt.f32 %v7146_v53 }
0x207b   :  { %v11258_v6 = vpop.eup %11257 }
0x207c   :  { %v7149_v17 = vmul.f32 %v11258_v6, %v7133_v29 }
0x207e   :  { %v7157_v39 = vmul.f32 %v9875_v4, %v7149_v17 }
0x207f   :  { %v11260_v55 = vpop.eup %11259 }
0x2080   :  { %v7150_v36 = vmul.f32 %v11260_v55, %v7134_v50  ;;  %v7165_v13 = vadd.f32 %v9876_v42, %v7157_v39 }
0x2082   :  { %v7158_v21 = vmul.f32 %v9875_v4, %v7150_v36 }
0x2084   :  { %v7166_v33 = vadd.f32 %v9876_v42, %v7158_v21 }
0x2086   :  { %v7167_v12 = vpack.c.bf16 %v7166_v33, %v7165_v13 }
0x2088   :  { %10672 = vmatmul.mubr.msk.bf16.vlgmr.msra.gmra.mxu1 %vm73_vm0, %v7167_v12 }
0x2089   :  { %10682 = vmatprep.mubr.msk.f32.mxu1 %vm11352_vm3, %v11351_v19 }
0x2148   :  { %v7230_v2 = vpop.f32.mrf.mxu1 }
0x2149   :  { %v13083_v40 = vadd.f32 %v9882_v15, %v7230_v2 }
0x214a   :  { %v10673_v48 = vpop.f32.mrf.mxu1 }
0x214b   :  { %7403 = vrot.lane.b32.xlu0 %v13083_v40, %s13641_s6  ;;  %7238 = vrot.lane.b32.xlu1 %v13083_v40, %s13634_s1 }
0x214c   :  { %v7233_v32 = vpop.f32.mrf.mxu1 }
0x214d   :  { %v13093_v41 = vadd.f32 %v9882_v15, %v7233_v32 }
0x214e   :  { %v10674_v31 = vpop.f32.mrf.mxu1 }
0x214f   :  { %7733 = vrot.lane.b32.xlu0 %v13083_v40, %s13639_s28  ;;  %7401 = vrot.lane.b32.xlu1 %v13083_v40, %s13635_s20 }
0x2153   :  { %7568 = vrot.lane.b32.xlu1 %v13083_v40, %s13637_s4  ;;  %7912 = vrot.lane.b32.xlu0 %v13093_v41, %s13634_s1  ;;  %s13643_s1 = smov 8  }
0x2157   :  { %7566 = vrot.lane.b32.xlu1 %v13083_v40, %s13636_s2  ;;  %8075 = vrot.lane.b32.xlu0 %v13093_v41, %s13635_s20  ;;  %s13644_s20 = smov 16  }
0x215b   :  { %7731 = vrot.lane.b32.xlu1 %v13083_v40, %s13638_s3  ;;  %8240 = vrot.lane.b32.xlu0 %v13093_v41, %s13636_s2  ;;  %s13645_s2 = smov 24  }
0x215f   :  { %8077 = vrot.lane.b32.xlu1 %v13093_v41, %s13641_s6  ;;  %8405 = vrot.lane.b32.xlu0 %v13093_v41, %s13638_s3 }
0x2163   :  { %8242 = vrot.lane.b32.xlu1 %v13093_v41, %s13637_s4 }
0x2167   :  { %8407 = vrot.lane.b32.xlu1 %v13093_v41, %s13639_s28  ;;  %s13646_s28 = sld [smem:[#allocation9_spill]] }
0x21bd   :  { %v7239_v23 = vpop.permute.xlu1 %7238  ;;  %v7404_v52 = vpop.permute.xlu0 %7403 }
0x21be   :  { %10676 = vmatpush3.xpose.msk.msra.mxu0 %vm306_vm4, %v7239_v23 }
0x21bf   :  { %10685 = vmatprep.subr.mxu0 %v11351_v19 }
0x21c1   :  { %10678 = vmatmul.mubr.msk.f32.vlgmr.msra.gmra.mxu0 %vm306_vm4, %v13083_v40  ;;  %v7402_v63 = vpop.permute.xlu1 %7401  ;;  %v7734_v35 = vpop.permute.xlu0 %7733 }
0x21c2   :  { %10686 = vmatpush3.xpose.msk.msra.mxu0 %vm306_vm4, %v7404_v52  ;;  %10687 = vmatprep.mubr.msk.f32.mxu0 %vm11352_vm3, %v11351_v19 }
0x21c3   :  { %10695 = vmatprep.subr.mxu0 %v11351_v19 }
0x21c5   :  { %10688 = vmatmul.mubr.msk.f32.vlgmr.msra.gmra.mxu0 %vm306_vm4, %v7402_v63  ;;  %v7569_v3 = vpop.permute.xlu1 %7568  ;;  %v7913_v30 = vpop.permute.xlu0 %7912 }
0x21c6   :  { %10696 = vmatpush3.xpose.msk.msra.mxu0 %vm306_vm4, %v7569_v3  ;;  %10697 = vmatprep.mubr.msk.f32.mxu0 %vm11352_vm3, %v11351_v19 }
0x21c7   :  { %10705 = vmatprep.subr.mxu0 %v11351_v19 }
0x21c9   :  { %v7567_v9 = vpop.permute.xlu1 %7566  ;;  %v8076_v43 = vpop.permute.xlu0 %8075 }
0x21ca   :  { %10698 = vmatmul.mubr.msk.f32.vlgmr.msra.gmra.mxu0 %vm306_vm4, %v7567_v9 }
0x21cb   :  { %10706 = vmatpush3.xpose.msk.msra.mxu0 %vm306_vm4, %v7734_v35  ;;  %10707 = vmatprep.mubr.msk.f32.mxu0 %vm11352_vm3, %v11351_v19 }
0x21cc   :  { %10715 = vmatprep.subr.mxu0 %v11351_v19 }
0x21cd   :  { %v7732_v34 = vpop.permute.xlu1 %7731  ;;  %v8241_v56 = vpop.permute.xlu0 %8240 }
0x21ce   :  { %10708 = vmatmul.mubr.msk.f32.vlgmr.msra.gmra.mxu0 %vm306_vm4, %v7732_v34 }
0x21cf   :  { %10716 = vmatpush3.xpose.msk.msra.mxu0 %vm306_vm4, %v7913_v30  ;;  %10717 = vmatprep.mubr.msk.f32.mxu0 %vm11352_vm3, %v11351_v19 }
0x21d0   :  { %10725 = vmatprep.subr.mxu0 %v11351_v19 }
0x21d1   :  { %v8078_v58 = vpop.permute.xlu1 %8077  ;;  %v8406_v59 = vpop.permute.xlu0 %8405 }
0x21d2   :  { %10718 = vmatmul.mubr.msk.f32.vlgmr.msra.gmra.mxu0 %vm306_vm4, %v13093_v41 }
0x21d3   :  { %10726 = vmatpush3.xpose.msk.msra.mxu0 %vm306_vm4, %v8078_v58  ;;  %10727 = vmatprep.mubr.msk.f32.mxu0 %vm11352_vm3, %v11351_v19 }
0x21d4   :  { %10735 = vmatprep.subr.mxu0 %v11351_v19 }
0x21d5   :  { %v8243_v38 = vpop.permute.xlu1 %8242 }
0x21d6   :  { %10728 = vmatmul.mubr.msk.f32.vlgmr.msra.gmra.mxu0 %vm306_vm4, %v8076_v43 }
0x21d7   :  { %10736 = vmatpush3.xpose.msk.msra.mxu0 %vm306_vm4, %v8243_v38  ;;  %10737 = vmatprep.mubr.msk.f32.mxu0 %vm11352_vm3, %v11351_v19 }
0x21d8   :  { %10745 = vmatprep.subr.mxu0 %v11351_v19 }
0x21d9   :  { %v8408_v54 = vpop.permute.xlu1 %8407 }
0x21da   :  { %10738 = vmatmul.mubr.msk.f32.vlgmr.msra.gmra.mxu0 %vm306_vm4, %v8241_v56 }
0x21db   :  { %10746 = vmatpush3.xpose.msk.msra.mxu0 %vm306_vm4, %v8408_v54  ;;  %10747 = vmatprep.mubr.msk.f32.mxu0 %vm11352_vm3, %v11351_v19 }
0x21dc   :  { %10755 = vmatprep.subr.bf16.mxu0 %v11351_v19 }
0x21de   :  { %10748 = vmatmul.mubr.msk.f32.vlgmr.msra.gmra.mxu0 %vm306_vm4, %v8406_v59 }
0x21df   :  { %10759 = vmatprep.mubr.msk.bf16.mxu0 %vm11352_vm3, %v11351_v19 }
0x2281   :  { %v7310_v7 = vpop.f32.mrf.mxu0 }
0x2282   :  { %v7314_v49 = vsel %vm306_vm4, %v7310_v7, -inf }
0x2283   :  { %v10679_v1 = vpop.f32.mrf.mxu0  ;;  %7315 = vmax.xlane.f32.xlu1 %v7314_v49 }
0x2285   :  { %v7475_v62 = vpop.f32.mrf.mxu0 }
0x2286   :  { %v7479_v46 = vsel %vm306_vm4, %v7475_v62, -inf }
0x2287   :  { %v10689_v27 = vpop.f32.mrf.mxu0  ;;  %7480 = vmax.xlane.f32.xlu0 %v7479_v46 }
0x228a   :  { %v7640_v18 = vpop.f32.mrf.mxu0 }
0x228b   :  { %v7644_v29 = vsel %vm306_vm4, %v7640_v18, -inf }
0x228c   :  { %v10699_v0 = vpop.f32.mrf.mxu0  ;;  %7645 = vmax.xlane.f32.xlu0 %v7644_v29 }
0x228e   :  { %v7805_v22 = vpop.f32.mrf.mxu0 }
0x228f   :  { %v7809_v28 = vsel %vm306_vm4, %v7805_v22, -inf }
0x2290   :  { %v10709_v50 = vpop.f32.mrf.mxu0  ;;  %7810 = vmax.xlane.f32.xlu0 %v7809_v28 }
0x2292   :  { %v7984_v26 = vpop.f32.mrf.mxu0 }
0x2293   :  { %v7988_v60 = vsel %vm306_vm4, %v7984_v26, -inf }
0x2294   :  { %7989 = vmax.xlane.f32.xlu1 %v7988_v60  ;;  %v10719_v61 = vpop.f32.mrf.mxu0 }
0x2296   :  { %v8149_v57 = vpop.f32.mrf.mxu0 }
0x2297   :  { %v8153_v47 = vsel %vm306_vm4, %v8149_v57, -inf }
0x2298   :  { %8154 = vmax.xlane.f32.xlu0 %v8153_v47  ;;  %v10729_v5 = vpop.f32.mrf.mxu0 }
0x229a   :  { %v8314_v20 = vpop.f32.mrf.mxu0 }
0x229b   :  { %v8318_v24 = vsel %vm306_vm4, %v8314_v20, -inf }
0x229c   :  { %8319 = vmax.xlane.f32.xlu1 %v8318_v24  ;;  %v10739_v44 = vpop.f32.mrf.mxu0 }
0x229e   :  { %v8479_v37 = vpop.f32.mrf.mxu0 }
0x229f   :  { %v8483_v53 = vsel %vm306_vm4, %v8479_v37, -inf }
0x22a0   :  { %8484 = vmax.xlane.f32.xlu0 %v8483_v53  ;;  %v10749_v6 = vpop.f32.mrf.mxu0 }
0x22ad   :  { %7490 = vrot.lane.b32.xlu1 %v13083_v40, %s13640_s25 }
0x22b1   :  { %7655 = vrot.lane.b32.xlu1 %v13083_v40, %s13628_s0 }
0x22b6   :  { %7325 = vrot.lane.b32.xlu0 %v13083_v40, %s13629_s22 }
0x230c   :  { %v7316_v17 = vpop.xlane.xlu1 %7315 }
0x230d   :  { %v7317_v4 = vsub.f32 %v7310_v7, %v7316_v17 }
0x230f   :  { %v7318_v55 = vmul.f32 1.442695, %v7317_v4 }
0x2310   :  { %v7481_v36 = vpop.xlane.xlu0 %7480 }
0x2311   :  { %11261 = vpow2.f32 %v7318_v55  ;;  %v7482_v39 = vsub.f32 %v7475_v62, %v7481_v36 }
0x2313   :  { %v7483_v42 = vmul.f32 1.442695, %v7482_v39 }
0x2315   :  { %11263 = vpow2.f32 %v7483_v42  ;;  %v7646_v21 = vpop.xlane.xlu0 %7645 }
0x2316   :  { %v7647_v23 = vsub.f32 %v7640_v18, %v7646_v21 }
0x2318   :  { %v7648_v35 = vmul.f32 1.442695, %v7647_v23 }
0x2319   :  { %v7811_v12 = vpop.xlane.xlu0 %7810 }
0x231a   :  { %v7812_v63 = vsub.f32 %v7805_v22, %v7811_v12  ;;  %11265 = vpow2.f32 %v7648_v35 }
0x231c   :  { %v7813_v30 = vmul.f32 1.442695, %v7812_v63 }
0x231d   :  { %v7990_v52 = vpop.xlane.xlu1 %7989 }
0x231e   :  { %v11262_v13 = vpop.eup %11261  ;;  %v7991_v3 = vsub.f32 %v7984_v26, %v7990_v52  ;;  %11267 = vpow2.f32 %v7813_v30 }
0x231f   :  { %v7320_v33 = vsel %vm306_vm4, %v11262_v13, 0.0 }
0x2320   :  { %7321 = vadd.xlane.f32.xlu1 %v7320_v33  ;;  %v7992_v43 = vmul.f32 1.442695, %v7991_v3 }
0x2321   :  { %v8155_v48 = vpop.xlane.xlu0 %8154 }
0x2322   :  { %v13172_v15 = vpop.eup %11263  ;;  %v8156_v34 = vsub.f32 %v8149_v57, %v8155_v48  ;;  %11269 = vpow2.f32 %v7992_v43 }
0x2323   :  { %v7485_v2 = vsel %vm306_vm4, %v13172_v15, 0.0 }
0x2324   :  { %7486 = vadd.xlane.f32.xlu0 %v7485_v2  ;;  %v8157_v38 = vmul.f32 1.442695, %v8156_v34 }
0x2325   :  { %v8320_v9 = vpop.xlane.xlu1 %8319 }
0x2326   :  { %v8321_v58 = vsub.f32 %v8314_v20, %v8320_v9  ;;  %11271 = vpow2.f32 %v8157_v38 }
0x2328   :  { %v8322_v56 = vmul.f32 1.442695, %v8321_v58 }
0x2329   :  { %v8485_v32 = vpop.xlane.xlu0 %8484  ;;  %v7491_v50 = vpop.permute.xlu1 %7490 }
0x232a   :  { %v8486_v54 = vsub.f32 %v8479_v37, %v8485_v32  ;;  %11273 = vpow2.f32 %v8322_v56 }
0x232c   :  { %v8487_v59 = vmul.f32 1.442695, %v8486_v54 }
0x232d   :  { %v7326_v31 = vpop.permute.xlu0 %7325  ;;  %v7656_v26 = vpop.permute.xlu1 %7655 }
0x232e   :  { %10681 = vmatpush3.msra.mxu1 %v7326_v31  ;;  %11275 = vpow2.f32 %v8487_v59 }
0x232f   :  { %10690 = vmatprep.subr.mxu1 %v11351_v19 }
0x2331   :  { %7999 = vrot.lane.b32.xlu1 %v13093_v41, %s13629_s22 }
0x233a   :  { %7820 = vrot.lane.b32.xlu0 %v13083_v40, %s13630_s21  ;;  %v11266_v40 = vpop.eup %11265 }
0x233b   :  { %v11268_v7 = vpop.eup %11267  ;;  %v7650_v49 = vsel %vm306_vm4, %v11266_v40, 0.0 }
0x233c   :  { %v13182_v1 = vpop.eup %11269  ;;  %v7815_v27 = vsel %vm306_vm4, %v11268_v7, 0.0 }
0x233d   :  { %v13184_v62 = vpop.eup %11271  ;;  %v7994_v46 = vsel %vm306_vm4, %v13182_v1, 0.0 }
0x233e   :  { %v13189_v18 = vpop.eup %11273  ;;  %v8159_v0 = vsel %vm306_vm4, %v13184_v62, 0.0 }
0x233f   :  { %v8324_v29 = vsel %vm306_vm4, %v13189_v18, 0.0  ;;  %v13195_v22 = vpop.eup %11275 }
0x2340   :  { %v8489_v28 = vsel %vm306_vm4, %v13195_v22, 0.0 }
0x2355   :  { %7651 = vadd.xlane.f32.xlu1 %v7650_v49 }
0x2359   :  { %7995 = vadd.xlane.f32.xlu1 %v7994_v46  ;;  %7816 = vadd.xlane.f32.xlu0 %v7815_v27 }
0x235d   :  { %8325 = vadd.xlane.f32.xlu1 %v8324_v29  ;;  %8160 = vadd.xlane.f32.xlu0 %v8159_v0 }
0x2361   :  { %8490 = vadd.xlane.f32.xlu1 %v8489_v28 }
0x2372   :  { %8329 = vrot.lane.b32.xlu1 %v13093_v41, %s13628_s0  ;;  %s13642_s0 = sld [smem:[#allocation8_spill]] }
0x2373   :  { %8164 = vrot.lane.b32.xlu0 %v13093_v41, %s13640_s25 }
0x2377   :  { %8494 = vrot.lane.b32.xlu0 %v13093_v41, %s13630_s21 }
0x2378   :  { %v10991_v56 = vld [vmem:[%s13642_s0 + $0x38] sm:$0xff]  }
0x2379   :  { %10756 = vmatpush3.bf16.msra.mxu0 %v10991_v56 }
0x237a   :  { %10757 = vmatprep.subr.bf16.mxu0 %v11351_v19 }
0x23a9   :  { %v7322_v60 = vpop.xlane.xlu1 %7321 }
0x23aa   :  { %11277 = vrcp.f32 %v7322_v60 }
0x23ad   :  { %v7487_v61 = vpop.xlane.xlu0 %7486  ;;  %v8000_v41 = vpop.permute.xlu1 %7999 }
0x23ae   :  { %11279 = vrcp.f32 %v7487_v61 }
0x23b1   :  { %v7821_v24 = vpop.permute.xlu0 %7820 }
0x23b7   :  { %v11278_v57 = vpop.eup %11277 }
0x23b8   :  { %v7324_v47 = vmul.f32 %v11278_v57, %v11262_v13 }
0x23ba   :  { %10683 = vmatmul.mubr.msk.f32.vlgmr.msra.gmra.mxu1 %vm306_vm4, %v7324_v47 }
0x23bb   :  { %v11280_v5 = vpop.eup %11279  ;;  %10691 = vmatpush3.msra.mxu1 %v7491_v50  ;;  %10692 = vmatprep.mubr.msk.f32.mxu1 %vm11352_vm3, %v11351_v19 }
0x23bc   :  { %10700 = vmatprep.subr.mxu1 %v11351_v19  ;;  %v7489_v20 = vmul.f32 %v11280_v5, %v13172_v15 }
0x23be   :  { %10693 = vmatmul.mubr.msk.f32.vlgmr.msra.gmra.mxu1 %vm306_vm4, %v7489_v20 }
0x23bf   :  { %10701 = vmatpush3.msra.mxu1 %v7656_v26  ;;  %10702 = vmatprep.mubr.msk.f32.mxu1 %vm11352_vm3, %v11351_v19 }
0x23c0   :  { %10710 = vmatprep.subr.mxu1 %v11351_v19 }
0x23de   :  { %v7652_v44 = vpop.xlane.xlu1 %7651 }
0x23df   :  { %11281 = vrcp.f32 %v7652_v44 }
0x23e2   :  { %v7817_v37 = vpop.xlane.xlu0 %7816  ;;  %v7996_v53 = vpop.xlane.xlu1 %7995 }
0x23e3   :  { %11283 = vrcp.f32 %v7817_v37 }
0x23e4   :  { %11285 = vrcp.f32 %v7996_v53  ;;  %v9915_v53 = vld [vmem:[%s13646_s28 + $0x3] ss:$0 sm:$0xff] }
0x23e6   :  { %v8161_v6 = vpop.xlane.xlu0 %8160  ;;  %v8326_v17 = vpop.xlane.xlu1 %8325 }
0x23e7   :  { %11287 = vrcp.f32 %v8161_v6 }
0x23e8   :  { %11289 = vrcp.f32 %v8326_v17 }
0x23ea   :  { %v8491_v36 = vpop.xlane.xlu1 %8490  ;;  %v8165_v12 = vpop.permute.xlu0 %8164 }
0x23eb   :  { %11291 = vrcp.f32 %v8491_v36 }
0x23ec   :  { %v11282_v4 = vpop.eup %11281 }
0x23ed   :  { %v7654_v55 = vmul.f32 %v11282_v4, %v11266_v40  ;;  %v10992_v40 = vld [vmem:[%s13642_s0 + $0x30] sm:$0xff]  }
0x23ee   :  { %v8330_v48 = vpop.permute.xlu1 %8329  ;;  %v8495_v23 = vpop.permute.xlu0 %8494  ;;  %10758 = vmatpush3.bf16.msra.mxu0 %v10992_v40 }
0x23ef   :  { %10703 = vmatmul.mubr.msk.f32.vlgmr.msra.gmra.mxu1 %vm306_vm4, %v7654_v55 }
0x23f0   :  { %10711 = vmatpush3.msra.mxu1 %v7821_v24  ;;  %10712 = vmatprep.mubr.msk.f32.mxu1 %vm11352_vm3, %v11351_v19  ;;  %v11284_v39 = vpop.eup %11283 }
0x23f1   :  { %10720 = vmatprep.subr.mxu1 %v11351_v19  ;;  %v7819_v42 = vmul.f32 %v11284_v39, %v11268_v7  ;;  %v11286_v21 = vpop.eup %11285 }
0x23f2   :  { %v7998_v13 = vmul.f32 %v11286_v21, %v13182_v1 }
0x23f3   :  { %10713 = vmatmul.mubr.msk.f32.vlgmr.msra.gmra.mxu1 %vm306_vm4, %v7819_v42 }
0x23f4   :  { %10721 = vmatpush3.msra.mxu1 %v8000_v41  ;;  %10722 = vmatprep.mubr.msk.f32.mxu1 %vm11352_vm3, %v11351_v19  ;;  %v11288_v33 = vpop.eup %11287 }
0x23f5   :  { %10730 = vmatprep.subr.mxu1 %v11351_v19  ;;  %v8163_v15 = vmul.f32 %v11288_v33, %v13184_v62  ;;  %v11290_v2 = vpop.eup %11289 }
0x23f6   :  { %v8328_v32 = vmul.f32 %v11290_v2, %v13189_v18 }
0x23f7   :  { %10723 = vmatmul.mubr.msk.f32.vlgmr.msra.gmra.mxu1 %vm306_vm4, %v7998_v13 }
0x23f8   :  { %10731 = vmatpush3.msra.mxu1 %v8165_v12  ;;  %10732 = vmatprep.mubr.msk.f32.mxu1 %vm11352_vm3, %v11351_v19  ;;  %v11292_v31 = vpop.eup %11291 }
0x23f9   :  { %10740 = vmatprep.subr.mxu1 %v11351_v19  ;;  %v8493_v52 = vmul.f32 %v11292_v31, %v13195_v22 }
0x23fb   :  { %10733 = vmatmul.mubr.msk.f32.vlgmr.msra.gmra.mxu1 %vm306_vm4, %v8163_v15 }
0x23fc   :  { %10741 = vmatpush3.msra.mxu1 %v8330_v48  ;;  %10742 = vmatprep.mubr.msk.f32.mxu1 %vm11352_vm3, %v11351_v19 }
0x23fd   :  { %10750 = vmatprep.subr.mxu1 %v11351_v19 }
0x23ff   :  { %10743 = vmatmul.mubr.msk.f32.vlgmr.msra.gmra.mxu1 %vm306_vm4, %v8328_v32 }
0x2400   :  { %10751 = vmatpush3.msra.mxu1 %v8495_v23  ;;  %10752 = vmatprep.mubr.msk.f32.mxu1 %vm11352_vm3, %v11351_v19 }
0x2403   :  { %10753 = vmatmul.mubr.msk.f32.vlgmr.msra.gmra.mxu1 %vm306_vm4, %v8493_v52  ;;  %v10993_v52 = vld [vmem:[%s13578_s14 + $0xe0] ss:$16 sps:$4 sm:$0xff]  }
0x2404   :  { %8811 = vmatprep.mubr.bf16.mxu1 %v11367_v16 }
0x247a   :  { %v7397_v63 = vpop.f32.mrf.mxu1 }
0x247c   :  { %v10684_v35 = vpop.f32.mrf.mxu1 }
0x247d   :  { %v10996_v35 = vld [vmem:[%s13578_s14 + $0xe8] ss:$16 sps:$4 sm:$0xff]  }
0x247e   :  { %v7562_v3 = vpop.f32.mrf.mxu1 }
0x2480   :  { %v10694_v9 = vpop.f32.mrf.mxu1 }
0x2481   :  { %v11001_v9 = vld [vmem:[%s13578_s14 + $0xc4] ss:$16 sps:$4 sm:$0xff]  }
0x24af   :  { %v7727_v30 = vpop.f32.mrf.mxu1 }
0x24b1   :  { %v10704_v34 = vpop.f32.mrf.mxu1 }
0x24b2   :  { %v10999_v34 = vld [vmem:[%s13578_s14 + $0xc0] ss:$16 sps:$4 sm:$0xff]  }
0x24b3   :  { %v7892_v43 = vpop.f32.mrf.mxu1 }
0x24b5   :  { %v10714_v58 = vpop.f32.mrf.mxu1 }
0x24b7   :  { %v8071_v38 = vpop.f32.mrf.mxu1 }
0x24b9   :  { %v10724_v54 = vpop.f32.mrf.mxu1 }
0x24bb   :  { %v8236_v59 = vpop.f32.mrf.mxu1 }
0x24bc   :  { %v10828_v7 = vpack.i.bf16 %v8236_v59, %v7562_v3  ;;  %v10998_v3 = vld [vmem:[%s13578_s14 + $0xec] ss:$16 sps:$4 sm:$0xff]  }
0x24bd   :  { %v10734_v49 = vpop.f32.mrf.mxu1  ;;  %8834 = vmatprep.subr.bf16.mxu0 %v10998_v3 }
0x24be   :  { %10829 = vrot.lane.b32.xlu1 %v10828_v7, %s13643_s1 }
0x24bf   :  { %v8401_v1 = vpop.f32.mrf.mxu1 }
0x24c0   :  { %v10833_v62 = vpack.i.bf16 %v8401_v1, %v7727_v30  ;;  %v11004_v30 = vld [vmem:[%s13578_s14 + $0xcc] ss:$16 sps:$4 sm:$0xff]   ;;  %v9921_v1 = vld [vmem:[%s13576_s12 + $0x3] ss:$0 sm:$0xff] }
0x24c1   :  { %v10744_v46 = vpop.f32.mrf.mxu1 }
0x24c2   :  { %10834 = vrot.lane.b32.xlu0 %v10833_v62, %s13644_s20 }
0x24c3   :  { %v8566_v27 = vpop.f32.mrf.mxu1 }
0x24c4   :  { %v10838_v18 = vpack.i.bf16 %v8566_v27, %v7892_v43  ;;  %v11002_v43 = vld [vmem:[%s13578_s14 + $0xc8] ss:$16 sps:$4 sm:$0xff]  }
0x24c5   :  { %v10754_v29 = vpop.f32.mrf.mxu1 }
0x24c6   :  { %10839 = vrot.lane.b32.xlu1 %v10838_v18, %s13645_s2  ;;  %v9922_v18 = vld [vmem:[%s13577_s13 + $0x3] ss:$0 sm:$0xff] }
0x2530   :  { %v10830_v19 = vpop.permute.xlu1 %10829 }
0x2531   :  { %v10832_v22 = vunpack.i.h.bf16 %v10830_v19  ;;  %v10831_v28 = vunpack.i.l.bf16 %v10830_v19 }
0x2533   :  { %v8582_v61 = vsel %vm306_vm4, %v8071_v38, %v10832_v22  ;;  %v7908_v57 = vsel %vm306_vm4, %v7397_v63, %v10831_v28  ;;  %v10995_v63 = vld [vmem:[%s13578_s14 + $0xe4] ss:$16 sps:$4 sm:$0xff]   ;;  %v11005_v28 = vld [vmem:[%s13580_s16 + $0x378] sm:$0xff]  }
0x2534   :  { %v10835_v0 = vpop.permute.xlu0 %10834  ;;  %8791 = vmatprep.subr.bf16.mxu1 %v10995_v63 }
0x2535   :  { %v10837_v50 = vunpack.i.h.bf16 %v10835_v0  ;;  %v10836_v26 = vunpack.i.l.bf16 %v10835_v0  ;;  %8792 = vmatpush1.bf16.msra.mxu1 %v10993_v52  ;;  %v9931_v52 = vld [vmem:[%s13579_s15 + $0xc] sm:$0xf] }
0x2536   :  { %8793 = vmatprep.subr.bf16.mxu1 %v11001_v9  ;;  %v8719_v63 = vrot.slane %v9931_v52, %v11861_v51 }
0x2537   :  { %v8583_v20 = vsel %vm976_vm5, %v8582_v61, %v10837_v50  ;;  %v7909_v41 = vsel %vm976_vm5, %v7908_v57, %v10836_v26  ;;  %v11006_v50 = vld [vmem:[%s13580_s16 + $0x3f8] sm:$0xff]   ;;  %v11009_v61 = vld [vmem:[%s13580_s16 + $0x370] sm:$0xff]  }
0x2538   :  { %v10840_v60 = vpop.permute.xlu1 %10839  ;;  %v11007_v26 = vld [vmem:[%s13580_s16 + $0x338] sm:$0xff]   ;;  %v11010_v57 = vld [vmem:[%s13580_s16 + $0x3f0] sm:$0xff]  }
0x2539   :  { %v10842_v47 = vunpack.i.h.bf16 %v10840_v60  ;;  %v10841_v5 = vunpack.i.l.bf16 %v10840_v60  ;;  %8794 = vmatpush1.bf16.msra.mxu1 %v10999_v34  ;;  %v11008_v60 = vld [vmem:[%s13580_s16 + $0x3b8] sm:$0xff]   ;;  %v8731_v34 = vrot.slane %v9931_v52, %v11870_v11 }
0x253a   :  { %10327 = vmatprep.subr.bf16.mxu1 %v11005_v28 }
0x253b   :  { %v8584_v24 = vsel %vm978_vm6, %v8583_v20, %v10842_v47  ;;  %v7910_v44 = vsel %vm978_vm6, %v7909_v41, %v10841_v5  ;;  %v11011_v47 = vld [vmem:[%s13580_s16 + $0x330] sm:$0xff]   ;;  %v11013_v20 = vld [vmem:[%s13580_s16 + $0x368] sm:$0xff]  }
0x253c   :  { %v8585_v37 = vpack.c.bf16 %v8584_v24, %v7910_v44  ;;  %v11012_v5 = vld [vmem:[%s13580_s16 + $0x3b0] sm:$0xff]   ;;  %v11014_v41 = vld [vmem:[%s13580_s16 + $0x3e8] sm:$0xff]  }
0x253d   :  { %v11015_v24 = vld [vmem:[%s13580_s16 + $0x328] sm:$0xff]  }
0x253e   :  { %10760 = vmatmul.mubr.msk.bf16.vlgmr.msra.gmra.mxu0 %vm73_vm0, %v8585_v37  ;;  %v11016_v44 = vld [vmem:[%s13580_s16 + $0x3a8] sm:$0xff]   ;;  %v11017_v37 = vld [vmem:[%s13580_s16 + $0x360] sm:$0xff]  }
0x253f   :  { %8854 = vmatprep.mubr.bf16.mxu0 %v11367_v16  ;;  %8835 = vmatpush1.bf16.msra.mxu0 %v10996_v35  ;;  %v8727_v35 = vrot.slane %v9931_v52, %v11863_v8 }
0x2540   :  { %8836 = vmatprep.subr.bf16.mxu0 %v11004_v30  ;;  %v8723_v30 = vrot.slane %v9931_v52, %v11868_v10 }
0x2543   :  { %8837 = vmatpush1.bf16.msra.mxu0 %v11002_v43 }
0x2544   :  { %10349 = vmatprep.subr.bf16.mxu0 %v11006_v50 }
0x25fe   :  { %v8648_v6 = vpop.f32.mrf.mxu0 }
0x25ff   :  { %v8649_v17 = vadd.f32 %v9915_v53, %v8648_v6  ;;  %v11019_v6 = vld [vmem:[%s13580_s16 + $0x320] sm:$0xff]  }
0x2600   :  { %v10761_v4 = vpop.f32.mrf.mxu0 }
0x2601   :  { %v13261_v55 = vadd.f32 %v8649_v17, %v13050_v25  ;;  %v11020_v17 = vld [vmem:[%s13580_s16 + $0x3a0] sm:$0xff]   ;;  %v11021_v4 = vld [vmem:[%s13580_s16 + $0x358] sm:$0xff]  }
0x2602   :  { %v8651_v36 = vpop.f32.mrf.mxu0 }
0x2603   :  { %v8652_v39 = vadd.f32 %v9915_v53, %v8651_v36  ;;  %v8661_v42 = vsel %vm73_vm0, %v13261_v55, 0.0  ;;  %v11018_v53 = vld [vmem:[%s13580_s16 + $0x3e0] sm:$0xff]   ;;  %v11022_v36 = vld [vmem:[%s13580_s16 + $0x3d8] sm:$0xff]  }
0x2604   :  { %8662 = vadd.xlane.f32.xlu0 %v8661_v42  ;;  %v10762_v21 = vpop.f32.mrf.mxu0  ;;  %v11024_v42 = vld [vmem:[%s13580_s16 + $0x398] sm:$0xff]  }
0x2605   :  { %v13266_v13 = vadd.f32 %v8652_v39, %v13055_v14  ;;  %v11023_v39 = vld [vmem:[%s13580_s16 + $0x318] sm:$0xff]   ;;  %v11025_v21 = vld [vmem:[%s13580_s16 + $0x350] sm:$0xff]  }
0x2607   :  { %v8664_v16 = vsel %vm73_vm0, %v13266_v13, 0.0 }
0x2608   :  { %8665 = vadd.xlane.f32.xlu1 %v8664_v16  ;;  %v11026_v16 = vld [vmem:[%s13580_s16 + $0x3d0] sm:$0xff]  }
0x268d   :  { %v8663_v33 = vpop.xlane.xlu0 %8662 }
0x268e   :  { %v8667_v12 = vmul.f32 0.03125, %v8663_v33  ;;  %v11027_v33 = vld [vmem:[%s13580_s16 + $0x310] sm:$0xff]  }
0x2690   :  { %v8669_v15 = vsub.f32 %v13261_v55, %v8667_v12  ;;  %v11028_v12 = vld [vmem:[%s13580_s16 + $0x390] sm:$0xff]  }
0x2691   :  { %v8666_v25 = vpop.xlane.xlu1 %8665 }
0x2692   :  { %v8668_v2 = vmul.f32 0.03125, %v8666_v25  ;;  %v8671_v48 = vmul.f32 %v8669_v15, %v8669_v15  ;;  %v11030_v25 = vld [vmem:[%s13580_s16 + $0x3c8] sm:$0xff]  }
0x2694   :  { %v8670_v32 = vsub.f32 %v13266_v13, %v8668_v2  ;;  %v8673_v31 = vsel %vm73_vm0, %v8671_v48, 0.0  ;;  %v11031_v2 = vld [vmem:[%s13580_s16 + $0x308] sm:$0xff]  }
0x2695   :  { %8674 = vadd.xlane.f32.xlu0 %v8673_v31  ;;  %v11032_v48 = vld [vmem:[%s13580_s16 + $0x388] sm:$0xff]   ;;  %v11034_v31 = vld [vmem:[%s13580_s16 + $0x3c0] sm:$0xff]  }
0x2696   :  { %v8672_v23 = vmul.f32 %v8670_v32, %v8670_v32 }
0x2698   :  { %v8676_v14 = vsel %vm73_vm0, %v8672_v23, 0.0  ;;  %v11035_v23 = vld [vmem:[%s13580_s16 + $0x300] sm:$0xff]  }
0x2699   :  { %8677 = vadd.xlane.f32.xlu0 %v8676_v14  ;;  %v11036_v14 = vld [vmem:[%s13580_s16 + $0x380] sm:$0xff]  }
0x271e   :  { %v8675_v58 = vpop.xlane.xlu0 %8674 }
0x271f   :  { %v8679_v38 = vmul.f32 0.03125, %v8675_v58 }
0x2721   :  { %v8681_v56 = vadd.f32 1e-05, %v8679_v38 }
0x2722   :  { %v8678_v54 = vpop.xlane.xlu0 %8677 }
0x2723   :  { %11293 = vrsqrt.f32 %v8681_v56  ;;  %v8680_v59 = vmul.f32 0.03125, %v8678_v54 }
0x2725   :  { %v8682_v40 = vadd.f32 1e-05, %v8680_v59 }
0x2727   :  { %11295 = vrsqrt.f32 %v8682_v40 }
0x2730   :  { %v11294_v7 = vpop.eup %11293 }
0x2731   :  { %v8685_v49 = vmul.f32 %v11294_v7, %v8669_v15  ;;  %v11029_v15 = vld [vmem:[%s13580_s16 + $0x348] sm:$0xff]  }
0x2733   :  { %v8693_v27 = vmul.f32 %v9921_v1, %v8685_v49 }
0x2734   :  { %v11296_v62 = vpop.eup %11295 }
0x2735   :  { %v8686_v46 = vmul.f32 %v11296_v62, %v8670_v32  ;;  %v8701_v19 = vadd.f32 %v9922_v18, %v8693_v27  ;;  %v11033_v32 = vld [vmem:[%s13580_s16 + $0x340] sm:$0xff]  }
0x2737   :  { %v8694_v29 = vmul.f32 %v9921_v1, %v8686_v46 }
0x2739   :  { %v8702_v0 = vadd.f32 %v9922_v18, %v8694_v29 }
0x273b   :  { %v8703_v22 = vpack.c.bf16 %v8702_v0, %v8701_v19 }
0x273d   :  { %9940 = vmatmul.mubr.msk.bf16.vlgmr.msra.gmra.mxu1 %vm73_vm0, %v8703_v22  ;;  %9941 = vmatmul.mubr.msk.bf16.vlgmr.msra.gmra.mxu0 %vm73_vm0, %v8703_v22 }
0x273e   :  { %10328 = vmatpush3.bf16.msra.mxu1 %v11007_v26  ;;  %10350 = vmatpush3.bf16.msra.mxu0 %v11008_v60 }
0x273f   :  { %10329 = vmatprep.subr.bf16.mxu1 %v11009_v61  ;;  %10351 = vmatprep.subr.bf16.mxu0 %v11010_v57 }
0x2742   :  { %10330 = vmatpush3.bf16.msra.mxu1 %v11011_v47  ;;  %10352 = vmatpush3.bf16.msra.mxu0 %v11012_v5 }
0x2743   :  { %10331 = vmatprep.subr.bf16.mxu1 %v11013_v20  ;;  %10353 = vmatprep.subr.bf16.mxu0 %v11014_v41 }
0x2746   :  { %10332 = vmatpush3.bf16.msra.mxu1 %v11015_v24  ;;  %10354 = vmatpush3.bf16.msra.mxu0 %v11016_v44 }
0x2747   :  { %10333 = vmatprep.subr.bf16.mxu1 %v11017_v37  ;;  %10355 = vmatprep.subr.bf16.mxu0 %v11018_v53 }
0x274a   :  { %10334 = vmatpush3.bf16.msra.mxu1 %v11019_v6  ;;  %10356 = vmatpush3.bf16.msra.mxu0 %v11020_v17 }
0x274b   :  { %10335 = vmatprep.subr.bf16.mxu1 %v11021_v4  ;;  %10357 = vmatprep.subr.bf16.mxu0 %v11022_v36 }
0x274e   :  { %10336 = vmatpush3.bf16.msra.mxu1 %v11023_v39  ;;  %10358 = vmatpush3.bf16.msra.mxu0 %v11024_v42 }
0x274f   :  { %10337 = vmatprep.subr.bf16.mxu1 %v11025_v21  ;;  %10359 = vmatprep.subr.bf16.mxu0 %v11026_v16 }
0x2752   :  { %10338 = vmatpush3.bf16.msra.mxu1 %v11027_v33  ;;  %10360 = vmatpush3.bf16.msra.mxu0 %v11028_v12 }
0x2753   :  { %10339 = vmatprep.subr.bf16.mxu1 %v11029_v15  ;;  %10361 = vmatprep.subr.bf16.mxu0 %v11030_v25 }
0x2756   :  { %10340 = vmatpush3.bf16.msra.mxu1 %v11031_v2  ;;  %10362 = vmatpush3.bf16.msra.mxu0 %v11032_v48 }
0x2757   :  { %10341 = vmatprep.subr.bf16.mxu1 %v11033_v32  ;;  %10363 = vmatprep.subr.bf16.mxu0 %v11034_v31 }
0x275a   :  { %10342 = vmatpush3.bf16.msra.mxu1 %v11035_v23  ;;  %10364 = vmatpush3.bf16.msra.mxu0 %v11036_v14 }
0x27fd   :  { %v8813_v3 = vpop.f32.mrf.mxu1  ;;  %v8856_v9 = vpop.f32.mrf.mxu0 }
0x27fe   :  { %v13409_v43 = vadd.f32 %v8813_v3, %v8719_v63  ;;  %v13411_v58 = vadd.f32 %v8856_v9, %v8727_v35 }
0x27ff   :  { %v8815_v38 = vpop.f32.mrf.mxu1  ;;  %v8858_v56 = vpop.f32.mrf.mxu0 }
0x2800   :  { %v13414_v54 = vmul.f32 0.70710677, %v13409_v43  ;;  %v13417_v59 = vmul.f32 0.70710677, %v13411_v58  ;;  %v13419_v51 = vadd.f32 %v8815_v38, %v8723_v30  ;;  %v13421_v8 = vadd.f32 %v8858_v56, %v8731_v34 }
0x2801   :  { %v8817_v7 = vpop.f32.mrf.mxu1  ;;  %v8860_v19 = vpop.f32.mrf.mxu0 }
0x2802   :  { %v8897_v10 = vand.u32 2147483647, %v13414_v54  ;;  %v13425_v11 = vand.u32 2147483647, %v13417_v59  ;;  %v13428_v40 = vmul.f32 0.70710677, %v13419_v51  ;;  %v13436_v50 = vadd.f32 %v8817_v7, %v8719_v63 }
0x2803   :  { %v13433_v46 = vmul.f32 0.70710677, %v13421_v8  ;;  %v8819_v0 = vpop.f32.mrf.mxu1  ;;  %v13438_v26 = vadd.f32 %v8860_v19, %v8727_v35  ;;  %v8862_v24 = vpop.f32.mrf.mxu0  ;;  %vm8881_vm3 = vcmp.ge.f32.partialorder %v13414_v54, 0.0  ;;  %vm8883_vm5 = vcmp.ge.f32.partialorder %v13417_v59, 0.0 }
0x2804   :  { %v8905_v49 = vmul.f32 0.3275911, %v8897_v10  ;;  %v8907_v1 = vmul.f32 0.3275911, %v13425_v11  ;;  %v8898_v62 = vand.u32 2147483647, %v13428_v40  ;;  %v13440_v60 = vadd.f32 %v8819_v0, %v8723_v30 }
0x2805   :  { %v8900_v28 = vand.u32 2147483647, %v13433_v46  ;;  %v13443_v57 = vmul.f32 0.70710677, %v13436_v50  ;;  %v13446_v5 = vmul.f32 0.70710677, %v13438_v26  ;;  %v13454_v6 = vadd.f32 %v8862_v24, %v8731_v34 }
0x2806   :  { %v8913_v27 = vadd.f32 1.0, %v8905_v49  ;;  %v8915_v18 = vadd.f32 1.0, %v8907_v1  ;;  %v8906_v29 = vmul.f32 0.3275911, %v8898_v62  ;;  %v13450_v41 = vmul.f32 0.70710677, %v13440_v60 }
0x2807   :  { %v8908_v61 = vmul.f32 0.3275911, %v8900_v28  ;;  %v8901_v20 = vand.u32 2147483647, %v13443_v57  ;;  %v8903_v37 = vand.u32 2147483647, %v13446_v5 }
0x2808   :  { %11297 = vrcp.f32 %v8913_v27  ;;  %v8914_v22 = vadd.f32 1.0, %v8906_v29  ;;  %v8902_v53 = vand.u32 2147483647, %v13450_v41  ;;  %v9009_v21 = vsub.f32 0.0, %v8897_v10 }
0x2809   :  { %11299 = vrcp.f32 %v8915_v18  ;;  %v8916_v47 = vadd.f32 1.0, %v8908_v61  ;;  %v8909_v44 = vmul.f32 0.3275911, %v8901_v20  ;;  %v8911_v4 = vmul.f32 0.3275911, %v8903_v37 }
0x280a   :  { %11301 = vrcp.f32 %v8914_v22  ;;  %v8910_v36 = vmul.f32 0.3275911, %v8902_v53  ;;  %v13459_v33 = vmul.f32 0.70710677, %v13454_v6  ;;  %v9010_v2 = vsub.f32 0.0, %v8898_v62 }
0x280b   :  { %11303 = vrcp.f32 %v8916_v47  ;;  %v8917_v17 = vadd.f32 1.0, %v8909_v44  ;;  %v8919_v39 = vadd.f32 1.0, %v8911_v4  ;;  %v9013_v32 = vsub.f32 0.0, %v8901_v20 }
0x280c   :  { %v8918_v16 = vadd.f32 1.0, %v8910_v36  ;;  %v13466_v31 = vand.u32 2147483647, %v13459_v33  ;;  %v9017_v14 = vmul.f32 %v9009_v21, %v8897_v10  ;;  %v9011_v30 = vsub.f32 0.0, %v13425_v11 }
0x280d   :  { %11305 = vrcp.f32 %v8917_v17  ;;  %v9018_v34 = vmul.f32 %v9010_v2, %v8898_v62  ;;  %v9012_v38 = vsub.f32 0.0, %v8900_v28  ;;  %v9021_v1 = vmul.f32 %v9013_v32, %v8901_v20 }
0x280e   :  { %11307 = vrcp.f32 %v8919_v39  ;;  %v8912_v3 = vmul.f32 0.3275911, %v13466_v31  ;;  %v9025_v27 = vmul.f32 1.442695, %v9017_v14  ;;  %v9015_v29 = vsub.f32 0.0, %v8903_v37 }
0x280f   :  { %11309 = vrcp.f32 %v8918_v16  ;;  %v9014_v19 = vsub.f32 0.0, %v8902_v53  ;;  %v9019_v62 = vmul.f32 %v9011_v30, %v13425_v11  ;;  %v9027_v47 = vmul.f32 1.442695, %v9018_v34 }
0x2810   :  { %v8920_v10 = vadd.f32 1.0, %v8912_v3  ;;  %v9020_v44 = vmul.f32 %v9012_v38, %v8900_v28  ;;  %v9033_v4 = vmul.f32 1.442695, %v9021_v1  ;;  %v9023_v39 = vmul.f32 %v9015_v29, %v8903_v37 }
0x2811   :  { %v9022_v21 = vmul.f32 %v9014_v19, %v8902_v53  ;;  %v9029_v11 = vmul.f32 1.442695, %v9019_v62  ;;  %vm8882_vm4 = vcmp.ge.f32.partialorder %v13428_v40, 0.0  ;;  %vm8885_vm6 = vcmp.ge.f32.partialorder %v13443_v57, 0.0 }
0x2812   :  { %11311 = vrcp.f32 %v8920_v10  ;;  %v9031_v28 = vmul.f32 1.442695, %v9020_v44  ;;  %v8893_v57 = vsel %vm8885_vm6, 1.0, %v11368_v45  ;;  %vm8884_vm9 = vcmp.ge.f32.partialorder %v13433_v46, 0.0 }
0x2813   :  { %11313 = vpow2.f32 %v9025_v27  ;;  %v9035_v3 = vmul.f32 1.442695, %v9022_v21  ;;  %vm8887_vm10 = vcmp.ge.f32.partialorder %v13446_v5, 0.0  ;;  %vm8886_vm11 = vcmp.ge.f32.partialorder %v13450_v41, 0.0 }
0x2814   :  { %11315 = vpow2.f32 %v9027_v47  ;;  %v8892_v46 = vsel %vm8884_vm9, 1.0, %v11368_v45  ;;  %v8895_v5 = vsel %vm8887_vm10, 1.0, %v11368_v45  ;;  %vm8888_vm12 = vcmp.ge.f32.partialorder %v13459_v33, 0.0 }
0x2815   :  { %v13456_v42 = vpop.eup %11297  ;;  %11317 = vpow2.f32 %v9033_v4 }
0x2816   :  { %v13461_v12 = vpop.eup %11299  ;;  %v8937_v15 = vmul.f32 1.0614054, %v13456_v42  ;;  %11319 = vpow2.f32 %v9029_v11 }
0x2817   :  { %v8939_v25 = vmul.f32 1.0614054, %v13461_v12  ;;  %v13468_v23 = vpop.eup %11301  ;;  %11321 = vpow2.f32 %v9031_v28 }
0x2818   :  { %v8945_v48 = vadd.f32 -1.4531521, %v8937_v15  ;;  %v8938_v35 = vmul.f32 1.0614054, %v13468_v23  ;;  %v13475_v56 = vpop.eup %11303 }
0x2819   :  { %v8947_v52 = vadd.f32 -1.4531521, %v8939_v25  ;;  %v8940_v18 = vmul.f32 1.0614054, %v13475_v56 }
0x281a   :  { %v8953_v63 = vmul.f32 %v13456_v42, %v8945_v48  ;;  %v8946_v49 = vadd.f32 -1.4531521, %v8938_v35  ;;  %v13481_v20 = vpop.eup %11305  ;;  %v9037_v35 = vmul.f32 1.442695, %v9023_v39 }
0x281b   :  { %v8955_v9 = vmul.f32 %v13461_v12, %v8947_v52  ;;  %v8948_v24 = vadd.f32 -1.4531521, %v8940_v18  ;;  %v8941_v2 = vmul.f32 1.0614054, %v13481_v20  ;;  %v13487_v32 = vpop.eup %11307 }
0x281c   :  { %v8961_v7 = vadd.f32 1.4214138, %v8953_v63  ;;  %v8954_v61 = vmul.f32 %v13468_v23, %v8946_v49  ;;  %v9016_v63 = vsub.f32 0.0, %v13466_v31  ;;  %v8943_v53 = vmul.f32 1.0614054, %v13487_v32 }
0x281d   :  { %v8963_v22 = vadd.f32 1.4214138, %v8955_v9  ;;  %v8956_v36 = vmul.f32 %v13475_v56, %v8948_v24  ;;  %v8949_v52 = vadd.f32 -1.4531521, %v8941_v2  ;;  %v13492_v9 = vpop.eup %11309  ;;  %11323 = vpow2.f32 %v9037_v35 }
0x281e   :  { %v8969_v0 = vmul.f32 %v13456_v42, %v8961_v7  ;;  %v8962_v17 = vadd.f32 1.4214138, %v8954_v61  ;;  %v8951_v1 = vadd.f32 -1.4531521, %v8943_v53  ;;  %v8942_v10 = vmul.f32 1.0614054, %v13492_v9 }
0x281f   :  { %v8971_v15 = vmul.f32 %v13461_v12, %v8963_v22  ;;  %v8964_v48 = vadd.f32 1.4214138, %v8956_v36  ;;  %v8957_v7 = vmul.f32 %v13481_v20, %v8949_v52  ;;  %v9024_v18 = vmul.f32 %v9016_v63, %v13466_v31  ;;  %v13502_v47 = vpop.eup %11311 }
0x2820   :  { %v8977_v16 = vadd.f32 -0.28449672, %v8969_v0  ;;  %v8970_v25 = vmul.f32 %v13468_v23, %v8962_v17  ;;  %v8959_v19 = vmul.f32 %v13487_v32, %v8951_v1  ;;  %v8950_v0 = vadd.f32 -1.4531521, %v8942_v10 }
0x2821   :  { %v8972_v37 = vmul.f32 %v13475_v56, %v8964_v48  ;;  %v8979_v34 = vadd.f32 -0.28449672, %v8971_v15  ;;  %v8965_v27 = vadd.f32 1.4214138, %v8957_v7  ;;  %11325 = vpow2.f32 %v9035_v3  ;;  %v11314_v15 = vpop.eup %11313 }
0x2822   :  { %v8978_v14 = vadd.f32 -0.28449672, %v8970_v25  ;;  %v8985_v30 = vmul.f32 %v13456_v42, %v8977_v16  ;;  %v8967_v44 = vadd.f32 1.4214138, %v8959_v19  ;;  %v8958_v17 = vmul.f32 %v13492_v9, %v8950_v0  ;;  %v11316_v63 = vpop.eup %11315 }
0x2823   :  { %v8980_v49 = vadd.f32 -0.28449672, %v8972_v37  ;;  %v8973_v62 = vmul.f32 %v13481_v20, %v8965_v27  ;;  %v8987_v24 = vmul.f32 %v13461_v12, %v8979_v34  ;;  %v8944_v31 = vmul.f32 1.0614054, %v13502_v47  ;;  %v11318_v53 = vpop.eup %11317 }
0x2824   :  { %v8986_v38 = vmul.f32 %v13468_v23, %v8978_v14  ;;  %v8993_v22 = vadd.f32 0.2548296, %v8985_v30  ;;  %v9039_v36 = vmul.f32 1.442695, %v9024_v18  ;;  %v8975_v21 = vmul.f32 %v13487_v32, %v8967_v44  ;;  %v11320_v27 = vpop.eup %11319 }
0x2825   :  { %v8988_v61 = vmul.f32 %v13475_v56, %v8980_v49  ;;  %v8981_v4 = vadd.f32 -0.28449672, %v8973_v62  ;;  %v8966_v16 = vadd.f32 1.4214138, %v8958_v17  ;;  %v8952_v48 = vadd.f32 -1.4531521, %v8944_v31  ;;  %v11322_v19 = vpop.eup %11321 }
0x2826   :  { %v8994_v29 = vadd.f32 0.2548296, %v8986_v38  ;;  %v9001_v25 = vmul.f32 %v13456_v42, %v8993_v22  ;;  %v8995_v28 = vadd.f32 0.2548296, %v8987_v24  ;;  %v8983_v14 = vadd.f32 -0.28449672, %v8975_v21 }
0x2827   :  { %v8996_v2 = vadd.f32 0.2548296, %v8988_v61  ;;  %v8989_v11 = vmul.f32 %v13481_v20, %v8981_v4  ;;  %v8974_v52 = vmul.f32 %v13492_v9, %v8966_v16  ;;  %11327 = vpow2.f32 %v9039_v36 }
0x2828   :  { %v9002_v39 = vmul.f32 %v13468_v23, %v8994_v29  ;;  %v8960_v23 = vmul.f32 %v13502_v47, %v8952_v48  ;;  %v8991_v42 = vmul.f32 %v13487_v32, %v8983_v14  ;;  %v9041_v30 = vmul.f32 %v11314_v15, %v9001_v25 }
0x2829   :  { %v8997_v37 = vadd.f32 0.2548296, %v8989_v11  ;;  %v8982_v3 = vadd.f32 -0.28449672, %v8974_v52  ;;  %v9004_v34 = vmul.f32 %v13475_v56, %v8996_v2  ;;  %v9003_v49 = vmul.f32 %v13461_v12, %v8995_v28 }
0x282a   :  { %v9042_v35 = vmul.f32 %v11316_v63, %v9002_v39  ;;  %v8968_v7 = vadd.f32 1.4214138, %v8960_v23  ;;  %v8999_v1 = vadd.f32 0.2548296, %v8991_v42  ;;  %v8889_v18 = vsel %vm8881_vm3, 1.0, %v11368_v45  ;;  %v11324_v61 = vpop.eup %11323 }
0x282b   :  { %v9005_v38 = vmul.f32 %v13481_v20, %v8997_v37  ;;  %v8990_v10 = vmul.f32 %v13492_v9, %v8982_v3  ;;  %v8890_v20 = vsel %vm8882_vm4, 1.0, %v11368_v45  ;;  %v9049_v62 = vsub.f32 1.0, %v9041_v30 }
0x282c   :  { %v8976_v56 = vmul.f32 %v13502_v47, %v8968_v7  ;;  %v9050_v0 = vsub.f32 1.0, %v9042_v35  ;;  %v9007_v12 = vmul.f32 %v13487_v32, %v8999_v1  ;;  %v9044_v24 = vmul.f32 %v11322_v19, %v9004_v34 }
0x282d   :  { %v9045_v29 = vmul.f32 %v11318_v53, %v9005_v38  ;;  %v8998_v22 = vadd.f32 0.2548296, %v8990_v10  ;;  %v9043_v17 = vmul.f32 %v11320_v27, %v9003_v49  ;;  %v9057_v15 = vmul.f32 %v9049_v62, %v8889_v18 }
0x282e   :  { %v8984_v54 = vadd.f32 -0.28449672, %v8976_v56  ;;  %v9047_v4 = vmul.f32 %v11324_v61, %v9007_v12  ;;  %v11326_v36 = vpop.eup %11325  ;;  %v9058_v39 = vmul.f32 %v9050_v0, %v8890_v20  ;;  %v9052_v25 = vsub.f32 1.0, %v9044_v24 }
0x282f   :  { %v9053_v44 = vsub.f32 1.0, %v9045_v29  ;;  %v9006_v31 = vmul.f32 %v13492_v9, %v8998_v22  ;;  %v8891_v9 = vsel %vm8883_vm5, 1.0, %v11368_v45  ;;  %v9051_v11 = vsub.f32 1.0, %v9043_v17 }
0x2830   :  { %v8992_v32 = vmul.f32 %v13502_v47, %v8984_v54  ;;  %v9055_v21 = vsub.f32 1.0, %v9047_v4  ;;  %v8894_v14 = vsel %vm8886_vm11, 1.0, %v11368_v45  ;;  %v9066_v63 = vadd.f32 1.0, %v9058_v39 }
0x2831   :  { %v9061_v40 = vmul.f32 %v9053_v44, %v8893_v57  ;;  %v9046_v16 = vmul.f32 %v11326_v36, %v9006_v31  ;;  %v8869_v37 = vmul.f32 0.5, %v13436_v50  ;;  %v9065_v35 = vadd.f32 1.0, %v9057_v15 }
0x2832   :  { %v9000_v2 = vadd.f32 0.2548296, %v8992_v32  ;;  %v9063_v23 = vmul.f32 %v9055_v21, %v8895_v5  ;;  %v9060_v59 = vmul.f32 %v9052_v25, %v8892_v46  ;;  %v9059_v3 = vmul.f32 %v9051_v11, %v8891_v9 }
0x2833   :  { %v9054_v48 = vsub.f32 1.0, %v9046_v16  ;;  %v9069_v28 = vadd.f32 1.0, %v9061_v40  ;;  %v8866_v30 = vmul.f32 0.5, %v13419_v51  ;;  %v8870_v34 = vmul.f32 0.5, %v13440_v60 }
0x2834   :  { %v9008_v52 = vmul.f32 %v13502_v47, %v9000_v2  ;;  %v11328_v41 = vpop.eup %11327  ;;  %v8865_v7 = vmul.f32 0.5, %v13409_v43  ;;  %v9071_v10 = vadd.f32 1.0, %v9063_v23  ;;  %v8896_v27 = vsel %vm8888_vm12, 1.0, %v11368_v45 }
0x2835   :  { %v9062_v53 = vmul.f32 %v9054_v48, %v8894_v14  ;;  %v9077_v47 = vmul.f32 %v9069_v28, %v8869_v37  ;;  %v9074_v1 = vmul.f32 %v9066_v63, %v8866_v30  ;;  %v9068_v29 = vadd.f32 1.0, %v9060_v59 }
0x2836   :  { %v9048_v42 = vmul.f32 %v11328_v41, %v9008_v52  ;;  %v9073_v18 = vmul.f32 %v9065_v35, %v8865_v7  ;;  %v9067_v33 = vadd.f32 1.0, %v9059_v3  ;;  %v8871_v19 = vmul.f32 0.5, %v13438_v26 }
0x2837   :  { %v9070_v38 = vadd.f32 1.0, %v9062_v53  ;;  %v8868_v51 = vmul.f32 0.5, %v13421_v8  ;;  %v8872_v0 = vmul.f32 0.5, %v13454_v6  ;;  %v8867_v12 = vmul.f32 0.5, %v13411_v58  ;;  %v10007_v8 = vld [vmem:[%s13581_s17 + $0x3] ss:$0 sm:$0xff] }
0x2838   :  { %v9056_v49 = vsub.f32 1.0, %v9048_v42  ;;  %v9081_v60 = vpack.c.bf16 %v9077_v47, %v9073_v18  ;;  %v9079_v22 = vmul.f32 %v9071_v10, %v8871_v19  ;;  %s11329_s17 = scalar_lea.vmem %s9442_s18, 256 }
0x2839   :  { %v9078_v50 = vmul.f32 %v9070_v38, %v8870_v34  ;;  %v9076_v61 = vmul.f32 %v9068_v29, %v8868_v51  ;;  %v9075_v45 = vmul.f32 %v9067_v33, %v8867_v12  ;;  %p11330_p0 = scmp.ne.s32.totalorder %s9442_s18, %s11329_s17  ;;  %p11335_p2 = scmp.lt.s32.totalorder %s11329_s17, %s11329_s17 }
0x283a   :  { %v9064_v56 = vmul.f32 %v9056_v49, %v8896_v27 }
0x283b   :  { %v9082_v20 = vpack.c.bf16 %v9078_v50, %v9074_v1  ;;  %v9083_v44 = vpack.c.bf16 %v9079_v22, %v9075_v45  ;;  %p11336_p3 = por %p11335_p2, %p11334_p1 }
0x283c   :  { %v9072_v43 = vadd.f32 1.0, %v9064_v56 }
0x283d   :  { %9382 = vmatprep.mubr.bf16.mxu1 %v9082_v20  ;;  %p11337_p4 = pnand %p11336_p3, %p11330_p0 }
0x283e   :  { %v9080_v62 = vmul.f32 %v9072_v43, %v8872_v0  ;;  %9383 = vmatmul.mubr.bf16.vlgmr.msra.gmra.mxu1 %v9081_v60 }
0x2840   :  { %v9084_v24 = vpack.c.bf16 %v9080_v62, %v9076_v61 }
0x2842   :  { %9423 = vmatprep.mubr.bf16.mxu0 %v9084_v24 }
0x2843   :  { %9424 = vmatmul.mubr.bf16.vlgmr.msra.gmra.mxu0 %v9083_v44 }
0x28fe   :  { %v10343_v26 = vpop.f32.mrf.mxu1 }
0x2900   :  { %v10344_v54 = vpop.f32.mrf.mxu1 }
0x2901   :  { %v10345_v6 = vadd.f32 %v10344_v54, %v10343_v26 }
0x2902   :  { %v10346_v17 = vpop.f32.mrf.mxu1 }
0x2903   :  { %v10365_v57 = vpop.f32.mrf.mxu0  ;;  %v9385_v58 = vadd.f32 %v10345_v6, %v10007_v8 }
0x2904   :  { %v10347_v4 = vpop.f32.mrf.mxu1 }
0x2905   :  { %v10366_v31 = vpop.f32.mrf.mxu0  ;;  %v10348_v36 = vadd.f32 %v10347_v4, %v10346_v17 }
0x2906   :  { %v10367_v40 = vadd.f32 %v10366_v31, %v10365_v57 }
0x2907   :  { %v10368_v32 = vpop.f32.mrf.mxu0  ;;  %v9388_v21 = vadd.f32 %v10348_v36, %v10007_v8 }
0x2908   :  { %v9426_v39 = vadd.f32 %v10367_v40, %v9385_v58 }
0x2909   :  { %v10369_v16 = vpop.f32.mrf.mxu0 }
0x290a   :  { %v9432_v15 = vadd.f32 %v9426_v39, %v13261_v55  ;;  %v10370_v25 = vadd.f32 %v10369_v16, %v10368_v32 }
0x290c   :  { %9434 = vst.msk [vmem:[#allocation2] sm:$0xff] %vm73_vm0, %v9432_v15  ;;  %v9429_v2 = vadd.f32 %v10370_v25, %v9388_v21 }
0x290e   :  { %v9433_v9 = vadd.f32 %v9429_v2, %v13266_v13 }
0x2910   :  { %9435 = vst.msk [vmem:[#allocation2 + $0x8] sm:$0xff] %vm73_vm0, %v9433_v9 }
0x2911   :  { %11340 = shalt.err (!%p11337_p4)
}
0x2912   :  { %s11370_s11 = smov 128   ;;  %s13647_s24 = sld [smem:[#allocation10_spill]] }
0x2918   :  { %9447 = dma.vmem_to_hbm [thread:$0]  %s9442_s18, 256, %s13647_s24, [#allocation3], %s11370_s11, %s11370_s11, %s13643_s1  }
0x2919   :  { %11349 = dma.done.wait [#allocation3], 256  }
0x291a   :  { %11350 = vsyncadd [#allocation3], 4294967040 }
0x291b   :  { %9451 = vsyncpa [#allocation3], 1 }

</bundles_post_ra>
